<compile_context>
chip_gen: v5e
topology: v5e:2x2
jax: 0.10.0
libtpu: 0.0.40
codegen_flags: <defaults>
</compile_context>

<pallas_src>
import functools

import jax
import jax.numpy as jnp
from jax.experimental import pallas as pl
from jax.experimental.pallas import tpu as pltpu


# ----------------------------------------------------------------------------
# Kernel
# ----------------------------------------------------------------------------
def _conv_block_kernel(x_ref, w1_ref, b1_ref, w2_ref, b2_ref, o_ref, h_ref,
                       *, th, wd, cin, cout, slope):
    """Fused ConvBlock row-tile.

    x_ref : (H+4, W+4, Cin)        zero-padded input image (bf16), resident per batch
    w1_ref: (9*Cin, Cout)          packed conv1 weights (bf16)
    w2_ref: (9*Cout + Cin, Cout)   packed conv2 weights + residual projection (bf16)
    b*_ref: (1, Cout)              biases (f32)
    o_ref : (TH*W, Cout)           output tile, row-major over (row, col) (bf16)
    h_ref : (TH+2, W+2, Cout)      VMEM scratch: conv1 activations + zero border (bf16)
    """
    i = pl.program_id(1)
    n_tiles = pl.num_programs(1)
    r0 = pl.multiple_of(i * th, th)            # first image row of this tile

    # ---------------- Stage 1: conv1 + bias + LeakyReLU -----------------------
    # K-fused im2col over the (TH+2, W) halo grid: one MXU dot, M=(TH+2)*W,
    # K=9*Cin.  Tap (dy,dx) for h-row t (image row r0-1+t), col u reads
    # x_pad[r0+t+dy, u+1+dx, :].
    taps1 = [x_ref[pl.ds(r0 + dy, th + 2), 1 + dx:1 + dx + wd, :]
             for dy in range(3) for dx in range(3)]
    lhs1 = jnp.concatenate(taps1, axis=-1).reshape((th + 2) * wd, 9 * cin)
    h = jnp.dot(lhs1, w1_ref[...], preferred_element_type=jnp.float32)
    h = h + b1_ref[...]
    h = jnp.where(h >= 0.0, h, slope * h)                     # LeakyReLU(0.01)
    h3 = h.reshape(th + 2, wd, cout)

    # Halo rows -1 / H exist only off-image: they are conv2's zero padding.
    tix = jax.lax.broadcasted_iota(jnp.int32, (th + 2, 1, 1), 0)
    keep = ((tix != 0) | (i != 0)) & ((tix != th + 1) | (i != n_tiles - 1))
    h3 = jnp.where(keep, h3, 0.0).astype(jnp.bfloat16)

    # Zero border columns (conv2's zero padding at cols -1 / W), written once
    # per tile together with the interior.
    zc = jnp.zeros((th + 2, 1, cout), jnp.bfloat16)
    h_ref[...] = jnp.concatenate([zc, h3, zc], axis=1)

    # -------- Stage 2: conv2 + truncated residual + bias + LeakyReLU ----------
    # One MXU dot, M=TH*W, K=9*Cout + Cin (residual rides as the last Cin
    # contraction rows, multiplied by the 0/1 projection packed into w2_ref).
    taps2 = [h_ref[dy:dy + th, dx:dx + wd, :]
             for dy in range(3) for dx in range(3)]
    taps2.append(x_ref[pl.ds(r0 + 2, th), 2:2 + wd, :])       # residual source
    lhs2 = jnp.concatenate(taps2, axis=-1).reshape(th * wd, 9 * cout + cin)
    y = jnp.dot(lhs2, w2_ref[...], preferred_element_type=jnp.float32)
    y = y + b2_ref[...]
    o_ref[...] = jnp.where(y >= 0.0, y, slope * y).astype(o_ref.dtype)


# ----------------------------------------------------------------------------
# Weight packing (one-time, OUTSIDE the jitted forward)
# ----------------------------------------------------------------------------
def pack_conv_block_params(w1, b1, w2, b2):
    """PyTorch-layout (Cout, Cin, 3, 3) -> K-fused (9*Cin, Cout) bf16 packs.

    conv2 additionally gets the truncated-channel residual projection appended
    as Cin extra contraction rows: rows (i, i) are 1 for i < min(Cin, Cout).
    """
    cin = w1.shape[1]
    cout = w1.shape[0]

    def pack_w(w):
        co, ci = w.shape[0], w.shape[1]
        # (Cout, Cin, kh, kw) -> (kh, kw, Cin, Cout) -> (9*Cin, Cout)
        return jnp.transpose(w, (2, 3, 1, 0)).reshape(9 * ci, co).astype(jnp.bfloat16)

    res_proj = jnp.eye(cin, cout, dtype=jnp.bfloat16)          # truncated residual
    w2aug = jnp.concatenate([pack_w(w2), res_proj], axis=0)    # (9*Cout+Cin, Cout)
    return {
        "w1": pack_w(w1),
        "b1": jnp.asarray(b1, jnp.float32).reshape(1, -1),
        "w2aug": w2aug,
        "b2": jnp.asarray(b2, jnp.float32).reshape(1, -1),
    }


# ----------------------------------------------------------------------------
# VMEM planning
# ----------------------------------------------------------------------------
def _vmem_bytes_per_step(th, h, w, cin, cout, out_bytes):
    inp = 2 * (h + 4) * (w + 4) * cin * 2            # resident padded input (bf16, 2 bufs)
    wgt = 2 * ((9 * cin) * cout + (9 * cout + cin) * cout + 2 * cout) * 4
    out = 2 * th * w * cout * out_bytes              # output block (2 bufs)
    hsc = (th + 2) * (w + 2) * cout * 2              # conv1 scratch
    slabs = ((th + 2) * w * 9 * cin + th * w * (9 * cout + cin)) * 2 \
        + ((th + 2) * w + th * w) * cout * 4         # im2col slabs + f32 dot outputs
    return inp + wgt + out + hsc + slabs


def _choose_row_tile(h, w, cin, cout, out_bytes, budget_bytes):
    """Largest divisor of H whose per-step footprint fits the VMEM budget."""
    divisors = sorted({d for d in range(1, h + 1) if h % d == 0}, reverse=True)
    for th in divisors:
        if _vmem_bytes_per_step(th, h, w, cin, cout, out_bytes) <= budget_bytes:
            return th
    return 1


# ----------------------------------------------------------------------------
# Forward wrapper
# ----------------------------------------------------------------------------
def conv_block_forward(x_nchw, packed, *, slope=0.01, out_dtype=jnp.bfloat16):
    """ConvBlock forward (PyTorch NCHW in / NCHW out) via one fused Pallas kernel."""
    n, cin, h, w = x_nchw.shape
    cout = packed["b1"].shape[-1]
    out_bytes = jnp.dtype(out_dtype).itemsize

    # Largest row tile within a 20 MiB working budget (well under v7x's 64 MiB
    # physical VMEM / 32 MiB scoped default).  Demo: th = H -> one step/batch.
    budget = 20 << 20
    th = _choose_row_tile(h, w, cin, cout, out_bytes, budget)
    n_tiles = h // th

    # NHWC (channels -> lanes), zero-pad spatial dims by 2 (halo for the two
    # fused 3x3 convs), bf16 for the MXU path (accumulation stays f32).
    x = jnp.transpose(x_nchw, (0, 2, 3, 1))
    xp = jnp.pad(x, ((0, 0), (2, 2), (2, 2), (0, 0))).astype(jnp.bfloat16)

    est = _vmem_bytes_per_step(th, h, w, cin, cout, out_bytes)
    vmem_limit = int(min(48 << 20, max(16 << 20, 2 * est)))   # headroom on v7x

    kernel = functools.partial(_conv_block_kernel, th=th, wd=w,
                               cin=cin, cout=cout, slope=slope)

    out = pl.pallas_call(
        kernel,
        grid=(n, n_tiles),
        in_specs=[
            # Full padded image per batch element; the block index ignores the
            # row-tile axis, so it stays resident (not re-DMAed) across tiles.
            pl.BlockSpec((None, h + 4, w + 4, cin), lambda b, i: (b, 0, 0, 0)),
            pl.BlockSpec((9 * cin, cout), lambda b, i: (0, 0)),
            pl.BlockSpec((1, cout), lambda b, i: (0, 0)),
            pl.BlockSpec((9 * cout + cin, cout), lambda b, i: (0, 0)),
            pl.BlockSpec((1, cout), lambda b, i: (0, 0)),
        ],
        # Output tile is a contiguous (TH*W, Cout) slab -> dense HBM DMA.
        out_specs=pl.BlockSpec((None, th * w, cout), lambda b, i: (b, i, 0)),
        out_shape=jax.ShapeDtypeStruct((n, h * w, cout), out_dtype),
        scratch_shapes=[pltpu.VMEM((th + 2, w + 2, cout), jnp.bfloat16)],
        compiler_params=pltpu.CompilerParams(
            dimension_semantics=("parallel", "parallel"),
            vmem_limit_bytes=vmem_limit),
    )(xp, packed["w1"], packed["b1"], packed["w2aug"], packed["b2"])

    out = out.reshape(n, h, w, cout)
    return jnp.transpose(out, (0, 3, 1, 2))                    # back to NCHW


# ----------------------------------------------------------------------------
# Pure-XLA reference mirroring the kernel's bf16-input / f32-accum numerics
# ----------------------------------------------------------------------------
def _conv_block_reference(x_nchw, w1, b1, w2, b2, slope=0.01):
    dn = ("NCHW", "OIHW", "NCHW")
    xb = x_nchw.astype(jnp.bfloat16)
    h = jax.lax.conv_general_dilated(
        xb, w1.astype(jnp.bfloat16), window_strides=(1, 1),
        padding=((1, 1), (1, 1)), dimension_numbers=dn,
        preferred_element_type=jnp.float32)
    h = h + b1[None, :, None, None]
    h = jnp.where(h >= 0.0, h, slope * h)
    y = jax.lax.conv_general_dilated(
        h.astype(jnp.bfloat16), w2.astype(jnp.bfloat16), window_strides=(1, 1),
        padding=((1, 1), (1, 1)), dimension_numbers=dn,
        preferred_element_type=jnp.float32)
    y = y + b2[None, :, None, None]
    cmin = min(x_nchw.shape[1], y.shape[1])
    y = y.at[:, :cmin].add(xb[:, :cmin].astype(jnp.float32))
    return jnp.where(y >= 0.0, y, slope * y)


if __name__ == "__main__":
    key = jax.random.PRNGKey(0)
    kw1, kb1, kw2, kb2, kx = jax.random.split(key, 5)

    N, CIN, H, W = 2, 4, 16, 16
    COUT = 32

    w1 = jax.random.normal(kw1, (COUT, CIN, 3, 3), jnp.float32) / jnp.sqrt(9.0 * CIN)
    b1 = 0.1 * jax.random.normal(kb1, (COUT,), jnp.float32)
    w2 = jax.random.normal(kw2, (COUT, COUT, 3, 3), jnp.float32) / jnp.sqrt(9.0 * COUT)
    b2 = 0.1 * jax.random.normal(kb2, (COUT,), jnp.float32)
    x = jax.random.normal(kx, (N, CIN, H, W), jnp.float32)

    packed = pack_conv_block_params(w1, b1, w2, b2)   # one-time repack, outside jit
    fwd = jax.jit(conv_block_forward)

    out = jax.block_until_ready(fwd(x, packed))
    ref = jax.block_until_ready(_conv_block_reference(x, w1, b1, w2, b2))

    assert out.shape == (N, COUT, H, W), out.shape
    assert out.dtype == jnp.bfloat16, out.dtype
    out32 = out.astype(jnp.float32)
    assert bool(jnp.all(jnp.isfinite(out32)))

    # Tolerance = f32-accum matmul error + the requested bf16 output cast.
    err = jnp.abs(out32 - ref)
    tol = 5e-3 + 8e-3 * jnp.abs(ref)
    assert bool(jnp.all(err <= tol)), (
        f"max abs err {float(jnp.max(err))}, max ref {float(jnp.max(jnp.abs(ref)))}")
    print("KERNEL_OK")
</pallas_src>

<mosaic_0001>
module attributes {stable_mosaic.version = 11 : i64} {
  func.func @_conv_block_kernel(%arg0: i32, %arg1: i32, %arg2: memref<1x20x20x4xbf16, #tpu.memory_space<vmem>>, %arg3: memref<36x32xbf16, #tpu.memory_space<vmem>>, %arg4: memref<1x32xf32, #tpu.memory_space<vmem>>, %arg5: memref<292x32xbf16, #tpu.memory_space<vmem>>, %arg6: memref<1x32xf32, #tpu.memory_space<vmem>>, %arg7: memref<1x256x32xbf16, #tpu.memory_space<vmem>>, %arg8: memref<18x18x32xbf16, #tpu.memory_space<vmem>>) attributes {dimension_semantics = [#tpu.dimension_semantics<parallel>, #tpu.dimension_semantics<parallel>], iteration_bounds = array<i64: 2, 1>, scalar_prefetch = 0 : i64, scratch_operands = 1 : i64, tpu.core_type = #tpu.core_type<tc>, window_params = [{transform_indices = @transform_0, window_bounds = array<i64: 1, 20, 20, 4>}, {pipeline_mode = #tpu.pipeline_mode<synchronous>, transform_indices = @transform_1, window_bounds = array<i64: 36, 32>}, {pipeline_mode = #tpu.pipeline_mode<synchronous>, transform_indices = @transform_2, window_bounds = array<i64: 1, 32>}, {pipeline_mode = #tpu.pipeline_mode<synchronous>, transform_indices = @transform_3, window_bounds = array<i64: 292, 32>}, {pipeline_mode = #tpu.pipeline_mode<synchronous>, transform_indices = @transform_4, window_bounds = array<i64: 1, 32>}, {transform_indices = @transform_5, window_bounds = array<i64: 1, 256, 32>}]} {
    %c16_i32 = arith.constant 16 : i32
    %0 = arith.muli %arg1, %c16_i32 : i32
    %1 = tpu.assume_multiple %0, 16 : i32
    %c0_i32 = arith.constant 0 : i32
    %2 = arith.addi %1, %c0_i32 : i32
    %c0 = arith.constant 0 : index
    %3 = arith.index_cast %2 : i32 to index
    %c1 = arith.constant 1 : index
    %c0_0 = arith.constant 0 : index
    %4 = vector.load %arg2[%c0, %3, %c1, %c0_0] : memref<1x20x20x4xbf16, #tpu.memory_space<vmem>>, vector<1x18x16x4xbf16>
    %5 = vector.shape_cast %4 : vector<1x18x16x4xbf16> to vector<18x16x4xbf16>
    %c0_i32_1 = arith.constant 0 : i32
    %6 = arith.addi %1, %c0_i32_1 : i32
    %c0_2 = arith.constant 0 : index
    %7 = arith.index_cast %6 : i32 to index
    %c2 = arith.constant 2 : index
    %c0_3 = arith.constant 0 : index
    %8 = vector.load %arg2[%c0_2, %7, %c2, %c0_3] : memref<1x20x20x4xbf16, #tpu.memory_space<vmem>>, vector<1x18x16x4xbf16>
    %9 = vector.shape_cast %8 : vector<1x18x16x4xbf16> to vector<18x16x4xbf16>
    %c0_i32_4 = arith.constant 0 : i32
    %10 = arith.addi %1, %c0_i32_4 : i32
    %c0_5 = arith.constant 0 : index
    %11 = arith.index_cast %10 : i32 to index
    %c3 = arith.constant 3 : index
    %c0_6 = arith.constant 0 : index
    %12 = vector.load %arg2[%c0_5, %11, %c3, %c0_6] : memref<1x20x20x4xbf16, #tpu.memory_space<vmem>>, vector<1x18x16x4xbf16>
    %13 = vector.shape_cast %12 : vector<1x18x16x4xbf16> to vector<18x16x4xbf16>
    %c1_i32 = arith.constant 1 : i32
    %14 = arith.addi %1, %c1_i32 : i32
    %c0_7 = arith.constant 0 : index
    %15 = arith.index_cast %14 : i32 to index
    %c1_8 = arith.constant 1 : index
    %c0_9 = arith.constant 0 : index
    %16 = vector.load %arg2[%c0_7, %15, %c1_8, %c0_9] : memref<1x20x20x4xbf16, #tpu.memory_space<vmem>>, vector<1x18x16x4xbf16>
    %17 = vector.shape_cast %16 : vector<1x18x16x4xbf16> to vector<18x16x4xbf16>
    %c1_i32_10 = arith.constant 1 : i32
    %18 = arith.addi %1, %c1_i32_10 : i32
    %c0_11 = arith.constant 0 : index
    %19 = arith.index_cast %18 : i32 to index
    %c2_12 = arith.constant 2 : index
    %c0_13 = arith.constant 0 : index
    %20 = vector.load %arg2[%c0_11, %19, %c2_12, %c0_13] : memref<1x20x20x4xbf16, #tpu.memory_space<vmem>>, vector<1x18x16x4xbf16>
    %21 = vector.shape_cast %20 : vector<1x18x16x4xbf16> to vector<18x16x4xbf16>
    %c1_i32_14 = arith.constant 1 : i32
    %22 = arith.addi %1, %c1_i32_14 : i32
    %c0_15 = arith.constant 0 : index
    %23 = arith.index_cast %22 : i32 to index
    %c3_16 = arith.constant 3 : index
    %c0_17 = arith.constant 0 : index
    %24 = vector.load %arg2[%c0_15, %23, %c3_16, %c0_17] : memref<1x20x20x4xbf16, #tpu.memory_space<vmem>>, vector<1x18x16x4xbf16>
    %25 = vector.shape_cast %24 : vector<1x18x16x4xbf16> to vector<18x16x4xbf16>
    %c2_i32 = arith.constant 2 : i32
    %26 = arith.addi %1, %c2_i32 : i32
    %c0_18 = arith.constant 0 : index
    %27 = arith.index_cast %26 : i32 to index
    %c1_19 = arith.constant 1 : index
    %c0_20 = arith.constant 0 : index
    %28 = vector.load %arg2[%c0_18, %27, %c1_19, %c0_20] : memref<1x20x20x4xbf16, #tpu.memory_space<vmem>>, vector<1x18x16x4xbf16>
    %29 = vector.shape_cast %28 : vector<1x18x16x4xbf16> to vector<18x16x4xbf16>
    %c2_i32_21 = arith.constant 2 : i32
    %30 = arith.addi %1, %c2_i32_21 : i32
    %c0_22 = arith.constant 0 : index
    %31 = arith.index_cast %30 : i32 to index
    %c2_23 = arith.constant 2 : index
    %c0_24 = arith.constant 0 : index
    %32 = vector.load %arg2[%c0_22, %31, %c2_23, %c0_24] : memref<1x20x20x4xbf16, #tpu.memory_space<vmem>>, vector<1x18x16x4xbf16>
    %33 = vector.shape_cast %32 : vector<1x18x16x4xbf16> to vector<18x16x4xbf16>
    %c2_i32_25 = arith.constant 2 : i32
    %34 = arith.addi %1, %c2_i32_25 : i32
    %c0_26 = arith.constant 0 : index
    %35 = arith.index_cast %34 : i32 to index
    %c3_27 = arith.constant 3 : index
    %c0_28 = arith.constant 0 : index
    %36 = vector.load %arg2[%c0_26, %35, %c3_27, %c0_28] : memref<1x20x20x4xbf16, #tpu.memory_space<vmem>>, vector<1x18x16x4xbf16>
    %37 = vector.shape_cast %36 : vector<1x18x16x4xbf16> to vector<18x16x4xbf16>
    %38 = tpu.concatenate %5, %9, %13, %17, %21, %25, %29, %33, %37 in 2 : vector<18x16x4xbf16>, vector<18x16x4xbf16>, vector<18x16x4xbf16>, vector<18x16x4xbf16>, vector<18x16x4xbf16>, vector<18x16x4xbf16>, vector<18x16x4xbf16>, vector<18x16x4xbf16>, vector<18x16x4xbf16> -> vector<18x16x36xbf16>
    %39 = vector.shape_cast %38 : vector<18x16x36xbf16> to vector<288x36xbf16>
    %c0_29 = arith.constant 0 : index
    %c0_30 = arith.constant 0 : index
    %40 = vector.load %arg3[%c0_29, %c0_30] : memref<36x32xbf16, #tpu.memory_space<vmem>>, vector<36x32xbf16>
    %cst = arith.constant dense<0.000000e+00> : vector<288x32xf32>
    %41 = tpu.matmul %39, %40, %cst {dimension_numbers = #tpu.dot_dimension_numbers<[1], [0], [0], [1], [0, 0, 1, 1], [], []>} : vector<288x36xbf16>, vector<36x32xbf16>, vector<288x32xf32> -> vector<288x32xf32>
    %c0_31 = arith.constant 0 : index
    %c0_32 = arith.constant 0 : index
    %42 = vector.load %arg4[%c0_31, %c0_32] : memref<1x32xf32, #tpu.memory_space<vmem>>, vector<1x32xf32>
    %43 = vector.broadcast %42 : vector<1x32xf32> to vector<288x32xf32>
    %44 = arith.addf %41, %43 : vector<288x32xf32>
    %cst_33 = arith.constant 0.000000e+00 : f32
    %45 = vector.broadcast %cst_33 : f32 to vector<288x32xf32>
    %46 = arith.cmpf oge, %44, %45 : vector<288x32xf32>
    %cst_34 = arith.constant 0.00999999977 : f32
    %47 = vector.broadcast %cst_34 : f32 to vector<288x32xf32>
    %48 = arith.mulf %47, %44 : vector<288x32xf32>
    %49 = arith.select %46, %44, %48 : vector<288x32xi1>, vector<288x32xf32>
    %50 = vector.shape_cast %49 : vector<288x32xf32> to vector<18x16x32xf32>
    %51 = tpu.iota {dimensions = array<i32: 0>} : vector<18x1x1xi32>
    %c0_i32_35 = arith.constant 0 : i32
    %52 = vector.broadcast %c0_i32_35 : i32 to vector<18x1x1xi32>
    %53 = arith.cmpi ne, %51, %52 : vector<18x1x1xi32>
    %c0_i32_36 = arith.constant 0 : i32
    %54 = arith.cmpi ne, %arg1, %c0_i32_36 : i32
    %55 = vector.broadcast %54 : i1 to vector<18x1x1xi1>
    %56 = arith.ori %53, %55 : vector<18x1x1xi1>
    %c17_i32 = arith.constant 17 : i32
    %57 = vector.broadcast %c17_i32 : i32 to vector<18x1x1xi32>
    %58 = arith.cmpi ne, %51, %57 : vector<18x1x1xi32>
    %c0_i32_37 = arith.constant 0 : i32
    %59 = arith.cmpi ne, %arg1, %c0_i32_37 : i32
    %60 = vector.broadcast %59 : i1 to vector<18x1x1xi1>
    %61 = arith.ori %58, %60 : vector<18x1x1xi1>
    %62 = arith.andi %56, %61 : vector<18x1x1xi1>
    %cst_38 = arith.constant 0.000000e+00 : f32
    %63 = vector.shape_cast %62 : vector<18x1x1xi1> to vector<18x1x1xi1>
    %64 = vector.broadcast %63 : vector<18x1x1xi1> to vector<18x16x32xi1>
    %65 = vector.broadcast %cst_38 : f32 to vector<18x16x32xf32>
    %66 = arith.select %64, %50, %65 : vector<18x16x32xi1>, vector<18x16x32xf32>
    %67 = arith.truncf %66 : vector<18x16x32xf32> to vector<18x16x32xbf16>
    %cst_39 = arith.constant 0.000000e+00 : bf16
    %68 = vector.broadcast %cst_39 : bf16 to vector<18x1x32xbf16>
    %69 = tpu.concatenate %68, %67, %68 in 1 : vector<18x1x32xbf16>, vector<18x16x32xbf16>, vector<18x1x32xbf16> -> vector<18x18x32xbf16>
    %c0_40 = arith.constant 0 : index
    %c0_41 = arith.constant 0 : index
    %c0_42 = arith.constant 0 : index
    %70 = vector.load %arg8[%c0_40, %c0_41, %c0_42] : memref<18x18x32xbf16, #tpu.memory_space<vmem>>, vector<18x18x32xbf16>
    tpu.vector_store %arg8[%c0_40, %c0_41, %c0_42], %69 {strides = array<i32>} : memref<18x18x32xbf16, #tpu.memory_space<vmem>>, vector<18x18x32xbf16>,
    %c0_43 = arith.constant 0 : index
    %c0_44 = arith.constant 0 : index
    %c0_45 = arith.constant 0 : index
    %71 = vector.load %arg8[%c0_43, %c0_44, %c0_45] : memref<18x18x32xbf16, #tpu.memory_space<vmem>>, vector<16x16x32xbf16>
    %c0_46 = arith.constant 0 : index
    %c1_47 = arith.constant 1 : index
    %c0_48 = arith.constant 0 : index
    %72 = vector.load %arg8[%c0_46, %c1_47, %c0_48] : memref<18x18x32xbf16, #tpu.memory_space<vmem>>, vector<16x16x32xbf16>
    %c0_49 = arith.constant 0 : index
    %c2_50 = arith.constant 2 : index
    %c0_51 = arith.constant 0 : index
    %73 = vector.load %arg8[%c0_49, %c2_50, %c0_51] : memref<18x18x32xbf16, #tpu.memory_space<vmem>>, vector<16x16x32xbf16>
    %c1_52 = arith.constant 1 : index
    %c0_53 = arith.constant 0 : index
    %c0_54 = arith.constant 0 : index
    %74 = vector.load %arg8[%c1_52, %c0_53, %c0_54] : memref<18x18x32xbf16, #tpu.memory_space<vmem>>, vector<16x16x32xbf16>
    %c1_55 = arith.constant 1 : index
    %c1_56 = arith.constant 1 : index
    %c0_57 = arith.constant 0 : index
    %75 = vector.load %arg8[%c1_55, %c1_56, %c0_57] : memref<18x18x32xbf16, #tpu.memory_space<vmem>>, vector<16x16x32xbf16>
    %c1_58 = arith.constant 1 : index
    %c2_59 = arith.constant 2 : index
    %c0_60 = arith.constant 0 : index
    %76 = vector.load %arg8[%c1_58, %c2_59, %c0_60] : memref<18x18x32xbf16, #tpu.memory_space<vmem>>, vector<16x16x32xbf16>
    %c2_61 = arith.constant 2 : index
    %c0_62 = arith.constant 0 : index
    %c0_63 = arith.constant 0 : index
    %77 = vector.load %arg8[%c2_61, %c0_62, %c0_63] : memref<18x18x32xbf16, #tpu.memory_space<vmem>>, vector<16x16x32xbf16>
    %c2_64 = arith.constant 2 : index
    %c1_65 = arith.constant 1 : index
    %c0_66 = arith.constant 0 : index
    %78 = vector.load %arg8[%c2_64, %c1_65, %c0_66] : memref<18x18x32xbf16, #tpu.memory_space<vmem>>, vector<16x16x32xbf16>
    %c2_67 = arith.constant 2 : index
    %c2_68 = arith.constant 2 : index
    %c0_69 = arith.constant 0 : index
    %79 = vector.load %arg8[%c2_67, %c2_68, %c0_69] : memref<18x18x32xbf16, #tpu.memory_space<vmem>>, vector<16x16x32xbf16>
    %c2_i32_70 = arith.constant 2 : i32
    %80 = arith.addi %1, %c2_i32_70 : i32
    %c0_71 = arith.constant 0 : index
    %81 = arith.index_cast %80 : i32 to index
    %c2_72 = arith.constant 2 : index
    %c0_73 = arith.constant 0 : index
    %82 = vector.load %arg2[%c0_71, %81, %c2_72, %c0_73] : memref<1x20x20x4xbf16, #tpu.memory_space<vmem>>, vector<1x16x16x4xbf16>
    %83 = vector.shape_cast %82 : vector<1x16x16x4xbf16> to vector<16x16x4xbf16>
    %84 = tpu.concatenate %71, %72, %73, %74, %75, %76, %77, %78, %79, %83 in 2 : vector<16x16x32xbf16>, vector<16x16x32xbf16>, vector<16x16x32xbf16>, vector<16x16x32xbf16>, vector<16x16x32xbf16>, vector<16x16x32xbf16>, vector<16x16x32xbf16>, vector<16x16x32xbf16>, vector<16x16x32xbf16>, vector<16x16x4xbf16> -> vector<16x16x292xbf16>
    %85 = vector.shape_cast %84 : vector<16x16x292xbf16> to vector<256x292xbf16>
    %c0_74 = arith.constant 0 : index
    %c0_75 = arith.constant 0 : index
    %86 = vector.load %arg5[%c0_74, %c0_75] : memref<292x32xbf16, #tpu.memory_space<vmem>>, vector<292x32xbf16>
    %cst_76 = arith.constant dense<0.000000e+00> : vector<256x32xf32>
    %87 = tpu.matmul %85, %86, %cst_76 {dimension_numbers = #tpu.dot_dimension_numbers<[1], [0], [0], [1], [0, 0, 1, 1], [], []>} : vector<256x292xbf16>, vector<292x32xbf16>, vector<256x32xf32> -> vector<256x32xf32>
    %c0_77 = arith.constant 0 : index
    %c0_78 = arith.constant 0 : index
    %88 = vector.load %arg6[%c0_77, %c0_78] : memref<1x32xf32, #tpu.memory_space<vmem>>, vector<1x32xf32>
    %89 = vector.broadcast %88 : vector<1x32xf32> to vector<256x32xf32>
    %90 = arith.addf %87, %89 : vector<256x32xf32>
    %cst_79 = arith.constant 0.000000e+00 : f32
    %91 = vector.broadcast %cst_79 : f32 to vector<256x32xf32>
    %92 = arith.cmpf oge, %90, %91 : vector<256x32xf32>
    %cst_80 = arith.constant 0.00999999977 : f32
    %93 = vector.broadcast %cst_80 : f32 to vector<256x32xf32>
    %94 = arith.mulf %93, %90 : vector<256x32xf32>
    %95 = arith.select %92, %90, %94 : vector<256x32xi1>, vector<256x32xf32>
    %96 = arith.truncf %95 : vector<256x32xf32> to vector<256x32xbf16>
    %c0_81 = arith.constant 0 : index
    %c0_82 = arith.constant 0 : index
    %c0_83 = arith.constant 0 : index
    %97 = vector.load %arg7[%c0_81, %c0_82, %c0_83] : memref<1x256x32xbf16, #tpu.memory_space<vmem>>, vector<1x256x32xbf16>
    %98 = vector.shape_cast %97 : vector<1x256x32xbf16> to vector<256x32xbf16>
    %99 = vector.shape_cast %96 : vector<256x32xbf16> to vector<1x256x32xbf16>
    tpu.vector_store %arg7[%c0_81, %c0_82, %c0_83], %99 {strides = array<i32>} : memref<1x256x32xbf16, #tpu.memory_space<vmem>>, vector<1x256x32xbf16>,
    return
  }
  func.func @transform_0(%arg0: i32, %arg1: i32) -> (i32, i32, i32, i32) {
    %c0_i32 = arith.constant 0 : i32
    %c0_i32_0 = arith.constant 0 : i32
    %c0_i32_1 = arith.constant 0 : i32
    %c0_i32_2 = arith.constant 0 : i32
    return %arg0, %c0_i32, %c0_i32_0, %c0_i32_1 : i32, i32, i32, i32
  }
  func.func @transform_1(%arg0: i32, %arg1: i32) -> (i32, i32) {
    %c0_i32 = arith.constant 0 : i32
    %c0_i32_0 = arith.constant 0 : i32
    %c0_i32_1 = arith.constant 0 : i32
    return %c0_i32, %c0_i32_0 : i32, i32
  }
  func.func @transform_2(%arg0: i32, %arg1: i32) -> (i32, i32) {
    %c0_i32 = arith.constant 0 : i32
    %c0_i32_0 = arith.constant 0 : i32
    %c0_i32_1 = arith.constant 0 : i32
    return %c0_i32, %c0_i32_0 : i32, i32
  }
  func.func @transform_3(%arg0: i32, %arg1: i32) -> (i32, i32) {
    %c0_i32 = arith.constant 0 : i32
    %c0_i32_0 = arith.constant 0 : i32
    %c0_i32_1 = arith.constant 0 : i32
    return %c0_i32, %c0_i32_0 : i32, i32
  }
  func.func @transform_4(%arg0: i32, %arg1: i32) -> (i32, i32) {
    %c0_i32 = arith.constant 0 : i32
    %c0_i32_0 = arith.constant 0 : i32
    %c0_i32_1 = arith.constant 0 : i32
    return %c0_i32, %c0_i32_0 : i32, i32
  }
  func.func @transform_5(%arg0: i32, %arg1: i32) -> (i32, i32, i32) {
    %c0_i32 = arith.constant 0 : i32
    %c0_i32_0 = arith.constant 0 : i32
    return %arg0, %arg1, %c0_i32 : i32, i32, i32
  }
}

</mosaic_0001>

<bundles_post_ra>
// kernel: conv_block_forward.1
= control target key start
LH: loop header
LB: loop body
LE: loop exit
PB: predicated region body
PF: predicated region fallthrough
CT: control target
= control target key end

     0   :  { %10 = vsyncpa [#allocation4], 0  ;;  %s12359_s0 = inlined_call_operand.vmem [shape: bf16[2,20,20,4], index: 0, kind: input, shape index: {}]   ;;  %s12360_s1 = inlined_call_operand.vmem [shape: bf16[36,32], index: 1, kind: input, shape index: {}]   ;;  %s12361_s2 = inlined_call_operand.vmem [shape: f32[1,32], index: 2, kind: input, shape index: {}]   ;;  %s12362_s3 = inlined_call_operand.vmem [shape: bf16[292,32], index: 3, kind: input, shape index: {}]   ;;  %s12363_s4 = inlined_call_operand.vmem [shape: f32[1,32], index: 4, kind: input, shape index: {}]   ;;  %s12364_s5 = inlined_call_operand.hbm [shape: bf16[2,256,32], index: 5, kind: output, shape index: {}]  }
   0x1   :  { %12 = vsyncpa [#allocation4 + $0x1], 0  ;;  %s8546_s18 = smov 0   ;;  %s8548_s19 = smov 0  }
   0x2   :  { %s8550_s20 = smov 0   ;;  %s8552_s21 = smov 0  }
   0x3   :  { %s8554_s22 = smov 0   ;;  %s8556_s23 = smov 0  }
   0x4 LB: > { %s7363_s24 = sadd.s32 4294967295, %s8503_s23   ;;  %s7364_s25 = sadd.s32 4294967294, %s8503_s23   ;;  %s8503_s23 = sphi %s8556_s23, %s18_s23   ;;  %s8499_s22 = sphi %s8554_s22, %s12779_s22   ;;  %s8495_s21 = sphi %s8552_s21, %s12778_s21   ;;  %s8491_s20 = sphi %s8550_s20, %s12777_s20   ;;  %s8487_s19 = sphi %s8548_s19, %s12776_s19   ;;  %s8483_s18 = sphi %s8546_s18, %s12775_s18  }
   0x5   : > { %s30_s26 = sadd.s32 1, %s8499_s22  ;;  %s149_s27 = sadd.s32 1, %s8491_s20 }
   0x6   : > { %p32_p0 = scmp.ge.s32.totalorder %s30_s26, 2  ;;  %p159_p1 = scmp.ne.s32.totalorder %s8491_s20, %s8487_s19 }
   0x7   : > { %p160_p2 = scmp.eq.s32.totalorder %s7363_s24, 1  ;;  %p165_p3 = scmp.ne.s32.totalorder %s8487_s19, %s8483_s18 }
   0x8   : > { %s12781_s26 = smov (%p32_p0, %s30_s26), 0  ;;  %p166_p5 = scmp.eq.s32.totalorder %s7364_s25, 1 }
   0x9   : > { %p8586_p4 = por %p160_p2, %p159_p1  ;;  %s144_s29 = ssub.s32 %s8499_s22, %s12781_s26 }
   0xa   : > { %p7367_p6 = scmp.ge.s32.totalorder %s8503_s23, 1  ;;  %p147_p7 = scmp.eq.s32.totalorder %s144_s29, 0 }
   0xb   : > { %p8593_p8 = por %p166_p5, %p165_p3  ;;  %p204_p9 = scmp.lt.s32.totalorder %s8503_s23, 3 }
   0xc   : > { %s8599_s6 = scalar_select %p147_p7, %s8491_s20, %s149_s27  }
   0xd   : > { %p205_p10 = pnand %p7367_p6, %p204_p9 }
   0xf   : > { %208 = sbr.rel (%p205_p10) target bundleno = 1456 (0x5b0), region = 40 }
  0x14   : > { %p232_p11 = scmp.lt.s32.totalorder %s8495_s21, 1  ;;  %s8505_s12 = smov 4   ;;  %vm719_vm0 = vsmask.f32 7424  ;;  %vm1098_vm1 = vcmask 1046528   ;;  %vm3634_vm2 = vcmask 1041408  }
  0x15   : > { %s8506_s13 = smov 8   ;;  %s8507_s14 = smov 12   ;;  %vm2773_vm3 = vcmask 31744   ;;  %vm12410_vm4 = vcmask 64512   ;;  %vm2937_vm5 = vcmask 97280   ;;  %vm3010_vm6 = vcmask 130048  }
  0x16   : > { %s233_s7 = scalar_select %p232_p11, %s8495_s21, 1  ;;  %vm3156_vm7 = vcmask 195584   ;;  %vm3083_vm8 = vcmask 162816   ;;  %vm12413_vm9 = vcmask 228352   ;;  %vm3302_vm10 = vcmask 261120  }
  0x17   : > { %s8508_s15 = smov 16   ;;  %s8509_s16 = smov 20   ;;  %vm3579_vm11 = vcmask 293888   ;;  %vm4175_vm12 = vcmask 1040384   ;;  %vm4176_vm13 = vsmask.f32 256 }
  0x18   : > { %s8223_s8 = smul.u32 240, %s233_s7  ;;  %s8510_s17 = smov 28   ;;  %vm10539_vm14 = vmand %vm4175_vm12, %vm4176_vm13  ;;  %vm4415_vm12 = vcmask 253952   ;;  %vm4412_vm13 = vcmask 257024  }
  0x19   : > { %s8511_s24 = smov 24   ;;  %s8512_s25 = smov 32  }
  0x1a   : > { %s8606_s11 = scalar_lea.vmem %s12359_s0, %s8223_s8  ;;  %s8515_s27 = smov 96  }
  0x1b   : > { %v251_v0 = vld [vmem:[%s8606_s11 + $0x20] sm:$0x1]  ;;  %v248_v1 = vld [vmem:[%s8606_s11 + $0x14] sm:$0x1]  ;;  %v245_v2 = vld [vmem:[%s8606_s11 + $0x8] sm:$0x1] }
  0x1c   : > { %v583_v3 = vunpack.c.l.b16 %v251_v0  ;;  %v580_v4 = vunpack.c.l.b16 %v248_v1  ;;  %v577_v5 = vunpack.c.l.b16 %v245_v2  ;;  %v8051_v6 = vld [vmem:[%s8606_s11 + $0x18] sm:$0xf0]  ;;  %v8052_v7 = vld [vmem:[%s8606_s11 + $0x18] sm:$0xe]  ;;  %v254_v8 = vld [vmem:[%s8606_s11 + $0x2c] sm:$0x1] }
  0x1d   : > { %v8614_v9 = vor.u32 %v8052_v7, %v8051_v6  ;;  %v586_v10 = vunpack.c.l.b16 %v254_v8  ;;  %v8048_v11 = vld [vmem:[%s8606_s11] sm:$0xf0]  ;;  %v8049_v12 = vld [vmem:[%s8606_s11] sm:$0xe]  ;;  %v8054_v17 = vld [vmem:[%s8606_s11 + $0x30] sm:$0xf0] }
  0x1e   : > { %v8618_v13 = vpack.c.b16 %v583_v3, %v583_v3  ;;  %v8620_v14 = vpack.c.b16 %v580_v4, %v580_v4  ;;  %v8622_v15 = vpack.c.b16 %v577_v5, %v577_v5  ;;  %v8624_v16 = vor.u32 %v8049_v12, %v8048_v11  ;;  %v257_v18 = vld [vmem:[%s8606_s11 + $0x38] sm:$0x1]  ;;  %v8055_v22 = vld [vmem:[%s8606_s11 + $0x30] sm:$0xe]  ;;  %v298_v29 = vld [vmem:[%s8606_s11 + $0xc] sm:$0xe] }
  0x1f   : > { %v749_v19 = vshrl.u32 %v8614_v9, 16  ;;  %v751_v20 = vshll.u32 %v8614_v9, 16  ;;  %v8630_v21 = vpack.c.b16 %v586_v10, %v586_v10  ;;  %v589_v23 = vunpack.c.l.b16 %v257_v18  ;;  %v8634_v24 = vld [vmem:[%s8606_s11 + $0x10] sm:$0xf]  ;;  %v8653_v41 = vld [vmem:[%s8606_s11 + $0x28] sm:$0xf] }
  0x20   : > { %12416 = vst [vmem:[#allocation6_spill] sm:$0xff] %v8618_v13  ;;  %v760_v25 = vshrl.u32 %v8618_v13, 16  ;;  %v746_v26 = vshrl.u32 %v8620_v14, 16  ;;  %v732_v27 = vshrl.u32 %v8622_v15, 16  ;;  %v756_v28 = vshll.u32 %v8618_v13, 16  ;;  %s229_s8 = sand.u32 1, %s8487_s19  }
  0x21   : > { %12417 = vst [vmem:[#allocation7_spill] sm:$0xff] %v8630_v21  ;;  %v753_v30 = vrot.slane %v751_v20, 1  ;;  %v721_v31 = vshrl.u32 %v8624_v16, 16  ;;  %v723_v32 = vshll.u32 %v8624_v16, 16  ;;  %v728_v34 = vshll.u32 %v8622_v15, 16  ;;  %s11895_s9 = sshll.u32 %s229_s8, 7 }
  0x22   : > { %982 = vrot.lane.b32.xlu2 %v760_v25, %s8505_s12  ;;  %978 = vrot.lane.b32.xlu1 %v746_v26, %s8505_s12  ;;  %v758_v33 = vrot.slane %v756_v28, 1  ;;  %v8646_v35 = vpack.c.b16 %v589_v23, %v589_v23  ;;  %v8648_v36 = vor.u32 %v8055_v22, %v8054_v17  ;;  %v12373_v39 = vunpack.c.l.b16 %v8634_v24  ;;  %12419 = vst [vmem:[#allocation9_spill] sm:$0xff] %v8653_v41  ;;  %v300_v42 = vld [vmem:[%s8606_s11 + $0x24] sm:$0xe]  ;;  %v260_v50 = vld [vmem:[%s8606_s11 + $0x44] sm:$0x1] }
  0x23   : > { %974 = vrot.lane.b32.xlu0 %v732_v27, %s8505_s12  ;;  %v754_v37 = vor.u32 %v753_v30, %v749_v19  ;;  %v725_v38 = vrot.slane %v723_v32, 1  ;;  %v684_v40 = vunpack.c.l.b16 %v298_v29  ;;  %v774_v43 = vshrl.u32 %v8630_v21, 16  ;;  %v8668_v55 = vld [vmem:[%s8606_s11 + $0x40] sm:$0xf]  ;;  %v302_v56 = vld [vmem:[%s8606_s11 + $0x3c] sm:$0xe] }
  0x24   : > { %12418 = vst [vmem:[#allocation8_spill] sm:$0xff] %v8646_v35  ;;  %v730_v44 = vrot.slane %v728_v34, 1  ;;  %v779_v45 = vshll.u32 %v8648_v36, 16  ;;  %v777_v47 = vshrl.u32 %v8648_v36, 16  ;;  %v784_v48 = vshll.u32 %v8646_v35, 16  ;;  %s11917_s10 = scalar_lea.vmem [#allocation3], %s11895_s9 }
  0x25   : > { %v726_v46 = vor.u32 %v725_v38, %v721_v31  ;;  %v8662_v49 = vpack.c.b16 %v12373_v39, %v684_v40  ;;  %v742_v52 = vshll.u32 %v8620_v14, 16  ;;  %v12372_v53 = vunpack.c.l.b16 %v8653_v41  ;;  %12420 = vst [vmem:[#allocation10_spill] sm:$0xff] %v8668_v55  ;;  %v8681_v0 = vld [vmem:[%s8606_s11 + $0x58] sm:$0xf]  ;;  %v304_v5 = vld [vmem:[%s8606_s11 + $0x54] sm:$0xe] }
  0x26   : > { %v781_v51 = vrot.slane %v779_v45, 1  ;;  %v686_v54 = vunpack.c.l.b16 %v300_v42  ;;  %v759_v57 = vsel %vm719_vm0, %v754_v37, %v758_v33  ;;  %v770_v62 = vshll.u32 %v8630_v21, 16  ;;  %12421 = vst [vmem:[#allocation11_spill] sm:$0xff] %v8681_v0  ;;  %v266_v18 = vld [vmem:[%s8606_s11 + $0x5c] sm:$0x1]  ;;  %s7277_s29 = sshll.u32 %s11917_s10, 4  ;;  %s7278_s29 = int_to_ptr.vmem [resolvable:$true] %s7277_s29 }
  0x27   : > { %v735_v58 = vshrl.u32 %v8662_v49, 16  ;;  %v737_v59 = vshll.u32 %v8662_v49, 16  ;;  %v731_v60 = vsel %vm719_vm0, %v726_v46, %v730_v44  ;;  %v592_v63 = vunpack.c.l.b16 %v260_v50  ;;  %v263_v25 = vld [vmem:[%s8606_s11 + $0x50] sm:$0x1]  ;;  %v8057_v27 = vld [vmem:[%s8606_s11 + $0x48] sm:$0xf0] }
  0x28   : > { %v8677_v61 = vpack.c.b16 %v12372_v53, %v686_v54  ;;  %v786_v1 = vrot.slane %v784_v48, 1  ;;  %v12371_v3 = vunpack.c.l.b16 %v8668_v55  ;;  %v688_v4 = vunpack.c.l.b16 %v302_v56  ;;  %v8058_v28 = vld [vmem:[%s8606_s11 + $0x48] sm:$0xe]  ;;  %v269_v48 = vld [vmem:[%s8606_s11 + $0x68] sm:$0x1] }
  0x29   : > { %v739_v2 = vrot.slane %v737_v59, 1  ;;  %v782_v6 = vor.u32 %v781_v51, %v777_v47  ;;  %v744_v7 = vrot.slane %v742_v52, 1  ;;  %v8690_v12 = vpack.c.b16 %v592_v63, %v592_v63  ;;  %v8060_v52 = vld [vmem:[%s8606_s11 + $0x60] sm:$0xf0]  ;;  %v8061_v54 = vld [vmem:[%s8606_s11 + $0x60] sm:$0xe] }
  0x2a   : > { %980 = vrot.lane.b32.xlu2 %v759_v57, %s8505_s12  ;;  %986 = vrot.lane.b32.xlu1 %v774_v43, %s8505_s12  ;;  %v763_v8 = vshrl.u32 %v8677_v61, 16  ;;  %v765_v10 = vshll.u32 %v8677_v61, 16  ;;  %v8694_v17 = vpack.c.b16 %v12371_v3, %v688_v4  ;;  %v12368_v19 = vunpack.c.l.b16 %v8681_v0  ;;  %v9217_v0 = vld [vmem:[%s8606_s11 + $0x9c] sm:$0xf0]  ;;  %v7426_v55 = vld [vmem:[%s8606_s11 + $0x24] sm:$0xe] }
  0x2b   : > { %972 = vrot.lane.b32.xlu0 %v731_v60, %s8505_s12  ;;  %v740_v11 = vor.u32 %v739_v2, %v735_v58  ;;  %12422 = vst [vmem:[#allocation12_spill] sm:$0xff] %v8690_v12  ;;  %v772_v22 = vrot.slane %v770_v62, 1  ;;  %v690_v23 = vunpack.c.l.b16 %v304_v5  ;;  %v787_v29 = vsel %vm719_vm0, %v782_v6, %v786_v1  ;;  %v8735_v6 = vld [vmem:[%s8606_s11 + $0x70] sm:$0xf] }
  0x2c   : > { %v767_v20 = vrot.slane %v765_v10, 1  ;;  %v793_v26 = vshll.u32 %v8694_v17, 16  ;;  %v598_v32 = vunpack.c.l.b16 %v266_v18  ;;  %v791_v33 = vshrl.u32 %v8694_v17, 16  ;;  %12425 = vst [vmem:[#allocation15_spill] sm:$0xff] %v8735_v6 }
  0x2d   : > { %v745_v30 = vsel %vm719_vm0, %v740_v11, %v744_v7  ;;  %v798_v37 = vshll.u32 %v8690_v12, 16  ;;  %v8708_v38 = vpack.c.b16 %v12368_v19, %v690_v23  ;;  %v595_v42 = vunpack.c.l.b16 %v263_v25  ;;  %v306_v7 = vld [vmem:[%s8606_s11 + $0x6c] sm:$0xe]  ;;  %v8064_v23 = vld [vmem:[%s8606_s11 + $0x78] sm:$0xe] }
  0x2e   : > { %v768_v31 = vor.u32 %v767_v20, %v763_v8  ;;  %v795_v34 = vrot.slane %v793_v26, 1  ;;  %v8711_v43 = vor.u32 %v8058_v28, %v8057_v27  ;;  %v8716_v46 = vpack.c.b16 %v598_v32, %v598_v32  ;;  %v8063_v8 = vld [vmem:[%s8606_s11 + $0x78] sm:$0xf0]  ;;  %v314_v19 = vld [vmem:[%s8606_s11 + $0xcc] sm:$0xe] }
  0x2f   : > { %v800_v45 = vrot.slane %v798_v37, 1  ;;  %v821_v47 = vshll.u32 %v8708_v38, 16  ;;  %v8720_v50 = vpack.c.b16 %v595_v42, %v595_v42  ;;  %v802_v56 = vshrl.u32 %v8690_v12, 16 }
  0x30   : > { %v773_v40 = vsel %vm719_vm0, %v768_v31, %v772_v22  ;;  %v796_v44 = vor.u32 %v795_v34, %v791_v33  ;;  %12423 = vst [vmem:[#allocation13_spill] sm:$0xff] %v8716_v46  ;;  %v807_v51 = vshll.u32 %v8711_v43, 16  ;;  %v788_v57 = vshrl.u32 %v8646_v35, 16  ;;  %v275_v22 = vld [vmem:[%s8606_s11 + $0x80] sm:$0x1] }
  0x31   : > { %12424 = vst [vmem:[#allocation14_spill] sm:$0xff] %v8720_v50  ;;  %v819_v58 = vshrl.u32 %v8708_v38, 16  ;;  %v601_v59 = vunpack.c.l.b16 %v269_v48  ;;  %v823_v62 = vrot.slane %v821_v47, 1  ;;  %v826_v63 = vshll.u32 %v8716_v46, 16  ;;  %v8761_v47 = vld [vmem:[%s8606_s11 + $0x88] sm:$0xf] }
  0x32   : > { %988 = vrot.lane.b32.xlu2 %v787_v29, %s8505_s12  ;;  %976 = vrot.lane.b32.xlu1 %v745_v30, %s8505_s12  ;;  %v801_v60 = vsel %vm719_vm0, %v796_v44, %v800_v45  ;;  %v8730_v1 = vor.u32 %v8061_v54, %v8060_v52  ;;  %v805_v2 = vshrl.u32 %v8711_v43, 16  ;;  %v809_v4 = vrot.slane %v807_v51, 1  ;;  %v272_v29 = vld [vmem:[%s8606_s11 + $0x74] sm:$0x1]  ;;  %12427 = vst [vmem:[#allocation17_spill] sm:$0xff] %v8761_v47 }
  0x33   : > { %984 = vrot.lane.b32.xlu0 %v773_v40, %s8505_s12  ;;  %v812_v5 = vshll.u32 %v8720_v50, 16  ;;  %v824_v10 = vor.u32 %v823_v62, %v819_v58  ;;  %v828_v11 = vrot.slane %v826_v63, 1  ;;  %v8742_v18 = vpack.c.b16 %v601_v59, %v601_v59  ;;  %v308_v48 = vld [vmem:[%s8606_s11 + $0x84] sm:$0xe]  ;;  %v7423_v35 = vld [vmem:[%s8606_s11 + $0xe0] sm:$0x1] }
  0x34   : > { %v835_v20 = vshll.u32 %v8730_v1, 16  ;;  %v810_v25 = vor.u32 %v809_v4, %v805_v2  ;;  %v12367_v27 = vunpack.c.l.b16 %v8735_v6  ;;  %v692_v28 = vunpack.c.l.b16 %v306_v7 }
  0x35   : > { %12426 = vst [vmem:[#allocation16_spill] sm:$0xff] %v8742_v18  ;;  %v814_v26 = vrot.slane %v812_v5, 1  ;;  %v816_v30 = vshrl.u32 %v8720_v50, 16  ;;  %v607_v31 = vunpack.c.l.b16 %v275_v22  ;;  %v8750_v32 = vor.u32 %v8064_v23, %v8063_v8  ;;  %v7414_v50 = vld [vmem:[%s8606_s11 + $0xbc] sm:$0x1] }
  0x36   : > { %v829_v33 = vsel %vm719_vm0, %v824_v10, %v828_v11  ;;  %v833_v34 = vshrl.u32 %v8730_v1, 16  ;;  %v837_v37 = vrot.slane %v835_v20, 1  ;;  %v840_v40 = vshll.u32 %v8742_v18, 16 }
  0x37   : > { %v815_v42 = vsel %vm719_vm0, %v810_v25, %v814_v26  ;;  %v604_v44 = vunpack.c.l.b16 %v272_v29  ;;  %v8758_v45 = vpack.c.b16 %v12367_v27, %v692_v28  ;;  %v8766_v51 = vpack.c.b16 %v607_v31, %v607_v31  ;;  %v8787_v25 = vld [vmem:[%s8606_s11 + $0x9c] sm:$0xff]  }
  0x38   : > { %v863_v52 = vshll.u32 %v8750_v32, 16  ;;  %v838_v54 = vor.u32 %v837_v37, %v833_v34  ;;  %v12365_v58 = vunpack.c.l.b16 %v8761_v47  ;;  %v694_v59 = vunpack.c.l.b16 %v308_v48  ;;  %12430 = vst [vmem:[#allocation20_spill] sm:$0xff] %v8787_v25  ;;  %v310_v26 = vld [vmem:[%s8606_s11 + $0x9c] sm:$0xe]  ;;  %v8066_v48 = vld [vmem:[%s8606_s11 + $0x90] sm:$0xf0] }
  0x39   : > { %12428 = vst [vmem:[#allocation18_spill] sm:$0xff] %v8766_v51  ;;  %v849_v62 = vshll.u32 %v8758_v45, 16  ;;  %v844_v63 = vshrl.u32 %v8742_v18, 16  ;;  %v861_v2 = vshrl.u32 %v8750_v32, 16  ;;  %v868_v5 = vshll.u32 %v8766_v51, 16 }
  0x3a   : > { %994 = vrot.lane.b32.xlu2 %v802_v56, %s8505_s12  ;;  %992 = vrot.lane.b32.xlu1 %v801_v60, %s8505_s12  ;;  %v842_v56 = vrot.slane %v840_v40, 1  ;;  %v8772_v60 = vpack.c.b16 %v604_v44, %v604_v44  ;;  %v865_v4 = vrot.slane %v863_v52, 1  ;;  %v830_v10 = vshrl.u32 %v8716_v46, 16  ;;  %v281_v44 = vld [vmem:[%s8606_s11 + $0x98] sm:$0x1] }
  0x3b   : > { %990 = vrot.lane.b32.xlu0 %v788_v57, %s8505_s12  ;;  %v278_v57 = vld [vmem:[%s8606_s11 + $0x8c] sm:$0x1]  ;;  %v8782_v11 = vpack.c.b16 %v12365_v58, %v694_v59  ;;  %v847_v20 = vshrl.u32 %v8758_v45, 16  ;;  %v851_v22 = vrot.slane %v849_v62, 1  ;;  %v870_v29 = vrot.slane %v868_v5, 1 }
  0x3c   : > { %12429 = vst [vmem:[#allocation19_spill] sm:$0xff] %v8772_v60  ;;  %v610_v7 = vunpack.c.l.b16 %v278_v57  ;;  %v843_v8 = vsel %vm719_vm0, %v838_v54, %v842_v56  ;;  %v854_v23 = vshll.u32 %v8772_v60, 16  ;;  %v866_v28 = vor.u32 %v865_v4, %v861_v2  ;;  %v8067_v52 = vld [vmem:[%s8606_s11 + $0x90] sm:$0xe]  ;;  %v7396_v47 = vld [vmem:[%s8606_s11 + $0x74] sm:$0x1] }
  0x3d   : > { %v877_v31 = vshll.u32 %v8782_v11, 16  ;;  %v12366_v34 = vunpack.c.h.b16 %v8787_v25  ;;  %v696_v37 = vunpack.c.l.b16 %v310_v26  ;;  %v852_v40 = vor.u32 %v851_v22, %v847_v20  ;;  %v8025_v25 = vld [vmem:[%s8606_s11 + $0x60] sm:$0xff]  }
  0x3e   : > { %v871_v54 = vsel %vm719_vm0, %v866_v28, %v870_v29  ;;  %v858_v56 = vshrl.u32 %v8772_v60, 16  ;;  %v875_v62 = vshrl.u32 %v8782_v11, 16  ;;  %v613_v4 = vunpack.c.l.b16 %v281_v44  ;;  %v8069_v28 = vld [vmem:[%s8606_s11 + $0xa8] sm:$0xf0]  ;;  %v8070_v29 = vld [vmem:[%s8606_s11 + $0xa8] sm:$0xe] }
  0x3f   : > { %v8807_v2 = vpack.c.b16 %v12366_v34, %v696_v37  ;;  %v8827_v44 = vor.u32 %v8070_v29, %v8069_v28  ;;  %v8072_v28 = vld [vmem:[%s8606_s11 + $0xc0] sm:$0xf0]  ;;  %v293_v29 = vld [vmem:[%s8606_s11 + $0xc8] sm:$0x1]  ;;  %v290_v34 = vld [vmem:[%s8606_s11 + $0xbc] sm:$0x1] }
  0x40   : > { %v8819_v26 = vpack.c.b16 %v613_v4, %v613_v4 }
  0x42   : > { %1000 = vrot.lane.b32.xlu2 %v829_v33, %s8505_s12  ;;  %998 = vrot.lane.b32.xlu1 %v816_v30, %s8505_s12  ;;  %v8792_v30 = vpack.c.b16 %v610_v7, %v610_v7  ;;  %v284_v33 = vld [vmem:[%s8606_s11 + $0xa4] sm:$0x1]  ;;  %v8810_v7 = vor.u32 %v8067_v52, %v8066_v48  ;;  %12433 = vst [vmem:[#allocation23_spill] sm:$0xff] %v8819_v26  ;;  %v903_v52 = vshrl.u32 %v8807_v2, 16 }
  0x43   : > { %996 = vrot.lane.b32.xlu0 %v815_v42, %s8505_s12  ;;  %v856_v42 = vrot.slane %v854_v23, 1  ;;  %v616_v59 = vunpack.c.l.b16 %v284_v33  ;;  %v905_v23 = vshll.u32 %v8807_v2, 16  ;;  %v872_v33 = vshrl.u32 %v8766_v51, 16 }
  0x44   : > { %12431 = vst [vmem:[#allocation21_spill] sm:$0xff] %v8792_v30  ;;  %v882_v57 = vshll.u32 %v8792_v30, 16  ;;  %v886_v37 = vshrl.u32 %v8792_v30, 16  ;;  %v7394_v30 = vld [vmem:[%s8606_s11 + $0x6c] sm:$0xf] }
  0x45   : > { %v857_v5 = vsel %vm719_vm0, %v852_v40, %v856_v42 }
  0x46   : > { %v884_v22 = vrot.slane %v882_v57, 1  ;;  %v889_v57 = vshrl.u32 %v8810_v7, 16 }
  0x4a   : > { %1006 = vrot.lane.b32.xlu2 %v844_v63, %s8505_s12  ;;  %1004 = vrot.lane.b32.xlu1 %v843_v8, %s8505_s12  ;;  %v879_v63 = vrot.slane %v877_v31, 1  ;;  %v8814_v8 = vpack.c.b16 %v616_v59, %v616_v59  ;;  %v891_v31 = vshll.u32 %v8810_v7, 16 }
  0x4b   : > { %1002 = vrot.lane.b32.xlu0 %v830_v10, %s8505_s12  ;;  %v287_v10 = vld [vmem:[%s8606_s11 + $0xb0] sm:$0x1] }
  0x4c   : > { %12432 = vst [vmem:[#allocation22_spill] sm:$0xff] %v8814_v8  ;;  %v880_v20 = vor.u32 %v879_v63, %v875_v62  ;;  %v910_v40 = vshll.u32 %v8814_v8, 16  ;;  %v619_v42 = vunpack.c.l.b16 %v287_v10  ;;  %v893_v59 = vrot.slane %v891_v31, 1  ;;  %v8834_v62 = vld [vmem:[%s8606_s11 + $0xb8] sm:$0xf] }
  0x4d   : > { %12434 = vst [vmem:[#allocation24_spill] sm:$0xff] %v8834_v62  ;;  %v312_v63 = vld [vmem:[%s8606_s11 + $0xb4] sm:$0xe]  ;;  %v8073_v31 = vld [vmem:[%s8606_s11 + $0xc0] sm:$0xe]  ;;  %v12369_v58 = vunpack.c.l.b16 %v8834_v62 }
  0x4e   : > { %v885_v48 = vsel %vm719_vm0, %v880_v20, %v884_v22  ;;  %v8839_v4 = vpack.c.b16 %v619_v42, %v619_v42  ;;  %v912_v20 = vrot.slane %v910_v40, 1  ;;  %v900_v42 = vshrl.u32 %v8819_v26, 16 }
  0x50   : > { %12435 = vst [vmem:[#allocation25_spill] sm:$0xff] %v8839_v4 }
  0x52   : > { %1012 = vrot.lane.b32.xlu2 %v871_v54, %s8505_s12  ;;  %1010 = vrot.lane.b32.xlu1 %v858_v56, %s8505_s12  ;;  %v907_v54 = vrot.slane %v905_v23, 1  ;;  %v896_v56 = vshll.u32 %v8819_v26, 16  ;;  %v894_v23 = vor.u32 %v893_v59, %v889_v57  ;;  %v622_v57 = vunpack.c.l.b16 %v290_v34  ;;  %v7376_v26 = vld [vmem:[%s8606_s11 + $0x24] sm:$0xf] }
  0x53   : > { %1008 = vrot.lane.b32.xlu0 %v857_v5, %s8505_s12  ;;  %v919_v5 = vshll.u32 %v8827_v44, 16 }
  0x54   : > { %v908_v10 = vor.u32 %v907_v54, %v903_v52  ;;  %v898_v22 = vrot.slane %v896_v56, 1  ;;  %v625_v52 = vunpack.c.l.b16 %v293_v29  ;;  %v8852_v54 = vor.u32 %v8073_v31, %v8072_v28  ;;  %v296_v31 = vld [vmem:[%s8606_s11 + $0xd4] sm:$0x1] }
  0x55   : > { %v921_v27 = vrot.slane %v919_v5, 1  ;;  %v8870_v28 = vpack.c.b16 %v622_v57, %v622_v57 }
  0x56   : > { %v913_v40 = vsel %vm719_vm0, %v908_v10, %v912_v20  ;;  %v899_v56 = vsel %vm719_vm0, %v894_v23, %v898_v22  ;;  %v8866_v20 = vpack.c.b16 %v625_v52, %v625_v52  ;;  %v947_v22 = vshll.u32 %v8852_v54, 16 }
  0x57   : > { %v700_v23 = vunpack.c.l.b16 %v314_v19  ;;  %12438 = vst [vmem:[#allocation28_spill] sm:$0xff] %v8870_v28  ;;  %v628_v52 = vunpack.c.l.b16 %v296_v31 }
  0x58   : > { %12437 = vst [vmem:[#allocation27_spill] sm:$0xff] %v8866_v20 }
  0x5a   : > { %1018 = vrot.lane.b32.xlu2 %v886_v37, %s8505_s12  ;;  %1016 = vrot.lane.b32.xlu1 %v885_v48, %s8505_s12  ;;  %v698_v37 = vunpack.c.l.b16 %v312_v63  ;;  %v917_v48 = vshrl.u32 %v8827_v44, 16  ;;  %v8860_v63 = vld [vmem:[%s8606_s11 + $0xd0] sm:$0xf] }
  0x5b   : > { %1014 = vrot.lane.b32.xlu0 %v872_v33, %s8505_s12  ;;  %v924_v33 = vshll.u32 %v8839_v4, 16  ;;  %12436 = vst [vmem:[#allocation26_spill] sm:$0xff] %v8860_v63  ;;  %v12370_v34 = vunpack.c.l.b16 %v8860_v63 }
  0x5c   : > { %v8857_v59 = vpack.c.b16 %v12369_v58, %v698_v37  ;;  %v922_v5 = vor.u32 %v921_v27, %v917_v48  ;;  %v928_v37 = vshrl.u32 %v8839_v4, 16  ;;  %v914_v27 = vshrl.u32 %v8814_v8, 16 }
  0x5d   : > { %v926_v10 = vrot.slane %v924_v33, 1  ;;  %v945_v48 = vshrl.u32 %v8852_v54, 16  ;;  %v949_v33 = vrot.slane %v947_v22, 1  ;;  %v8881_v19 = vpack.c.b16 %v12370_v34, %v700_v23 }
  0x5e   : > { %v933_v29 = vshll.u32 %v8857_v59, 16  ;;  %v938_v58 = vshll.u32 %v8870_v28, 16  ;;  %v8888_v22 = vpack.c.b16 %v628_v52, %v628_v52 }
  0x5f   : > { %v961_v23 = vshll.u32 %v8881_v19, 16  ;;  %v959_v53 = vshrl.u32 %v8881_v19, 16 }
  0x60   : > { %v935_v57 = vrot.slane %v933_v29, 1  ;;  %12439 = vst [vmem:[#allocation29_spill] sm:$0xff] %v8888_v22  ;;  %v940_v34 = vrot.slane %v938_v58, 1  ;;  %v942_v29 = vshrl.u32 %v8870_v28, 16  ;;  %v966_v39 = vshll.u32 %v8888_v22, 16 }
  0x62   : > { %1024 = vrot.lane.b32.xlu2 %v913_v40, %s8505_s12  ;;  %1022 = vrot.lane.b32.xlu1 %v900_v42, %s8505_s12  ;;  %v927_v42 = vsel %vm719_vm0, %v922_v5, %v926_v10  ;;  %v952_v40 = vshll.u32 %v8866_v20, 16  ;;  %v950_v5 = vor.u32 %v949_v33, %v945_v48  ;;  %v315_v48 = vld [vmem:[%s8606_s11 + $0x8] sm:$0x3]  ;;  %v968_v33 = vrot.slane %v966_v39, 1 }
  0x63   : > { %1020 = vrot.lane.b32.xlu0 %v899_v56, %s8505_s12  ;;  %v931_v56 = vshrl.u32 %v8857_v59, 16  ;;  %v1062_v52 = vunpack.c.l.b16 %v315_v48  ;;  %v1102_v39 = vrot.slane %v8662_v49, 1 }
  0x64   : > { %v954_v10 = vrot.slane %v952_v40, 1 }
  0x65   : > { %v936_v31 = vor.u32 %v935_v57, %v931_v56  ;;  %v970_v56 = vshrl.u32 %v8888_v22, 16 }
  0x66   : > { %v955_v3 = vsel %vm719_vm0, %v950_v5, %v954_v10  ;;  %v956_v5 = vshrl.u32 %v8866_v20, 16  ;;  %v330_v20 = vld [vmem:[%s8606_s11 + $0xbc] sm:$0x3] }
  0x6a   : > { %1030 = vrot.lane.b32.xlu2 %v928_v37, %s8505_s12  ;;  %1028 = vrot.lane.b32.xlu1 %v927_v42, %s8505_s12  ;;  %v963_v37 = vrot.slane %v961_v23, 1  ;;  %v941_v42 = vsel %vm719_vm0, %v936_v31, %v940_v34  ;;  %v1080_v34 = vpack.c.b16 %v1062_v52, %v1062_v52  ;;  %v317_v23 = vld [vmem:[%s8606_s11 + $0x20] sm:$0x3] }
  0x6b   : > { %1026 = vrot.lane.b32.xlu0 %v914_v27, %s8505_s12  ;;  %v316_v27 = vld [vmem:[%s8606_s11 + $0x14] sm:$0x3] }
  0x6c   : > { %v964_v58 = vor.u32 %v963_v37, %v959_v53  ;;  %v1063_v40 = vunpack.c.l.b16 %v316_v27  ;;  %v1099_v37 = vrot.slane %v8624_v16, 1 }
  0x6e   : > { %v969_v57 = vsel %vm719_vm0, %v964_v58, %v968_v33  ;;  %v1081_v10 = vpack.c.b16 %v1063_v40, %v1063_v40  ;;  %v319_v58 = vld [vmem:[%s8606_s11 + $0x38] sm:$0x3]  ;;  %v318_v33 = vld [vmem:[%s8606_s11 + $0x2c] sm:$0x3]  ;;  %v1105_v40 = vrot.slane %v8614_v9, 1 }
  0x6f   : > { %v1066_v52 = vunpack.c.l.b16 %v319_v58  ;;  %v322_v58 = vld [vmem:[%s8606_s11 + $0x5c] sm:$0x3] }
  0x70   : > { %v1103_v53 = vrot.slane %v1081_v10, 1 }
  0x72   : > { %1036 = vrot.lane.b32.xlu2 %v955_v3, %s8505_s12  ;;  %1034 = vrot.lane.b32.xlu1 %v942_v29, %s8505_s12  ;;  %v1064_v3 = vunpack.c.l.b16 %v317_v23  ;;  %v1100_v29 = vrot.slane %v1080_v34, 1  ;;  %v320_v34 = vld [vmem:[%s8606_s11 + $0x44] sm:$0x3]  ;;  %v1111_v23 = vrot.slane %v8648_v36, 1 }
  0x73   : > { %1032 = vrot.lane.b32.xlu0 %v941_v42, %s8505_s12  ;;  %v1104_v42 = vsel %vm1098_vm1, %v1102_v39, %v1103_v53  ;;  %v1067_v39 = vunpack.c.l.b16 %v320_v34  ;;  %v323_v34 = vld [vmem:[%s8606_s11 + $0x68] sm:$0x3] }
  0x74   : > { %v1082_v27 = vpack.c.b16 %v1064_v3, %v1064_v3  ;;  %v1101_v48 = vsel %vm1098_vm1, %v1099_v37, %v1100_v29  ;;  %v1108_v37 = vrot.slane %v8677_v61, 1 }
  0x76   : > { %v1106_v49 = vrot.slane %v1082_v27, 1  ;;  %v1085_v27 = vpack.c.b16 %v1067_v39, %v1067_v39  ;;  %v1070_v39 = vunpack.c.l.b16 %v323_v34 }
  0x78   : > { %v1115_v36 = vrot.slane %v1085_v27, 1  ;;  %v1117_v27 = vrot.slane %v8711_v43, 1 }
  0x7a   : > { %1042 = vrot.lane.b32.xlu2 %v970_v56, %s8505_s12  ;;  %1040 = vrot.lane.b32.xlu1 %v969_v57, %s8505_s12  ;;  %v1065_v56 = vunpack.c.l.b16 %v318_v33  ;;  %v1107_v57 = vsel %vm1098_vm1, %v1105_v40, %v1106_v49  ;;  %v321_v33 = vld [vmem:[%s8606_s11 + $0x50] sm:$0x3] }
  0x7b   : > { %1038 = vrot.lane.b32.xlu0 %v956_v5, %s8505_s12  ;;  %v1084_v5 = vpack.c.b16 %v1066_v52, %v1066_v52  ;;  %v1068_v52 = vunpack.c.l.b16 %v321_v33  ;;  %v1088_v33 = vpack.c.b16 %v1070_v39, %v1070_v39 }
  0x7c   : > { %v8909_v31 = vpop.permute.xlu2 %982  ;;  %v1083_v10 = vpack.c.b16 %v1065_v56, %v1065_v56 }
  0x7d   : > { %v1112_v9 = vrot.slane %v1084_v5, 1 }
  0x82   : > { %1157 = vrot.lane.b32.xlu2 %v1104_v42, %s8506_s13  ;;  %1155 = vrot.lane.b32.xlu1 %v1100_v29, %s8506_s13  ;;  %v1109_v29 = vrot.slane %v1083_v10, 1  ;;  %v1113_v42 = vsel %vm1098_vm1, %v1111_v23, %v1112_v9  ;;  %v1086_v10 = vpack.c.b16 %v1068_v52, %v1068_v52 }
  0x83   : > { %1153 = vrot.lane.b32.xlu0 %v1101_v48, %s8506_s13 }
  0x84   : > { %v8920_v16 = vpop.permute.xlu2 %980  ;;  %v1110_v48 = vsel %vm1098_vm1, %v1108_v37, %v1109_v29 }
  0x8a   : > { %1163 = vrot.lane.b32.xlu2 %v1106_v49, %s8506_s13  ;;  %1161 = vrot.lane.b32.xlu1 %v1107_v57, %s8506_s13  ;;  %v1069_v49 = vunpack.c.l.b16 %v322_v58 }
  0x8b   : > { %1159 = vrot.lane.b32.xlu0 %v1103_v53, %s8506_s13  ;;  %v1114_v53 = vrot.slane %v8694_v17, 1  ;;  %v1120_v17 = vrot.slane %v8708_v38, 1  ;;  %v1124_v38 = vrot.slane %v1088_v33, 1 }
  0x8c   : > { %v8928_v3 = vpop.permute.xlu2 %988  ;;  %v1087_v5 = vpack.c.b16 %v1069_v49, %v1069_v49  ;;  %v1123_v49 = vrot.slane %v8730_v1, 1  ;;  %v1129_v1 = vrot.slane %v8750_v32, 1 }
  0x8d   : > { %12440 = vst [vmem:[#allocation30_spill] sm:$0xff] %v8928_v3  ;;  %v1116_v57 = vsel %vm1098_vm1, %v1114_v53, %v1115_v36  ;;  %v324_v53 = vld [vmem:[%s8606_s11 + $0x74] sm:$0x3] }
  0x8e   : > { %v1121_v23 = vrot.slane %v1087_v5, 1  ;;  %v1071_v5 = vunpack.c.l.b16 %v324_v53  ;;  %v1125_v34 = vsel %vm1098_vm1, %v1123_v49, %v1124_v38  ;;  %v1126_v53 = vrot.slane %v8758_v45, 1 }
  0x90   : > { %v1122_v58 = vsel %vm1098_vm1, %v1120_v17, %v1121_v23  ;;  %v1089_v39 = vpack.c.b16 %v1071_v5, %v1071_v5 }
  0x92   : > { %1169 = vrot.lane.b32.xlu2 %v1113_v42, %s8506_s13  ;;  %1167 = vrot.lane.b32.xlu1 %v1109_v29, %s8506_s13  ;;  %v1118_v42 = vrot.slane %v1086_v10, 1 }
  0x93   : > { %1165 = vrot.lane.b32.xlu0 %v1110_v48, %s8506_s13 }
  0x94   : > { %v8939_v40 = vpop.permute.xlu2 %994  ;;  %v8941_v61 = vpop.permute.xlu1 %978 }
  0x95   : > { %12441 = vst [vmem:[#allocation31_spill] sm:$0xff] %v8939_v40  ;;  %v8943_v56 = vpop.permute.xlu0 %974 }
  0x9a   : > { %1175 = vrot.lane.b32.xlu2 %v1115_v36, %s8506_s13  ;;  %1173 = vrot.lane.b32.xlu1 %v1116_v57, %s8506_s13  ;;  %v1119_v36 = vsel %vm1098_vm1, %v1117_v27, %v1118_v42  ;;  %v326_v27 = vld [vmem:[%s8606_s11 + $0x8c] sm:$0x3] }
  0x9b   : > { %1171 = vrot.lane.b32.xlu0 %v1112_v9, %s8506_s13  ;;  %v325_v9 = vld [vmem:[%s8606_s11 + $0x80] sm:$0x3] }
  0x9c   : > { %v8951_v29 = vpop.permute.xlu2 %1000  ;;  %v8953_v37 = vpop.permute.xlu1 %986  ;;  %v1072_v43 = vunpack.c.l.b16 %v325_v9  ;;  %v1127_v9 = vrot.slane %v1089_v39, 1 }
  0x9d   : > { %12442 = vst [vmem:[#allocation32_spill] sm:$0xff] %v8951_v29  ;;  %v8956_v48 = vpop.permute.xlu0 %972 }
  0x9e   : > { %12443 = vst [vmem:[#allocation33_spill] sm:$0xff] %v8953_v37  ;;  %v1090_v17 = vpack.c.b16 %v1072_v43, %v1072_v43  ;;  %v1128_v5 = vsel %vm1098_vm1, %v1126_v53, %v1127_v9 }
  0xa2   : > { %1181 = vrot.lane.b32.xlu2 %v1122_v58, %s8506_s13  ;;  %1179 = vrot.lane.b32.xlu1 %v1118_v42, %s8506_s13  ;;  %v1130_v42 = vrot.slane %v1090_v17, 1  ;;  %v1073_v58 = vunpack.c.l.b16 %v326_v27  ;;  %v1132_v17 = vrot.slane %v8782_v11, 1  ;;  %v1138_v11 = vrot.slane %v8807_v2, 1 }
  0xa3   : > { %1177 = vrot.lane.b32.xlu0 %v1119_v36, %s8506_s13 }
  0xa4   : > { %v8966_v52 = vpop.permute.xlu2 %1006  ;;  %v8968_v57 = vpop.permute.xlu1 %976  ;;  %v1131_v43 = vsel %vm1098_vm1, %v1129_v1, %v1130_v42 }
  0xa5   : > { %12444 = vst [vmem:[#allocation34_spill] sm:$0xff] %v8966_v52  ;;  %v8970_v10 = vpop.permute.xlu0 %984 }
  0xa6   : > { %12445 = vst [vmem:[#allocation35_spill] sm:$0xff] %v8970_v10 }
  0xaa   : > { %1187 = vrot.lane.b32.xlu2 %v1124_v38, %s8506_s13  ;;  %1185 = vrot.lane.b32.xlu1 %v1125_v34, %s8506_s13  ;;  %v1091_v38 = vpack.c.b16 %v1073_v58, %v1073_v58  ;;  %v327_v34 = vld [vmem:[%s8606_s11 + $0x98] sm:$0x3] }
  0xab   : > { %1183 = vrot.lane.b32.xlu0 %v1121_v23, %s8506_s13  ;;  %v328_v23 = vld [vmem:[%s8606_s11 + $0xa4] sm:$0x3]  ;;  %v1074_v1 = vunpack.c.l.b16 %v327_v34 }
  0xac   : > { %v8978_v33 = vpop.permute.xlu2 %1012  ;;  %v8980_v36 = vpop.permute.xlu1 %992  ;;  %v1133_v32 = vrot.slane %v1091_v38, 1  ;;  %v1075_v45 = vunpack.c.l.b16 %v328_v23 }
  0xad   : > { %12446 = vst [vmem:[#allocation36_spill] sm:$0xff] %v8978_v33  ;;  %v8983_v49 = vpop.permute.xlu0 %990  ;;  %v1092_v63 = vpack.c.b16 %v1074_v1, %v1074_v1  ;;  %v9157_v33 = vld [vmem:[%s8606_s11 + $0x6c] sm:$0xff]  }
  0xae   : > { %12447 = vst [vmem:[#allocation37_spill] sm:$0xff] %v8980_v36  ;;  %v1134_v53 = vsel %vm1098_vm1, %v1132_v17, %v1133_v32  ;;  %v1093_v22 = vpack.c.b16 %v1075_v45, %v1075_v45  ;;  %v1135_v17 = vrot.slane %v8810_v7, 1  ;;  %v12392_v60 = vunpack.c.h.b16 %v9157_v33  ;;  %v7424_v36 = vld [vmem:[%s8606_s11 + $0xc] sm:$0xe] }
  0xaf   : > { %12448 = vst [vmem:[#allocation38_spill] sm:$0xff] %v8983_v49  ;;  %v1136_v34 = vrot.slane %v1092_v63, 1  ;;  %v1141_v63 = vrot.slane %v8827_v44, 1  ;;  %v1147_v44 = vrot.slane %v8852_v54, 1 }
  0xb2   : > { %1193 = vrot.lane.b32.xlu2 %v1131_v43, %s8506_s13  ;;  %1191 = vrot.lane.b32.xlu1 %v1127_v9, %s8506_s13  ;;  %v329_v43 = vld [vmem:[%s8606_s11 + $0xb0] sm:$0x3]  ;;  %v1139_v9 = vrot.slane %v1093_v22, 1 }
  0xb3   : > { %1189 = vrot.lane.b32.xlu0 %v1128_v5, %s8506_s13  ;;  %v1076_v38 = vunpack.c.l.b16 %v329_v43 }
  0xb4   : > { %v8993_v39 = vpop.permute.xlu2 %1018  ;;  %v8995_v27 = vpop.permute.xlu1 %998  ;;  %v1140_v1 = vsel %vm1098_vm1, %v1138_v11, %v1139_v9  ;;  %v1077_v11 = vunpack.c.l.b16 %v330_v20 }
  0xb5   : > { %12449 = vst [vmem:[#allocation39_spill] sm:$0xff] %v8993_v39  ;;  %v8997_v58 = vpop.permute.xlu0 %996  ;;  %v7393_v39 = vld [vmem:[%s8606_s11 + $0x68] sm:$0x1] }
  0xb6   : > { %12450 = vst [vmem:[#allocation40_spill] sm:$0xff] %v8995_v27  ;;  %v1095_v8 = vpack.c.b16 %v1077_v11, %v1077_v11  ;;  %v7412_v27 = vld [vmem:[%s8606_s11 + $0xb4] sm:$0xf] }
  0xb7   : > { %12451 = vst [vmem:[#allocation41_spill] sm:$0xff] %v8997_v58  ;;  %v8028_v58 = vld [vmem:[%s8606_s11 + $0xa8] sm:$0xff]  }
  0xba   : > { %1199 = vrot.lane.b32.xlu2 %v1133_v32, %s8506_s13  ;;  %1197 = vrot.lane.b32.xlu1 %v1134_v53, %s8506_s13  ;;  %v1094_v32 = vpack.c.b16 %v1076_v38, %v1076_v38  ;;  %v1137_v53 = vsel %vm1098_vm1, %v1135_v17, %v1136_v34 }
  0xbb   : > { %1195 = vrot.lane.b32.xlu0 %v1130_v42, %s8506_s13  ;;  %v331_v42 = vld [vmem:[%s8606_s11 + $0xc8] sm:$0x3] }
  0xbc   : > { %v9005_v5 = vpop.permute.xlu2 %1024  ;;  %v9007_v23 = vpop.permute.xlu1 %1004  ;;  %v1142_v2 = vrot.slane %v1094_v32, 1  ;;  %v1078_v7 = vunpack.c.l.b16 %v331_v42  ;;  %v1145_v42 = vrot.slane %v1095_v8, 1  ;;  %v1150_v8 = vrot.slane %v8881_v19, 1 }
  0xbd   : > { %12452 = vst [vmem:[#allocation42_spill] sm:$0xff] %v9005_v5  ;;  %v9010_v45 = vpop.permute.xlu0 %1002 }
  0xbe   : > { %12453 = vst [vmem:[#allocation43_spill] sm:$0xff] %v9007_v23  ;;  %v1143_v17 = vsel %vm1098_vm1, %v1141_v63, %v1142_v2  ;;  %v1096_v28 = vpack.c.b16 %v1078_v7, %v1078_v7  ;;  %v1144_v63 = vrot.slane %v8857_v59, 1 }
  0xbf   : > { %12454 = vst [vmem:[#allocation44_spill] sm:$0xff] %v9010_v45 }
  0xc2   : > { %1205 = vrot.lane.b32.xlu2 %v1140_v1, %s8506_s13  ;;  %1203 = vrot.lane.b32.xlu1 %v1136_v34, %s8506_s13  ;;  %v332_v1 = vld [vmem:[%s8606_s11 + $0xd4] sm:$0x3]  ;;  %v1148_v34 = vrot.slane %v1096_v28, 1 }
  0xc3   : > { %1201 = vrot.lane.b32.xlu0 %v1137_v53, %s8506_s13  ;;  %v1079_v32 = vunpack.c.l.b16 %v332_v1 }
  0xc4   : > { %v9020_v22 = vpop.permute.xlu2 %1030  ;;  %v9022_v43 = vpop.permute.xlu1 %1010 }
  0xc5   : > { %12455 = vst [vmem:[#allocation45_spill] sm:$0xff] %v9020_v22  ;;  %v9024_v38 = vpop.permute.xlu0 %1008  ;;  %v1097_v11 = vpack.c.b16 %v1079_v32, %v1079_v32  ;;  %v7370_v32 = vld [vmem:[%s8606_s11 + $0xc] sm:$0xf]  ;;  %v9136_v22 = vld [vmem:[%s8606_s11 + $0x54] sm:$0xf0] }
  0xc6   : > { %12456 = vst [vmem:[#allocation46_spill] sm:$0xff] %v9022_v43 }
  0xc7   : > { %12457 = vst [vmem:[#allocation47_spill] sm:$0xff] %v9024_v38  ;;  %v1151_v54 = vrot.slane %v1097_v11, 1 }
  0xc9   : > { %v1152_v1 = vsel %vm1098_vm1, %v1150_v8, %v1151_v54 }
  0xca   : > { %1211 = vrot.lane.b32.xlu2 %v1142_v2, %s8506_s13  ;;  %1209 = vrot.lane.b32.xlu1 %v1143_v17, %s8506_s13  ;;  %v1149_v2 = vsel %vm1098_vm1, %v1147_v44, %v1148_v34  ;;  %v7372_v44 = vld [vmem:[%s8606_s11 + $0x14] sm:$0x1] }
  0xcb   : > { %1207 = vrot.lane.b32.xlu0 %v1139_v9, %s8506_s13  ;;  %v1146_v9 = vsel %vm1098_vm1, %v1144_v63, %v1145_v42  ;;  %v1281_v19 = vunpack.c.l.b16 %v7372_v44  ;;  %v1279_v63 = vunpack.c.l.b16 %v7370_v32  ;;  %v8022_v44 = vld [vmem:[%s8606_s11 + $0x18] sm:$0xff]  }
  0xcc   : > { %v9032_v53 = vpop.permute.xlu2 %1036  ;;  %v9034_v20 = vpop.permute.xlu1 %1016 }
  0xcd   : > { %12458 = vst [vmem:[#allocation48_spill] sm:$0xff] %v9032_v53  ;;  %v9037_v7 = vpop.permute.xlu0 %1014 }
  0xce   : > { %12459 = vst [vmem:[#allocation49_spill] sm:$0xff] %v9034_v20 }
  0xcf   : > { %12460 = vst [vmem:[#allocation50_spill] sm:$0xff] %v9037_v7 }
  0xd2   : > { %1217 = vrot.lane.b32.xlu2 %v1149_v2, %s8506_s13  ;;  %1215 = vrot.lane.b32.xlu1 %v1145_v42, %s8506_s13  ;;  %v9055_v42 = vld [vmem:[%s8606_s11 + $0xc] sm:$0xff]  }
  0xd3   : > { %1213 = vrot.lane.b32.xlu0 %v1146_v9, %s8506_s13  ;;  %v12380_v2 = vunpack.c.h.b16 %v9055_v42  ;;  %v12492_v49 = vunpack.c.h.b16 %v9055_v42 }
  0xd4   : > { %v9045_v28 = vpop.permute.xlu2 %1042  ;;  %v9047_v59 = vpop.permute.xlu1 %1022 }
  0xd5   : > { %12461 = vst [vmem:[#allocation51_spill] sm:$0xff] %v9045_v28  ;;  %v9049_v17 = vpop.permute.xlu0 %1020  ;;  %v9067_v28 = vpack.c.b16 %v1281_v19, %v1281_v19  ;;  %v1285_v19 = vunpack.c.l.b16 %v7376_v26  ;;  %v7382_v26 = vld [vmem:[%s8606_s11 + $0x3c] sm:$0xf] }
  0xd6   : > { %12462 = vst [vmem:[#allocation52_spill] sm:$0xff] %v9047_v59 }
  0xd7   : > { %12463 = vst [vmem:[#allocation53_spill] sm:$0xff] %v9049_v17  ;;  %v1333_v17 = vpack.c.b16 %v12380_v2, %v1279_v63 }
  0xda   : > { %1223 = vrot.lane.b32.xlu2 %v1151_v54, %s8506_s13  ;;  %1221 = vrot.lane.b32.xlu1 %v1152_v1, %s8506_s13  ;;  %v7378_v54 = vld [vmem:[%s8606_s11 + $0x2c] sm:$0x1]  ;;  %v7375_v1 = vld [vmem:[%s8606_s11 + $0x20] sm:$0x1] }
  0xdb   : > { %1219 = vrot.lane.b32.xlu0 %v1148_v34, %s8506_s13  ;;  %v9076_v34 = vld [vmem:[%s8606_s11 + $0x24] sm:$0xff]   ;;  %v1287_v32 = vunpack.c.l.b16 %v7378_v54  ;;  %v1284_v63 = vunpack.c.l.b16 %v7375_v1  ;;  %v7381_v54 = vld [vmem:[%s8606_s11 + $0x38] sm:$0x1]  ;;  %v1291_v1 = vunpack.c.l.b16 %v7382_v26 }
  0xdc   : > { %v9061_v11 = vpop.permute.xlu2 %1157  ;;  %v9063_v9 = vpop.permute.xlu1 %1028  ;;  %v7384_v26 = vld [vmem:[%s8606_s11 + $0x44] sm:$0x1] }
  0xdd   : > { %12464 = vst [vmem:[#allocation54_spill] sm:$0xff] %v9063_v9  ;;  %v9065_v8 = vpop.permute.xlu0 %1026  ;;  %v9089_v51 = vpack.c.b16 %v1287_v32, %v1287_v32  ;;  %v9093_v7 = vpack.c.b16 %v1284_v63, %v1284_v63 }
  0xde   : > { %12465 = vst [vmem:[#allocation55_spill] sm:$0xff] %v9065_v8  ;;  %v12382_v8 = vunpack.c.h.b16 %v9076_v34 }
  0xe2   : > { %1373 = vrot.lane.b32.xlu2 %v8022_v44, %s8507_s14  ;;  %1371 = vrot.lane.b32.xlu1 %v9067_v28, %s8507_s14  ;;  %v1337_v44 = vpack.c.b16 %v12382_v8, %v1285_v19 }
  0xe3   : > { %1369 = vrot.lane.b32.xlu0 %v1333_v17, %s8507_s14  ;;  %v9098_v17 = vld [vmem:[%s8606_s11 + $0x3c] sm:$0xff]  }
  0xe4   : > { %v9083_v2 = vpop.permute.xlu2 %1163  ;;  %v9085_v9 = vpop.permute.xlu1 %1034  ;;  %v12383_v32 = vunpack.c.h.b16 %v9098_v17  ;;  %v12499_v10 = vunpack.c.h.b16 %v9098_v17 }
  0xe5   : > { %12466 = vst [vmem:[#allocation56_spill] sm:$0xff] %v9083_v2  ;;  %v9087_v59 = vpop.permute.xlu0 %1032  ;;  %v1507_v2 = vshrl.u32 %v9067_v28, 16 }
  0xe6   : > { %12467 = vst [vmem:[#allocation57_spill] sm:$0xff] %v9085_v9  ;;  %v1341_v9 = vpack.c.b16 %v12383_v32, %v1291_v1 }
  0xe7   : > { %12468 = vst [vmem:[#allocation58_spill] sm:$0xff] %v9087_v59  ;;  %v1290_v59 = vunpack.c.l.b16 %v7381_v54  ;;  %v8023_v54 = vld [vmem:[%s8606_s11 + $0x30] sm:$0xff]  }
  0xe9   : > { %v9114_v20 = vpack.c.b16 %v1290_v59, %v1290_v59 }
  0xea   : > { %1379 = vrot.lane.b32.xlu2 %v9089_v51, %s8507_s14  ;;  %1377 = vrot.lane.b32.xlu1 %v1337_v44, %s8507_s14  ;;  %v7387_v44 = vld [vmem:[%s8606_s11 + $0x50] sm:$0x1] }
  0xeb   : > { %1375 = vrot.lane.b32.xlu0 %v9093_v7, %s8507_s14 }
  0xec   : > { %v9106_v19 = vpop.permute.xlu2 %1169  ;;  %v9108_v63 = vpop.permute.xlu1 %1040 }
  0xed   : > { %12469 = vst [vmem:[#allocation59_spill] sm:$0xff] %v9106_v19  ;;  %v9110_v8 = vpop.permute.xlu0 %1038  ;;  %v1461_v19 = vunpack.c.l.b16 %v7426_v55  ;;  %v12496_v55 = vunpack.c.h.b16 %v9076_v34  ;;  %v1503_v34 = vshll.u32 %v9067_v28, 16 }
  0xee   : > { %12470 = vst [vmem:[#allocation60_spill] sm:$0xff] %v9108_v63  ;;  %v1296_v63 = vunpack.c.l.b16 %v7387_v44  ;;  %v7388_v44 = vld [vmem:[%s8606_s11 + $0x54] sm:$0xff]  }
  0xef   : > { %12471 = vst [vmem:[#allocation61_spill] sm:$0xff] %v9110_v8  ;;  %v1293_v8 = vunpack.c.l.b16 %v7384_v26  ;;  %v8024_v26 = vld [vmem:[%s8606_s11 + $0x48] sm:$0xff]   ;;  %v1505_v21 = vrot.slane %v1503_v34, 1 }
  0xf0   : > { %v9129_v32 = vpack.c.b16 %v1296_v63, %v1296_v63 }
  0xf1   : > { %v9131_v4 = vpack.c.b16 %v1293_v8, %v1293_v8 }
  0xf2   : > { %1385 = vrot.lane.b32.xlu2 %v1341_v9, %s8507_s14  ;;  %1383 = vrot.lane.b32.xlu1 %v9114_v20, %s8507_s14  ;;  %v7390_v9 = vld [vmem:[%s8606_s11 + $0x5c] sm:$0x1] }
  0xf3   : > { %1381 = vrot.lane.b32.xlu0 %v8023_v54, %s8507_s14  ;;  %v1299_v54 = vunpack.c.l.b16 %v7390_v9  ;;  %v1305_v9 = vunpack.c.l.b16 %v7396_v47  ;;  %v7400_v47 = vld [vmem:[%s8606_s11 + $0x84] sm:$0xf] }
  0xf4   : > { %v9123_v53 = vpop.permute.xlu2 %1175  ;;  %v9125_v1 = vpop.permute.xlu1 %1155 }
  0xf5   : > { %12472 = vst [vmem:[#allocation62_spill] sm:$0xff] %v9123_v53  ;;  %v9127_v59 = vpop.permute.xlu0 %1153  ;;  %v9150_v5 = vpack.c.b16 %v1299_v54, %v1299_v54  ;;  %v1302_v54 = vunpack.c.l.b16 %v7393_v39  ;;  %v9170_v18 = vpack.c.b16 %v1305_v9, %v1305_v9  ;;  %v1309_v39 = vunpack.c.l.b16 %v7400_v47  ;;  %v7402_v47 = vld [vmem:[%s8606_s11 + $0x8c] sm:$0x1]  ;;  %v9238_v53 = vld [vmem:[%s8606_s11 + $0xb4] sm:$0xff]  }
  0xf6   : > { %v1311_v45 = vunpack.c.l.b16 %v7402_v47  ;;  %v8027_v47 = vld [vmem:[%s8606_s11 + $0x90] sm:$0xff]  }
  0xf7   : > { %v9174_v52 = vpack.c.b16 %v1302_v54, %v1302_v54 }
  0xf8   : > { %v9212_v29 = vpack.c.b16 %v1311_v45, %v1311_v45 }
  0xfa   : > { %1391 = vrot.lane.b32.xlu2 %v9129_v32, %s8507_s14  ;;  %1389 = vrot.lane.b32.xlu1 %v8024_v26, %s8507_s14  ;;  %v1303_v26 = vunpack.c.l.b16 %v7394_v30  ;;  %v7399_v30 = vld [vmem:[%s8606_s11 + $0x80] sm:$0x1] }
  0xfb   : > { %1387 = vrot.lane.b32.xlu0 %v9131_v4, %s8507_s14 }
  0xfc   : > { %v9144_v63 = vpop.permute.xlu2 %1181  ;;  %v9146_v8 = vpop.permute.xlu1 %1161 }
  0xfd   : > { %12473 = vst [vmem:[#allocation63_spill] sm:$0xff] %v9144_v63  ;;  %v9148_v62 = vpop.permute.xlu0 %1159 }
 0x102   : > { %1397 = vrot.lane.b32.xlu2 %v8025_v25, %s8507_s14  ;;  %1395 = vrot.lane.b32.xlu1 %v9150_v5, %s8507_s14  ;;  %v1349_v25 = vpack.c.b16 %v12392_v60, %v1303_v26 }
 0x103   : > { %1393 = vrot.lane.b32.xlu0 %v7388_v44, %s8507_s14  ;;  %v9179_v44 = vld [vmem:[%s8606_s11 + $0x84] sm:$0xff]  }
 0x104   : > { %v9164_v43 = vpop.permute.xlu2 %1187  ;;  %v9166_v38 = vpop.permute.xlu1 %1167  ;;  %v12394_v9 = vunpack.c.h.b16 %v9179_v44 }
 0x105   : > { %12474 = vst [vmem:[#allocation64_spill] sm:$0xff] %v9164_v43  ;;  %v9168_v6 = vpop.permute.xlu0 %1165  ;;  %v1308_v43 = vunpack.c.l.b16 %v7399_v30  ;;  %v8026_v30 = vld [vmem:[%s8606_s11 + $0x78] sm:$0xff]  }
 0x106   : > { %12475 = vst [vmem:[#allocation65_spill] sm:$0xff] %v9166_v38  ;;  %v1353_v23 = vpack.c.b16 %v12394_v9, %v1309_v39 }
 0x107   : > { %12476 = vst [vmem:[#allocation66_spill] sm:$0xff] %v9168_v6  ;;  %v9195_v46 = vpack.c.b16 %v1308_v43, %v1308_v43  ;;  %v8079_v6 = vld [vmem:[%s8606_s11 + $0x30] sm:$0xe] }
 0x10a   : > { %1403 = vrot.lane.b32.xlu2 %v9170_v18, %s8507_s14  ;;  %1401 = vrot.lane.b32.xlu1 %v1349_v25, %s8507_s14  ;;  %v7405_v25 = vld [vmem:[%s8606_s11 + $0x98] sm:$0x1] }
 0x10b   : > { %1399 = vrot.lane.b32.xlu0 %v9174_v52, %s8507_s14 }
 0x10c   : > { %v9187_v26 = vpop.permute.xlu2 %1193  ;;  %v9189_v54 = vpop.permute.xlu1 %1173 }
 0x10d   : > { %12477 = vst [vmem:[#allocation67_spill] sm:$0xff] %v9187_v26  ;;  %v9191_v60 = vpop.permute.xlu0 %1171  ;;  %v1314_v26 = vunpack.c.l.b16 %v7405_v25  ;;  %v7406_v25 = vld [vmem:[%s8606_s11 + $0x9c] sm:$0xff]  }
 0x10e   : > { %12478 = vst [vmem:[#allocation68_spill] sm:$0xff] %v9189_v54  ;;  %v7417_v54 = vld [vmem:[%s8606_s11 + $0xc8] sm:$0x1] }
 0x10f   : > { %12479 = vst [vmem:[#allocation69_spill] sm:$0xff] %v9191_v60  ;;  %v9210_v9 = vpack.c.b16 %v1314_v26, %v1314_v26 }
 0x112   : > { %1409 = vrot.lane.b32.xlu2 %v1353_v23, %s8507_s14  ;;  %1407 = vrot.lane.b32.xlu1 %v9195_v46, %s8507_s14  ;;  %v7408_v23 = vld [vmem:[%s8606_s11 + $0xa4] sm:$0x1] }
 0x113   : > { %1405 = vrot.lane.b32.xlu0 %v8026_v30, %s8507_s14  ;;  %v1317_v30 = vunpack.c.l.b16 %v7408_v23  ;;  %v1323_v23 = vunpack.c.l.b16 %v7414_v50 }
 0x114   : > { %v9204_v63 = vpop.permute.xlu2 %1199  ;;  %v9206_v39 = vpop.permute.xlu1 %1179 }
 0x115   : > { %12480 = vst [vmem:[#allocation70_spill] sm:$0xff] %v9204_v63  ;;  %v9208_v43 = vpop.permute.xlu0 %1177  ;;  %v9251_v40 = vpack.c.b16 %v1323_v23, %v1323_v23 }
 0x116   : > { %12481 = vst [vmem:[#allocation71_spill] sm:$0xff] %v9206_v39  ;;  %v9231_v39 = vpack.c.b16 %v1317_v30, %v1317_v30  ;;  %v12398_v30 = vunpack.c.h.b16 %v9238_v53 }
 0x117   : > { %12482 = vst [vmem:[#allocation72_spill] sm:$0xff] %v9208_v43  ;;  %v7411_v43 = vld [vmem:[%s8606_s11 + $0xb0] sm:$0x1] }
 0x11a   : > { %1415 = vrot.lane.b32.xlu2 %v9210_v9, %s8507_s14  ;;  %1413 = vrot.lane.b32.xlu1 %v8027_v47, %s8507_s14  ;;  %v1321_v47 = vunpack.c.l.b16 %v7412_v27  ;;  %v7418_v27 = vld [vmem:[%s8606_s11 + $0xcc] sm:$0xf] }
 0x11b   : > { %1411 = vrot.lane.b32.xlu0 %v9212_v29, %s8507_s14 }
 0x11c   : > { %v9225_v26 = vpop.permute.xlu2 %1205  ;;  %v9227_v45 = vpop.permute.xlu1 %1185 }
 0x11d   : > { %12483 = vst [vmem:[#allocation73_spill] sm:$0xff] %v9225_v26  ;;  %v9229_v63 = vpop.permute.xlu0 %1183  ;;  %v1320_v26 = vunpack.c.l.b16 %v7411_v43  ;;  %v9261_v43 = vld [vmem:[%s8606_s11 + $0xcc] sm:$0xff]  }
 0x11e   : > { %12484 = vst [vmem:[#allocation74_spill] sm:$0xff] %v9227_v45  ;;  %v12401_v23 = vunpack.c.h.b16 %v9261_v43 }
 0x11f   : > { %12485 = vst [vmem:[#allocation75_spill] sm:$0xff] %v9229_v63  ;;  %v9255_v50 = vpack.c.b16 %v1320_v26, %v1320_v26  ;;  %v1459_v26 = vunpack.c.l.b16 %v7424_v36 }
 0x121   : > { %v9287_v36 = vpack.c.b16 %v12492_v49, %v1459_v26 }
 0x122   : > { %1421 = vrot.lane.b32.xlu2 %v8028_v58, %s8507_s14  ;;  %1419 = vrot.lane.b32.xlu1 %v9231_v39, %s8507_s14  ;;  %v1361_v58 = vpack.c.b16 %v12398_v30, %v1321_v47  ;;  %v1326_v47 = vunpack.c.l.b16 %v7417_v54 }
 0x123   : > { %1417 = vrot.lane.b32.xlu0 %v7406_v25, %s8507_s14  ;;  %v1327_v25 = vunpack.c.l.b16 %v7418_v27  ;;  %v1498_v42 = vshll.u32 %v9287_v36, 16 }
 0x124   : > { %v9245_v45 = vpop.permute.xlu2 %1211  ;;  %v9247_v63 = vpop.permute.xlu1 %1191  ;;  %v9279_v27 = vpack.c.b16 %v1326_v47, %v1326_v47 }
 0x125   : > { %12486 = vst [vmem:[#allocation76_spill] sm:$0xff] %v9245_v45  ;;  %v9249_v12 = vpop.permute.xlu0 %1189 }
 0x126   : > { %12487 = vst [vmem:[#allocation77_spill] sm:$0xff] %v9247_v63  ;;  %v8075_v63 = vld [vmem:[%s8606_s11 + $0x18] sm:$0xf0] }
 0x127   : > { %12488 = vst [vmem:[#allocation78_spill] sm:$0xff] %v9249_v12  ;;  %v8076_v12 = vld [vmem:[%s8606_s11 + $0x18] sm:$0xe] }
 0x128   : > { %v9283_v54 = vor.u32 %v8076_v12, %v8075_v63 }
 0x12a   : > { %1427 = vrot.lane.b32.xlu2 %v9251_v40, %s8507_s14  ;;  %1425 = vrot.lane.b32.xlu1 %v1361_v58, %s8507_s14  ;;  %v1365_v58 = vpack.c.b16 %v12401_v23, %v1327_v25  ;;  %v1332_v25 = vunpack.c.l.b16 %v7423_v35  ;;  %v1512_v12 = vshll.u32 %v9283_v54, 16  ;;  %v7428_v35 = vld [vmem:[%s8606_s11 + $0x3c] sm:$0xe] }
 0x12b   : > { %1423 = vrot.lane.b32.xlu0 %v9255_v50, %s8507_s14 }
 0x12c   : > { %v9269_v30 = vpop.permute.xlu2 %1217  ;;  %v9271_v45 = vpop.permute.xlu1 %1197  ;;  %v9307_v23 = vpack.c.b16 %v1332_v25, %v1332_v25  ;;  %v1514_v3 = vrot.slane %v1512_v12, 1 }
 0x12d   : > { %12489 = vst [vmem:[#allocation79_spill] sm:$0xff] %v9269_v30  ;;  %v9275_v60 = vpop.permute.xlu0 %1195  ;;  %v7420_v30 = vld [vmem:[%s8606_s11 + $0xd4] sm:$0x1] }
 0x12e   : > { %12490 = vst [vmem:[#allocation80_spill] sm:$0xff] %v9271_v45  ;;  %v8029_v45 = vld [vmem:[%s8606_s11 + $0xc0] sm:$0xff]   ;;  %v1329_v47 = vunpack.c.l.b16 %v7420_v30  ;;  %v1510_v30 = vshrl.u32 %v9283_v54, 16 }
 0x12f   : > { %12491 = vst [vmem:[#allocation81_spill] sm:$0xff] %v9275_v60  ;;  %v8038_v60 = vld [vmem:[%s8606_s11 + $0xd8] sm:$0xff]  }
 0x130   : > { %v1515_v25 = vor.u32 %v1514_v3, %v1510_v30 }
 0x132   : > { %1433 = vrot.lane.b32.xlu2 %v1365_v58, %s8507_s14  ;;  %1431 = vrot.lane.b32.xlu1 %v9279_v27, %s8507_s14  ;;  %v9305_v58 = vpack.c.b16 %v12496_v55, %v1461_v19  ;;  %v1463_v19 = vunpack.c.l.b16 %v7428_v35  ;;  %v8078_v35 = vld [vmem:[%s8606_s11 + $0x30] sm:$0xf0] }
 0x133   : > { %1429 = vrot.lane.b32.xlu0 %v8029_v45, %s8507_s14  ;;  %v9311_v45 = vpack.c.b16 %v1329_v47, %v1329_v47  ;;  %v9340_v34 = vor.u32 %v8079_v6, %v8078_v35  ;;  %v8081_v6 = vld [vmem:[%s8606_s11 + $0x48] sm:$0xf0] }
 0x134   : > { %v9296_v63 = vpop.permute.xlu2 %1223  ;;  %v9298_v49 = vpop.permute.xlu1 %1203  ;;  %v1526_v12 = vshll.u32 %v9305_v58, 16 }
 0x135   : > { %12493 = vst [vmem:[#allocation82_spill] sm:$0xff] %v9296_v63  ;;  %v9301_v26 = vpop.permute.xlu0 %1201  ;;  %v1517_v63 = vshll.u32 %v9093_v7, 16 }
 0x136   : > { %12494 = vst [vmem:[#allocation83_spill] sm:$0xff] %v9298_v49  ;;  %v1496_v49 = vshrl.u32 %v9287_v36, 16  ;;  %v1528_v30 = vrot.slane %v1526_v12, 1 }
 0x137   : > { %12495 = vst [vmem:[#allocation84_spill] sm:$0xff] %v9301_v26  ;;  %v1500_v26 = vrot.slane %v1498_v42, 1  ;;  %v1519_v47 = vrot.slane %v1517_v63, 1  ;;  %v1524_v63 = vshrl.u32 %v9305_v58, 16 }
 0x139   : > { %v1501_v42 = vor.u32 %v1500_v26, %v1496_v49  ;;  %v1520_v3 = vsel %vm719_vm0, %v1515_v25, %v1519_v47  ;;  %v1531_v49 = vshll.u32 %v9089_v51, 16  ;;  %v1529_v28 = vor.u32 %v1528_v30, %v1524_v63  ;;  %v8082_v47 = vld [vmem:[%s8606_s11 + $0x48] sm:$0xe] }
 0x13a   : > { %1439 = vrot.lane.b32.xlu2 %v9307_v23, %s8507_s14  ;;  %1437 = vrot.lane.b32.xlu1 %v8038_v60, %s8507_s14  ;;  %v9333_v60 = vpack.c.b16 %v12499_v10, %v1463_v19  ;;  %v1521_v30 = vshrl.u32 %v9093_v7, 16 }
 0x13b   : > { %1435 = vrot.lane.b32.xlu0 %v9311_v45, %s8507_s14  ;;  %v1506_v26 = vsel %vm719_vm0, %v1501_v42, %v1505_v21  ;;  %v1533_v17 = vrot.slane %v1531_v49, 1  ;;  %v1540_v21 = vshll.u32 %v9340_v34, 16  ;;  %v1535_v42 = vshrl.u32 %v9089_v51, 16 }
 0x13c   : > { %v9323_v55 = vpop.permute.xlu2 %1373  ;;  %v9325_v38 = vpop.permute.xlu1 %1209  ;;  %v1554_v10 = vshll.u32 %v9333_v60, 16  ;;  %v9360_v49 = vor.u32 %v8082_v47, %v8081_v6  ;;  %v8084_v47 = vld [vmem:[%s8606_s11 + $0x60] sm:$0xf0] }
 0x13d   : > { %12497 = vst [vmem:[#allocation85_spill] sm:$0xff] %v9325_v38  ;;  %v9327_v37 = vpop.permute.xlu0 %1207  ;;  %v1534_v63 = vsel %vm719_vm0, %v1529_v28, %v1533_v17  ;;  %v8085_v38 = vld [vmem:[%s8606_s11 + $0x60] sm:$0xe] }
 0x13e   : > { %12498 = vst [vmem:[#allocation86_spill] sm:$0xff] %v9327_v37  ;;  %v1556_v35 = vrot.slane %v1554_v10, 1  ;;  %v8321_v37 = vld [vmem:[%s8606_s11 + $0x54] sm:$0xe]  ;;  %v1568_v7 = vshll.u32 %v9360_v49, 16  ;;  %v9382_v41 = vor.u32 %v8085_v38, %v8084_v47  ;;  %v1563_v47 = vshrl.u32 %v9131_v4, 16 }
 0x142   : > { %1751 = vrot.lane.b32.xlu2 %v1520_v3, %s8508_s15  ;;  %1749 = vrot.lane.b32.xlu1 %v1507_v2, %s8508_s15  ;;  %v1552_v2 = vshrl.u32 %v9333_v60, 16  ;;  %v1559_v3 = vshll.u32 %v9131_v4, 16 }
 0x143   : > { %1747 = vrot.lane.b32.xlu0 %v1506_v26, %s8508_s15  ;;  %v1538_v26 = vshrl.u32 %v9340_v34, 16 }
 0x144   : > { %v9346_v19 = vpop.permute.xlu2 %1379  ;;  %v9348_v25 = vpop.permute.xlu1 %1215  ;;  %v1557_v51 = vor.u32 %v1556_v35, %v1552_v2  ;;  %v1561_v10 = vrot.slane %v1559_v3, 1  ;;  %v7432_v2 = vld [vmem:[%s8606_s11 + $0x6c] sm:$0xe]  ;;  %v1566_v35 = vshrl.u32 %v9360_v49, 16  ;;  %v1570_v3 = vrot.slane %v1568_v7, 1 }
 0x145   : > { %12500 = vst [vmem:[#allocation87_spill] sm:$0xff] %v9346_v19  ;;  %v9353_v12 = vpop.permute.xlu0 %1213  ;;  %v12507_v7 = vunpack.c.h.b16 %v9157_v33  ;;  %v1587_v33 = vshll.u32 %v9150_v5, 16 }
 0x146   : > { %12501 = vst [vmem:[#allocation88_spill] sm:$0xff] %v9348_v25  ;;  %v1542_v25 = vrot.slane %v1540_v21, 1 }
 0x147   : > { %12502 = vst [vmem:[#allocation89_spill] sm:$0xff] %v9353_v12  ;;  %v1545_v12 = vshll.u32 %v9114_v20, 16 }
 0x148   : > { %v1543_v6 = vor.u32 %v1542_v25, %v1538_v26 }
 0x149   : > { %v1547_v21 = vrot.slane %v1545_v12, 1  ;;  %v1467_v12 = vunpack.c.l.b16 %v7432_v2  ;;  %v1594_v2 = vshrl.u32 %v9382_v41, 16 }
 0x14a   : > { %1757 = vrot.lane.b32.xlu2 %v1535_v42, %s8508_s15  ;;  %1755 = vrot.lane.b32.xlu1 %v1534_v63, %s8508_s15  ;;  %v1562_v42 = vsel %vm719_vm0, %v1557_v51, %v1561_v10  ;;  %v1549_v63 = vshrl.u32 %v9114_v20, 16  ;;  %v1571_v20 = vor.u32 %v1570_v3, %v1566_v35  ;;  %v1596_v51 = vshll.u32 %v9382_v41, 16 }
 0x14b   : > { %1753 = vrot.lane.b32.xlu0 %v1521_v30, %s8508_s15  ;;  %v1573_v30 = vshll.u32 %v9129_v32, 16  ;;  %v1548_v25 = vsel %vm719_vm0, %v1543_v6, %v1547_v21  ;;  %v9401_v6 = vpack.c.b16 %v12507_v7, %v1467_v12  ;;  %v1577_v21 = vshrl.u32 %v9129_v32, 16 }
 0x14c   : > { %v9369_v28 = vpop.permute.xlu2 %1385  ;;  %v9371_v17 = vpop.permute.xlu1 %1221  ;;  %v1598_v35 = vrot.slane %v1596_v51, 1  ;;  %v1601_v3 = vshll.u32 %v9174_v52, 16 }
 0x14d   : > { %12503 = vst [vmem:[#allocation90_spill] sm:$0xff] %v9369_v28  ;;  %v9375_v19 = vpop.permute.xlu0 %1219  ;;  %v1575_v26 = vrot.slane %v1573_v30, 1 }
 0x14e   : > { %12504 = vst [vmem:[#allocation91_spill] sm:$0xff] %v9371_v17  ;;  %v9385_v17 = vor.u32 %v8321_v37, %v9136_v22  ;;  %v1599_v4 = vor.u32 %v1598_v35, %v1594_v2  ;;  %v1603_v32 = vrot.slane %v1601_v3, 1  ;;  %v1608_v2 = vshrl.u32 %v9401_v6, 16 }
 0x14f   : > { %12505 = vst [vmem:[#allocation92_spill] sm:$0xff] %v9375_v19  ;;  %v1589_v19 = vrot.slane %v1587_v33, 1  ;;  %v1615_v3 = vshll.u32 %v9170_v18, 16 }
 0x150   : > { %v1582_v37 = vshll.u32 %v9385_v17, 16  ;;  %v1580_v30 = vshrl.u32 %v9385_v17, 16 }
 0x151   : > { %v1617_v33 = vrot.slane %v1615_v3, 1 }
 0x152   : > { %1763 = vrot.lane.b32.xlu2 %v1562_v42, %s8508_s15  ;;  %1761 = vrot.lane.b32.xlu1 %v1549_v63, %s8508_s15  ;;  %v7434_v42 = vld [vmem:[%s8606_s11 + $0x84] sm:$0xe]  ;;  %v1576_v63 = vsel %vm719_vm0, %v1571_v20, %v1575_v26  ;;  %v1610_v20 = vshll.u32 %v9401_v6, 16 }
 0x153   : > { %1759 = vrot.lane.b32.xlu0 %v1548_v25, %s8508_s15  ;;  %v1584_v25 = vrot.slane %v1582_v37, 1  ;;  %v1469_v12 = vunpack.c.l.b16 %v7434_v42  ;;  %v8088_v42 = vld [vmem:[%s8606_s11 + $0x78] sm:$0xe] }
 0x154   : > { %v9392_v10 = vpop.permute.xlu2 %1391  ;;  %v9394_v38 = vpop.permute.xlu1 %1371  ;;  %v1612_v35 = vrot.slane %v1610_v20, 1 }
 0x155   : > { %12506 = vst [vmem:[#allocation93_spill] sm:$0xff] %v9392_v10  ;;  %v9397_v22 = vpop.permute.xlu0 %1369  ;;  %v1585_v7 = vor.u32 %v1584_v25, %v1580_v30  ;;  %v8087_v10 = vld [vmem:[%s8606_s11 + $0x78] sm:$0xf0] }
 0x156   : > { %v9432_v25 = vor.u32 %v8088_v42, %v8087_v10  ;;  %v8091_v10 = vld [vmem:[%s8606_s11 + $0x90] sm:$0xe] }
 0x157   : > { %v1590_v30 = vsel %vm719_vm0, %v1585_v7, %v1589_v19  ;;  %v8090_v19 = vld [vmem:[%s8606_s11 + $0x90] sm:$0xf0]  ;;  %v1619_v7 = vshrl.u32 %v9170_v18, 16 }
 0x158   : > { %v1622_v3 = vshrl.u32 %v9432_v25, 16 }
 0x15a   : > { %1769 = vrot.lane.b32.xlu2 %v1577_v21, %s8508_s15  ;;  %1767 = vrot.lane.b32.xlu1 %v1576_v63, %s8508_s15  ;;  %v12509_v21 = vunpack.c.h.b16 %v9179_v44  ;;  %v1604_v63 = vsel %vm719_vm0, %v1599_v4, %v1603_v32  ;;  %v1624_v32 = vshll.u32 %v9432_v25, 16 }
 0x15b   : > { %1765 = vrot.lane.b32.xlu0 %v1563_v47, %s8508_s15  ;;  %v1591_v47 = vshrl.u32 %v9150_v5, 16  ;;  %v1613_v5 = vor.u32 %v1612_v35, %v1608_v2  ;;  %v1605_v2 = vshrl.u32 %v9174_v52, 16  ;;  %v9452_v35 = vor.u32 %v8091_v10, %v8090_v19  ;;  %v8093_v10 = vld [vmem:[%s8606_s11 + $0xa8] sm:$0xf0] }
 0x15c   : > { %v9415_v26 = vpop.permute.xlu2 %1397  ;;  %v9417_v51 = vpop.permute.xlu1 %1377  ;;  %v9425_v28 = vpack.c.b16 %v12509_v21, %v1469_v12 }
 0x15d   : > { %12508 = vst [vmem:[#allocation94_spill] sm:$0xff] %v9415_v26  ;;  %v9419_v37 = vpop.permute.xlu0 %1375  ;;  %v8324_v26 = vld [vmem:[%s8606_s11 + $0x9c] sm:$0xe]  ;;  %v1652_v52 = vshll.u32 %v9452_v35, 16 }
 0x15e   : > { %v1638_v44 = vshll.u32 %v9425_v28, 16  ;;  %v1636_v42 = vshrl.u32 %v9425_v28, 16 }
 0x160   : > { %v1640_v21 = vrot.slane %v1638_v44, 1 }
 0x162   : > { %1775 = vrot.lane.b32.xlu2 %v1604_v63, %s8508_s15  ;;  %1773 = vrot.lane.b32.xlu1 %v1591_v47, %s8508_s15  ;;  %v1643_v47 = vshll.u32 %v9212_v29, 16  ;;  %v1618_v63 = vsel %vm719_vm0, %v1613_v5, %v1617_v33  ;;  %v1641_v18 = vor.u32 %v1640_v21, %v1636_v42  ;;  %v7438_v42 = vld [vmem:[%s8606_s11 + $0xb4] sm:$0xe]  ;;  %v1650_v21 = vshrl.u32 %v9452_v35, 16 }
 0x163   : > { %1771 = vrot.lane.b32.xlu0 %v1590_v30, %s8508_s15  ;;  %v1626_v30 = vrot.slane %v1624_v32, 1 }
 0x164   : > { %v9438_v12 = vpop.permute.xlu2 %1403  ;;  %v9440_v4 = vpop.permute.xlu1 %1383  ;;  %v1645_v44 = vrot.slane %v1643_v47, 1  ;;  %v1654_v47 = vrot.slane %v1652_v52, 1  ;;  %v12518_v52 = vunpack.c.h.b16 %v9238_v53  ;;  %v1671_v53 = vshll.u32 %v9231_v39, 16 }
 0x165   : > { %12510 = vst [vmem:[#allocation95_spill] sm:$0xff] %v9438_v12  ;;  %v9445_v20 = vpop.permute.xlu0 %1381  ;;  %v1629_v12 = vshll.u32 %v9195_v46, 16  ;;  %v1627_v19 = vor.u32 %v1626_v30, %v1622_v3  ;;  %v1473_v3 = vunpack.c.l.b16 %v7438_v42 }
 0x166   : > { %12511 = vst [vmem:[#allocation96_spill] sm:$0xff] %v9440_v4  ;;  %v8094_v4 = vld [vmem:[%s8606_s11 + $0xa8] sm:$0xe] }
 0x167   : > { %12512 = vst [vmem:[#allocation97_spill] sm:$0xff] %v9445_v20  ;;  %v1631_v32 = vrot.slane %v1629_v12, 1  ;;  %v9474_v13 = vor.u32 %v8094_v4, %v8093_v10  ;;  %v1647_v10 = vshrl.u32 %v9212_v29, 16 }
 0x169   : > { %v1632_v12 = vsel %vm719_vm0, %v1627_v19, %v1631_v32  ;;  %v9493_v19 = vpack.c.b16 %v12518_v52, %v1473_v3  ;;  %v1661_v32 = vshrl.u32 %v9210_v9, 16 }
 0x16a   : > { %1781 = vrot.lane.b32.xlu2 %v1619_v7, %s8508_s15  ;;  %1779 = vrot.lane.b32.xlu1 %v1618_v63, %s8508_s15  ;;  %v1646_v7 = vsel %vm719_vm0, %v1641_v18, %v1645_v44  ;;  %v1633_v63 = vshrl.u32 %v9195_v46, 16  ;;  %v1655_v46 = vor.u32 %v1654_v47, %v1650_v21  ;;  %v1680_v18 = vshll.u32 %v9474_v13, 16  ;;  %v7440_v47 = vld [vmem:[%s8606_s11 + $0xcc] sm:$0xe] }
 0x16b   : > { %1777 = vrot.lane.b32.xlu0 %v1605_v2, %s8508_s15  ;;  %v1657_v2 = vshll.u32 %v9210_v9, 16  ;;  %12519 = vst [vmem:[#allocation103_spill] sm:$0xff] %v9493_v19  ;;  %v1685_v21 = vshll.u32 %v9255_v50, 16  ;;  %v1694_v29 = vshll.u32 %v9493_v19, 16  ;;  %v1475_v9 = vunpack.c.l.b16 %v7440_v47 }
 0x16c   : > { %v9461_v5 = vpop.permute.xlu2 %1409  ;;  %v9463_v33 = vpop.permute.xlu1 %1389  ;;  %v1682_v42 = vrot.slane %v1680_v18, 1 }
 0x16d   : > { %12513 = vst [vmem:[#allocation98_spill] sm:$0xff] %v9461_v5  ;;  %v9467_v20 = vpop.permute.xlu0 %1387  ;;  %v9477_v5 = vor.u32 %v8324_v26, %v9217_v0  ;;  %v1659_v30 = vrot.slane %v1657_v2, 1  ;;  %v1696_v47 = vrot.slane %v1694_v29, 1 }
 0x16e   : > { %12514 = vst [vmem:[#allocation99_spill] sm:$0xff] %v9463_v33 }
 0x16f   : > { %v1666_v0 = vshll.u32 %v9477_v5, 16  ;;  %v1664_v2 = vshrl.u32 %v9477_v5, 16 }
 0x172   : > { %1787 = vrot.lane.b32.xlu2 %v1646_v7, %s8508_s15  ;;  %1785 = vrot.lane.b32.xlu1 %v1633_v63, %s8508_s15  ;;  %v1660_v7 = vsel %vm719_vm0, %v1655_v46, %v1659_v30  ;;  %v1678_v63 = vshrl.u32 %v9474_v13, 16  ;;  %v1687_v46 = vrot.slane %v1685_v21, 1 }
 0x173   : > { %1783 = vrot.lane.b32.xlu0 %v1632_v12, %s8508_s15  ;;  %v1668_v12 = vrot.slane %v1666_v0, 1 }
 0x174   : > { %v9484_v44 = vpop.permute.xlu2 %1415  ;;  %v9486_v4 = vpop.permute.xlu1 %1395  ;;  %v1683_v3 = vor.u32 %v1682_v42, %v1678_v63  ;;  %v12523_v63 = vunpack.c.h.b16 %v9261_v43 }
 0x175   : > { %12515 = vst [vmem:[#allocation100_spill] sm:$0xff] %v9484_v44  ;;  %v9489_v26 = vpop.permute.xlu0 %1393  ;;  %v1669_v52 = vor.u32 %v1668_v12, %v1664_v2  ;;  %v1673_v44 = vrot.slane %v1671_v53, 1 }
 0x176   : > { %12516 = vst [vmem:[#allocation101_spill] sm:$0xff] %v9486_v4  ;;  %v8096_v4 = vld [vmem:[%s8606_s11 + $0xc0] sm:$0xf0]  ;;  %v9520_v42 = vpack.c.b16 %v12523_v63, %v1475_v9  ;;  %v1688_v21 = vsel %vm719_vm0, %v1683_v3, %v1687_v46  ;;  %v8099_v3 = vld [vmem:[%s8606_s11 + $0xd8] sm:$0xf0] }
 0x177   : > { %12517 = vst [vmem:[#allocation102_spill] sm:$0xff] %v9489_v26  ;;  %v8097_v26 = vld [vmem:[%s8606_s11 + $0xc0] sm:$0xe]  ;;  %v1674_v2 = vsel %vm719_vm0, %v1669_v52, %v1673_v44  ;;  %v8100_v44 = vld [vmem:[%s8606_s11 + $0xd8] sm:$0xe]  ;;  %v1689_v52 = vshrl.u32 %v9255_v50, 16 }
 0x178   : > { %12524 = vst [vmem:[#allocation107_spill] sm:$0xff] %v9520_v42  ;;  %v9524_v12 = vor.u32 %v8097_v26, %v8096_v4  ;;  %v1722_v29 = vshll.u32 %v9520_v42, 16  ;;  %v1703_v26 = vshrl.u32 %v9251_v40, 16 }
 0x17a   : > { %1793 = vrot.lane.b32.xlu2 %v1661_v32, %s8508_s15  ;;  %1791 = vrot.lane.b32.xlu1 %v1660_v7, %s8508_s15  ;;  %v1675_v32 = vshrl.u32 %v9231_v39, 16  ;;  %v1692_v7 = vshrl.u32 %v9493_v19, 16  ;;  %12525 = vst [vmem:[#allocation108_spill] sm:$0xff] %v9524_v12  ;;  %v1708_v9 = vshll.u32 %v9524_v12, 16  ;;  %v1706_v63 = vshrl.u32 %v9524_v12, 16 }
 0x17b   : > { %1789 = vrot.lane.b32.xlu0 %v1647_v10, %s8508_s15  ;;  %v1699_v10 = vshll.u32 %v9251_v40, 16 }
 0x17c   : > { %v9507_v30 = vpop.permute.xlu2 %1421  ;;  %v9509_v18 = vpop.permute.xlu1 %1401  ;;  %v1697_v39 = vor.u32 %v1696_v47, %v1692_v7  ;;  %v1724_v7 = vrot.slane %v1722_v29, 1  ;;  %v1727_v47 = vshll.u32 %v9311_v45, 16 }
 0x17d   : > { %12520 = vst [vmem:[#allocation104_spill] sm:$0xff] %v9507_v30  ;;  %v9511_v0 = vpop.permute.xlu0 %1399  ;;  %v1701_v53 = vrot.slane %v1699_v10, 1  ;;  %v9544_v10 = vor.u32 %v8100_v44, %v8099_v3 }
 0x17e   : > { %12521 = vst [vmem:[#allocation105_spill] sm:$0xff] %v9509_v18  ;;  %v1729_v50 = vrot.slane %v1727_v47, 1  ;;  %v7443_v47 = vld [vmem:[%s8606_s11 + $0x20] sm:$0x3] }
 0x17f   : > { %12522 = vst [vmem:[#allocation106_spill] sm:$0xff] %v9511_v0  ;;  %v1702_v46 = vsel %vm719_vm0, %v1697_v39, %v1701_v53  ;;  %v1736_v39 = vshll.u32 %v9544_v10, 16 }
 0x180   : > { %12529 = vst [vmem:[#allocation112_spill] sm:$0xff] %v9544_v10 }
 0x182   : > { %1799 = vrot.lane.b32.xlu2 %v1688_v21, %s8508_s15  ;;  %1797 = vrot.lane.b32.xlu1 %v1675_v32, %s8508_s15  ;;  %v1720_v32 = vshrl.u32 %v9520_v42, 16  ;;  %v1710_v21 = vrot.slane %v1708_v9, 1  ;;  %v1734_v42 = vshrl.u32 %v9544_v10, 16 }
 0x183   : > { %1795 = vrot.lane.b32.xlu0 %v1674_v2, %s8508_s15  ;;  %v1713_v2 = vshll.u32 %v9279_v27, 16 }
 0x184   : > { %v9530_v30 = vpop.permute.xlu2 %1427  ;;  %v9532_v43 = vpop.permute.xlu1 %1407  ;;  %v1725_v40 = vor.u32 %v1724_v7, %v1720_v32  ;;  %v1711_v3 = vor.u32 %v1710_v21, %v1706_v63  ;;  %v1741_v32 = vshll.u32 %v9307_v23, 16  ;;  %v1838_v21 = vunpack.c.l.b16 %v7443_v47 }
 0x185   : > { %12526 = vst [vmem:[#allocation109_spill] sm:$0xff] %v9530_v30  ;;  %v9537_v4 = vpop.permute.xlu0 %1405  ;;  %v1715_v9 = vrot.slane %v1713_v2, 1  ;;  %v7442_v30 = vld [vmem:[%s8606_s11 + $0x14] sm:$0x3]  ;;  %v1873_v47 = vrot.slane %v9287_v36, 1  ;;  %v1879_v36 = vrot.slane %v9305_v58, 1 }
 0x186   : > { %12527 = vst [vmem:[#allocation110_spill] sm:$0xff] %v9532_v43  ;;  %v1856_v10 = vpack.c.b16 %v1838_v21, %v1838_v21  ;;  %v1885_v58 = vrot.slane %v9333_v60, 1  ;;  %v7465_v43 = vld [vmem:[%s8606_s11 + $0x2c] sm:$0x1] }
 0x187   : > { %12528 = vst [vmem:[#allocation111_spill] sm:$0xff] %v9537_v4  ;;  %v1716_v7 = vsel %vm719_vm0, %v1711_v3, %v1715_v9  ;;  %v1745_v3 = vshrl.u32 %v9307_v23, 16  ;;  %v2058_v18 = vunpack.c.l.b16 %v7465_v43 }
 0x18a   : > { %1805 = vrot.lane.b32.xlu2 %v1703_v26, %s8508_s15  ;;  %1803 = vrot.lane.b32.xlu1 %v1702_v46, %s8508_s15  ;;  %v1717_v26 = vshrl.u32 %v9279_v27, 16  ;;  %v1730_v46 = vsel %vm719_vm0, %v1725_v40, %v1729_v50  ;;  %v1743_v27 = vrot.slane %v1741_v32, 1  ;;  %v1837_v50 = vunpack.c.l.b16 %v7442_v30 }
 0x18b   : > { %1801 = vrot.lane.b32.xlu0 %v1689_v52, %s8508_s15  ;;  %v1738_v52 = vrot.slane %v1736_v39, 1  ;;  %v1876_v30 = vrot.slane %v9283_v54, 1 }
 0x18c   : > { %v9552_v53 = vpop.permute.xlu2 %1433  ;;  %v9554_v29 = vpop.permute.xlu1 %1413 }
 0x18d   : > { %12530 = vst [vmem:[#allocation113_spill] sm:$0xff] %v9552_v53  ;;  %v9556_v44 = vpop.permute.xlu0 %1411  ;;  %v1739_v63 = vor.u32 %v1738_v52, %v1734_v42  ;;  %v1877_v42 = vrot.slane %v1856_v10, 1 }
 0x18e   : > { %12531 = vst [vmem:[#allocation114_spill] sm:$0xff] %v9554_v29 }
 0x18f   : > { %12532 = vst [vmem:[#allocation115_spill] sm:$0xff] %v9556_v44  ;;  %v1744_v9 = vsel %vm719_vm0, %v1739_v63, %v1743_v27  ;;  %v1878_v27 = vsel %vm1098_vm1, %v1876_v30, %v1877_v42 }
 0x192   : > { %1811 = vrot.lane.b32.xlu2 %v1730_v46, %s8508_s15  ;;  %1809 = vrot.lane.b32.xlu1 %v1717_v26, %s8508_s15  ;;  %v1731_v46 = vshrl.u32 %v9311_v45, 16  ;;  %v1855_v26 = vpack.c.b16 %v1837_v50, %v1837_v50 }
 0x193   : > { %1807 = vrot.lane.b32.xlu0 %v1716_v7, %s8508_s15  ;;  %v7444_v7 = vld [vmem:[%s8606_s11 + $0x2c] sm:$0x3] }
 0x194   : > { %v9568_v2 = vpop.permute.xlu2 %1439  ;;  %v9570_v40 = vpop.permute.xlu1 %1419  ;;  %v1839_v52 = vunpack.c.l.b16 %v7444_v7  ;;  %v1874_v45 = vrot.slane %v1855_v26, 1 }
 0x195   : > { %12533 = vst [vmem:[#allocation116_spill] sm:$0xff] %v9568_v2  ;;  %v9572_v39 = vpop.permute.xlu0 %1417 }
 0x196   : > { %12534 = vst [vmem:[#allocation117_spill] sm:$0xff] %v9570_v40  ;;  %v1857_v21 = vpack.c.b16 %v1839_v52, %v1839_v52  ;;  %v1875_v50 = vsel %vm1098_vm1, %v1873_v47, %v1874_v45 }
 0x197   : > { %12535 = vst [vmem:[#allocation118_spill] sm:$0xff] %v9572_v39  ;;  %v8103_v39 = vld [vmem:[%s8606_s11 + $0x18] sm:$0xe] }
 0x198   : > { %v1880_v54 = vrot.slane %v1857_v21, 1 }
 0x19a   : > { %1817 = vrot.lane.b32.xlu2 %v1745_v3, %s8508_s15  ;;  %1815 = vrot.lane.b32.xlu1 %v1744_v9, %s8508_s15  ;;  %v7446_v3 = vld [vmem:[%s8606_s11 + $0x44] sm:$0x3]  ;;  %v7445_v9 = vld [vmem:[%s8606_s11 + $0x38] sm:$0x3]  ;;  %v1881_v52 = vsel %vm1098_vm1, %v1879_v36, %v1880_v54  ;;  %v1882_v36 = vrot.slane %v9340_v34, 1 }
 0x19b   : > { %1813 = vrot.lane.b32.xlu0 %v1731_v46, %s8508_s15  ;;  %v1841_v10 = vunpack.c.l.b16 %v7446_v3  ;;  %v1840_v7 = vunpack.c.l.b16 %v7445_v9  ;;  %s8514_s15 = smov 64  }
 0x19c   : > { %v9582_v23 = vpop.permute.xlu2 %1751  ;;  %v9584_v32 = vpop.permute.xlu1 %1425 }
 0x19d   : > { %12536 = vst [vmem:[#allocation119_spill] sm:$0xff] %v9584_v32  ;;  %v9587_v63 = vpop.permute.xlu0 %1423  ;;  %v1859_v47 = vpack.c.b16 %v1841_v10, %v1841_v10  ;;  %v1858_v2 = vpack.c.b16 %v1840_v7, %v1840_v7 }
 0x19e   : > { %12537 = vst [vmem:[#allocation120_spill] sm:$0xff] %v9587_v63 }
 0x19f   : > { %v1883_v9 = vrot.slane %v1858_v2, 1  ;;  %v1888_v2 = vrot.slane %v9360_v49, 1  ;;  %v1894_v49 = vrot.slane %v9382_v41, 1 }
 0x1a2   : > { %1931 = vrot.lane.b32.xlu2 %v1878_v27, %s8509_s16  ;;  %1929 = vrot.lane.b32.xlu1 %v1874_v45, %s8509_s16  ;;  %v7447_v27 = vld [vmem:[%s8606_s11 + $0x50] sm:$0x3]  ;;  %v1886_v45 = vrot.slane %v1859_v47, 1 }
 0x1a3   : > { %1927 = vrot.lane.b32.xlu0 %v1875_v50, %s8509_s16  ;;  %v1842_v21 = vunpack.c.l.b16 %v7447_v27 }
 0x1a4   : > { %v9597_v46 = vpop.permute.xlu2 %1757  ;;  %v9599_v26 = vpop.permute.xlu1 %1431  ;;  %v1887_v7 = vsel %vm1098_vm1, %v1885_v58, %v1886_v45 }
 0x1a5   : > { %12538 = vst [vmem:[#allocation121_spill] sm:$0xff] %v9599_v26  ;;  %v9601_v30 = vpop.permute.xlu0 %1429  ;;  %v7451_v26 = vld [vmem:[%s8606_s11 + $0x80] sm:$0x3] }
 0x1a6   : > { %12539 = vst [vmem:[#allocation122_spill] sm:$0xff] %v9601_v30  ;;  %v7448_v30 = vld [vmem:[%s8606_s11 + $0x5c] sm:$0x3] }
 0x1a7   : > { %v1843_v58 = vunpack.c.l.b16 %v7448_v30 }
 0x1aa   : > { %1937 = vrot.lane.b32.xlu2 %v1880_v54, %s8509_s16  ;;  %1935 = vrot.lane.b32.xlu1 %v1881_v52, %s8509_s16  ;;  %v1860_v54 = vpack.c.b16 %v1842_v21, %v1842_v21  ;;  %v1884_v52 = vsel %vm1098_vm1, %v1882_v36, %v1883_v9 }
 0x1ab   : > { %1933 = vrot.lane.b32.xlu0 %v1877_v42, %s8509_s16  ;;  %v7449_v42 = vld [vmem:[%s8606_s11 + $0x68] sm:$0x3] }
 0x1ac   : > { %v9609_v50 = vpop.permute.xlu2 %1763  ;;  %v9611_v3 = vpop.permute.xlu1 %1437  ;;  %v1889_v60 = vrot.slane %v1860_v54, 1  ;;  %v1844_v34 = vunpack.c.l.b16 %v7449_v42 }
 0x1ad   : > { %12540 = vst [vmem:[#allocation123_spill] sm:$0xff] %v9611_v3  ;;  %v9614_v10 = vpop.permute.xlu0 %1435 }
 0x1ae   : > { %12541 = vst [vmem:[#allocation124_spill] sm:$0xff] %v9614_v10  ;;  %v1890_v36 = vsel %vm1098_vm1, %v1888_v2, %v1889_v60  ;;  %v1862_v3 = vpack.c.b16 %v1844_v34, %v1844_v34  ;;  %v1861_v10 = vpack.c.b16 %v1843_v58, %v1843_v58  ;;  %v1891_v2 = vrot.slane %v9385_v17, 1 }
 0x1b0   : > { %v1892_v42 = vrot.slane %v1861_v10, 1 }
 0x1b2   : > { %1943 = vrot.lane.b32.xlu2 %v1887_v7, %s8509_s16  ;;  %1941 = vrot.lane.b32.xlu1 %v1883_v9, %s8509_s16  ;;  %v7450_v7 = vld [vmem:[%s8606_s11 + $0x74] sm:$0x3]  ;;  %v1895_v9 = vrot.slane %v1862_v3, 1  ;;  %v1897_v3 = vrot.slane %v9401_v6, 1  ;;  %v1903_v6 = vrot.slane %v9425_v28, 1 }
 0x1b3   : > { %1939 = vrot.lane.b32.xlu0 %v1884_v52, %s8509_s16  ;;  %v1845_v54 = vunpack.c.l.b16 %v7450_v7  ;;  %v7455_v28 = vld [vmem:[%s8606_s11 + $0xb0] sm:$0x3] }
 0x1b4   : > { %v9624_v47 = vpop.permute.xlu2 %1769  ;;  %v9626_v27 = vpop.permute.xlu1 %1749  ;;  %v1896_v58 = vsel %vm1098_vm1, %v1894_v49, %v1895_v9  ;;  %v1846_v49 = vunpack.c.l.b16 %v7451_v26 }
 0x1b5   : > { %12542 = vst [vmem:[#allocation125_spill] sm:$0xff] %v9624_v47  ;;  %v9628_v21 = vpop.permute.xlu0 %1747 }
 0x1b6   : > { %v1864_v32 = vpack.c.b16 %v1846_v49, %v1846_v49 }
 0x1ba   : > { %1949 = vrot.lane.b32.xlu2 %v1889_v60, %s8509_s16  ;;  %1947 = vrot.lane.b32.xlu1 %v1890_v36, %s8509_s16  ;;  %v1863_v60 = vpack.c.b16 %v1845_v54, %v1845_v54  ;;  %v1893_v36 = vsel %vm1098_vm1, %v1891_v2, %v1892_v42 }
 0x1bb   : > { %1945 = vrot.lane.b32.xlu0 %v1886_v45, %s8509_s16  ;;  %v7452_v45 = vld [vmem:[%s8606_s11 + $0x8c] sm:$0x3] }
 0x1bc   : > { %v9636_v30 = vpop.permute.xlu2 %1775  ;;  %v9638_v52 = vpop.permute.xlu1 %1755  ;;  %v1898_v41 = vrot.slane %v1863_v60, 1  ;;  %v1847_v17 = vunpack.c.l.b16 %v7452_v45  ;;  %v1901_v45 = vrot.slane %v1864_v32, 1  ;;  %v1906_v32 = vrot.slane %v9452_v35, 1 }
 0x1bd   : > { %12543 = vst [vmem:[#allocation126_spill] sm:$0xff] %v9636_v30  ;;  %v9641_v34 = vpop.permute.xlu0 %1753 }
 0x1be   : > { %v1899_v2 = vsel %vm1098_vm1, %v1897_v3, %v1898_v41  ;;  %v1865_v63 = vpack.c.b16 %v1847_v17, %v1847_v17  ;;  %v1900_v3 = vrot.slane %v9432_v25, 1  ;;  %v1850_v25 = vunpack.c.l.b16 %v7455_v28 }
 0x1c2   : > { %1955 = vrot.lane.b32.xlu2 %v1896_v58, %s8509_s16  ;;  %1953 = vrot.lane.b32.xlu1 %v1892_v42, %s8509_s16  ;;  %v7453_v58 = vld [vmem:[%s8606_s11 + $0x98] sm:$0x3]  ;;  %v1904_v42 = vrot.slane %v1865_v63, 1  ;;  %v7454_v63 = vld [vmem:[%s8606_s11 + $0xa4] sm:$0x3] }
 0x1c3   : > { %1951 = vrot.lane.b32.xlu0 %v1893_v36, %s8509_s16  ;;  %v1848_v60 = vunpack.c.l.b16 %v7453_v58  ;;  %v8102_v58 = vld [vmem:[%s8606_s11 + $0x18] sm:$0xf0] }
 0x1c4   : > { %v9651_v10 = vpop.permute.xlu2 %1781  ;;  %v9653_v7 = vpop.permute.xlu1 %1761  ;;  %v8104_v29 = vor.u32 %v8103_v39, %v8102_v58 }
 0x1c5   : > { %12544 = vst [vmem:[#allocation127_spill] sm:$0xff] %v9651_v10  ;;  %v9655_v54 = vpop.permute.xlu0 %1759  ;;  %v1866_v49 = vpack.c.b16 %v1848_v60, %v1848_v60  ;;  %v1849_v60 = vunpack.c.l.b16 %v7454_v63  ;;  %v8039_v10 = vld [vmem:[%s8606_s11 + $0x18] sm:$0xff]  }
 0x1c6   : > { %v2272_v35 = vshll.u32 %v8104_v29, 16 }
 0x1ca   : > { %1961 = vrot.lane.b32.xlu2 %v1898_v41, %s8509_s16  ;;  %1959 = vrot.lane.b32.xlu1 %v1899_v2, %s8509_s16  ;;  %v1905_v41 = vsel %vm1098_vm1, %v1903_v6, %v1904_v42  ;;  %v1907_v2 = vrot.slane %v1866_v49, 1  ;;  %v1912_v49 = vrot.slane %v9474_v13, 1 }
 0x1cb   : > { %1957 = vrot.lane.b32.xlu0 %v1895_v9, %s8509_s16  ;;  %v1902_v9 = vsel %vm1098_vm1, %v1900_v3, %v1901_v45  ;;  %v7462_v3 = vld [vmem:[%s8606_s11 + $0x20] sm:$0x1] }
 0x1cc   : > { %v9663_v26 = vpop.permute.xlu2 %1787  ;;  %v9665_v36 = vpop.permute.xlu1 %1767  ;;  %v2055_v44 = vunpack.c.l.b16 %v7462_v3  ;;  %v2274_v3 = vrot.slane %v2272_v35, 1 }
 0x1cd   : > { %12545 = vst [vmem:[#allocation128_spill] sm:$0xff] %v9663_v26  ;;  %v9668_v17 = vpop.permute.xlu0 %1765 }
 0x1ce   : > { %12546 = vst [vmem:[#allocation129_spill] sm:$0xff] %v9665_v36  ;;  %v2108_v39 = vpack.c.b16 %v2055_v44, %v2055_v44  ;;  %v7464_v44 = vld [vmem:[%s8606_s11 + $0x24] sm:$0xff]  }
 0x1d2   : > { %1967 = vrot.lane.b32.xlu2 %v1905_v41, %s8509_s16  ;;  %1965 = vrot.lane.b32.xlu1 %v1901_v45, %s8509_s16  ;;  %v1908_v41 = vsel %vm1098_vm1, %v1906_v32, %v1907_v2  ;;  %v1868_v45 = vpack.c.b16 %v1850_v25, %v1850_v25 }
 0x1d3   : > { %1963 = vrot.lane.b32.xlu0 %v1902_v9, %s8509_s16  ;;  %v1867_v9 = vpack.c.b16 %v1849_v60, %v1849_v60  ;;  %v2270_v60 = vshrl.u32 %v8104_v29, 16 }
 0x1d4   : > { %v9680_v40 = vpop.permute.xlu2 %1793  ;;  %v9682_v6 = vpop.permute.xlu1 %1773  ;;  %v1913_v28 = vrot.slane %v1868_v45, 1  ;;  %v7532_v45 = vld [vmem:[%s8606_s11 + $0x20] sm:$0x3] }
 0x1d5   : > { %12547 = vst [vmem:[#allocation130_spill] sm:$0xff] %v9680_v40  ;;  %v9685_v53 = vpop.permute.xlu0 %1771  ;;  %v1910_v25 = vrot.slane %v1867_v9, 1  ;;  %v8430_v40 = vld [vmem:[%s8606_s11 + $0x24] sm:$0xf0]  ;;  %v2611_v35 = vunpack.c.l.b16 %v7532_v45 }
 0x1d6   : > { %12548 = vst [vmem:[#allocation131_spill] sm:$0xff] %v9682_v6 }
 0x1d7   : > { %12549 = vst [vmem:[#allocation132_spill] sm:$0xff] %v9685_v53  ;;  %v8041_v53 = vld [vmem:[%s8606_s11 + $0x48] sm:$0xff]  }
 0x1da   : > { %1973 = vrot.lane.b32.xlu2 %v1907_v2, %s8509_s16  ;;  %1971 = vrot.lane.b32.xlu1 %v1908_v41, %s8509_s16  ;;  %v1909_v2 = vrot.slane %v9477_v5, 1  ;;  %v2277_v41 = vshll.u32 %v2108_v39, 16  ;;  %v2275_v5 = vor.u32 %v2274_v3, %v2270_v60  ;;  %v2110_v3 = vpack.c.b16 %v2058_v18, %v2058_v18 }
 0x1db   : > { %1969 = vrot.lane.b32.xlu0 %v1904_v42, %s8509_s16  ;;  %v1914_v42 = vsel %vm1098_vm1, %v1912_v49, %v1913_v28 }
 0x1dc   : > { %v9692_v63 = vpop.permute.xlu2 %1799  ;;  %v9694_v32 = vpop.permute.xlu1 %1779  ;;  %v1911_v13 = vsel %vm1098_vm1, %v1909_v2, %v1910_v25  ;;  %v2279_v9 = vrot.slane %v2277_v41, 1 }
 0x1dd   : > { %12550 = vst [vmem:[#allocation133_spill] sm:$0xff] %v9692_v63  ;;  %v9697_v58 = vpop.permute.xlu0 %1777  ;;  %v8431_v63 = vld [vmem:[%s8606_s11 + $0x24] sm:$0xe] }
 0x1de   : > { %12551 = vst [vmem:[#allocation134_spill] sm:$0xff] %v9694_v32  ;;  %v2280_v4 = vsel %vm719_vm0, %v2275_v5, %v2279_v9  ;;  %v2629_v32 = vpack.c.b16 %v2611_v35, %v2611_v35  ;;  %v2291_v5 = vshll.u32 %v2110_v3, 16  ;;  %v8105_v9 = vld [vmem:[%s8606_s11 + $0x30] sm:$0xf0]  ;;  %v8106_v35 = vld [vmem:[%s8606_s11 + $0x30] sm:$0xe] }
 0x1df   : > { %12552 = vst [vmem:[#allocation135_spill] sm:$0xff] %v9697_v58 }
 0x1e0   : > { %v2648_v60 = vrot.slane %v2629_v32, 1 }
 0x1e2   : > { %1979 = vrot.lane.b32.xlu2 %v1914_v42, %s8509_s16  ;;  %1977 = vrot.lane.b32.xlu1 %v1910_v25, %s8509_s16  ;;  %v8432_v42 = vor.u32 %v8431_v63, %v8430_v40  ;;  %v2647_v25 = vrot.slane %v8104_v29, 1  ;;  %v2281_v40 = vshrl.u32 %v2108_v39, 16  ;;  %v2293_v29 = vrot.slane %v2291_v5, 1 }
 0x1e3   : > { %1975 = vrot.lane.b32.xlu0 %v1911_v13, %s8509_s16 }
 0x1e4   : > { %v9708_v26 = vpop.permute.xlu2 %1805  ;;  %v9710_v49 = vpop.permute.xlu1 %1785  ;;  %v2286_v41 = vshll.u32 %v8432_v42, 16  ;;  %v2284_v63 = vshrl.u32 %v8432_v42, 16 }
 0x1e5   : > { %12553 = vst [vmem:[#allocation136_spill] sm:$0xff] %v9708_v26  ;;  %v9713_v2 = vpop.permute.xlu0 %1783  ;;  %v7468_v26 = vld [vmem:[%s8606_s11 + $0x38] sm:$0x1] }
 0x1e6   : > { %12554 = vst [vmem:[#allocation137_spill] sm:$0xff] %v9710_v49  ;;  %v2061_v49 = vunpack.c.l.b16 %v7468_v26  ;;  %v2295_v26 = vshrl.u32 %v2110_v3, 16 }
 0x1e7   : > { %12555 = vst [vmem:[#allocation138_spill] sm:$0xff] %v9713_v2 }
 0x1ea   : > { %2521 = vrot.lane.b32.xlu2 %v2280_v4, %s8510_s17  ;;  %2143 = vrot.lane.b32.xlu1 %v8039_v10, %s8511_s24  ;;  %v2649_v4 = vsel %vm1098_vm1, %v2647_v25, %v2648_v60  ;;  %v2288_v10 = vrot.slane %v2286_v41, 1 }
 0x1eb   : > { %1981 = vrot.lane.b32.xlu0 %v1913_v28, %s8509_s16  ;;  %v7533_v28 = vld [vmem:[%s8606_s11 + $0x2c] sm:$0x3] }
 0x1ec   : > { %v9720_v13 = vpop.permute.xlu2 %1811  ;;  %v9722_v45 = vpop.permute.xlu1 %1791  ;;  %v2289_v18 = vor.u32 %v2288_v10, %v2284_v63  ;;  %v2612_v32 = vunpack.c.l.b16 %v7533_v28  ;;  %v2112_v10 = vpack.c.b16 %v2061_v49, %v2061_v49 }
 0x1ed   : > { %12556 = vst [vmem:[#allocation139_spill] sm:$0xff] %v9720_v13  ;;  %v9724_v43 = vpop.permute.xlu0 %1789 }
 0x1ee   : > { %12557 = vst [vmem:[#allocation140_spill] sm:$0xff] %v9722_v45  ;;  %v8107_v45 = vor.u32 %v8106_v35, %v8105_v9  ;;  %v2305_v9 = vshll.u32 %v2112_v10, 16  ;;  %v7534_v35 = vld [vmem:[%s8606_s11 + $0x38] sm:$0x3] }
 0x1ef   : > { %12558 = vst [vmem:[#allocation141_spill] sm:$0xff] %v9724_v43  ;;  %v2630_v43 = vpack.c.b16 %v2612_v32, %v2612_v32 }
 0x1f1   : > { %v2651_v63 = vrot.slane %v2630_v43, 1  ;;  %v2307_v43 = vrot.slane %v2305_v9, 1 }
 0x1f2   : > { %2523 = vrot.lane.b32.xlu2 %v2281_v40, %s8510_s17  ;;  %2701 = vrot.lane.b32.xlu1 %v2649_v4, %s8512_s25  ;;  %v2294_v40 = vsel %vm719_vm0, %v2289_v18, %v2293_v29  ;;  %v2650_v4 = vrot.slane %v8432_v42, 1  ;;  %v2298_v29 = vshrl.u32 %v8107_v45, 16  ;;  %v8434_v42 = vld [vmem:[%s8606_s11 + $0x3c] sm:$0xe] }
 0x1f3   : > { %2145 = vrot.lane.b32.xlu0 %v2108_v39, %s8511_s24  ;;  %v2300_v39 = vshll.u32 %v8107_v45, 16 }
 0x1f4   : > { %v9733_v13 = vpop.permute.xlu2 %1817  ;;  %v9735_v25 = vpop.permute.xlu1 %1797 }
 0x1f5   : > { %12559 = vst [vmem:[#allocation142_spill] sm:$0xff] %v9733_v13  ;;  %v9738_v41 = vpop.permute.xlu0 %1795  ;;  %v2302_v32 = vrot.slane %v2300_v39, 1  ;;  %v2613_v13 = vunpack.c.l.b16 %v7534_v35 }
 0x1f6   : > { %12560 = vst [vmem:[#allocation143_spill] sm:$0xff] %v9735_v25  ;;  %v8040_v25 = vld [vmem:[%s8606_s11 + $0x30] sm:$0xff]  }
 0x1f7   : > { %12561 = vst [vmem:[#allocation144_spill] sm:$0xff] %v9738_v41  ;;  %v2303_v49 = vor.u32 %v2302_v32, %v2298_v29  ;;  %v2631_v2 = vpack.c.b16 %v2613_v13, %v2613_v13 }
 0x1f9   : > { %v2308_v41 = vsel %vm719_vm0, %v2303_v49, %v2307_v43  ;;  %v2654_v29 = vrot.slane %v2631_v2, 1  ;;  %v8108_v43 = vld [vmem:[%s8606_s11 + $0x48] sm:$0xf0] }
 0x1fa   : > { %2525 = vrot.lane.b32.xlu2 %v2294_v40, %s8510_s17  ;;  %2147 = vrot.lane.b32.xlu1 %v7464_v44, %s8511_s24  ;;  %v2652_v44 = vsel %vm1098_vm1, %v2650_v4, %v2651_v63  ;;  %v7470_v40 = vld [vmem:[%s8606_s11 + $0x3c] sm:$0xff]   ;;  %v7471_v4 = vld [vmem:[%s8606_s11 + $0x44] sm:$0x1] }
 0x1fb   : > { %2703 = vrot.lane.b32.xlu0 %v2648_v60, %s8512_s25  ;;  %v8433_v60 = vld [vmem:[%s8606_s11 + $0x3c] sm:$0xf0]  ;;  %v2064_v12 = vunpack.c.l.b16 %v7471_v4  ;;  %v8109_v4 = vld [vmem:[%s8606_s11 + $0x48] sm:$0xe] }
 0x1fc   : > { %v9744_v5 = vpop.permute.xlu2 %1931  ;;  %v9746_v28 = vpop.permute.xlu1 %1803 }
 0x1fd   : > { %12562 = vst [vmem:[#allocation145_spill] sm:$0xff] %v9746_v28  ;;  %v9748_v18 = vpop.permute.xlu0 %1801  ;;  %v2114_v32 = vpack.c.b16 %v2064_v12, %v2064_v12 }
 0x1fe   : > { %12563 = vst [vmem:[#allocation146_spill] sm:$0xff] %v9748_v18 }
 0x1ff   : > { %v2319_v49 = vshll.u32 %v2114_v32, 16 }
 0x201   : > { %v2321_v2 = vrot.slane %v2319_v49, 1 }
 0x202   : > { %2527 = vrot.lane.b32.xlu2 %v2295_v26, %s8510_s17  ;;  %2705 = vrot.lane.b32.xlu1 %v2652_v44, %s8512_s25  ;;  %v8435_v26 = vor.u32 %v8434_v42, %v8433_v60  ;;  %v2309_v60 = vshrl.u32 %v2112_v10, 16 }
 0x203   : > { %2149 = vrot.lane.b32.xlu0 %v2110_v3, %s8511_s24  ;;  %v2653_v3 = vrot.slane %v8107_v45, 1 }
 0x204   : > { %v9758_v18 = vpop.permute.xlu2 %1937  ;;  %v9760_v39 = vpop.permute.xlu1 %1809  ;;  %v2314_v44 = vshll.u32 %v8435_v26, 16  ;;  %v2312_v42 = vshrl.u32 %v8435_v26, 16 }
 0x205   : > { %12564 = vst [vmem:[#allocation147_spill] sm:$0xff] %v9760_v39  ;;  %v9763_v28 = vpop.permute.xlu0 %1807 }
 0x206   : > { %12565 = vst [vmem:[#allocation148_spill] sm:$0xff] %v9763_v28 }
 0x20a   : > { %2529 = vrot.lane.b32.xlu2 %v2308_v41, %s8510_s17  ;;  %2151 = vrot.lane.b32.xlu1 %v8040_v25, %s8511_s24  ;;  %v2655_v41 = vsel %vm1098_vm1, %v2653_v3, %v2654_v29  ;;  %v2316_v25 = vrot.slane %v2314_v44, 1  ;;  %v7474_v3 = vld [vmem:[%s8606_s11 + $0x50] sm:$0x1]  ;;  %v8110_v44 = vor.u32 %v8109_v4, %v8108_v43 }
 0x20b   : > { %2707 = vrot.lane.b32.xlu0 %v2651_v63, %s8512_s25  ;;  %v7535_v63 = vld [vmem:[%s8606_s11 + $0x44] sm:$0x3]  ;;  %v2067_v58 = vunpack.c.l.b16 %v7474_v3  ;;  %v7536_v4 = vld [vmem:[%s8606_s11 + $0x50] sm:$0x3]  ;;  %v7476_v3 = vld [vmem:[%s8606_s11 + $0x54] sm:$0xff]  }
 0x20c   : > { %v9770_v9 = vpop.permute.xlu2 %1943  ;;  %v9772_v35 = vpop.permute.xlu1 %1815  ;;  %v2317_v12 = vor.u32 %v2316_v25, %v2312_v42  ;;  %v2614_v45 = vunpack.c.l.b16 %v7535_v63  ;;  %v2615_v0 = vunpack.c.l.b16 %v7536_v4 }
 0x20d   : > { %12566 = vst [vmem:[#allocation149_spill] sm:$0xff] %v9772_v35  ;;  %v9774_v13 = vpop.permute.xlu0 %1813  ;;  %v2116_v25 = vpack.c.b16 %v2067_v58, %v2067_v58 }
 0x20e   : > { %12567 = vst [vmem:[#allocation150_spill] sm:$0xff] %v9774_v13  ;;  %v2322_v39 = vsel %vm719_vm0, %v2317_v12, %v2321_v2  ;;  %v2323_v2 = vshrl.u32 %v2114_v32, 16 }
 0x20f   : > { %v2333_v43 = vshll.u32 %v2116_v25, 16  ;;  %v2337_v4 = vshrl.u32 %v2116_v25, 16 }
 0x212   : > { %2531 = vrot.lane.b32.xlu2 %v2309_v60, %s8510_s17  ;;  %2709 = vrot.lane.b32.xlu1 %v2655_v41, %s8512_s25  ;;  %v2632_v60 = vpack.c.b16 %v2614_v45, %v2614_v45  ;;  %v2656_v41 = vrot.slane %v8435_v26, 1  ;;  %v8437_v26 = vld [vmem:[%s8606_s11 + $0x54] sm:$0xe] }
 0x213   : > { %2153 = vrot.lane.b32.xlu0 %v2112_v10, %s8511_s24  ;;  %v2328_v10 = vshll.u32 %v8110_v44, 16 }
 0x214   : > { %v9783_v35 = vpop.permute.xlu2 %1949  ;;  %v9785_v13 = vpop.permute.xlu1 %1929  ;;  %v2657_v42 = vrot.slane %v2632_v60, 1  ;;  %v2335_v60 = vrot.slane %v2333_v43, 1 }
 0x215   : > { %12568 = vst [vmem:[#allocation151_spill] sm:$0xff] %v9783_v35  ;;  %v9788_v28 = vpop.permute.xlu0 %1927  ;;  %v2330_v45 = vrot.slane %v2328_v10, 1  ;;  %v2633_v35 = vpack.c.b16 %v2615_v0, %v2615_v0 }
 0x21a   : > { %2533 = vrot.lane.b32.xlu2 %v2322_v39, %s8510_s17  ;;  %2155 = vrot.lane.b32.xlu1 %v7470_v40, %s8511_s24  ;;  %v2326_v39 = vshrl.u32 %v8110_v44, 16  ;;  %v2658_v40 = vsel %vm1098_vm1, %v2656_v41, %v2657_v42 }
 0x21b   : > { %2711 = vrot.lane.b32.xlu0 %v2654_v29, %s8512_s25  ;;  %v8436_v29 = vld [vmem:[%s8606_s11 + $0x54] sm:$0xf0] }
 0x21c   : > { %v9794_v49 = vpop.permute.xlu2 %1955  ;;  %v9796_v63 = vpop.permute.xlu1 %1935  ;;  %v2331_v58 = vor.u32 %v2330_v45, %v2326_v39  ;;  %v2659_v39 = vrot.slane %v8110_v44, 1  ;;  %v2660_v45 = vrot.slane %v2633_v35, 1 }
 0x21d   : > { %12569 = vst [vmem:[#allocation152_spill] sm:$0xff] %v9794_v49  ;;  %v9798_v12 = vpop.permute.xlu0 %1933  ;;  %v7477_v49 = vld [vmem:[%s8606_s11 + $0x5c] sm:$0x1] }
 0x21e   : > { %v2070_v6 = vunpack.c.l.b16 %v7477_v49  ;;  %v2336_v19 = vsel %vm719_vm0, %v2331_v58, %v2335_v60  ;;  %v8111_v58 = vld [vmem:[%s8606_s11 + $0x60] sm:$0xf0]  ;;  %v7480_v60 = vld [vmem:[%s8606_s11 + $0x68] sm:$0x1] }
 0x222   : > { %2535 = vrot.lane.b32.xlu2 %v2323_v2, %s8510_s17  ;;  %2713 = vrot.lane.b32.xlu1 %v2658_v40, %s8512_s25  ;;  %v8438_v2 = vor.u32 %v8437_v26, %v8436_v29  ;;  %v7537_v26 = vld [vmem:[%s8606_s11 + $0x5c] sm:$0x3] }
 0x223   : > { %2157 = vrot.lane.b32.xlu0 %v2114_v32, %s8511_s24  ;;  %v2118_v32 = vpack.c.b16 %v2070_v6, %v2070_v6 }
 0x224   : > { %v9809_v30 = vpop.permute.xlu2 %1961  ;;  %v9811_v10 = vpop.permute.xlu1 %1941  ;;  %v2342_v40 = vshll.u32 %v8438_v2, 16 }
 0x225   : > { %12570 = vst [vmem:[#allocation153_spill] sm:$0xff] %v9809_v30  ;;  %v9813_v41 = vpop.permute.xlu0 %1939  ;;  %v2347_v29 = vshll.u32 %v2118_v32, 16 }
 0x226   : > { %v2344_v6 = vrot.slane %v2342_v40, 1  ;;  %v2073_v40 = vunpack.c.l.b16 %v7480_v60  ;;  %v7538_v60 = vld [vmem:[%s8606_s11 + $0x68] sm:$0x3] }
 0x227   : > { %v2349_v35 = vrot.slane %v2347_v29, 1 }
 0x22a   : > { %2537 = vrot.lane.b32.xlu2 %v2336_v19, %s8510_s17  ;;  %2159 = vrot.lane.b32.xlu1 %v8041_v53, %s8511_s24  ;;  %v2661_v19 = vsel %vm1098_vm1, %v2659_v39, %v2660_v45  ;;  %v2340_v53 = vshrl.u32 %v8438_v2, 16 }
 0x22b   : > { %2715 = vrot.lane.b32.xlu0 %v2657_v42, %s8512_s25  ;;  %v2616_v42 = vunpack.c.l.b16 %v7537_v26 }
 0x22c   : > { %v9820_v43 = vpop.permute.xlu2 %1967  ;;  %v9822_v49 = vpop.permute.xlu1 %1947  ;;  %v2345_v44 = vor.u32 %v2344_v6, %v2340_v53 }
 0x22d   : > { %12571 = vst [vmem:[#allocation154_spill] sm:$0xff] %v9820_v43  ;;  %v9824_v0 = vpop.permute.xlu0 %1945  ;;  %v8112_v43 = vld [vmem:[%s8606_s11 + $0x60] sm:$0xe]  ;;  %v2634_v36 = vpack.c.b16 %v2616_v42, %v2616_v42 }
 0x22e   : > { %12572 = vst [vmem:[#allocation155_spill] sm:$0xff] %v9822_v49  ;;  %v8113_v49 = vor.u32 %v8112_v43, %v8111_v58 }
 0x22f   : > { %v2663_v53 = vrot.slane %v2634_v36, 1 }
 0x230   : > { %v2356_v29 = vshll.u32 %v8113_v49, 16 }
 0x232   : > { %2539 = vrot.lane.b32.xlu2 %v2337_v4, %s8510_s17  ;;  %2717 = vrot.lane.b32.xlu1 %v2661_v19, %s8512_s25  ;;  %v2350_v4 = vsel %vm719_vm0, %v2345_v44, %v2349_v35  ;;  %v2662_v19 = vrot.slane %v8438_v2, 1  ;;  %v2351_v35 = vshrl.u32 %v2118_v32, 16  ;;  %v2354_v44 = vshrl.u32 %v8113_v49, 16 }
 0x233   : > { %2161 = vrot.lane.b32.xlu0 %v2116_v25, %s8511_s24  ;;  %v2120_v25 = vpack.c.b16 %v2073_v40, %v2073_v40  ;;  %v2358_v42 = vrot.slane %v2356_v29, 1  ;;  %v7482_v40 = vld [vmem:[%s8606_s11 + $0x6c] sm:$0xff]  }
 0x234   : > { %v9834_v30 = vpop.permute.xlu2 %1973  ;;  %v9836_v47 = vpop.permute.xlu1 %1953  ;;  %v3559_v29 = vld [vmem:[%s12360_s1 + $0x10] sm:$0x3] }
 0x235   : > { %12573 = vst [vmem:[#allocation156_spill] sm:$0xff] %v9834_v30  ;;  %v9838_v39 = vpop.permute.xlu0 %1951  ;;  %v2361_v58 = vshll.u32 %v2120_v25, 16  ;;  %v2359_v36 = vor.u32 %v2358_v42, %v2354_v44  ;;  %v8042_v44 = vld [vmem:[%s8606_s11 + $0x60] sm:$0xff]  }
 0x236   : > { %12574 = vst [vmem:[#allocation157_spill] sm:$0xff] %v9836_v47 }
 0x237   : > { %12575 = vst [vmem:[#allocation158_spill] sm:$0xff] %v9838_v39  ;;  %v2363_v2 = vrot.slane %v2361_v58, 1 }
 0x23a   : > { %2541 = vrot.lane.b32.xlu2 %v2350_v4, %s8510_s17  ;;  %2163 = vrot.lane.b32.xlu1 %v7476_v3, %s8511_s24  ;;  %v2664_v3 = vsel %vm1098_vm1, %v2662_v19, %v2663_v53  ;;  %v8439_v4 = vld [vmem:[%s8606_s11 + $0x6c] sm:$0xf0] }
 0x23b   : > { %2719 = vrot.lane.b32.xlu0 %v2660_v45, %s8512_s25  ;;  %v8440_v45 = vld [vmem:[%s8606_s11 + $0x6c] sm:$0xe] }
 0x23c   : > { %v9844_v6 = vpop.permute.xlu2 %1979  ;;  %v9846_v43 = vpop.permute.xlu1 %1959 }
 0x23d   : > { %12576 = vst [vmem:[#allocation159_spill] sm:$0xff] %v9844_v6  ;;  %v9848_v26 = vpop.permute.xlu0 %1957  ;;  %v2617_v6 = vunpack.c.l.b16 %v7538_v60 }
 0x23e   : > { %12577 = vst [vmem:[#allocation160_spill] sm:$0xff] %v9846_v43  ;;  %v7483_v43 = vld [vmem:[%s8606_s11 + $0x74] sm:$0x1] }
 0x23f   : > { %12578 = vst [vmem:[#allocation161_spill] sm:$0xff] %v9848_v26  ;;  %v3573_v26 = vunpack.c.l.b16 %v3559_v29  ;;  %v2635_v42 = vpack.c.b16 %v2617_v6, %v2617_v6  ;;  %v2076_v58 = vunpack.c.l.b16 %v7483_v43  ;;  %v2665_v29 = vrot.slane %v8113_v49, 1  ;;  %v7782_v6 = vld [vmem:[%s12360_s1 + $0x8] sm:$0xff] }
 0x242   : > { %2543 = vrot.lane.b32.xlu2 %v2351_v35, %s8510_s17  ;;  %2721 = vrot.lane.b32.xlu1 %v2664_v3, %s8512_s25  ;;  %v2364_v35 = vsel %vm719_vm0, %v2359_v36, %v2363_v2  ;;  %v3576_v3 = vpack.c.b16 %v3573_v26, %v3573_v26  ;;  %v2365_v36 = vshrl.u32 %v2120_v25, 16 }
 0x243   : > { %2165 = vrot.lane.b32.xlu0 %v2118_v32, %s8511_s24  ;;  %v8441_v32 = vor.u32 %v8440_v45, %v8439_v4 }
 0x244   : > { %v9861_v30 = vpop.permute.xlu2 %2521  ;;  %v9863_v19 = vpop.permute.xlu1 %1965  ;;  %v3636_v60 = vsel %vm3634_vm2, %v3576_v3, 0  ;;  %v7781_v3 = vld [vmem:[%s12360_s1] sm:$0xff] }
 0x245   : > { %12579 = vst [vmem:[#allocation162_spill] sm:$0xff] %v9863_v19  ;;  %v9866_v47 = vpop.permute.xlu0 %1963  ;;  %3643 = vmatpush.bf16.msra.mxu0 %v3636_v60  ;;  %v2666_v19 = vrot.slane %v2635_v42, 1  ;;  %v2370_v26 = vshll.u32 %v8441_v32, 16  ;;  %v2368_v49 = vshrl.u32 %v8441_v32, 16 }
 0x246   : > { %12580 = vst [vmem:[#allocation163_spill] sm:$0xff] %v9866_v47  ;;  %v9874_v47 = vpack.c.b16 %v2076_v58, %v2076_v58 }
 0x247   : > { %v2372_v2 = vrot.slane %v2370_v26, 1 }
 0x249   : > { %3644 = vmatpush.bf16.msra.mxu0 %v7782_v6  ;;  %v2373_v42 = vor.u32 %v2372_v2, %v2368_v49  ;;  %v8114_v6 = vld [vmem:[%s8606_s11 + $0x78] sm:$0xf0]  ;;  %v2668_v49 = vrot.slane %v8441_v32, 1 }
 0x24a   : > { %2545 = vrot.lane.b32.xlu2 %v2364_v35, %s8510_s17  ;;  %2167 = vrot.lane.b32.xlu1 %v8042_v44, %s8511_s24  ;;  %v2375_v35 = vshll.u32 %v9874_v47, 16  ;;  %v7539_v44 = vld [vmem:[%s8606_s11 + $0x74] sm:$0x3] }
 0x24b   : > { %2723 = vrot.lane.b32.xlu0 %v2663_v53, %s8512_s25  ;;  %v2667_v53 = vsel %vm1098_vm1, %v2665_v29, %v2666_v19  ;;  %v2618_v60 = vunpack.c.l.b16 %v7539_v44 }
 0x24c   : > { %v9879_v43 = vpop.permute.xlu2 %2523  ;;  %v9881_v4 = vpop.permute.xlu1 %1971  ;;  %v2377_v58 = vrot.slane %v2375_v35, 1 }
 0x24d   : > { %12581 = vst [vmem:[#allocation164_spill] sm:$0xff] %v9881_v4  ;;  %v9883_v45 = vpop.permute.xlu0 %1969  ;;  %3645 = vmatpush.bf16.msra.mxu0 %v7781_v3  ;;  %v7486_v4 = vld [vmem:[%s8606_s11 + $0x80] sm:$0x1] }
 0x24e   : > { %12582 = vst [vmem:[#allocation165_spill] sm:$0xff] %v9883_v45  ;;  %v8115_v45 = vld [vmem:[%s8606_s11 + $0x78] sm:$0xe]  ;;  %v2378_v3 = vsel %vm719_vm0, %v2373_v42, %v2377_v58  ;;  %v2079_v33 = vunpack.c.l.b16 %v7486_v4 }
 0x250   : > { %v9913_v35 = vpack.c.b16 %v2079_v33, %v2079_v33 }
 0x252   : > { %2547 = vrot.lane.b32.xlu2 %v2365_v36, %s8510_s17  ;;  %2725 = vrot.lane.b32.xlu1 %v2667_v53, %s8512_s25  ;;  %v9904_v36 = vpack.c.b16 %v2618_v60, %v2618_v60  ;;  %v9906_v53 = vor.u32 %v8115_v45, %v8114_v6  ;;  %v2389_v6 = vshll.u32 %v9913_v35, 16 }
 0x253   : > { %2169 = vrot.lane.b32.xlu0 %v2120_v25, %s8511_s24  ;;  %v7819_v25 = vld [vmem:[%s8606_s11] sm:$0xff]  }
 0x254   : > { %v9894_v29 = vpop.permute.xlu2 %2525  ;;  %v9896_v26 = vpop.permute.xlu1 %1977  ;;  %v2669_v2 = vrot.slane %v9904_v36, 1  ;;  %v2384_v44 = vshll.u32 %v9906_v53, 16  ;;  %v2776_v4 = vsel %vm2773_vm3, %v7819_v25, %v8956_v48  ;;  %v2379_v48 = vshrl.u32 %v9874_v47, 16  ;;  %v9934_v36 = vld [vmem:[%s8606_s11 + $0x84] sm:$0xff]  }
 0x255   : > { %12583 = vst [vmem:[#allocation166_spill] sm:$0xff] %v9896_v26  ;;  %v9901_v39 = vpop.permute.xlu0 %1975  ;;  %v2382_v58 = vshrl.u32 %v9906_v53, 16  ;;  %v8442_v25 = vld [vmem:[%s8606_s11 + $0x84] sm:$0xf0] }
 0x256   : > { %12584 = vst [vmem:[#allocation167_spill] sm:$0xff] %v9901_v39  ;;  %v2670_v32 = vsel %vm1098_vm1, %v2668_v49, %v2669_v2  ;;  %v2386_v60 = vrot.slane %v2384_v44, 1  ;;  %v7489_v39 = vld [vmem:[%s8606_s11 + $0x8c] sm:$0x1] }
 0x258   : > { %v2387_v44 = vor.u32 %v2386_v60, %v2382_v58 }
 0x25a   : > { %2549 = vrot.lane.b32.xlu2 %v2378_v3, %s8510_s17  ;;  %2171 = vrot.lane.b32.xlu1 %v7482_v40, %s8511_s24  ;;  %v2866_v40 = vsel %vm12410_vm4, %v2776_v4, %v9127_v59  ;;  %v7540_v59 = vld [vmem:[%s8606_s11 + $0x80] sm:$0x3]  ;;  %v8292_v4 = vld [vmem:[%s8606_s11 + $0xc] sm:$0xff]  }
 0x25b   : > { %2727 = vrot.lane.b32.xlu0 %v2666_v19, %s8512_s25  ;;  %v2939_v19 = vsel %vm2937_vm5, %v2866_v40, %v9397_v22  ;;  %v8443_v22 = vld [vmem:[%s8606_s11 + $0x84] sm:$0xe]  ;;  %v578_v40 = vunpack.c.l.b16 %v8292_v4 }
 0x25c   : > { %v9918_v45 = vpop.permute.xlu2 %2527  ;;  %v2144_v42 = vpop.permute.xlu1 %2143  ;;  %v3012_v3 = vsel %vm3010_vm6, %v2939_v19, %v9628_v21  ;;  %v2619_v21 = vunpack.c.l.b16 %v7540_v59  ;;  %v2391_v19 = vrot.slane %v2389_v6, 1 }
 0x25d   : > { %v9922_v33 = vpop.permute.xlu0 %1981  ;;  %v3085_v49 = vsel %vm3083_vm8, %v3012_v3, %v9788_v28  ;;  %v2778_v28 = vsel %vm2773_vm3, %v8622_v15, %v8943_v56  ;;  %v8043_v15 = vld [vmem:[%s8606_s11 + $0x78] sm:$0xff]   ;;  %v2082_v56 = vunpack.c.l.b16 %v7489_v39 }
 0x25e   : > { %12585 = vst [vmem:[#allocation168_spill] sm:$0xff] %v9922_v33  ;;  %v3158_v33 = vsel %vm3156_vm7, %v3085_v49, %v2144_v42  ;;  %v9959_v60 = vpack.c.b16 %v2619_v21, %v2619_v21  ;;  %v2392_v3 = vsel %vm719_vm0, %v2387_v44, %v2391_v19  ;;  %v9965_v49 = vor.u32 %v8443_v22, %v8442_v25 }
 0x25f   : > { %v3231_v42 = vsel %vm12413_vm9, %v3158_v33, %v9861_v30 }
 0x262   : > { %2551 = vrot.lane.b32.xlu2 %v2379_v48, %s8510_s17  ;;  %2729 = vrot.lane.b32.xlu1 %v2670_v32, %s8512_s25  ;;  %v12586_v32 = vunpack.c.l.b16 %v8634_v24 }
 0x263   : > { %2173 = vrot.lane.b32.xlu0 %v9874_v47, %s8511_s24  ;;  %v2868_v47 = vsel %vm12410_vm4, %v2778_v28, %v9125_v1 }
 0x264   : > { %v9946_v26 = vpop.permute.xlu2 %2529  ;;  %v2702_v4 = vpop.permute.xlu1 %2701  ;;  %v631_v59 = vpack.c.b16 %v12586_v32, %v578_v40  ;;  %v2941_v6 = vsel %vm2937_vm5, %v2868_v47, %v9394_v38  ;;  %v2671_v38 = vrot.slane %v9906_v53, 1  ;;  %v2672_v40 = vrot.slane %v9959_v60, 1 }
 0x265   : > { %v2146_v48 = vpop.permute.xlu0 %2145  ;;  %v3304_v58 = vsel %vm3302_vm10, %v3231_v42, %v2702_v4  ;;  %v3014_v24 = vsel %vm3010_vm6, %v2941_v6, %v9626_v27  ;;  %v9979_v27 = vpack.c.b16 %v2082_v56, %v2082_v56  ;;  %v2393_v4 = vshrl.u32 %v9913_v35, 16 }
 0x266   : > { %v3087_v30 = vsel %vm3083_vm8, %v3014_v24, %v9785_v13  ;;  %v3377_v1 = vshll.u32 %v3304_v58, 16  ;;  %v2781_v39 = vsel %vm2773_vm3, %v631_v59, %v8968_v57  ;;  %v2398_v13 = vshll.u32 %v9965_v49, 16  ;;  %v8117_v24 = vld [vmem:[%s8606_s11 + $0x90] sm:$0xf0] }
 0x267   : > { %v3160_v33 = vsel %vm3156_vm7, %v3087_v30, %v2146_v48  ;;  %v2870_v25 = vsel %vm12410_vm4, %v2781_v39, %v9061_v11  ;;  %v2673_v28 = vsel %vm1098_vm1, %v2671_v38, %v2672_v40  ;;  %v2396_v11 = vshrl.u32 %v9965_v49, 16 }
 0x268   : > { %v2943_v53 = vsel %vm2937_vm5, %v2870_v25, %v9323_v55  ;;  %v3379_v44 = vrot.slane %v3377_v1, 1  ;;  %v3233_v57 = vsel %vm12413_vm9, %v3160_v33, %v9879_v43  ;;  %v3375_v42 = vshrl.u32 %v3304_v58, 16  ;;  %v7541_v43 = vld [vmem:[%s8606_s11 + $0x8c] sm:$0x3]  ;;  %v7492_v33 = vld [vmem:[%s8606_s11 + $0x98] sm:$0x1] }
 0x269   : > { %v2400_v32 = vrot.slane %v2398_v13, 1  ;;  %v2403_v59 = vshll.u32 %v9979_v27, 16  ;;  %v3016_v55 = vsel %vm3010_vm6, %v2943_v53, %v9582_v23  ;;  %v2620_v56 = vunpack.c.l.b16 %v7541_v43 }
 0x26a   : > { %2553 = vrot.lane.b32.xlu2 %v2392_v3, %s8510_s17  ;;  %2175 = vrot.lane.b32.xlu1 %v8043_v15, %s8511_s24  ;;  %v3089_v47 = vsel %vm3083_vm8, %v3016_v55, %v9744_v5  ;;  %v3380_v60 = vor.u32 %v3379_v44, %v3375_v42  ;;  %v8118_v5 = vld [vmem:[%s8606_s11 + $0x90] sm:$0xe]  ;;  %v2783_v38 = vsel %vm2773_vm3, %v8620_v14, %v8941_v61  ;;  %v2085_v14 = vunpack.c.l.b16 %v7492_v33 }
 0x26b   : > { %2731 = vrot.lane.b32.xlu0 %v2669_v2, %s8512_s25  ;;  %v2401_v23 = vor.u32 %v2400_v32, %v2396_v11  ;;  %v2405_v15 = vrot.slane %v2403_v59, 1  ;;  %v2872_v13 = vsel %vm12410_vm4, %v2783_v38, %v9148_v62  ;;  %v2407_v59 = vshrl.u32 %v9979_v27, 16 }
 0x26c   : > { %v9984_v22 = vpop.permute.xlu2 %2531  ;;  %v2148_v21 = vpop.permute.xlu1 %2147  ;;  %v2945_v53 = vsel %vm2937_vm5, %v2872_v13, %v9419_v37 }
 0x26d   : > { %v2704_v19 = vpop.permute.xlu0 %2703  ;;  %v3162_v3 = vsel %vm3156_vm7, %v3089_v47, %v2148_v21  ;;  %v10020_v21 = vor.u32 %v8118_v5, %v8117_v24  ;;  %v2406_v44 = vsel %vm719_vm0, %v2401_v23, %v2405_v15  ;;  %v3018_v61 = vsel %vm3010_vm6, %v2945_v53, %v9641_v34  ;;  %v8446_v23 = vld [vmem:[%s8606_s11 + $0x9c] sm:$0xe]  ;;  %v8294_v5 = vld [vmem:[%s8606_s11 + $0x24] sm:$0xff]  }
 0x26e   : > { %v3306_v2 = vsel %vm3302_vm10, %v3233_v57, %v2704_v19  ;;  %v10025_v57 = vpack.c.b16 %v2620_v56, %v2620_v56  ;;  %v2674_v34 = vrot.slane %v9965_v49, 1  ;;  %v12587_v53 = vld [vmem:[#allocation6_spill] sm:$0xff] }
 0x26f   : > { %v3381_v48 = vshll.u32 %v3306_v2, 16  ;;  %v2412_v37 = vshll.u32 %v10020_v21, 16  ;;  %v8293_v2 = vld [vmem:[%s8606_s11 + $0x18] sm:$0xff]  }
 0x271   : > { %v3383_v6 = vrot.slane %v3381_v48, 1  ;;  %v2414_v55 = vrot.slane %v2412_v37, 1 }
 0x272   : > { %2555 = vrot.lane.b32.xlu2 %v2393_v4, %s8510_s17  ;;  %2733 = vrot.lane.b32.xlu1 %v2673_v28, %s8512_s25  ;;  %v2786_v4 = vsel %vm2773_vm3, %v8293_v2, %v8920_v16  ;;  %v10042_v28 = vpack.c.b16 %v2085_v14, %v2085_v14 }
 0x273   : > { %2177 = vrot.lane.b32.xlu0 %v9913_v35, %s8511_s24  ;;  %v3384_v58 = vsel %vm719_vm0, %v3380_v60, %v3383_v6  ;;  %v3235_v35 = vsel %vm12413_vm9, %v3162_v3, %v9894_v29  ;;  %v3091_v29 = vsel %vm3083_vm8, %v3018_v61, %v9798_v12  ;;  %v2675_v12 = vrot.slane %v10025_v57, 1  ;;  %v7542_v6 = vld [vmem:[%s8606_s11 + $0x98] sm:$0x3]  ;;  %v12588_v61 = vld [vmem:[#allocation9_spill] sm:$0xff] }
 0x274   : > { %7558 = vmatmul.msk.bf16.vlgmr.msra.gmra.mxu0 %vm3579_vm11, %v3384_v58  ;;  %v10009_v30 = vpop.permute.xlu2 %2533  ;;  %v2706_v1 = vpop.permute.xlu1 %2705  ;;  %v2874_v11 = vsel %vm12410_vm4, %v2786_v4, %v9146_v8  ;;  %v2410_v8 = vshrl.u32 %v10020_v21, 16  ;;  %v8445_v58 = vld [vmem:[%s8606_s11 + $0x9c] sm:$0xf0] }
 0x275   : > { %v2150_v39 = vpop.permute.xlu0 %2149  ;;  %v3308_v25 = vsel %vm3302_vm10, %v3235_v35, %v2706_v1  ;;  %v2947_v16 = vsel %vm2937_vm5, %v2874_v11, %v9417_v51  ;;  %v2676_v60 = vsel %vm1098_vm1, %v2674_v34, %v2675_v12  ;;  %v2417_v51 = vshll.u32 %v10042_v28, 16  ;;  %v12591_v4 = vld [vmem:[#allocation87_spill] sm:$0xff] }
 0x276   : > { %v3387_v19 = vshll.u32 %v3308_v25, 16  ;;  %v3164_v62 = vsel %vm3156_vm7, %v3091_v29, %v2150_v39  ;;  %v3385_v43 = vshrl.u32 %v3308_v25, 16  ;;  %v3020_v3 = vsel %vm3010_vm6, %v2947_v16, %v9638_v52  ;;  %v7495_v25 = vld [vmem:[%s8606_s11 + $0xa4] sm:$0x1] }
 0x277   : > { %v3237_v49 = vsel %vm12413_vm9, %v3164_v62, %v9918_v45  ;;  %v10061_v45 = vld [vmem:[%s8606_s11 + $0x9c] sm:$0xff]   ;;  %v3093_v15 = vsel %vm3083_vm8, %v3020_v3, %v9796_v63  ;;  %v584_v1 = vunpack.c.l.b16 %v8294_v5  ;;  %v2415_v38 = vor.u32 %v2414_v55, %v2410_v8 }
 0x278   : > { %v2621_v52 = vunpack.c.l.b16 %v7542_v6  ;;  %v2419_v63 = vrot.slane %v2417_v51, 1  ;;  %v10094_v16 = vor.u32 %v8446_v23, %v8445_v58  ;;  %v12592_v8 = vld [vmem:[#allocation35_spill] sm:$0xff]  ;;  %v12594_v6 = vld [vmem:[#allocation97_spill] sm:$0xff] }
 0x27a   : > { %2557 = vrot.lane.b32.xlu2 %v2406_v44, %s8510_s17  ;;  %2179 = vrot.lane.b32.xlu1 %v9934_v36, %s8511_s24  ;;  %v2788_v44 = vsel %vm2773_vm3, %v12587_v53, %v8909_v31  ;;  %v10088_v2 = vpack.c.b16 %v2621_v52, %v2621_v52  ;;  %v2420_v11 = vsel %vm719_vm0, %v2415_v38, %v2419_v63  ;;  %v8044_v31 = vld [vmem:[%s8606_s11 + $0x90] sm:$0xff]  }
 0x27b   : > { %2735 = vrot.lane.b32.xlu0 %v2672_v40, %s8512_s25  ;;  %v3389_v40 = vrot.slane %v3387_v19, 1  ;;  %v12590_v19 = vld [vmem:[#allocation56_spill] sm:$0xff] }
 0x27c   : > { %v10046_v42 = vpop.permute.xlu2 %2535  ;;  %v2152_v36 = vpop.permute.xlu1 %2151  ;;  %v2876_v62 = vsel %vm12410_vm4, %v2788_v44, %v12590_v19  ;;  %v12595_v19 = vld [vmem:[#allocation33_spill] sm:$0xff] }
 0x27d   : > { %v2708_v48 = vpop.permute.xlu0 %2707  ;;  %v3390_v56 = vor.u32 %v3389_v40, %v3385_v43  ;;  %v3166_v33 = vsel %vm3156_vm7, %v3093_v15, %v2152_v36  ;;  %v2949_v34 = vsel %vm2937_vm5, %v2876_v62, %v12591_v4  ;;  %v2088_v36 = vunpack.c.l.b16 %v7495_v25  ;;  %v12593_v43 = vld [vmem:[#allocation66_spill] sm:$0xff]  ;;  %v12596_v62 = vld [vmem:[#allocation7_spill] sm:$0xff]  ;;  %v12597_v4 = vld [vmem:[#allocation65_spill] sm:$0xff] }
 0x27e   : > { %v3310_v32 = vsel %vm3302_vm10, %v3237_v49, %v2708_v48  ;;  %v3239_v57 = vsel %vm12413_vm9, %v3166_v33, %v9946_v26  ;;  %v3022_v26 = vsel %vm3010_vm6, %v2949_v34, %v9597_v46  ;;  %v2421_v15 = vshrl.u32 %v10042_v28, 16 }
 0x27f   : > { %v3391_v47 = vshll.u32 %v3310_v32, 16  ;;  %v3095_v40 = vsel %vm3083_vm8, %v3022_v26, %v9758_v18  ;;  %v2677_v32 = vrot.slane %v10020_v21, 1  ;;  %v10108_v46 = vpack.c.b16 %v2088_v36, %v2088_v36  ;;  %v12598_v36 = vld [vmem:[#allocation96_spill] sm:$0xff] }
 0x280   : > { %v2426_v18 = vshll.u32 %v10094_v16, 16 }
 0x281   : > { %v3393_v24 = vrot.slane %v3391_v47, 1  ;;  %v2431_v38 = vshll.u32 %v10108_v46, 16 }
 0x282   : > { %2559 = vrot.lane.b32.xlu2 %v2407_v59, %s8510_s17  ;;  %2737 = vrot.lane.b32.xlu1 %v2676_v60, %s8512_s25  ;;  %v2678_v59 = vrot.slane %v10088_v2, 1  ;;  %v2428_v33 = vrot.slane %v2426_v18, 1 }
 0x283   : > { %2181 = vrot.lane.b32.xlu0 %v9979_v27, %s8511_s24  ;;  %v3394_v35 = vsel %vm719_vm0, %v3390_v56, %v3393_v24  ;;  %v12589_v27 = vunpack.c.l.b16 %v12588_v61  ;;  %v2424_v24 = vshrl.u32 %v10094_v16, 16  ;;  %v8121_v61 = vld [vmem:[%s8606_s11 + $0xa8] sm:$0xe] }
 0x284   : > { %7559 = vmatmul.msk.bf16.gmra.mxu0 %vm3579_vm11, %v3394_v35  ;;  %v10075_v39 = vpop.permute.xlu2 %2537  ;;  %v2710_v13 = vpop.permute.xlu1 %2709  ;;  %v2679_v56 = vsel %vm1098_vm1, %v2677_v32, %v2678_v59 }
 0x285   : > { %v2154_v14 = vpop.permute.xlu0 %2153  ;;  %v635_v29 = vpack.c.b16 %v12589_v27, %v584_v1  ;;  %v3312_v37 = vsel %vm3302_vm10, %v3239_v57, %v2710_v13  ;;  %v2429_v44 = vor.u32 %v2428_v33, %v2424_v24  ;;  %v2435_v24 = vshrl.u32 %v10108_v46, 16 }
 0x286   : > { %v3397_v49 = vshll.u32 %v3312_v37, 16  ;;  %v3168_v48 = vsel %vm3156_vm7, %v3095_v40, %v2154_v14  ;;  %v3395_v5 = vshrl.u32 %v3312_v37, 16  ;;  %v8120_v14 = vld [vmem:[%s8606_s11 + $0xa8] sm:$0xf0]  ;;  %v2793_v37 = vsel %vm2773_vm3, %v12596_v62, %v12595_v19 }
 0x287   : > { %v2791_v55 = vsel %vm2773_vm3, %v635_v29, %v12592_v8  ;;  %v3241_v58 = vsel %vm12413_vm9, %v3168_v48, %v9984_v22  ;;  %v7543_v22 = vld [vmem:[%s8606_s11 + $0xa4] sm:$0x3]  ;;  %v7498_v29 = vld [vmem:[%s8606_s11 + $0xb0] sm:$0x1]  ;;  %v2880_v34 = vsel %vm12410_vm4, %v2793_v37, %v12597_v4  ;;  %v7501_v37 = vld [vmem:[%s8606_s11 + $0xbc] sm:$0x1] }
 0x288   : > { %v2878_v47 = vsel %vm12410_vm4, %v2791_v55, %v12593_v43  ;;  %v3399_v3 = vrot.slane %v3397_v49, 1  ;;  %v2622_v57 = vunpack.c.l.b16 %v7543_v22  ;;  %v2953_v26 = vsel %vm2937_vm5, %v2880_v34, %v12598_v36  ;;  %v8295_v43 = vld [vmem:[%s8606_s11 + $0x30] sm:$0xff]   ;;  %v12604_v36 = vld [vmem:[#allocation10_spill] sm:$0xff] }
 0x289   : > { %v2951_v21 = vsel %vm2937_vm5, %v2878_v47, %v12594_v6  ;;  %v2091_v48 = vunpack.c.l.b16 %v7498_v29  ;;  %v12599_v47 = vld [vmem:[#allocation30_spill] sm:$0xff] }
 0x28a   : > { %2561 = vrot.lane.b32.xlu2 %v2420_v11, %s8510_s17  ;;  %2183 = vrot.lane.b32.xlu1 %v8044_v31, %s8511_s24  ;;  %v3024_v52 = vsel %vm3010_vm6, %v2951_v21, %v9655_v54  ;;  %v3400_v63 = vor.u32 %v3399_v3, %v3395_v5  ;;  %v2433_v54 = vrot.slane %v2431_v38, 1  ;;  %v10149_v31 = vor.u32 %v8121_v61, %v8120_v14  ;;  %v12600_v21 = vld [vmem:[#allocation59_spill] sm:$0xff] }
 0x28b   : > { %2739 = vrot.lane.b32.xlu0 %v2675_v12, %s8512_s25  ;;  %v3097_v35 = vsel %vm3083_vm8, %v3024_v52, %v9813_v41  ;;  %v10154_v49 = vpack.c.b16 %v2622_v57, %v2622_v57  ;;  %v10171_v6 = vpack.c.b16 %v2091_v48, %v2091_v48  ;;  %v8296_v57 = vld [vmem:[%s8606_s11 + $0x3c] sm:$0xff]  }
 0x28c   : > { %v10113_v60 = vpop.permute.xlu2 %2539  ;;  %v2156_v51 = vpop.permute.xlu1 %2155  ;;  %v2434_v40 = vsel %vm719_vm0, %v2429_v44, %v2433_v54  ;;  %v2440_v18 = vshll.u32 %v10149_v31, 16  ;;  %v2438_v5 = vshrl.u32 %v10149_v31, 16  ;;  %v590_v14 = vunpack.c.l.b16 %v8296_v57 }
 0x28d   : > { %v2712_v23 = vpop.permute.xlu0 %2711  ;;  %v3170_v25 = vsel %vm3156_vm7, %v3097_v35, %v2156_v51  ;;  %v2796_v51 = vsel %vm2773_vm3, %v8295_v43, %v12599_v47  ;;  %v2445_v22 = vshll.u32 %v10171_v6, 16  ;;  %v7544_v35 = vld [vmem:[%s8606_s11 + $0xb0] sm:$0x3] }
 0x28e   : > { %v3314_v12 = vsel %vm3302_vm10, %v3241_v58, %v2712_v23  ;;  %v2882_v3 = vsel %vm12410_vm4, %v2796_v51, %v12600_v21  ;;  %v12601_v23 = vld [vmem:[#allocation90_spill] sm:$0xff] }
 0x28f   : > { %v3401_v1 = vshll.u32 %v3314_v12, 16  ;;  %v2955_v12 = vsel %vm2937_vm5, %v2882_v3, %v12601_v23  ;;  %v12607_v3 = vld [vmem:[#allocation37_spill] sm:$0xff]  ;;  %v12608_v23 = vld [vmem:[#allocation68_spill] sm:$0xff] }
 0x291   : > { %v3403_v13 = vrot.slane %v3401_v1, 1  ;;  %v2442_v1 = vrot.slane %v2440_v18, 1  ;;  %v2094_v18 = vunpack.c.l.b16 %v7501_v37  ;;  %v12612_v37 = vld [vmem:[#allocation31_spill] sm:$0xff] }
 0x292   : > { %2563 = vrot.lane.b32.xlu2 %v2421_v15, %s8510_s17  ;;  %2741 = vrot.lane.b32.xlu1 %v2679_v56, %s8512_s25 }
 0x293   : > { %2185 = vrot.lane.b32.xlu0 %v10042_v28, %s8511_s24  ;;  %v3404_v53 = vsel %vm719_vm0, %v3400_v63, %v3403_v13  ;;  %v3243_v28 = vsel %vm12413_vm9, %v3170_v25, %v10009_v30  ;;  %v3026_v30 = vsel %vm3010_vm6, %v2953_v26, %v9653_v7  ;;  %v2680_v7 = vrot.slane %v10094_v16, 1  ;;  %v8448_v13 = vld [vmem:[%s8606_s11 + $0xb4] sm:$0xf0]  ;;  %v8449_v25 = vld [vmem:[%s8606_s11 + $0xb4] sm:$0xe] }
 0x294   : > { %7560 = vmatmul.msk.bf16.gmra.mxu0 %vm3579_vm11, %v3404_v53  ;;  %v10138_v41 = vpop.permute.xlu2 %2541  ;;  %v2714_v27 = vpop.permute.xlu1 %2713  ;;  %v3099_v32 = vsel %vm3083_vm8, %v3026_v30, %v9811_v10  ;;  %v2681_v10 = vrot.slane %v10154_v49, 1  ;;  %v3028_v63 = vsel %vm3010_vm6, %v2955_v12, %v9609_v50  ;;  %v2623_v50 = vunpack.c.l.b16 %v7544_v35 }
 0x295   : > { %v2158_v2 = vpop.permute.xlu0 %2157  ;;  %v3316_v11 = vsel %vm3302_vm10, %v3243_v28, %v2714_v27  ;;  %v3101_v53 = vsel %vm3083_vm8, %v3028_v63, %v9770_v9  ;;  %v2443_v27 = vor.u32 %v2442_v1, %v2438_v5  ;;  %v2447_v9 = vrot.slane %v2445_v22, 1  ;;  %v12602_v28 = vld [vmem:[#allocation38_spill] sm:$0xff] }
 0x296   : > { %v3407_v8 = vshll.u32 %v3316_v11, 16  ;;  %v3172_v55 = vsel %vm3156_vm7, %v3099_v32, %v2158_v2  ;;  %v3405_v33 = vshrl.u32 %v3316_v11, 16  ;;  %v2682_v52 = vsel %vm1098_vm1, %v2680_v7, %v2681_v10  ;;  %v12603_v2 = vld [vmem:[#allocation8_spill] sm:$0xff] }
 0x297   : > { %v3245_v16 = vsel %vm12413_vm9, %v3172_v55, %v10046_v42  ;;  %v10190_v42 = vld [vmem:[%s8606_s11 + $0xb4] sm:$0xff]   ;;  %v2798_v4 = vsel %vm2773_vm3, %v12603_v2, %v12602_v28  ;;  %v10217_v30 = vpack.c.b16 %v2623_v50, %v2623_v50  ;;  %v8045_v55 = vld [vmem:[%s8606_s11 + $0xa8] sm:$0xff]   ;;  %v10223_v43 = vor.u32 %v8449_v25, %v8448_v13  ;;  %v7545_v13 = vld [vmem:[%s8606_s11 + $0xbc] sm:$0x3] }
 0x298   : > { %v2449_v1 = vshrl.u32 %v10171_v6, 16  ;;  %v12610_v25 = vld [vmem:[#allocation129_spill] sm:$0xff]  ;;  %v12613_v28 = vld [vmem:[#allocation12_spill] sm:$0xff] }
 0x299   : > { %v2684_v21 = vrot.slane %v10217_v30, 1  ;;  %v2803_v2 = vsel %vm2773_vm3, %v12613_v28, %v12612_v37  ;;  %v12616_v30 = vld [vmem:[#allocation125_spill] sm:$0xff]  ;;  %v12624_v37 = vld [vmem:[#allocation40_spill] sm:$0xff]  ;;  %v12625_v28 = vld [vmem:[#allocation14_spill] sm:$0xff] }
 0x29a   : > { %2565 = vrot.lane.b32.xlu2 %v2434_v40, %s8510_s17  ;;  %2187 = vrot.lane.b32.xlu1 %v10061_v45, %s8511_s24  ;;  %v12606_v40 = vld [vmem:[#allocation69_spill] sm:$0xff] }
 0x29b   : > { %2743 = vrot.lane.b32.xlu0 %v2678_v59, %s8512_s25  ;;  %v3409_v59 = vrot.slane %v3407_v8, 1  ;;  %v2884_v49 = vsel %vm12410_vm4, %v2798_v4, %v12606_v40  ;;  %v2448_v8 = vsel %vm719_vm0, %v2443_v27, %v2447_v9 }
 0x29c   : > { %v10175_v58 = vpop.permute.xlu2 %2543  ;;  %v2160_v45 = vpop.permute.xlu1 %2159  ;;  %v2957_v32 = vsel %vm2937_vm5, %v2884_v49, %v9467_v20  ;;  %v2683_v20 = vrot.slane %v10149_v31, 1 }
 0x29d   : > { %v2716_v15 = vpop.permute.xlu0 %2715  ;;  %v3410_v44 = vor.u32 %v3409_v59, %v3405_v33  ;;  %v3174_v61 = vsel %vm3156_vm7, %v3101_v53, %v2160_v45 }
 0x29e   : > { %v3318_v56 = vsel %vm3302_vm10, %v3245_v16, %v2716_v15  ;;  %v3247_v34 = vsel %vm12413_vm9, %v3174_v61, %v10075_v39  ;;  %v3030_v39 = vsel %vm3010_vm6, %v2957_v32, %v9668_v17  ;;  %v10237_v17 = vpack.c.b16 %v2094_v18, %v2094_v18  ;;  %v12609_v15 = vld [vmem:[#allocation99_spill] sm:$0xff] }
 0x29f   : > { %v3411_v38 = vshll.u32 %v3318_v56, 16  ;;  %v3103_v47 = vsel %vm3083_vm8, %v3030_v39, %v9824_v0  ;;  %v2454_v0 = vshll.u32 %v10223_v43, 16  ;;  %v2685_v33 = vsel %vm1098_vm1, %v2683_v20, %v2684_v21  ;;  %v12618_v20 = vld [vmem:[#allocation41_spill] sm:$0xff] }
 0x2a0   : > { %v2459_v63 = vshll.u32 %v10237_v17, 16  ;;  %v2624_v61 = vunpack.c.l.b16 %v7545_v13  ;;  %v2686_v39 = vrot.slane %v10223_v43, 1 }
 0x2a1   : > { %v3413_v54 = vrot.slane %v3411_v38, 1  ;;  %v2452_v38 = vshrl.u32 %v10223_v43, 16  ;;  %v2456_v35 = vrot.slane %v2454_v0, 1  ;;  %v12620_v43 = vld [vmem:[#allocation102_spill] sm:$0xff] }
 0x2a2   : > { %2567 = vrot.lane.b32.xlu2 %v2435_v24, %s8510_s17  ;;  %2745 = vrot.lane.b32.xlu1 %v2682_v52, %s8512_s25 }
 0x2a3   : > { %2189 = vrot.lane.b32.xlu0 %v10108_v46, %s8511_s24  ;;  %v3414_v29 = vsel %vm719_vm0, %v3410_v44, %v3413_v54  ;;  %v12605_v46 = vunpack.c.l.b16 %v12604_v36  ;;  %v12611_v44 = vld [vmem:[#allocation155_spill] sm:$0xff]  ;;  %v2457_v50 = vor.u32 %v2456_v35, %v2452_v38 }
 0x2a4   : > { %7561 = vmatmul.msk.bf16.gmra.mxu0 %vm3579_vm11, %v3414_v29  ;;  %v10204_v19 = vpop.permute.xlu2 %2545  ;;  %v2718_v62 = vpop.permute.xlu1 %2717  ;;  %v2461_v29 = vrot.slane %v2459_v63, 1  ;;  %v12621_v63 = vld [vmem:[#allocation132_spill] sm:$0xff] }
 0x2a5   : > { %v2162_v11 = vpop.permute.xlu0 %2161  ;;  %v639_v26 = vpack.c.b16 %v12605_v46, %v590_v14  ;;  %v3320_v48 = vsel %vm3302_vm10, %v3247_v34, %v2718_v62  ;;  %v10275_v46 = vpack.c.b16 %v2624_v61, %v2624_v61 }
 0x2a6   : > { %v3417_v51 = vshll.u32 %v3320_v48, 16  ;;  %v3176_v7 = vsel %vm3156_vm7, %v3103_v47, %v2162_v11  ;;  %v3415_v52 = vshrl.u32 %v3320_v48, 16  ;;  %v12614_v11 = vld [vmem:[#allocation62_spill] sm:$0xff]  ;;  %v2462_v49 = vsel %vm719_vm0, %v2457_v50, %v2461_v29 }
 0x2a7   : > { %v2801_v45 = vsel %vm2773_vm3, %v639_v26, %v12607_v3  ;;  %v3249_v24 = vsel %vm12413_vm9, %v3176_v7, %v10113_v60  ;;  %v12615_v26 = vld [vmem:[#allocation93_spill] sm:$0xff]  ;;  %v7456_v48 = vld [vmem:[%s8606_s11 + $0xbc] sm:$0x3]  ;;  %v2687_v47 = vrot.slane %v10275_v46, 1  ;;  %v8297_v7 = vld [vmem:[%s8606_s11 + $0x48] sm:$0xff]  }
 0x2a8   : > { %v2886_v12 = vsel %vm12410_vm4, %v2801_v45, %v12608_v23  ;;  %v3419_v56 = vrot.slane %v3417_v51, 1  ;;  %v1851_v51 = vunpack.c.l.b16 %v7456_v48  ;;  %v2806_v3 = vsel %vm2773_vm3, %v8297_v7, %v12618_v20  ;;  %v12619_v45 = vld [vmem:[#allocation72_spill] sm:$0xff]  ;;  %v12627_v46 = vld [vmem:[#allocation101_spill] sm:$0xff] }
 0x2a9   : > { %v2959_v31 = vsel %vm2937_vm5, %v2886_v12, %v12609_v15  ;;  %v2890_v0 = vsel %vm12410_vm4, %v2806_v3, %v12619_v45  ;;  %v8124_v15 = vld [vmem:[%s8606_s11 + $0xc0] sm:$0xe]  ;;  %v12631_v7 = vld [vmem:[#allocation157_spill] sm:$0xff] }
 0x2aa   : > { %2569 = vrot.lane.b32.xlu2 %v2448_v8, %s8510_s17  ;;  %2191 = vrot.lane.b32.xlu1 %v8045_v55, %s8511_s24  ;;  %v3032_v53 = vsel %vm3010_vm6, %v2959_v31, %v12610_v25  ;;  %v3420_v54 = vor.u32 %v3419_v56, %v3415_v52  ;;  %v2963_v31 = vsel %vm2937_vm5, %v2890_v0, %v12620_v43  ;;  %v264_v25 = vld [vmem:[%s8606_s11 + $0x54] sm:$0xf] }
 0x2ab   : > { %2747 = vrot.lane.b32.xlu0 %v2681_v10, %s8512_s25  ;;  %v3105_v60 = vsel %vm3083_vm8, %v3032_v53, %v12611_v44  ;;  %v3036_v13 = vsel %vm3010_vm6, %v2963_v31, %v12621_v63  ;;  %v12622_v53 = vld [vmem:[#allocation158_spill] sm:$0xff] }
 0x2ac   : > { %v10242_v59 = vpop.permute.xlu2 %2547  ;;  %v2164_v16 = vpop.permute.xlu1 %2163 }
 0x2ad   : > { %v2720_v5 = vpop.permute.xlu0 %2719  ;;  %v3178_v14 = vsel %vm3156_vm7, %v3105_v60, %v2164_v16  ;;  %v7504_v16 = vld [vmem:[%s8606_s11 + $0xc8] sm:$0x1] }
 0x2ae   : > { %v3322_v10 = vsel %vm3302_vm10, %v3249_v24, %v2720_v5  ;;  %v3251_v4 = vsel %vm12413_vm9, %v3178_v14, %v10138_v41  ;;  %v12617_v41 = vld [vmem:[#allocation151_spill] sm:$0xff] }
 0x2af   : > { %v3421_v22 = vshll.u32 %v3322_v10, 16  ;;  %v2463_v10 = vshrl.u32 %v10237_v17, 16 }
 0x2b1   : > { %v3423_v57 = vrot.slane %v3421_v22, 1  ;;  %v2097_v22 = vunpack.c.l.b16 %v7504_v16 }
 0x2b2   : > { %2571 = vrot.lane.b32.xlu2 %v2449_v1, %s8510_s17  ;;  %2749 = vrot.lane.b32.xlu1 %v2685_v33, %s8512_s25  ;;  %v2688_v1 = vsel %vm1098_vm1, %v2686_v39, %v2687_v47  ;;  %v10309_v33 = vpack.c.b16 %v1851_v51, %v1851_v51  ;;  %v12630_v39 = vld [vmem:[#allocation131_spill] sm:$0xff]  ;;  %v7546_v51 = vld [vmem:[%s8606_s11 + $0xc8] sm:$0x3] }
 0x2b3   : > { %2193 = vrot.lane.b32.xlu0 %v10171_v6, %s8511_s24  ;;  %v3424_v27 = vsel %vm719_vm0, %v3420_v54, %v3423_v57  ;;  %v2888_v6 = vsel %vm12410_vm4, %v2803_v2, %v12614_v11  ;;  %v12623_v57 = vld [vmem:[#allocation103_spill] sm:$0xff]  ;;  %v10326_v50 = vpack.c.b16 %v2097_v22, %v2097_v22  ;;  %v2808_v2 = vsel %vm2773_vm3, %v12625_v28, %v12624_v37 }
 0x2b4   : > { %7562 = vmatmul.msk.bf16.gmra.mxu0 %vm3579_vm11, %v3424_v27  ;;  %v10265_v9 = vpop.permute.xlu2 %2549  ;;  %v2722_v62 = vpop.permute.xlu1 %2721  ;;  %v2961_v40 = vsel %vm2937_vm5, %v2888_v6, %v12615_v26  ;;  %v1915_v14 = vrot.slane %v12623_v57, 1  ;;  %v1916_v27 = vrot.slane %v10309_v33, 1  ;;  %v2625_v16 = vunpack.c.l.b16 %v7546_v51  ;;  %v8451_v57 = vld [vmem:[%s8606_s11 + $0xcc] sm:$0xf0] }
 0x2b5   : > { %v2166_v34 = vpop.permute.xlu0 %2165  ;;  %v3324_v36 = vsel %vm3302_vm10, %v3251_v4, %v2722_v62  ;;  %v3034_v32 = vsel %vm3010_vm6, %v2961_v40, %v12616_v30  ;;  %v596_v62 = vunpack.c.l.b16 %v264_v25 }
 0x2b6   : > { %v3107_v8 = vsel %vm3083_vm8, %v3034_v32, %v12617_v41  ;;  %v3427_v55 = vshll.u32 %v3324_v36, 16  ;;  %v3425_v38 = vshrl.u32 %v3324_v36, 16  ;;  %v1917_v48 = vsel %vm1098_vm1, %v1915_v14, %v1916_v27  ;;  %v8452_v14 = vld [vmem:[%s8606_s11 + $0xcc] sm:$0xe] }
 0x2b7   : > { %v3180_v18 = vsel %vm3156_vm7, %v3107_v8, %v2166_v34  ;;  %v2473_v41 = vshll.u32 %v10326_v50, 16  ;;  %v12628_v8 = vld [vmem:[#allocation11_spill] sm:$0xff]  ;;  %v2643_v63 = vpack.c.b16 %v2625_v16, %v2625_v16 }
 0x2b8   : > { %v3429_v56 = vrot.slane %v3427_v55, 1  ;;  %v3253_v24 = vsel %vm12413_vm9, %v3180_v18, %v10175_v58  ;;  %v3109_v58 = vsel %vm3083_vm8, %v3036_v13, %v12622_v53  ;;  %v12629_v55 = vunpack.c.l.b16 %v12628_v8  ;;  %v12635_v13 = vld [vmem:[#allocation126_spill] sm:$0xff]  ;;  %v12636_v53 = vld [vmem:[#allocation152_spill] sm:$0xff] }
 0x2ba   : > { %2573 = vrot.lane.b32.xlu2 %v2462_v49, %s8510_s17  ;;  %2195 = vrot.lane.b32.xlu1 %v10190_v42, %s8511_s24  ;;  %v8123_v42 = vld [vmem:[%s8606_s11 + $0xc0] sm:$0xf0]  ;;  %v3430_v44 = vor.u32 %v3429_v56, %v3425_v38  ;;  %v643_v18 = vpack.c.b16 %v12629_v55, %v596_v62  ;;  %v12638_v62 = vld [vmem:[#allocation13_spill] sm:$0xff] }
 0x2bb   : > { %2751 = vrot.lane.b32.xlu0 %v2684_v21, %s8512_s25  ;;  %v10311_v35 = vor.u32 %v8124_v15, %v8123_v42  ;;  %v8046_v49 = vld [vmem:[%s8606_s11 + $0xc0] sm:$0xff]   ;;  %v12632_v42 = vld [vmem:[#allocation32_spill] sm:$0xff] }
 0x2bc   : > { %v10297_v23 = vpop.permute.xlu2 %2551  ;;  %v2168_v12 = vpop.permute.xlu1 %2167  ;;  %v2811_v15 = vsel %vm2773_vm3, %v643_v18, %v12632_v42  ;;  %v12633_v56 = vld [vmem:[#allocation63_spill] sm:$0xff]  ;;  %v8453_v18 = vor.u32 %v8452_v14, %v8451_v57  ;;  %v12644_v42 = vld [vmem:[#allocation108_spill] sm:$0xff] }
 0x2bd   : > { %v2724_v5 = vpop.permute.xlu0 %2723  ;;  %v3182_v54 = vsel %vm3156_vm7, %v3109_v58, %v2168_v12  ;;  %v2468_v29 = vshll.u32 %v10311_v35, 16  ;;  %v2466_v30 = vshrl.u32 %v10311_v35, 16  ;;  %v2475_v12 = vrot.slane %v2473_v41, 1  ;;  %v12641_v41 = vld [vmem:[#allocation135_spill] sm:$0xff] }
 0x2be   : > { %v3326_v21 = vsel %vm3302_vm10, %v3253_v24, %v2724_v5  ;;  %v3255_v6 = vsel %vm12413_vm9, %v3182_v54, %v10204_v19  ;;  %v2894_v24 = vsel %vm12410_vm4, %v2811_v15, %v12633_v56  ;;  %v7505_v54 = vld [vmem:[%s8606_s11 + $0xcc] sm:$0xff]   ;;  %v1918_v15 = vrot.slane %v12644_v42, 1 }
 0x2bf   : > { %v3431_v52 = vshll.u32 %v3326_v21, 16  ;;  %v2470_v32 = vrot.slane %v2468_v29, 1  ;;  %v12637_v29 = vld [vmem:[#allocation44_spill] sm:$0xff]  ;;  %v2482_v56 = vshll.u32 %v8453_v18, 16 }
 0x2c0   : > { %v2813_v37 = vsel %vm2773_vm3, %v12638_v62, %v12637_v29 }
 0x2c1   : > { %v3433_v60 = vrot.slane %v3431_v52, 1  ;;  %v2471_v0 = vor.u32 %v2470_v32, %v2466_v30  ;;  %v2477_v32 = vshrl.u32 %v10326_v50, 16 }
 0x2c2   : > { %2575 = vrot.lane.b32.xlu2 %v2463_v10, %s8510_s17  ;;  %2753 = vrot.lane.b32.xlu1 %v2688_v1, %s8512_s25  ;;  %v12634_v10 = vld [vmem:[#allocation94_spill] sm:$0xff] }
 0x2c3   : > { %2197 = vrot.lane.b32.xlu0 %v10237_v17, %s8511_s24  ;;  %v3434_v61 = vsel %vm719_vm0, %v3430_v44, %v3433_v60  ;;  %v12626_v17 = vld [vmem:[#allocation71_spill] sm:$0xff]  ;;  %v2967_v1 = vsel %vm2937_vm5, %v2894_v24, %v12634_v10  ;;  %v2476_v22 = vsel %vm719_vm0, %v2471_v0, %v2475_v12  ;;  %v12645_v24 = vld [vmem:[#allocation74_spill] sm:$0xff] }
 0x2c4   : > { %7563 = vmatmul.msk.bf16.gmra.mxu0 %vm3579_vm11, %v3434_v61  ;;  %v10333_v4 = vpop.permute.xlu2 %2553  ;;  %v2726_v34 = vpop.permute.xlu1 %2725  ;;  %v2892_v11 = vsel %vm12410_vm4, %v2808_v2, %v12626_v17  ;;  %v3040_v25 = vsel %vm3010_vm6, %v2967_v1, %v12635_v13  ;;  %v2690_v2 = vrot.slane %v2643_v63, 1 }
 0x2c5   : > { %v2170_v36 = vpop.permute.xlu0 %2169  ;;  %v2965_v26 = vsel %vm2937_vm5, %v2892_v11, %v12627_v46  ;;  %v3328_v40 = vsel %vm3302_vm10, %v3255_v6, %v2726_v34  ;;  %v3113_v58 = vsel %vm3083_vm8, %v3040_v25, %v12636_v53  ;;  %v2689_v11 = vrot.slane %v10311_v35, 1 }
 0x2c6   : > { %v3038_v19 = vsel %vm3010_vm6, %v2965_v26, %v12630_v39  ;;  %v3437_v3 = vshll.u32 %v3328_v40, 16  ;;  %v3435_v38 = vshrl.u32 %v3328_v40, 16 }
 0x2c7   : > { %v3111_v20 = vsel %vm3083_vm8, %v3038_v19, %v12631_v7  ;;  %v2691_v8 = vsel %vm1098_vm1, %v2689_v11, %v2690_v2 }
 0x2c8   : > { %v3184_v45 = vsel %vm3156_vm7, %v3111_v20, %v2170_v36  ;;  %v3439_v5 = vrot.slane %v3437_v3, 1  ;;  %v12639_v36 = vld [vmem:[#allocation75_spill] sm:$0xff]  ;;  %v7547_v20 = vld [vmem:[%s8606_s11 + $0xd4] sm:$0x3] }
 0x2c9   : > { %v2896_v46 = vsel %vm12410_vm4, %v2813_v37, %v12639_v36  ;;  %v12643_v3 = vld [vmem:[#allocation43_spill] sm:$0xff]  ;;  %v2626_v1 = vunpack.c.l.b16 %v7547_v20  ;;  %v2692_v37 = vrot.slane %v8453_v18, 1  ;;  %v12650_v36 = vld [vmem:[#allocation16_spill] sm:$0xff] }
 0x2ca   : > { %2199 = vrot.lane.b32.xlu2 %v8046_v49, %s8511_s24  ;;  %1983 = vrot.lane.b32.xlu1 %v1917_v48, %s8509_s16  ;;  %v3440_v44 = vor.u32 %v3439_v5, %v3435_v38  ;;  %v12640_v49 = vld [vmem:[#allocation106_spill] sm:$0xff] }
 0x2cb   : > { %2755 = vrot.lane.b32.xlu0 %v2687_v47, %s8512_s25  ;;  %v3257_v47 = vsel %vm12413_vm9, %v3184_v45, %v10242_v59  ;;  %v7457_v59 = vld [vmem:[%s8606_s11 + $0xc8] sm:$0x3]  ;;  %v2969_v48 = vsel %vm2937_vm5, %v2896_v46, %v12640_v49 }
 0x2cc   : > { %v10359_v43 = vpop.permute.xlu2 %2555  ;;  %v2172_v31 = vpop.permute.xlu1 %2171  ;;  %v1852_v6 = vunpack.c.l.b16 %v7457_v59  ;;  %v3042_v35 = vsel %vm3010_vm6, %v2969_v48, %v12641_v41  ;;  %v12648_v59 = vld [vmem:[#allocation160_spill] sm:$0xff]  ;;  %v12652_v41 = vld [vmem:[#allocation95_spill] sm:$0xff] }
 0x2cd   : > { %v2728_v21 = vpop.permute.xlu0 %2727  ;;  %v3186_v61 = vsel %vm3156_vm7, %v3113_v58, %v2172_v31  ;;  %v2480_v58 = vshrl.u32 %v8453_v18, 16  ;;  %v12651_v48 = vld [vmem:[#allocation64_spill] sm:$0xff] }
 0x2ce   : > { %v3330_v33 = vsel %vm3302_vm10, %v3257_v47, %v2728_v21  ;;  %v3259_v26 = vsel %vm12413_vm9, %v3186_v61, %v10265_v9  ;;  %v1870_v55 = vpack.c.b16 %v1852_v6, %v1852_v6  ;;  %v12642_v9 = vld [vmem:[#allocation161_spill] sm:$0xff]  ;;  %v2644_v61 = vpack.c.b16 %v2626_v1, %v2626_v1  ;;  %v12649_v6 = vld [vmem:[#allocation34_spill] sm:$0xff] }
 0x2cf   : > { %v3441_v52 = vshll.u32 %v3330_v33, 16  ;;  %v3115_v19 = vsel %vm3083_vm8, %v3042_v35, %v12642_v9  ;;  %v12646_v33 = vld [vmem:[#allocation105_spill] sm:$0xff]  ;;  %v2818_v46 = vsel %vm2773_vm3, %v12650_v36, %v12649_v6  ;;  %v12654_v9 = vld [vmem:[#allocation15_spill] sm:$0xff] }
 0x2d0   : > { %v1919_v16 = vrot.slane %v1870_v55, 1  ;;  %v2693_v49 = vrot.slane %v2644_v61, 1  ;;  %v12653_v55 = vld [vmem:[#allocation127_spill] sm:$0xff]  ;;  %v12664_v61 = vld [vmem:[#allocation77_spill] sm:$0xff] }
 0x2d1   : > { %v3443_v60 = vrot.slane %v3441_v52, 1  ;;  %v12666_v36 = vld [vmem:[#allocation137_spill] sm:$0xff] }
 0x2d2   : > { %2201 = vrot.lane.b32.xlu2 %v10326_v50, %s8511_s24  ;;  %2577 = vrot.lane.b32.xlu1 %v2476_v22, %s8510_s17  ;;  %v8298_v50 = vld [vmem:[%s8606_s11 + $0x60] sm:$0xff]   ;;  %v12647_v22 = vld [vmem:[#allocation134_spill] sm:$0xff]  ;;  %v1920_v53 = vsel %vm1098_vm1, %v1918_v15, %v1919_v16 }
 0x2d3   : > { %1985 = vrot.lane.b32.xlu0 %v1916_v27, %s8509_s16  ;;  %v3444_v28 = vsel %vm719_vm0, %v3440_v44, %v3443_v60  ;;  %v7507_v27 = vld [vmem:[%s8606_s11 + $0xd4] sm:$0x1]  ;;  %v2816_v45 = vsel %vm2773_vm3, %v8298_v50, %v12643_v3  ;;  %v2484_v44 = vrot.slane %v2482_v56, 1 }
 0x2d4   : > { %7564 = vmatmul.msk.bf16.gmra.mxu0 %vm3579_vm11, %v3444_v28  ;;  %v10387_v34 = vpop.permute.xlu2 %2557  ;;  %v2730_v17 = vpop.permute.xlu1 %2729  ;;  %v2100_v39 = vunpack.c.l.b16 %v7507_v27  ;;  %v2898_v5 = vsel %vm12410_vm4, %v2816_v45, %v12645_v24  ;;  %v12658_v24 = vld [vmem:[#allocation78_spill] sm:$0xff] }
 0x2d5   : > { %v2174_v40 = vpop.permute.xlu0 %2173  ;;  %v3332_v30 = vsel %vm3302_vm10, %v3259_v26, %v2730_v17  ;;  %v2971_v38 = vsel %vm2937_vm5, %v2898_v5, %v12646_v33  ;;  %v2485_v17 = vor.u32 %v2484_v44, %v2480_v58  ;;  %v8299_v26 = vld [vmem:[%s8606_s11 + $0x6c] sm:$0xff]  }
 0x2d6   : > { %v3447_v51 = vshll.u32 %v3332_v30, 16  ;;  %v3188_v7 = vsel %vm3156_vm7, %v3115_v19, %v2174_v40  ;;  %v10415_v31 = vpack.c.b16 %v2100_v39, %v2100_v39  ;;  %v3044_v63 = vsel %vm3010_vm6, %v2971_v38, %v12647_v22 }
 0x2d7   : > { %v3261_v21 = vsel %vm12413_vm9, %v3188_v7, %v10297_v23  ;;  %v3445_v13 = vshrl.u32 %v3332_v30, 16  ;;  %v3117_v23 = vsel %vm3083_vm8, %v3044_v63, %v12648_v59  ;;  %v602_v40 = vunpack.c.l.b16 %v8299_v26  ;;  %v12661_v63 = vld [vmem:[#allocation163_spill] sm:$0xff]  ;;  %v12667_v26 = vld [vmem:[#allocation162_spill] sm:$0xff] }
 0x2d8   : > { %v3449_v47 = vrot.slane %v3447_v51, 1  ;;  %v2487_v60 = vshll.u32 %v10415_v31, 16  ;;  %v2900_v30 = vsel %vm12410_vm4, %v2818_v46, %v12651_v48  ;;  %v12655_v19 = vunpack.c.l.b16 %v12654_v9  ;;  %v12656_v51 = vld [vmem:[#allocation153_spill] sm:$0xff]  ;;  %v12663_v59 = vld [vmem:[#allocation19_spill] sm:$0xff]  ;;  %v12668_v48 = vld [vmem:[#allocation36_spill] sm:$0xff] }
 0x2d9   : > { %v2973_v35 = vsel %vm2937_vm5, %v2900_v30, %v12652_v41  ;;  %v2491_v38 = vshrl.u32 %v10415_v31, 16  ;;  %v12671_v9 = vld [vmem:[#allocation67_spill] sm:$0xff] }
 0x2da   : > { %2759 = vrot.lane.b32.xlu2 %v2690_v2, %s8512_s25  ;;  %2579 = vrot.lane.b32.xlu1 %v2477_v32, %s8510_s17  ;;  %v3450_v57 = vor.u32 %v3449_v47, %v3445_v13  ;;  %v2489_v11 = vrot.slane %v2487_v60, 1  ;;  %v3046_v18 = vsel %vm3010_vm6, %v2973_v35, %v12653_v55  ;;  %v12662_v60 = vld [vmem:[#allocation46_spill] sm:$0xff]  ;;  %v12669_v35 = vld [vmem:[#allocation20_spill] sm:$0xff] }
 0x2db   : > { %2757 = vrot.lane.b32.xlu0 %v2691_v8, %s8512_s25  ;;  %v2694_v8 = vsel %vm1098_vm1, %v2692_v37, %v2693_v49  ;;  %v3119_v7 = vsel %vm3083_vm8, %v3046_v18, %v12656_v51  ;;  %v8302_v18 = vld [vmem:[%s8606_s11 + $0x84] sm:$0xff]   ;;  %v12672_v51 = vld [vmem:[#allocation98_spill] sm:$0xff] }
 0x2dc   : > { %v10412_v0 = vpop.permute.xlu2 %2559  ;;  %v2176_v12 = vpop.permute.xlu1 %2175  ;;  %v2490_v39 = vsel %vm719_vm0, %v2485_v17, %v2489_v11  ;;  %v8300_v11 = vld [vmem:[%s8606_s11 + $0x9c] sm:$0xff]  }
 0x2dd   : > { %v2732_v10 = vpop.permute.xlu0 %2731  ;;  %v3190_v29 = vsel %vm3156_vm7, %v3117_v23, %v2176_v12  ;;  %v12657_v12 = vld [vmem:[#allocation47_spill] sm:$0xff]  ;;  %v2823_v23 = vsel %vm2773_vm3, %v12663_v59, %v12662_v60  ;;  %v614_v6 = vunpack.c.l.b16 %v8300_v11  ;;  %v12679_v60 = vld [vmem:[#allocation42_spill] sm:$0xff] }
 0x2de   : > { %v3334_v52 = vsel %vm3302_vm10, %v3261_v21, %v2732_v10  ;;  %v12659_v21 = vld [vmem:[#allocation111_spill] sm:$0xff] }
 0x2df   : > { %v3451_v25 = vshll.u32 %v3334_v52, 16  ;;  %v12660_v52 = vld [vmem:[#allocation138_spill] sm:$0xff] }
 0x2e1   : > { %v3453_v14 = vrot.slane %v3451_v25, 1 }
 0x2e2   : > { %1989 = vrot.lane.b32.xlu2 %v1919_v16, %s8509_s16  ;;  %2203 = vrot.lane.b32.xlu1 %v7505_v54, %s8511_s24  ;;  %v3263_v54 = vsel %vm12413_vm9, %v3190_v29, %v10333_v4  ;;  %v647_v4 = vpack.c.b16 %v12655_v19, %v602_v40  ;;  %v2904_v29 = vsel %vm12410_vm4, %v2823_v23, %v12664_v61  ;;  %v12680_v23 = vld [vmem:[#allocation24_spill] sm:$0xff] }
 0x2e3   : > { %1987 = vrot.lane.b32.xlu0 %v1920_v53, %s8509_s16  ;;  %v3454_v62 = vsel %vm719_vm0, %v3450_v57, %v3453_v14 }
 0x2e4   : > { %7565 = vmatmul.msk.bf16.gmra.mxu0 %vm3579_vm11, %v3454_v62  ;;  %v10436_v28 = vpop.permute.xlu2 %2561  ;;  %v2734_v2 = vpop.permute.xlu1 %2733  ;;  %v2821_v16 = vsel %vm2773_vm3, %v647_v4, %v12657_v12 }
 0x2e5   : > { %v2178_v27 = vpop.permute.xlu0 %2177  ;;  %v3336_v32 = vsel %vm3302_vm10, %v3263_v54, %v2734_v2  ;;  %v2902_v5 = vsel %vm12410_vm4, %v2821_v16, %v12658_v24  ;;  %v12665_v2 = vld [vmem:[#allocation110_spill] sm:$0xff] }
 0x2e6   : > { %v3457_v20 = vshll.u32 %v3336_v32, 16  ;;  %v3192_v50 = vsel %vm3156_vm7, %v3119_v7, %v2178_v27  ;;  %v2975_v10 = vsel %vm2937_vm5, %v2902_v5, %v12659_v21  ;;  %v3455_v1 = vshrl.u32 %v3336_v32, 16  ;;  %v8303_v16 = vld [vmem:[%s8606_s11 + $0xb4] sm:$0xff]  }
 0x2e7   : > { %v3265_v15 = vsel %vm12413_vm9, %v3192_v50, %v10359_v43  ;;  %v3048_v22 = vsel %vm3010_vm6, %v2975_v10, %v12660_v52  ;;  %v2977_v17 = vsel %vm2937_vm5, %v2904_v29, %v12665_v2  ;;  %v8513_v32 = vmov 0.0|0.0   ;;  %v12684_v2 = vld [vmem:[#allocation45_spill] sm:$0xff] }
 0x2e8   : > { %v3459_v42 = vrot.slane %v3457_v20, 1  ;;  %v3121_v13 = vsel %vm3083_vm8, %v3048_v22, %v12661_v63  ;;  %v3050_v46 = vsel %vm3010_vm6, %v2977_v17, %v12666_v36  ;;  %v3959_v41 = vunpack.c.l.b16 %v8513_v32  ;;  %v12678_v63 = vld [vmem:[#allocation154_spill] sm:$0xff]  ;;  %v12685_v17 = vld [vmem:[#allocation25_spill] sm:$0xff] }
 0x2e9   : > { %v2848_v11 = vsel %vm2773_vm3, %v12685_v17, %v12684_v2  ;;  %v12702_v2 = vld [vmem:[#allocation58_spill] sm:$0xff] }
 0x2ea   : > { %2205 = vrot.lane.b32.xlu1 %v10415_v31, %s8511_s24  ;;  %2761 = vrot.lane.b32.xlu2 %v2694_v8, %s8512_s25  ;;  %v3460_v43 = vor.u32 %v3459_v42, %v3455_v1  ;;  %v12670_v8 = vunpack.c.h.b16 %v12669_v35  ;;  %v3995_v12 = vpack.c.b16 %v3959_v41, %v3959_v41  ;;  %v620_v42 = vunpack.c.l.b16 %v8303_v16  ;;  %v12675_v1 = vld [vmem:[#allocation21_spill] sm:$0xff]  ;;  %v12690_v35 = vld [vmem:[#allocation52_spill] sm:$0xff] }
 0x2eb   : > { %2581 = vrot.lane.b32.xlu0 %v2490_v39, %s8510_s17  ;;  %v608_v39 = vunpack.c.l.b16 %v8302_v18  ;;  %v12692_v18 = vld [vmem:[#allocation81_spill] sm:$0xff] }
 0x2ec   : > { %v10462_v3 = vpop.permute.xlu2 %2563  ;;  %v2180_v45 = vpop.permute.xlu1 %2179  ;;  %v655_v55 = vpack.c.b16 %v12670_v8, %v614_v6  ;;  %v4014_v10 = vshrl.u32 %v3995_v12, 16  ;;  %v12691_v8 = vld [vmem:[#allocation23_spill] sm:$0xff] }
 0x2ed   : > { %v2736_v56 = vpop.permute.xlu0 %2735  ;;  %v3194_v58 = vsel %vm3156_vm7, %v3121_v13, %v2180_v45 }
 0x2ee   : > { %v3338_v47 = vsel %vm3302_vm10, %v3265_v15, %v2736_v56  ;;  %v3267_v57 = vsel %vm12413_vm9, %v3194_v58, %v10387_v34  ;;  %v3123_v34 = vsel %vm3083_vm8, %v3050_v46, %v12667_v26  ;;  %v12673_v15 = vld [vmem:[#allocation128_spill] sm:$0xff]  ;;  %v2841_v59 = vsel %vm2773_vm3, %v655_v55, %v12679_v60  ;;  %v8304_v26 = vld [vmem:[%s8606_s11 + $0xc0] sm:$0xff]  }
 0x2ef   : > { %v3461_v33 = vshll.u32 %v3338_v47, 16  ;;  %v10520_v47 = vld [vmem:[%s12361_s2] ss:$0 sm:$0xff]  ;;  %v2838_v55 = vsel %vm2773_vm3, %v12691_v8, %v12690_v35 }
 0x2f1   : > { %v3463_v25 = vrot.slane %v3461_v33, 1  ;;  %v3647_v53 = vpop.f32.mrf.mxu0 }
 0x2f2   : > { %2763 = vrot.lane.b32.xlu1 %v2693_v49, %s8512_s25  ;;  %v8301_v49 = vld [vmem:[%s8606_s11 + $0x78] sm:$0xff]  }
 0x2f3   : > { %2583 = vrot.lane.b32.xlu0 %v2491_v38, %s8510_s17  ;;  %v3464_v44 = vsel %vm719_vm0, %v3460_v43, %v3463_v25  ;;  %v2826_v30 = vsel %vm2773_vm3, %v8301_v49, %v12668_v48  ;;  %v12676_v38 = vld [vmem:[#allocation17_spill] sm:$0xff]  ;;  %v12688_v49 = vld [vmem:[#allocation50_spill] sm:$0xff] }
 0x2f4   : > { %7566 = vmatmul.msk.bf16.gmra.mxu0 %vm3579_vm11, %v3464_v44  ;;  %v2738_v31 = vpop.permute.xlu1 %2737  ;;  %v10490_v62 = vpop.permute.xlu2 %2565  ;;  %v2906_v19 = vsel %vm12410_vm4, %v2826_v30, %v12671_v9  ;;  %v12677_v52 = vunpack.c.l.b16 %v12676_v38  ;;  %v4016_v44 = vrot.slane %v4014_v10, 7  ;;  %v12689_v48 = vld [vmem:[#allocation18_spill] sm:$0xff]  ;;  %v12697_v10 = vld [vmem:[#allocation55_spill] sm:$0xff]  ;;  %v12699_v38 = vld [vmem:[#allocation165_spill] sm:$0xff] }
 0x2f5   : > { %v2182_v14 = vpop.permute.xlu0 %2181  ;;  %v3340_v37 = vsel %vm3302_vm10, %v3267_v57, %v2738_v31  ;;  %v2979_v7 = vsel %vm2937_vm5, %v2906_v19, %v12672_v51  ;;  %v4017_v31 = vshll.u32 %v3995_v12, 16  ;;  %v12681_v57 = vunpack.c.l.b16 %v12680_v23  ;;  %v8305_v51 = vld [vmem:[%s8606_s11 + $0x90] sm:$0xff]  }
 0x2f6   : > { %v3467_v40 = vshll.u32 %v3340_v37, 16  ;;  %v3196_v27 = vsel %vm3156_vm7, %v3123_v34, %v2182_v14  ;;  %v3052_v56 = vsel %vm3010_vm6, %v2979_v7, %v12673_v15  ;;  %v3465_v24 = vshrl.u32 %v3340_v37, 16  ;;  %v12686_v34 = vld [vmem:[#allocation48_spill] sm:$0xff]  ;;  %v12693_v7 = vld [vmem:[#allocation53_spill] sm:$0xff] }
 0x2f7   : > { %v3269_v50 = vsel %vm12413_vm9, %v3196_v27, %v10412_v0  ;;  %v12674_v0 = vld [vmem:[#allocation39_spill] sm:$0xff]  ;;  %v651_v22 = vpack.c.b16 %v12677_v52, %v608_v39  ;;  %v3125_v13 = vsel %vm3083_vm8, %v3052_v56, %v12678_v63  ;;  %v659_v14 = vpack.c.b16 %v12681_v57, %v620_v42  ;;  %v12695_v42 = vld [vmem:[#allocation141_spill] sm:$0xff]  ;;  %v12701_v57 = vld [vmem:[#allocation28_spill] sm:$0xff] }
 0x2f8   : > { %v3469_v20 = vrot.slane %v3467_v40, 1  ;;  %v2833_v33 = vsel %vm2773_vm3, %v12675_v1, %v12674_v0  ;;  %v4019_v36 = vor.u32 %v4017_v31, %v4016_v44  ;;  %v4196_v46 = vsel %vm10539_vm14, %v4016_v44, 0  ;;  %v12698_v0 = vld [vmem:[#allocation22_spill] sm:$0xff]  ;;  %v12700_v23 = vld [vmem:[#allocation57_spill] sm:$0xff] }
 0x2f9   : > { %v3649_v54 = vpop.f32.mrf.mxu0  ;;  %v2856_v40 = vsel %vm2773_vm3, %v8304_v26, %v12686_v34  ;;  %v2828_v30 = vsel %vm2773_vm3, %v12689_v48, %v12688_v49  ;;  %v4252_v41 = vunpack.c.l.b16 %v4196_v46  ;;  %v2843_v1 = vsel %vm2773_vm3, %v12698_v0, %v12697_v10  ;;  %v12705_v46 = vld [vmem:[#allocation70_spill] sm:$0xff]  ;;  %v12706_v34 = vld [vmem:[#allocation73_spill] sm:$0xff]  ;;  %v12707_v49 = vld [vmem:[#allocation76_spill] sm:$0xff] }
 0x2fa   : > { %v3470_v25 = vor.u32 %v3469_v20, %v3465_v24  ;;  %v12687_v54 = vld [vmem:[#allocation49_spill] sm:$0xff]  ;;  %v2908_v39 = vsel %vm12410_vm4, %v2828_v30, %v12692_v18  ;;  %v2836_v20 = vsel %vm2773_vm3, %v8305_v51, %v12693_v7  ;;  %v8306_v24 = vld [vmem:[%s8606_s11 + $0xa8] sm:$0xff]   ;;  %v2851_v17 = vsel %vm2773_vm3, %v659_v14, %v12702_v2 }
 0x2fb   : > { %v2831_v27 = vsel %vm2773_vm3, %v651_v22, %v12687_v54  ;;  %v4306_v22 = vpack.c.b16 %v4252_v41, %v4252_v41  ;;  %v2912_v26 = vsel %vm12410_vm4, %v2833_v33, %v12705_v46  ;;  %v2918_v54 = vsel %vm12410_vm4, %v2841_v59, %v12706_v34  ;;  %v12708_v14 = vld [vmem:[#allocation80_spill] sm:$0xff]  ;;  %v12709_v59 = vld [vmem:[#allocation79_spill] sm:$0xff]  ;;  %v12722_v2 = vld [vmem:[#allocation109_spill] sm:$0xff] }
 0x2fc   : > { %v2184_v4 = vpop.permute.xlu1 %2183  ;;  %v10529_v43 = vpop.permute.xlu2 %2567  ;;  %v2924_v48 = vsel %vm12410_vm4, %v2848_v11, %v12707_v49  ;;  %v2910_v41 = vsel %vm12410_vm4, %v2831_v27, %v12708_v14  ;;  %v12710_v11 = vld [vmem:[#allocation114_spill] sm:$0xff]  ;;  %v12711_v27 = vld [vmem:[#allocation140_spill] sm:$0xff]  ;;  %v12724_v34 = vld [vmem:[#allocation117_spill] sm:$0xff] }
 0x2fd   : > { %v2740_v45 = vpop.permute.xlu0 %2739  ;;  %v3198_v61 = vsel %vm3156_vm7, %v3125_v13, %v2184_v4  ;;  %v4178_v4 = vsel %vm10539_vm14, 0, %v4019_v36  ;;  %4416 = vst.msk [vmem:[#allocation2 + $0x8] sm:$0x1] %vm4415_vm12, %v4306_v22  ;;  %v12704_v36 = vld [vmem:[#allocation27_spill] sm:$0xff] }
 0x2fe   : > { %v3342_v5 = vsel %vm3302_vm10, %v3269_v50, %v2740_v45  ;;  %v3271_v9 = vsel %vm12413_vm9, %v3198_v61, %v10436_v28  ;;  %v12694_v50 = vld [vmem:[#allocation115_spill] sm:$0xff]  ;;  %v4250_v56 = vunpack.c.l.b16 %v4178_v4  ;;  %v4251_v28 = vunpack.c.h.b16 %v4178_v4  ;;  %4467 = vst.msk [vmem:[#allocation2 + $0xd4] sm:$0x1] %vm4415_vm12, %v4306_v22 }
 0x2ff   : > { %v3471_v21 = vshll.u32 %v3342_v5, 16  ;;  %v2981_v45 = vsel %vm2937_vm5, %v2908_v39, %v12694_v50  ;;  %v12696_v5 = vld [vmem:[#allocation54_spill] sm:$0xff]  ;;  %v2853_v61 = vsel %vm2773_vm3, %v12701_v57, %v12700_v23  ;;  %v2930_v39 = vsel %vm12410_vm4, %v2856_v40, %v12709_v59  ;;  %v12713_v40 = vld [vmem:[#allocation84_spill] sm:$0xff]  ;;  %v12726_v14 = vld [vmem:[#allocation119_spill] sm:$0xff] }
 0x300   : > { %v3054_v15 = vsel %vm3010_vm6, %v2981_v45, %v12695_v42  ;;  %v12712_v45 = vld [vmem:[#allocation83_spill] sm:$0xff]  ;;  %v2914_v42 = vsel %vm12410_vm4, %v2836_v20, %v12713_v40  ;;  %v12720_v23 = vld [vmem:[#allocation100_spill] sm:$0xff] }
 0x301   : > { %v3473_v53 = vrot.slane %v3471_v21, 1  ;;  %v3652_v58 = vpop.f32.mrf.mxu0  ;;  %v2846_v21 = vsel %vm2773_vm3, %v8306_v24, %v12696_v5  ;;  %v3127_v52 = vsel %vm3083_vm8, %v3054_v15, %v12699_v38  ;;  %v12714_v15 = vld [vmem:[#allocation85_spill] sm:$0xff]  ;;  %v12721_v57 = vld [vmem:[#allocation104_spill] sm:$0xff] }
 0x302   : > { %v3653_v29 = vadd.f32 %v10520_v47, %v3652_v58 }
 0x303   : > { %v3474_v6 = vsel %vm719_vm0, %v3470_v25, %v3473_v53  ;;  %v4304_v25 = vpack.c.b16 %v4250_v56, %v4250_v56  ;;  %v4305_v53 = vpack.c.b16 %v4251_v28, %v4251_v28  ;;  %v2922_v56 = vsel %vm12410_vm4, %v2846_v21, %v12714_v15  ;;  %v12715_v28 = vld [vmem:[#allocation164_spill] sm:$0xff] }
 0x304   : > { %7567 = vmatmul.msk.bf16.gmra.mxu0 %vm3579_vm11, %v3474_v6  ;;  %v2742_v32 = vpop.permute.xlu1 %2741  ;;  %v3775_v12 = vmul.f32 0.01, %v3653_v29  ;;  %vm3739_vm15 = vcmp.ge.f32.partialorder %v3653_v29, 0.0  ;;  %v10583_v44 = vpop.permute.xlu2 %2569  ;;  %v12703_v6 = vld [vmem:[#allocation61_spill] sm:$0xff]  ;;  %v12719_v21 = vld [vmem:[#allocation92_spill] sm:$0xff] }
 0x305   : > { %v2186_v19 = vpop.permute.xlu0 %2185  ;;  %v3344_v16 = vsel %vm3302_vm10, %v3271_v9, %v2742_v32  ;;  %4413 = vst.msk [vmem:[#allocation2] sm:$0xf] %vm4412_vm13, %v4304_v25  ;;  %v2983_v9 = vsel %vm2937_vm5, %v2910_v41, %v12710_v11  ;;  %v2995_v41 = vsel %vm2937_vm5, %v2922_v56, %v12726_v14  ;;  %v12729_v11 = vld [vmem:[#allocation130_spill] sm:$0xff] }
 0x306   : > { %v3477_v63 = vshll.u32 %v3344_v16, 16  ;;  %v3811_v58 = vsel %vm3739_vm15, %v3653_v29, %v3775_v12  ;;  %v3200_v31 = vsel %vm3156_vm7, %v3127_v52, %v2186_v19  ;;  %v2858_v29 = vsel %vm2773_vm3, %v12704_v36, %v12703_v6  ;;  %4414 = vst.msk [vmem:[#allocation2 + $0x4] sm:$0xf] %vm4412_vm13, %v4305_v53  ;;  %v12716_v52 = vld [vmem:[#allocation86_spill] sm:$0xff]  ;;  %v12723_v6 = vld [vmem:[#allocation113_spill] sm:$0xff] }
 0x307   : > { %v3889_v35 = vpack.c.bf16 %v3811_v58, %v3811_v58  ;;  %v3273_v33 = vsel %vm12413_vm9, %v3200_v31, %v10462_v3  ;;  %4465 = vst.msk [vmem:[#allocation2 + $0xcc] sm:$0xf] %vm4412_vm13, %v4304_v25  ;;  %v3056_v51 = vsel %vm3010_vm6, %v2983_v9, %v12711_v27  ;;  %v3475_v7 = vshrl.u32 %v3344_v16, 16  ;;  %v12730_v27 = vld [vmem:[#allocation122_spill] sm:$0xff] }
 0x308   : > { %v3479_v8 = vrot.slane %v3477_v63, 1  ;;  %4466 = vst.msk [vmem:[#allocation2 + $0xd0] sm:$0xf] %vm4412_vm13, %v4305_v53  ;;  %v2916_v12 = vsel %vm12410_vm4, %v2838_v55, %v12712_v45  ;;  %v3129_v24 = vsel %vm3083_vm8, %v3056_v51, %v12715_v28  ;;  %v2920_v22 = vsel %vm12410_vm4, %v2843_v1, %v12716_v52  ;;  %v12717_v63 = vld [vmem:[#allocation88_spill] sm:$0xff] }
 0x309   : > { %v3654_v13 = vpop.f32.mrf.mxu0  ;;  %v3961_v5 = vunpack.c.l.b16 %v3889_v35  ;;  %v2928_v55 = vsel %vm12410_vm4, %v2853_v61, %v12717_v63  ;;  %v10635_v53 = vsel %vm12410_vm4, %v2858_v29, %v12719_v21  ;;  %v2985_v1 = vsel %vm2937_vm5, %v2912_v26, %v12720_v23  ;;  %v12725_v26 = vld [vmem:[#allocation118_spill] sm:$0xff]  ;;  %v12727_v35 = vld [vmem:[#allocation120_spill] sm:$0xff] }
 0x30a   : > { %v3655_v60 = vadd.f32 %v10520_v47, %v3654_v13  ;;  %v3480_v10 = vor.u32 %v3479_v8, %v3475_v7  ;;  %v12718_v13 = vld [vmem:[#allocation89_spill] sm:$0xff]  ;;  %v2991_v61 = vsel %vm2937_vm5, %v2918_v54, %v12721_v57  ;;  %v10649_v36 = vsel %vm2937_vm5, %v2930_v39, %v12723_v6  ;;  %v4500_v39 = vld [vmem:[#allocation2 + $0x8] sm:$0x1] }
 0x30b   : > { %v2926_v20 = vsel %vm12410_vm4, %v2851_v17, %v12718_v13  ;;  %v10645_v17 = vsel %vm2937_vm5, %v2924_v48, %v12722_v2  ;;  %v2989_v49 = vsel %vm2937_vm5, %v2916_v12, %v12724_v34  ;;  %v10664_v8 = vsel %vm2937_vm5, %v2920_v22, %v12727_v35  ;;  %v12731_v7 = vld [vmem:[#allocation133_spill] sm:$0xff] }
 0x30c   : > { %vm3740_vm15 = vcmp.ge.f32.partialorder %v3655_v60, 0.0  ;;  %v3776_v30 = vmul.f32 0.01, %v3655_v60  ;;  %v2188_v32 = vpop.permute.xlu1 %2187  ;;  %v10651_v29 = vpop.permute.xlu2 %2571  ;;  %v3058_v9 = vsel %vm3010_vm6, %v2985_v1, %v12729_v11  ;;  %v10675_v51 = vsel %vm2937_vm5, %v2926_v20, %v12730_v27  ;;  %v12735_v34 = vld [vmem:[#allocation145_spill] sm:$0xff]  ;;  %v7578_v11 = vld [vmem:[%s8606_s11 + $0x20] sm:$0x1] }
 0x30d   : > { %v2744_v18 = vpop.permute.xlu0 %2743  ;;  %v3202_v25 = vsel %vm3156_vm7, %v3129_v24, %v2188_v32  ;;  %v10681_v12 = vld [vmem:[#allocation2] sm:$0xff]   ;;  %v4806_v28 = vunpack.c.l.b16 %v4500_v39 }
 0x30e   : > { %v3812_v19 = vsel %vm3740_vm15, %v3655_v60, %v3776_v30  ;;  %v3346_v4 = vsel %vm3302_vm10, %v3273_v33, %v2744_v18  ;;  %v2987_v30 = vsel %vm2937_vm5, %v2914_v42, %v12725_v26  ;;  %v3275_v48 = vsel %vm12413_vm9, %v3202_v25, %v10490_v62  ;;  %v12728_v33 = vld [vmem:[#allocation121_spill] sm:$0xff]  ;;  %v12733_v24 = vld [vmem:[#allocation143_spill] sm:$0xff] }
 0x30f   : > { %v3890_v50 = vpack.c.bf16 %v3812_v19, %v3812_v19  ;;  %v3481_v3 = vshll.u32 %v3346_v4, 16  ;;  %v10668_v18 = vsel %vm2937_vm5, %v2928_v55, %v12728_v33  ;;  %v4841_v55 = vshll.u32 %v10681_v12, 16 }
 0x310   : > { %v10696_v57 = vpack.c.b16 %v4806_v28, %v4806_v28  ;;  %v4839_v33 = vshrl.u32 %v10681_v12, 16 }
 0x311   : > { %v3962_v0 = vunpack.c.l.b16 %v3890_v50  ;;  %v3483_v16 = vrot.slane %v3481_v3, 1  ;;  %v3657_v38 = vpop.f32.mrf.mxu0  ;;  %v3064_v50 = vsel %vm3010_vm6, %v2991_v61, %v12731_v7  ;;  %v12732_v3 = vld [vmem:[#allocation156_spill] sm:$0xff]  ;;  %v4843_v39 = vrot.slane %v4841_v55, 1 }
 0x312   : > { %v3658_v31 = vadd.f32 %v10520_v47, %v3657_v38  ;;  %v3131_v45 = vsel %vm3083_vm8, %v3058_v9, %v12732_v3  ;;  %v12734_v38 = vld [vmem:[#allocation144_spill] sm:$0xff] }
 0x313   : > { %v3996_v58 = vpack.c.b16 %v3962_v0, %v3961_v5  ;;  %v3484_v60 = vsel %vm719_vm0, %v3480_v10, %v3483_v16  ;;  %v3062_v5 = vsel %vm3010_vm6, %v2989_v49, %v12733_v24  ;;  %v3060_v52 = vsel %vm3010_vm6, %v2987_v30, %v12734_v38 }
 0x314   : > { %7568 = vmatmul.msk.bf16.gmra.mxu0 %vm3579_vm11, %v3484_v60  ;;  %v2746_v46 = vpop.permute.xlu1 %2745  ;;  %v3777_v4 = vmul.f32 0.01, %v3658_v31  ;;  %vm3741_vm15 = vcmp.ge.f32.partialorder %v3658_v31, 0.0  ;;  %v10699_v6 = vpop.permute.xlu2 %2573  ;;  %v10704_v49 = vsel %vm3010_vm6, %v2995_v41, %v12735_v34  ;;  %v6200_v24 = vunpack.c.l.b16 %v7578_v11 }
 0x315   : > { %v4021_v54 = vshrl.u32 %v3996_v58, 16  ;;  %v2190_v32 = vpop.permute.xlu0 %2189  ;;  %v3348_v59 = vsel %vm3302_vm10, %v3275_v48, %v2746_v46  ;;  %v4024_v62 = vshll.u32 %v3996_v58, 16  ;;  %v8152_v48 = vld [vmem:[#allocation2] sm:$0xe] }
 0x316   : > { %v3487_v15 = vshll.u32 %v3348_v59, 16  ;;  %v3204_v0 = vsel %vm3156_vm7, %v3131_v45, %v2190_v32  ;;  %v3813_v63 = vsel %vm3741_vm15, %v3658_v31, %v3777_v4  ;;  %v3485_v26 = vshrl.u32 %v3348_v59, 16  ;;  %v12736_v32 = vld [vmem:[#allocation167_spill] sm:$0xff]  ;;  %v7626_v45 = vld [vmem:[%s8606_s11 + $0x18] sm:$0xe] }
 0x317   : > { %v4023_v19 = vrot.slane %v4021_v54, 7  ;;  %v3277_v23 = vsel %vm12413_vm9, %v3204_v0, %v10529_v43  ;;  %v3891_v31 = vpack.c.bf16 %v3813_v63, %v3813_v63  ;;  %v8151_v54 = vld [vmem:[#allocation2] sm:$0xf0]  ;;  %v3133_v14 = vsel %vm3083_vm8, %v3060_v52, %v12736_v32 }
 0x318   : > { %v3489_v58 = vrot.slane %v3487_v15, 1  ;;  %v8153_v3 = vor.u32 %v8152_v48, %v8151_v54  ;;  %v12738_v15 = vld [vmem:[#allocation159_spill] sm:$0xff] }
 0x319   : > { %v4026_v40 = vor.u32 %v4024_v62, %v4023_v19  ;;  %v4197_v42 = vsel %vm10539_vm14, %v4023_v19, 0  ;;  %v3659_v56 = vpop.f32.mrf.mxu0  ;;  %v4846_v62 = vshll.u32 %v10696_v57, 16  ;;  %v3963_v4 = vunpack.c.l.b16 %v3891_v31 }
 0x31a   : > { %v4255_v10 = vunpack.c.l.b16 %v4197_v42  ;;  %v3660_v16 = vadd.f32 %v10520_v47, %v3659_v56  ;;  %v3490_v41 = vor.u32 %v3489_v58, %v3485_v26  ;;  %v12737_v42 = vld [vmem:[#allocation146_spill] sm:$0xff]  ;;  %v10722_v56 = vsel %vm3083_vm8, %v3064_v50, %v12738_v15 }
 0x31b   : > { %v4179_v22 = vsel %vm10539_vm14, 0, %v4026_v40  ;;  %v7783_v40 = vld [vmem:[%s8606_s11 + $0x18] sm:$0xf0]  ;;  %v3066_v12 = vsel %vm3010_vm6, %v10664_v8, %v12737_v42  ;;  %v12740_v8 = vld [vmem:[#allocation168_spill] sm:$0xff]  ;;  %v10739_v58 = vrot.slane %v8153_v3, 1 }
 0x31c   : > { %v4253_v13 = vunpack.c.l.b16 %v4179_v22  ;;  %v4254_v20 = vunpack.c.h.b16 %v4179_v22  ;;  %v4309_v25 = vpack.c.b16 %v4255_v10, %v4255_v10  ;;  %vm3742_vm4 = vcmp.ge.f32.partialorder %v3660_v16, 0.0  ;;  %v2192_v21 = vpop.permute.xlu1 %2191  ;;  %v12739_v10 = vld [vmem:[#allocation166_spill] sm:$0xff] }
 0x31d   : > { %v3778_v60 = vmul.f32 0.01, %v3660_v16  ;;  %v2748_v1 = vpop.permute.xlu0 %2747  ;;  %v3206_v59 = vsel %vm3156_vm7, %v3133_v14, %v2192_v21  ;;  %v3135_v0 = vsel %vm3083_vm8, %v3062_v5, %v12739_v10  ;;  %v10732_v63 = vsel %vm3083_vm8, %v3066_v12, %v12740_v8  ;;  %v8126_v15 = vld [vmem:[%s8606_s11 + $0xd8] sm:$0xf0] }
 0x31e   : > { %v4307_v61 = vpack.c.b16 %v4253_v13, %v4253_v13  ;;  %v4308_v2 = vpack.c.b16 %v4254_v20, %v4254_v20  ;;  %4419 = vst.msk [vmem:[#allocation2 + $0x14] sm:$0x1] %vm4415_vm12, %v4309_v25  ;;  %v3350_v46 = vsel %vm3302_vm10, %v3277_v23, %v2748_v1  ;;  %v3279_v22 = vsel %vm12413_vm9, %v3206_v59, %v10583_v44 }
 0x31f   : > { %v3814_v30 = vsel %vm3742_vm4, %v3660_v16, %v3778_v60  ;;  %v3491_v43 = vshll.u32 %v3350_v46, 16  ;;  %v7627_v20 = vor.u32 %v7783_v40, %v7626_v45  ;;  %v10735_v25 = vor.u32 %v4843_v39, %v4839_v33  ;;  %v10742_v60 = vld [vmem:[%s8606_s11 + $0xd4] sm:$0x3]  ;;  %v10747_v46 = vpop.permute.xlu2 %2575 }
 0x320   : > { %4417 = vst.msk [vmem:[#allocation2 + $0xc] sm:$0xf] %vm4412_vm13, %v4307_v61  ;;  %v3892_v35 = vpack.c.bf16 %v3814_v30, %v3814_v30  ;;  %v10737_v21 = vrot.slane %v4846_v62, 1  ;;  %v5111_v61 = vrot.slane %v10696_v57, 1  ;;  %v1853_v14 = vunpack.c.l.b16 %v10742_v60 }
 0x321   : > { %4418 = vst.msk [vmem:[#allocation2 + $0x10] sm:$0xf] %vm4412_vm13, %v4308_v2  ;;  %v3493_v9 = vrot.slane %v3491_v43, 1  ;;  %v3662_v19 = vpop.f32.mrf.mxu0  ;;  %v10745_v2 = vpack.c.b16 %v6200_v24, %v6200_v24  ;;  %v10753_v32 = vrot.slane %v7627_v20, 1  ;;  %v7548_v24 = vld [vmem:[%s8606_s11 + $0xe0] sm:$0x3] }
 0x322   : > { %v3964_v27 = vunpack.c.l.b16 %v3892_v35  ;;  %v3663_v7 = vadd.f32 %v10520_v47, %v3662_v19  ;;  %v2627_v20 = vunpack.c.l.b16 %v7548_v24 }
 0x323   : > { %v3494_v28 = vsel %vm719_vm0, %v3490_v41, %v3493_v9 }
 0x324   : > { %v3997_v16 = vpack.c.b16 %v3964_v27, %v3963_v4  ;;  %v3779_v38 = vmul.f32 0.01, %v3663_v7  ;;  %7569 = vmatmul.msk.bf16.gmra.mxu0 %vm3579_vm11, %v3494_v28  ;;  %v2750_v52 = vpop.permute.xlu1 %2749  ;;  %vm3743_vm4 = vcmp.ge.f32.partialorder %v3663_v7, 0.0  ;;  %v8127_v28 = vld [vmem:[%s8606_s11 + $0xd8] sm:$0xe] }
 0x325   : > { %v3352_v50 = vsel %vm3302_vm10, %v3279_v22, %v2750_v52  ;;  %v2194_v55 = vpop.permute.xlu0 %2193  ;;  %v4565_v13 = vld [vmem:[#allocation2 + $0x14] sm:$0x1] }
 0x326   : > { %v4028_v5 = vshrl.u32 %v3997_v16, 16  ;;  %v4031_v44 = vshll.u32 %v3997_v16, 16  ;;  %v5318_v1 = vunpack.c.l.b16 %v4565_v13  ;;  %v3815_v34 = vsel %vm3743_vm4, %v3663_v7, %v3779_v38 }
 0x327   : > { %v8455_v23 = vld [vmem:[#allocation2 + $0xc] sm:$0xe]  ;;  %v3497_v26 = vshll.u32 %v3352_v50, 16  ;;  %v3208_v54 = vsel %vm3156_vm7, %v3135_v0, %v2194_v55  ;;  %v3893_v59 = vpack.c.bf16 %v3815_v34, %v3815_v34  ;;  %v3495_v9 = vshrl.u32 %v3352_v50, 16  ;;  %v10779_v34 = vpop.permute.xlu2 %2199 }
 0x328   : > { %v4030_v31 = vrot.slane %v4028_v5, 7  ;;  %v10750_v30 = vld [vmem:[#allocation2 + $0xc] sm:$0xff]   ;;  %v10759_v11 = vpack.c.b16 %v5318_v1, %v5318_v1  ;;  %v3281_v42 = vsel %vm12413_vm9, %v3208_v54, %v10651_v29  ;;  %v6279_v29 = vrot.slane %v10745_v2, 1  ;;  %v7510_v5 = vld [vmem:[%s8606_s11 + $0xe0] sm:$0x1] }
 0x329   : > { %v8454_v43 = vld [vmem:[#allocation2 + $0xc] sm:$0xf0]  ;;  %v3664_v48 = vpop.f32.mrf.mxu0  ;;  %v3499_v4 = vrot.slane %v3497_v26, 1  ;;  %v10773_v13 = vor.u32 %v8127_v28, %v8126_v15  ;;  %v3965_v60 = vunpack.c.l.b16 %v3893_v59  ;;  %v10787_v54 = vpack.c.b16 %v1853_v14, %v1853_v14 }
 0x32a   : > { %v4033_v35 = vor.u32 %v4031_v44, %v4030_v31  ;;  %v4198_v33 = vsel %vm10539_vm14, %v4030_v31, 0  ;;  %v3665_v39 = vadd.f32 %v10520_v47, %v3664_v48  ;;  %v8456_v19 = vor.u32 %v8455_v23, %v8454_v43 }
 0x32b   : > { %v4258_v41 = vunpack.c.l.b16 %v4198_v33  ;;  %v5591_v38 = vrot.slane %v10759_v11, 1  ;;  %v3500_v44 = vor.u32 %v3499_v4, %v3495_v9  ;;  %v4849_v43 = vsel %vm719_vm0, %v10735_v25, %v10737_v21 }
 0x32c   : > { %v4180_v62 = vsel %vm10539_vm14, 0, %v4033_v35  ;;  %vm3744_vm15 = vcmp.ge.f32.partialorder %v3665_v39, 0.0  ;;  %v3780_v27 = vmul.f32 0.01, %v3665_v39  ;;  %v2196_v7 = vpop.permute.xlu1 %2195  ;;  %v5590_v16 = vrot.slane %v8456_v19, 1 }
 0x32d   : > { %v4256_v3 = vunpack.c.l.b16 %v4180_v62  ;;  %v4257_v45 = vunpack.c.h.b16 %v4180_v62  ;;  %v4312_v40 = vpack.c.b16 %v4258_v41, %v4258_v41  ;;  %v2752_v12 = vpop.permute.xlu0 %2751  ;;  %v3210_v2 = vsel %vm3156_vm7, %v10722_v56, %v2196_v7 }
 0x32e   : > { %v3816_v10 = vsel %vm3744_vm15, %v3665_v39, %v3780_v27  ;;  %v3354_v0 = vsel %vm3302_vm10, %v3281_v42, %v2752_v12  ;;  %v5592_v55 = vsel %vm1098_vm1, %v5590_v16, %v5591_v38  ;;  %v10794_v33 = vsel %vm1098_vm1, %v10739_v58, %v5111_v61  ;;  %v12741_v58 = vld [vmem:[#allocation107_spill] sm:$0xff] }
 0x32f   : > { %v4310_v52 = vpack.c.b16 %v4256_v3, %v4256_v3  ;;  %v4311_v22 = vpack.c.b16 %v4257_v45, %v4257_v45  ;;  %4422 = vst.msk [vmem:[#allocation2 + $0x20] sm:$0x1] %vm4415_vm12, %v4312_v40  ;;  %v3894_v8 = vpack.c.bf16 %v3816_v10, %v3816_v10  ;;  %v3501_v50 = vshll.u32 %v3354_v0, 16  ;;  %5638 = vrot.lane.b32.xlu2 %v5592_v55, %s8512_s25 }
 0x330   : > { %v2103_v39 = vunpack.c.l.b16 %v7510_v5  ;;  %v10797_v59 = vpack.c.b16 %v2627_v20, %v2627_v20  ;;  %v2496_v25 = vshll.u32 %v10773_v13, 16  ;;  %v3283_v14 = vsel %vm12413_vm9, %v3210_v2, %v10699_v6 }
 0x331   : > { %4420 = vst.msk [vmem:[#allocation2 + $0x18] sm:$0xf] %vm4412_vm13, %v4310_v52  ;;  %v3966_v23 = vunpack.c.l.b16 %v3894_v8  ;;  %v3503_v1 = vrot.slane %v3501_v50, 1  ;;  %v3667_v31 = vpop.f32.mrf.mxu0  ;;  %v10804_v57 = vsel %vm1098_vm1, %v10753_v32, %v6279_v29  ;;  %v1921_v61 = vrot.slane %v12741_v58, 1 }
 0x332   : > { %4421 = vst.msk [vmem:[#allocation2 + $0x1c] sm:$0xf] %vm4412_vm13, %v4311_v22  ;;  %v3668_v26 = vadd.f32 %v10520_v47, %v3667_v31  ;;  %v1922_v27 = vrot.slane %v10787_v54, 1  ;;  %v2695_v7 = vrot.slane %v10773_v13, 1  ;;  %v2696_v32 = vrot.slane %v10797_v59, 1 }
 0x333   : > { %v3998_v48 = vpack.c.b16 %v3966_v23, %v3965_v60  ;;  %v3504_v35 = vsel %vm719_vm0, %v3500_v44, %v3503_v1  ;;  %v10814_v42 = vpack.c.b16 %v2103_v39, %v2103_v39  ;;  %v2494_v12 = vshrl.u32 %v10773_v13, 16  ;;  %v10834_v23 = vpop.permute.xlu2 %2201 }
 0x334   : > { %vm3745_vm4 = vcmp.ge.f32.partialorder %v3668_v26, 0.0  ;;  %v3781_v56 = vmul.f32 0.01, %v3668_v26  ;;  %7570 = vmatmul.msk.bf16.gmra.mxu0 %vm3579_vm11, %v3504_v35  ;;  %v2754_v41 = vpop.permute.xlu1 %2753  ;;  %v2498_v15 = vrot.slane %v2496_v25, 1 }
 0x335   : > { %v4035_v21 = vshrl.u32 %v3998_v48, 16  ;;  %v2198_v9 = vpop.permute.xlu0 %2197  ;;  %v4038_v19 = vshll.u32 %v3998_v48, 16  ;;  %v3356_v62 = vsel %vm3302_vm10, %v3283_v14, %v2754_v41 }
 0x336   : > { %v4630_v4 = vld [vmem:[#allocation2 + $0x20] sm:$0x1]  ;;  %v3817_v45 = vsel %vm3745_vm4, %v3668_v26, %v3781_v56  ;;  %v3212_v6 = vsel %vm3156_vm7, %v10732_v63, %v2198_v9  ;;  %v3507_v10 = vshll.u32 %v3356_v62, 16  ;;  %v3505_v25 = vshrl.u32 %v3356_v62, 16 }
 0x337   : > { %v4037_v3 = vrot.slane %v4035_v21, 7  ;;  %v5798_v40 = vunpack.c.l.b16 %v4630_v4  ;;  %5030 = vrot.lane.b32.xlu2 %v4849_v43, %s8512_s25  ;;  %v3895_v52 = vpack.c.bf16 %v3817_v45, %v3817_v45  ;;  %v3285_v8 = vsel %vm12413_vm9, %v3212_v6, %v10747_v46  ;;  %v4566_v41 = vld [vmem:[#allocation2 + $0x20] sm:$0x1]  ;;  %v10843_v4 = vld [vmem:[#allocation2 + $0xc] sm:$0xf0] }
 0x338   : > { %v3509_v2 = vrot.slane %v3507_v10, 1  ;;  %v2501_v43 = vshll.u32 %v10814_v42, 16  ;;  %v2499_v6 = vor.u32 %v2498_v15, %v2494_v12 }
 0x339   : > { %v4040_v28 = vor.u32 %v4038_v19, %v4037_v3  ;;  %v4199_v24 = vsel %vm10539_vm14, %v4037_v3, 0  ;;  %v10820_v0 = vld [vmem:[#allocation2 + $0x18] sm:$0xff]   ;;  %v3669_v16 = vpop.f32.mrf.mxu0  ;;  %v10822_v38 = vpack.c.b16 %v5798_v40, %v5798_v40  ;;  %v10841_v19 = vld [vmem:[#allocation2 + $0xc] sm:$0xff]   ;;  %v3967_v3 = vunpack.c.l.b16 %v3895_v52 }
 0x33a   : > { %v4261_v63 = vunpack.c.l.b16 %v4199_v24  ;;  %5750 = vrot.lane.b32.xlu0 %v10820_v0, %s8514_s15  ;;  %v5833_v22 = vshll.u32 %v10820_v0, 16  ;;  %v5831_v55 = vshrl.u32 %v10820_v0, 16  ;;  %v3670_v29 = vadd.f32 %v10520_v47, %v3669_v16  ;;  %v8175_v40 = vld [vmem:[#allocation2 + $0x18] sm:$0xf0] }
 0x33b   : > { %v4181_v50 = vsel %vm10539_vm14, 0, %v4040_v28  ;;  %v5838_v20 = vshll.u32 %v10822_v38, 16  ;;  %v8176_v28 = vld [vmem:[#allocation2 + $0x18] sm:$0xe]  ;;  %v3510_v24 = vor.u32 %v3509_v2, %v3505_v25  ;;  %v2503_v15 = vrot.slane %v2501_v43, 1 }
 0x33c   : > { %v4259_v5 = vunpack.c.l.b16 %v4181_v50  ;;  %v4260_v60 = vunpack.c.h.b16 %v4181_v50  ;;  %v4315_v44 = vpack.c.b16 %v4261_v63, %v4261_v63  ;;  %v5835_v1 = vrot.slane %v5833_v22, 1  ;;  %v1984_v31 = vpop.permute.xlu1 %1983 }
 0x33d   : > { %vm3746_vm15 = vcmp.ge.f32.partialorder %v3670_v29, 0.0  ;;  %v3782_v26 = vmul.f32 0.01, %v3670_v29  ;;  %v2756_v46 = vpop.permute.xlu0 %2755  ;;  %v5840_v9 = vrot.slane %v5838_v20, 1  ;;  %v5319_v63 = vunpack.c.l.b16 %v4566_v41  ;;  %v12743_v20 = vld [vmem:[#allocation147_spill] sm:$0xff] }
 0x33e   : > { %v4313_v48 = vpack.c.b16 %v4259_v5, %v4259_v5  ;;  %v4314_v35 = vpack.c.b16 %v4260_v60, %v4260_v60  ;;  %4425 = vst.msk [vmem:[#allocation2 + $0x2c] sm:$0x1] %vm4415_vm12, %v4315_v44  ;;  %v10838_v39 = vor.u32 %v5835_v1, %v5831_v55  ;;  %v3358_v56 = vsel %vm3302_vm10, %v3285_v8, %v2756_v46  ;;  %v4501_v8 = vld [vmem:[#allocation2 + $0x14] sm:$0x1]  ;;  %v10867_v44 = vld [vmem:[#allocation2 + $0xc] sm:$0xe] }
 0x33f   : > { %v3818_v21 = vsel %vm3746_vm15, %v3670_v29, %v3782_v26  ;;  %v3511_v14 = vshll.u32 %v3358_v56, 16  ;;  %5158 = vrot.lane.b32.xlu2 %v10794_v33, %s8514_s15  ;;  %v3141_v52 = vsel %vm3083_vm8, %v10704_v49, %v1984_v31  ;;  %v8177_v55 = vor.u32 %v8176_v28, %v8175_v40  ;;  %v12742_v33 = vld [vmem:[#allocation136_spill] sm:$0xff] }
 0x340   : > { %4423 = vst.msk [vmem:[#allocation2 + $0x24] sm:$0xf] %vm4412_vm13, %v4313_v48  ;;  %v3896_v45 = vpack.c.bf16 %v3818_v21, %v3818_v21  ;;  %v5841_v62 = vsel %vm719_vm0, %v10838_v39, %v5840_v9  ;;  %v3070_v29 = vsel %vm3010_vm6, %v10645_v17, %v12742_v33  ;;  %v10864_v49 = vsel %vm3010_vm6, %v10668_v18, %v12743_v20  ;;  %v2760_v18 = vpop.permute.xlu2 %2759  ;;  %v8047_v48 = vld [vmem:[%s8606_s11 + $0xd8] sm:$0xff]  }
 0x341   : > { %4424 = vst.msk [vmem:[#allocation2 + $0x28] sm:$0xf] %vm4412_vm13, %v4314_v35  ;;  %v3513_v10 = vrot.slane %v3511_v14, 1  ;;  %v3672_v16 = vpop.f32.mrf.mxu0  ;;  %6022 = vrot.lane.b32.xlu1 %v5841_v62, %s8515_s27  ;;  %v1923_v17 = vsel %vm1098_vm1, %v1921_v61, %v1922_v27  ;;  %v10874_v31 = vpack.c.b16 %v5319_v63, %v5319_v63  ;;  %v4807_v2 = vunpack.c.l.b16 %v4501_v8 }
 0x342   : > { %v3968_v22 = vunpack.c.l.b16 %v3896_v45  ;;  %6326 = vrot.lane.b32.xlu0 %v10804_v57, %s8512_s25  ;;  %v3673_v12 = vadd.f32 %v10520_v47, %v3672_v16  ;;  %v3214_v46 = vsel %vm3156_vm7, %v3141_v52, %v10779_v34  ;;  %v2697_v43 = vsel %vm1098_vm1, %v2695_v7, %v2696_v32 }
 0x343   : > { %v3514_v50 = vsel %vm719_vm0, %v3510_v24, %v3513_v10  ;;  %v2504_v35 = vsel %vm719_vm0, %v2499_v6, %v2503_v15  ;;  %v10885_v58 = vrot.slane %v8177_v55, 1  ;;  %v5594_v7 = vrot.slane %v10874_v31, 1 }
 0x344   : > { %v3999_v5 = vpack.c.b16 %v3968_v22, %v3967_v3  ;;  %v3783_v60 = vmul.f32 0.01, %v3673_v12  ;;  %7571 = vmatmul.msk.bf16.gmra.mxu0 %vm3579_vm11, %v3514_v50  ;;  %v2578_v57 = vpop.permute.xlu1 %2577  ;;  %vm3747_vm4 = vcmp.ge.f32.partialorder %v3673_v12, 0.0  ;;  %v10897_v9 = vpack.c.b16 %v4807_v2, %v4807_v2 }
 0x345   : > { %v1986_v1 = vpop.permute.xlu0 %1985  ;;  %v3287_v34 = vsel %vm12413_vm9, %v3214_v46, %v2578_v57  ;;  %v4853_v16 = vshll.u32 %v10841_v19, 16  ;;  %v4631_v8 = vld [vmem:[#allocation2 + $0x2c] sm:$0x1]  ;;  %v4851_v57 = vshrl.u32 %v10841_v19, 16 }
 0x346   : > { %v4042_v26 = vshrl.u32 %v3999_v5, 16  ;;  %v4045_v56 = vshll.u32 %v3999_v5, 16  ;;  %v3819_v41 = vsel %vm3747_vm4, %v3673_v12, %v3783_v60  ;;  %v3143_v25 = vsel %vm3083_vm8, %v3070_v29, %v1986_v1 }
 0x347   : > { %1993 = vrot.lane.b32.xlu2 %v1922_v27, %s8509_s16  ;;  %v3897_v28 = vpack.c.bf16 %v3819_v41, %v3819_v41  ;;  %v3216_v54 = vsel %vm3156_vm7, %v3143_v25, %v10834_v23  ;;  %v8328_v27 = vor.u32 %v10867_v44, %v10843_v4  ;;  %v4855_v44 = vrot.slane %v4853_v16, 1  ;;  %v12744_v25 = vld [vmem:[#allocation124_spill] sm:$0xff] }
 0x348   : > { %v4044_v61 = vrot.slane %v4042_v26, 7  ;;  %v10888_v21 = vld [vmem:[#allocation2 + $0x24] sm:$0xff]   ;;  %v1990_v5 = vpop.permute.xlu2 %1989  ;;  %v5799_v1 = vunpack.c.l.b16 %v4631_v8  ;;  %v4858_v46 = vshll.u32 %v10897_v9, 16 }
 0x349   : > { %v10890_v14 = vld [vmem:[#allocation2 + $0x24] sm:$0xf0]  ;;  %v3674_v13 = vpop.f32.mrf.mxu0  ;;  %1991 = vrot.lane.b32.xlu1 %v1923_v17, %s8509_s16  ;;  %v3969_v17 = vunpack.c.l.b16 %v3897_v28  ;;  %v5845_v41 = vshll.u32 %v10888_v21, 16  ;;  %v4856_v28 = vor.u32 %v4855_v44, %v4851_v57 }
 0x34a   : > { %v4047_v3 = vor.u32 %v4045_v56, %v4044_v61  ;;  %v4200_v45 = vsel %vm10539_vm14, %v4044_v61, 0  ;;  %2207 = vrot.lane.b32.xlu0 %v8047_v48, %s8511_s24  ;;  %v3675_v6 = vadd.f32 %v10520_v47, %v3674_v13  ;;  %v4860_v16 = vrot.slane %v4858_v46, 1 }
 0x34b   : > { %v4264_v40 = vunpack.c.l.b16 %v4200_v45 }
 0x34c   : > { %v4182_v24 = vsel %vm10539_vm14, 0, %v4047_v3  ;;  %vm3748_vm15 = vcmp.ge.f32.partialorder %v3675_v6, 0.0  ;;  %v3784_v10 = vmul.f32 0.01, %v3675_v6  ;;  %v2580_v62 = vpop.permute.xlu1 %2579  ;;  %v10935_v3 = vsel %vm3083_vm8, %v10864_v49, %v1990_v5 }
 0x34d   : > { %v4262_v63 = vunpack.c.l.b16 %v4182_v24  ;;  %v4263_v22 = vunpack.c.h.b16 %v4182_v24  ;;  %v4318_v52 = vpack.c.b16 %v4264_v40, %v4264_v40  ;;  %v3289_v12 = vsel %vm12413_vm9, %v3216_v54, %v2580_v62  ;;  %v2758_v15 = vpop.permute.xlu0 %2757  ;;  %v7581_v24 = vld [vmem:[%s8606_s11 + $0x2c] sm:$0x1] }
 0x34e   : > { %v3820_v50 = vsel %vm3748_vm15, %v3675_v6, %v3784_v10  ;;  %v3362_v23 = vsel %vm3302_vm10, %v3289_v12, %v2760_v18  ;;  %v3360_v4 = vsel %vm3302_vm10, %v3287_v34, %v2758_v15  ;;  %v12745_v34 = vld [vmem:[#allocation148_spill] sm:$0xff]  ;;  %v10937_v54 = vpack.c.b16 %v5799_v1, %v5799_v1 }
 0x34f   : > { %v4316_v55 = vpack.c.b16 %v4262_v63, %v4262_v63  ;;  %v4317_v33 = vpack.c.b16 %v4263_v22, %v4263_v22  ;;  %4428 = vst.msk [vmem:[#allocation2 + $0x38] sm:$0x1] %vm4415_vm12, %v4318_v52  ;;  %v3898_v29 = vpack.c.bf16 %v3820_v50, %v3820_v50  ;;  %v3521_v20 = vshll.u32 %v3362_v23, 16  ;;  %2765 = vrot.lane.b32.xlu2 %v2697_v43, %s8512_s25  ;;  %v10948_v52 = vld [vmem:[#allocation2 + $0x24] sm:$0xff]   ;;  %v4567_v15 = vld [vmem:[#allocation2 + $0x2c] sm:$0x1] }
 0x350   : > { %v3517_v60 = vshll.u32 %v3360_v4, 16  ;;  %v3515_v26 = vshrl.u32 %v3360_v4, 16  ;;  %v10928_v43 = vsel %vm2937_vm5, %v10635_v53, %v12744_v25  ;;  %v3072_v13 = vsel %vm3010_vm6, %v10675_v51, %v12745_v34  ;;  %v10950_v12 = vld [vmem:[#allocation2 + $0x24] sm:$0xf0]  ;;  %v2762_v34 = vpop.permute.xlu2 %2761 }
 0x351   : > { %4426 = vst.msk [vmem:[#allocation2 + $0x30] sm:$0xf] %vm4412_vm13, %v4316_v55  ;;  %v3970_v2 = vunpack.c.l.b16 %v3898_v29  ;;  %v3677_v18 = vpop.f32.mrf.mxu0  ;;  %v3523_v48 = vrot.slane %v3521_v20, 1  ;;  %5270 = vrot.lane.b32.xlu1 %v10750_v30, %s8515_s27  ;;  %v5595_v51 = vsel %vm1098_vm1, %v10885_v58, %v5594_v7  ;;  %v2505_v62 = vshrl.u32 %v10814_v42, 16 }
 0x352   : > { %4427 = vst.msk [vmem:[#allocation2 + $0x34] sm:$0xf] %vm4412_vm13, %v4317_v33  ;;  %v3519_v61 = vrot.slane %v3517_v60, 1  ;;  %2585 = vrot.lane.b32.xlu0 %v2504_v35, %s8510_s17  ;;  %v3678_v56 = vadd.f32 %v10520_v47, %v3677_v18  ;;  %v5847_v63 = vrot.slane %v5845_v41, 1  ;;  %v10946_v22 = vrot.slane %v8328_v27, 1 }
 0x353   : > { %v4000_v45 = vpack.c.b16 %v3970_v2, %v3969_v17  ;;  %v5843_v58 = vshrl.u32 %v10888_v21, 16  ;;  %v6203_v7 = vunpack.c.l.b16 %v7581_v24  ;;  %v4861_v4 = vsel %vm719_vm0, %v4856_v28, %v4860_v16  ;;  %v7630_v27 = vld [vmem:[%s8606_s11 + $0x24] sm:$0xe]  ;;  %v7784_v33 = vld [vmem:[%s8606_s11 + $0x24] sm:$0xf0] }
 0x354   : > { %v3520_v6 = vor.u32 %v3519_v61, %v3515_v26  ;;  %v3785_v35 = vmul.f32 0.01, %v3678_v56  ;;  %v2204_v40 = vpop.permute.xlu1 %2203  ;;  %vm3749_vm4 = vcmp.ge.f32.partialorder %v3678_v56, 0.0  ;;  %v5850_v55 = vshll.u32 %v10937_v54, 16  ;;  %v8154_v28 = vld [vmem:[#allocation2 + $0x18] sm:$0xf0] }
 0x355   : > { %v4049_v10 = vshrl.u32 %v4000_v45, 16  ;;  %v1988_v53 = vpop.permute.xlu0 %1987  ;;  %v4052_v50 = vshll.u32 %v4000_v45, 16  ;;  %v5114_v29 = vrot.slane %v10897_v9, 1  ;;  %v5320_v57 = vunpack.c.l.b16 %v4567_v15  ;;  %v8458_v9 = vld [vmem:[#allocation2 + $0x24] sm:$0xe] }
 0x356   : > { %v3524_v49 = vsel %vm719_vm0, %v3520_v6, %v3523_v48  ;;  %v3821_v23 = vsel %vm3749_vm4, %v3678_v56, %v3785_v35  ;;  %v3145_v1 = vsel %vm3083_vm8, %v3072_v13, %v1988_v53  ;;  %v5848_v2 = vor.u32 %v5847_v63, %v5843_v58  ;;  %v4632_v13 = vld [vmem:[#allocation2 + $0x38] sm:$0x1] }
 0x357   : > { %v4051_v8 = vrot.slane %v4049_v10, 7  ;;  %7572 = vmatmul.msk.bf16.gmra.mxu0 %vm3579_vm11, %v3524_v49  ;;  %5640 = vrot.lane.b32.xlu2 %v5595_v51, %s8512_s25  ;;  %v3899_v18 = vpack.c.bf16 %v3821_v23, %v3821_v23  ;;  %v7631_v46 = vor.u32 %v7784_v33, %v7630_v27  ;;  %v6249_v48 = vpack.c.b16 %v6203_v7, %v6203_v7  ;;  %v8155_v49 = vld [vmem:[#allocation2 + $0x18] sm:$0xe] }
 0x358   : > { %v3218_v6 = vsel %vm3156_vm7, %v3145_v1, %v2204_v40  ;;  %v5800_v35 = vunpack.c.l.b16 %v4632_v13  ;;  %v5852_v27 = vrot.slane %v5850_v55, 1 }
 0x359   : > { %v4054_v20 = vor.u32 %v4052_v50, %v4051_v8  ;;  %v4201_v5 = vsel %vm10539_vm14, %v4051_v8, 0  ;;  %v3679_v60 = vpop.f32.mrf.mxu0  ;;  %2209 = vrot.lane.b32.xlu1 %v10814_v42, %s8511_s24  ;;  %v4502_v42 = vld [vmem:[#allocation2 + $0x20] sm:$0x1]  ;;  %v10973_v51 = vld [vmem:[#allocation2 + $0x30] sm:$0xff]   ;;  %v6281_v58 = vrot.slane %v7631_v46, 1  ;;  %v6282_v7 = vrot.slane %v6249_v48, 1 }
 0x35a   : > { %v4267_v44 = vunpack.c.l.b16 %v4201_v5  ;;  %2587 = vrot.lane.b32.xlu0 %v2505_v62, %s8510_s17  ;;  %v3680_v17 = vadd.f32 %v10520_v47, %v3679_v60  ;;  %v10975_v62 = vpack.c.b16 %v5320_v57, %v5320_v57  ;;  %v10979_v15 = vpack.c.b16 %v5800_v35, %v5800_v35  ;;  %v4568_v35 = vld [vmem:[#allocation2 + $0x38] sm:$0x1] }
 0x35b   : > { %v4183_v26 = vsel %vm10539_vm14, 0, %v4054_v20  ;;  %v4808_v40 = vunpack.c.l.b16 %v4502_v42  ;;  %v5857_v33 = vshll.u32 %v10973_v51, 16  ;;  %v8459_v20 = vor.u32 %v8458_v9, %v10950_v12 }
 0x35c   : > { %v4265_v61 = vunpack.c.l.b16 %v4183_v26  ;;  %v4266_v56 = vunpack.c.h.b16 %v4183_v26  ;;  %v4321_v41 = vpack.c.b16 %v4267_v44, %v4267_v44  ;;  %vm3750_vm15 = vcmp.ge.f32.partialorder %v3680_v17, 0.0  ;;  %v2206_v25 = vpop.permute.xlu1 %2205 }
 0x35d   : > { %v3786_v45 = vmul.f32 0.01, %v3680_v17  ;;  %v2582_v47 = vpop.permute.xlu0 %2581  ;;  %v8156_v5 = vor.u32 %v8155_v49, %v8154_v28  ;;  %v3971_v60 = vunpack.c.l.b16 %v3899_v18  ;;  %v10999_v12 = vsel %vm1098_vm1, %v10946_v22, %v5114_v29 }
 0x35e   : > { %v4319_v24 = vpack.c.b16 %v4265_v61, %v4265_v61  ;;  %v4320_v10 = vpack.c.b16 %v4266_v56, %v4266_v56  ;;  %4431 = vst.msk [vmem:[#allocation2 + $0x44] sm:$0x1] %vm4415_vm12, %v4321_v41  ;;  %v3291_v53 = vsel %vm12413_vm9, %v3218_v6, %v2582_v47  ;;  %v5853_v44 = vsel %vm719_vm0, %v5848_v2, %v5852_v27 }
 0x35f   : > { %v3822_v16 = vsel %vm3750_vm15, %v3680_v17, %v3786_v45  ;;  %v3364_v63 = vsel %vm3302_vm10, %v3291_v53, %v2762_v34  ;;  %5032 = vrot.lane.b32.xlu2 %v4861_v4, %s8512_s25  ;;  %v10994_v4 = vld [vmem:[%s12361_s2] ss:$0 sm:$0xff]  ;;  %v5862_v1 = vshll.u32 %v10979_v15, 16  ;;  %v5597_v59 = vrot.slane %v10975_v62, 1 }
 0x360   : > { %4429 = vst.msk [vmem:[#allocation2 + $0x3c] sm:$0xf] %vm4412_vm13, %v4319_v24  ;;  %v3900_v8 = vpack.c.bf16 %v3822_v16, %v3822_v16  ;;  %v3527_v50 = vshll.u32 %v3364_v63, 16  ;;  %v3220_v17 = vsel %vm3156_vm7, %v10935_v3, %v2206_v25  ;;  %v6283_v18 = vsel %vm1098_vm1, %v6281_v58, %v6282_v7 }
 0x361   : > { %4430 = vst.msk [vmem:[#allocation2 + $0x40] sm:$0xf] %vm4412_vm13, %v4320_v10  ;;  %v3682_v23 = vpop.f32.mrf.mxu0  ;;  %2767 = vrot.lane.b32.xlu1 %v2696_v32, %s8512_s25  ;;  %v11004_v32 = vpack.c.b16 %v4808_v40, %v4808_v40  ;;  %v5859_v22 = vrot.slane %v5857_v33, 1  ;;  %v5596_v29 = vrot.slane %v8459_v20, 1  ;;  %v11009_v61 = vrot.slane %v8156_v5, 1 }
 0x362   : > { %v3972_v57 = vunpack.c.l.b16 %v3900_v8  ;;  %5752 = vrot.lane.b32.xlu0 %v10888_v21, %s8514_s15  ;;  %v3683_v55 = vadd.f32 %v10994_v4, %v3682_v23  ;;  %v3529_v9 = vrot.slane %v3527_v50, 1  ;;  %v3525_v56 = vshrl.u32 %v3364_v63, 16 }
 0x363   : > { %v5855_v13 = vshrl.u32 %v10973_v51, 16  ;;  %v5864_v3 = vrot.slane %v5862_v1, 1  ;;  %v4870_v25 = vshll.u32 %v11004_v32, 16  ;;  %v5358_v53 = vshll.u32 %v10759_v11, 16 }
 0x364   : > { %v4001_v21 = vpack.c.b16 %v3972_v57, %v3971_v60  ;;  %v2764_v26 = vpop.permute.xlu1 %2763  ;;  %v3787_v46 = vmul.f32 0.01, %v3683_v55  ;;  %vm3751_vm4 = vcmp.ge.f32.partialorder %v3683_v55, 0.0  ;;  %v3530_v6 = vor.u32 %v3529_v9, %v3525_v56 }
 0x365   : > { %v2584_v48 = vpop.permute.xlu0 %2583  ;;  %v11017_v10 = vor.u32 %v5859_v22, %v5855_v13  ;;  %v5353_v49 = vshll.u32 %v10750_v30, 16  ;;  %v5351_v58 = vshrl.u32 %v10750_v30, 16  ;;  %v11032_v30 = vld [vmem:[#allocation2 + $0x24] sm:$0xff]   ;;  %v4872_v22 = vrot.slane %v4870_v25, 1 }
 0x366   : > { %v4056_v2 = vshrl.u32 %v4001_v21, 16  ;;  %v3293_v41 = vsel %vm12413_vm9, %v3220_v17, %v2584_v48  ;;  %v4059_v45 = vshll.u32 %v4001_v21, 16  ;;  %v3823_v28 = vsel %vm3751_vm4, %v3683_v55, %v3787_v46  ;;  %v11034_v21 = vld [vmem:[#allocation2 + $0x24] sm:$0xf0]  ;;  %v12746_v25 = vld [vmem:[#allocation139_spill] sm:$0xff] }
 0x367   : > { %v3366_v34 = vsel %vm3302_vm10, %v3293_v41, %v2764_v26  ;;  %5272 = vrot.lane.b32.xlu2 %v10820_v0, %s8515_s27  ;;  %v5321_v0 = vunpack.c.l.b16 %v4568_v35  ;;  %v5355_v7 = vrot.slane %v5353_v49, 1  ;;  %v3901_v60 = vpack.c.bf16 %v3823_v28, %v3823_v28  ;;  %v7634_v28 = vld [vmem:[%s8606_s11 + $0x30] sm:$0xe] }
 0x368   : > { %v4058_v42 = vrot.slane %v4056_v2, 7  ;;  %v3531_v47 = vshll.u32 %v3366_v34, 16  ;;  %v5598_v55 = vsel %vm1098_vm1, %v5596_v29, %v5597_v59  ;;  %v11038_v46 = vld [vmem:[#allocation2 + $0x3c] sm:$0xff]   ;;  %v5865_v59 = vsel %vm719_vm0, %v11017_v10, %v5864_v3  ;;  %v8178_v29 = vld [vmem:[#allocation2 + $0x30] sm:$0xf0] }
 0x369   : > { %v3684_v24 = vpop.f32.mrf.mxu0  ;;  %6024 = vrot.lane.b32.xlu1 %v5853_v44, %s8515_s27  ;;  %v5360_v44 = vrot.slane %v5358_v53, 1  ;;  %v5356_v1 = vor.u32 %v5355_v7, %v5351_v58  ;;  %v11040_v48 = vld [vmem:[#allocation2 + $0x3c] sm:$0xf0]  ;;  %v3973_v56 = vunpack.c.l.b16 %v3901_v60  ;;  %v8179_v34 = vld [vmem:[#allocation2 + $0x30] sm:$0xe]  ;;  %v11049_v13 = vpack.c.b16 %v5321_v0, %v5321_v0 }
 0x36a   : > { %v4061_v16 = vor.u32 %v4059_v45, %v4058_v42  ;;  %v4202_v63 = vsel %vm10539_vm14, %v4058_v42, 0  ;;  %v3533_v40 = vrot.slane %v3531_v47, 1  ;;  %6328 = vrot.lane.b32.xlu0 %v6283_v18, %s8512_s25  ;;  %v3685_v8 = vadd.f32 %v10994_v4, %v3684_v24  ;;  %v4633_v42 = vld [vmem:[#allocation2 + $0x44] sm:$0x1]  ;;  %v7584_v24 = vld [vmem:[%s8606_s11 + $0x38] sm:$0x1] }
 0x36b   : > { %v4270_v50 = vunpack.c.l.b16 %v4202_v63  ;;  %v5117_v18 = vrot.slane %v11004_v32, 1  ;;  %v11045_v2 = vsel %vm719_vm0, %v5356_v1, %v5360_v44  ;;  %v11059_v45 = vsel %vm3010_vm6, %v10649_v36, %v12746_v25  ;;  %v11075_v0 = vld [vmem:[#allocation2 + $0x24] sm:$0xe] }
 0x36c   : > { %v4184_v11 = vsel %vm10539_vm14, 0, %v4061_v16  ;;  %vm3752_vm15 = vcmp.ge.f32.partialorder %v3685_v8, 0.0  ;;  %v3788_v23 = vmul.f32 0.01, %v3685_v8  ;;  %v3534_v27 = vsel %vm719_vm0, %v3530_v6, %v3533_v40  ;;  %v12747_v6 = vld [vmem:[#allocation150_spill] sm:$0xff] }
 0x36d   : > { %v4268_v33 = vunpack.c.l.b16 %v4184_v11  ;;  %v4269_v20 = vunpack.c.h.b16 %v4184_v11  ;;  %v4324_v5 = vpack.c.b16 %v4270_v50, %v4270_v50  ;;  %7573 = vmatmul.msk.bf16.gmra.mxu0 %vm3579_vm11, %v3534_v27  ;;  %v11064_v47 = vsel %vm3010_vm6, %v10928_v43, %v12747_v6  ;;  %v4503_v40 = vld [vmem:[#allocation2 + $0x2c] sm:$0x1]  ;;  %v7638_v50 = vld [vmem:[%s8606_s11 + $0x3c] sm:$0xe]  ;;  %v7786_v11 = vld [vmem:[%s8606_s11 + $0x3c] sm:$0xf0] }
 0x36e   : > { %v3824_v57 = vsel %vm3752_vm15, %v3685_v8, %v3788_v23  ;;  %v5118_v53 = vsel %vm1098_vm1, %v11009_v61, %v5117_v18  ;;  %v6206_v49 = vunpack.c.l.b16 %v7584_v24  ;;  %v8180_v16 = vor.u32 %v8179_v34, %v8178_v29  ;;  %v7587_v23 = vld [vmem:[%s8606_s11 + $0x44] sm:$0x1] }
 0x36f   : > { %v4322_v17 = vpack.c.b16 %v4268_v33, %v4268_v33  ;;  %v4323_v9 = vpack.c.b16 %v4269_v20, %v4269_v20  ;;  %4434 = vst.msk [vmem:[#allocation2 + $0x50] sm:$0x1] %vm4415_vm12, %v4324_v5  ;;  %v3902_v26 = vpack.c.bf16 %v3824_v57, %v3824_v57  ;;  %6026 = vrot.lane.b32.xlu2 %v5865_v59, %s8515_s27  ;;  %v5801_v63 = vunpack.c.l.b16 %v4633_v42 }
 0x370   : > { %v4873_v8 = vsel %vm719_vm0, %v10838_v39, %v4872_v22  ;;  %v5600_v43 = vrot.slane %v11049_v13, 1  ;;  %v6251_v61 = vpack.c.b16 %v6206_v49, %v6206_v49  ;;  %v5599_v20 = vrot.slane %v8180_v16, 1 }
 0x371   : > { %4432 = vst.msk [vmem:[#allocation2 + $0x48] sm:$0xf] %vm4412_vm13, %v4322_v17  ;;  %v3974_v41 = vunpack.c.l.b16 %v3902_v26  ;;  %v3687_v32 = vpop.f32.mrf.mxu0  ;;  %5160 = vrot.lane.b32.xlu1 %v10999_v12, %s8514_s15  ;;  %v7785_v12 = vld [vmem:[%s8606_s11 + $0x30] sm:$0xf0]  ;;  %v11079_v5 = vpack.c.b16 %v5801_v63, %v5801_v63  ;;  %v4809_v60 = vunpack.c.l.b16 %v4503_v40  ;;  %v6209_v1 = vunpack.c.l.b16 %v7587_v23 }
 0x372   : > { %4433 = vst.msk [vmem:[#allocation2 + $0x4c] sm:$0xf] %vm4412_vm13, %v4323_v9  ;;  %5642 = vrot.lane.b32.xlu0 %v5598_v55, %s8512_s25  ;;  %v3688_v3 = vadd.f32 %v10994_v4, %v3687_v32  ;;  %v7635_v7 = vor.u32 %v7785_v12, %v7634_v28  ;;  %v7639_v17 = vor.u32 %v7786_v11, %v7638_v50  ;;  %v5869_v59 = vshll.u32 %v11038_v46, 16 }
 0x373   : > { %v4002_v35 = vpack.c.b16 %v3974_v41, %v3973_v56  ;;  %v6285_v56 = vrot.slane %v6251_v61, 1  ;;  %v4877_v41 = vshll.u32 %v11032_v30, 16  ;;  %v4825_v28 = vpack.c.b16 %v4809_v60, %v4809_v60  ;;  %v7814_v61 = vld [vmem:[%s12362_s3 + $0x78] sm:$0xff] }
 0x374   : > { %v3789_v58 = vmul.f32 0.01, %v3688_v3  ;;  %vm3753_vm4 = vcmp.ge.f32.partialorder %v3688_v3, 0.0  ;;  %v6284_v29 = vrot.slane %v7635_v7, 1  ;;  %v8331_v49 = vor.u32 %v11075_v0, %v11034_v21  ;;  %6924 = vmatpush.bf16.msra.mxu2 %v7814_v61 }
 0x375   : > { %v4063_v36 = vshrl.u32 %v4002_v35, 16  ;;  %v4066_v33 = vshll.u32 %v4002_v35, 16  ;;  %v6253_v35 = vpack.c.b16 %v6209_v1, %v6209_v1  ;;  %v6287_v40 = vrot.slane %v7639_v17, 1  ;;  %v4569_v1 = vld [vmem:[#allocation2 + $0x44] sm:$0x1] }
 0x376   : > { %v3825_v26 = vsel %vm3753_vm4, %v3688_v3, %v3789_v58  ;;  %v4504_v3 = vld [vmem:[#allocation2 + $0x38] sm:$0x1]  ;;  %v6286_v63 = vsel %vm1098_vm1, %v6284_v29, %v6285_v56  ;;  %v5867_v50 = vshrl.u32 %v11038_v46, 16  ;;  %v5874_v58 = vshll.u32 %v11079_v5, 16  ;;  %v8461_v17 = vld [vmem:[#allocation2 + $0x3c] sm:$0xe] }
 0x377   : > { %v4065_v27 = vrot.slane %v4063_v36, 7  ;;  %5162 = vrot.lane.b32.xlu2 %v5118_v53, %s8514_s15  ;;  %v3903_v25 = vpack.c.bf16 %v3825_v26, %v3825_v26  ;;  %v5871_v53 = vrot.slane %v5869_v59, 1  ;;  %v4810_v36 = vunpack.c.l.b16 %v4504_v3  ;;  %v8157_v56 = vld [vmem:[#allocation2 + $0x30] sm:$0xf0] }
 0x378   : > { %v4879_v7 = vrot.slane %v4877_v41, 1  ;;  %v6288_v0 = vrot.slane %v6253_v35, 1  ;;  %v4875_v23 = vshrl.u32 %v11032_v30, 16  ;;  %v5119_v26 = vrot.slane %v8331_v49, 1  ;;  %v8158_v41 = vld [vmem:[#allocation2 + $0x30] sm:$0xe] }
 0x379   : > { %v4068_v57 = vor.u32 %v4066_v33, %v4065_v27  ;;  %v4203_v55 = vsel %vm10539_vm14, %v4065_v27, 0  ;;  %v3689_v44 = vpop.f32.mrf.mxu0  ;;  %5754 = vrot.lane.b32.xlu1 %v10973_v51, %s8514_s15  ;;  %v3975_v11 = vunpack.c.l.b16 %v3903_v25  ;;  %v11103_v27 = vld [vmem:[#allocation2 + $0x3c] sm:$0xff]   ;;  %v11108_v60 = vpack.c.b16 %v4810_v36, %v4810_v36  ;;  %v4505_v36 = vld [vmem:[#allocation2 + $0x44] sm:$0x1] }
 0x37a   : > { %v4273_v9 = vunpack.c.l.b16 %v4203_v55  ;;  %5034 = vrot.lane.b32.xlu0 %v4873_v8, %s8512_s25  ;;  %v3690_v18 = vadd.f32 %v10994_v4, %v3689_v44  ;;  %v8460_v33 = vld [vmem:[#allocation2 + $0x3c] sm:$0xf0]  ;;  %v5872_v55 = vor.u32 %v5871_v53, %v5867_v50  ;;  %v4882_v44 = vshll.u32 %v4825_v28, 16 }
 0x37b   : > { %v4185_v22 = vsel %vm10539_vm14, 0, %v4068_v57  ;;  %v4880_v29 = vor.u32 %v4879_v7, %v4875_v23  ;;  %v5120_v3 = vrot.slane %v4825_v28, 1  ;;  %v4894_v25 = vshll.u32 %v11108_v60, 16  ;;  %v11128_v28 = vld [vmem:[#allocation2 + $0x3c] sm:$0xff]  }
 0x37c   : > { %v4271_v32 = vunpack.c.l.b16 %v4185_v22  ;;  %v4272_v34 = vunpack.c.h.b16 %v4185_v22  ;;  %v4327_v42 = vpack.c.b16 %v4273_v9, %v4273_v9  ;;  %vm3754_vm15 = vcmp.ge.f32.partialorder %v3690_v18, 0.0 }
 0x37d   : > { %v3790_v6 = vmul.f32 0.01, %v3690_v18  ;;  %v5601_v9 = vsel %vm1098_vm1, %v5599_v20, %v5600_v43  ;;  %v5876_v22 = vrot.slane %v5874_v58, 1  ;;  %v4884_v35 = vrot.slane %v4882_v44, 1 }
 0x37e   : > { %v4325_v12 = vpack.c.b16 %v4271_v32, %v4271_v32  ;;  %v4326_v24 = vpack.c.b16 %v4272_v34, %v4272_v34  ;;  %4437 = vst.msk [vmem:[#allocation2 + $0x5c] sm:$0x1] %vm4415_vm12, %v4327_v42  ;;  %v5370_v32 = vshll.u32 %v10874_v31, 16  ;;  %v6289_v34 = vsel %vm1098_vm1, %v6287_v40, %v6288_v0  ;;  %v11130_v40 = vld [vmem:[#allocation2 + $0x3c] sm:$0xf0] }
 0x37f   : > { %v3826_v16 = vsel %vm3754_vm15, %v3690_v18, %v3790_v6  ;;  %5756 = vrot.lane.b32.xlu2 %v11038_v46, %s8514_s15  ;;  %v7813_v18 = vld [vmem:[%s12362_s3 + $0x70] sm:$0xff]  ;;  %v5322_v42 = vunpack.c.l.b16 %v4569_v1  ;;  %v5877_v6 = vsel %vm719_vm0, %v5872_v55, %v5876_v22  ;;  %v5121_v53 = vsel %vm1098_vm1, %v5119_v26, %v5120_v3 }
 0x380   : > { %4435 = vst.msk [vmem:[#allocation2 + $0x54] sm:$0xf] %vm4412_vm13, %v4325_v12  ;;  %v3904_v8 = vpack.c.bf16 %v3826_v16, %v3826_v16  ;;  %v11124_v12 = vld [vmem:[#allocation2 + $0x48] sm:$0xff]   ;;  %6925 = vmatpush.bf16.msra.mxu2 %v7813_v18  ;;  %v8159_v49 = vor.u32 %v8158_v41, %v8157_v56  ;;  %v4896_v7 = vrot.slane %v4894_v25, 1  ;;  %v4811_v1 = vunpack.c.l.b16 %v4505_v36  ;;  %v11148_v41 = vld [vmem:[#allocation2 + $0x18] sm:$0xf0] }
 0x381   : > { %4436 = vst.msk [vmem:[#allocation2 + $0x58] sm:$0xf] %vm4412_vm13, %v4326_v24  ;;  %v3692_v21 = vpop.f32.mrf.mxu0  ;;  %6330 = vrot.lane.b32.xlu1 %v6286_v63, %s8512_s25  ;;  %v8462_v24 = vor.u32 %v8461_v17, %v8460_v33  ;;  %v4885_v63 = vsel %vm719_vm0, %v4880_v29, %v4884_v35  ;;  %v11135_v58 = vpack.c.b16 %v5322_v42, %v5322_v42  ;;  %v11157_v35 = vld [vmem:[#allocation2 + $0x3c] sm:$0xe] }
 0x382   : > { %v3976_v57 = vunpack.c.l.b16 %v3904_v8  ;;  %5274 = vrot.lane.b32.xlu0 %v10948_v52, %s8515_s27  ;;  %v3693_v46 = vadd.f32 %v10994_v4, %v3692_v21  ;;  %v11132_v8 = vrot.slane %v5370_v32, 1  ;;  %v5881_v21 = vshll.u32 %v11124_v12, 16  ;;  %v11150_v32 = vld [vmem:[#allocation2 + $0x18] sm:$0xe] }
 0x383   : > { %v5602_v44 = vrot.slane %v8462_v24, 1  ;;  %v11153_v25 = vpack.c.b16 %v4811_v1, %v4811_v1  ;;  %v4897_v36 = vsel %vm719_vm0, %v11017_v10, %v4896_v7  ;;  %v7806_v1 = vld [vmem:[%s12362_s3 + $0x38] sm:$0xff] }
 0x384   : > { %v4003_v59 = vpack.c.b16 %v3976_v57, %v3975_v11  ;;  %v3791_v20 = vmul.f32 0.01, %v3693_v46  ;;  %vm3755_vm4 = vcmp.ge.f32.partialorder %v3693_v46, 0.0  ;;  %v5879_v11 = vshrl.u32 %v11124_v12, 16  ;;  %6835 = vmatpush.bf16.msra.mxu1 %v7806_v1 }
 0x385   : > { %v5883_v56 = vrot.slane %v5881_v21, 1  ;;  %v7812_v21 = vld [vmem:[%s12362_s3 + $0x68] sm:$0xff] }
 0x386   : > { %v4070_v43 = vshrl.u32 %v4003_v59, 16  ;;  %v4073_v16 = vshll.u32 %v4003_v59, 16  ;;  %v3827_v33 = vsel %vm3755_vm4, %v3693_v46, %v3791_v20  ;;  %v5122_v20 = vrot.slane %v8159_v49, 1  ;;  %6926 = vmatpush.bf16.msra.mxu2 %v7812_v21 }
 0x387   : > { %6332 = vrot.lane.b32.xlu2 %v6289_v34, %s8512_s25  ;;  %v3905_v29 = vpack.c.bf16 %v3827_v33, %v3827_v33  ;;  %v11169_v49 = vor.u32 %v5883_v56, %v5879_v11  ;;  %v7590_v11 = vld [vmem:[%s8606_s11 + $0x50] sm:$0x1]  ;;  %v4906_v21 = vshll.u32 %v11153_v25, 16 }
 0x388   : > { %v4072_v31 = vrot.slane %v4070_v43, 7 }
 0x389   : > { %v3694_v50 = vpop.f32.mrf.mxu0  ;;  %5644 = vrot.lane.b32.xlu1 %v5601_v9, %s8512_s25  ;;  %v5639_v55 = vpop.permute.xlu2 %5638  ;;  %v5603_v9 = vrot.slane %v11135_v58, 1  ;;  %v3977_v24 = vunpack.c.l.b16 %v3905_v29  ;;  %v11197_v29 = vld [vmem:[#allocation2 + $0x54] sm:$0xff]  }
 0x38a   : > { %v4075_v0 = vor.u32 %v4073_v16, %v4072_v31  ;;  %v4204_v23 = vsel %vm10539_vm14, %v4072_v31, 0  ;;  %6028 = vrot.lane.b32.xlu0 %v5877_v6, %s8515_s27  ;;  %v3695_v61 = vadd.f32 %v10994_v4, %v3694_v50  ;;  %v5123_v6 = vrot.slane %v11108_v60, 1 }
 0x38b   : > { %v4276_v57 = vunpack.c.l.b16 %v4204_v23  ;;  %v5604_v43 = vsel %vm1098_vm1, %v5602_v44, %v5603_v9  ;;  %v8201_v50 = vor.u32 %v11150_v32, %v11148_v41  ;;  %v5126_v44 = vrot.slane %v11153_v25, 1  ;;  %v4635_v9 = vld [vmem:[#allocation2 + $0x5c] sm:$0x1] }
 0x38c   : > { %v4186_v17 = vsel %vm10539_vm14, 0, %v4075_v0  ;;  %vm3756_vm15 = vcmp.ge.f32.partialorder %v3695_v61, 0.0  ;;  %v3792_v26 = vmul.f32 0.01, %v3695_v61  ;;  %v4634_v0 = vld [vmem:[#allocation2 + $0x50] sm:$0x1] }
 0x38d   : > { %v4274_v18 = vunpack.c.l.b16 %v4186_v17  ;;  %v4275_v59 = vunpack.c.h.b16 %v4186_v17  ;;  %v4330_v22 = vpack.c.b16 %v4276_v57, %v4276_v57  ;;  %v5802_v33 = vunpack.c.l.b16 %v4634_v0  ;;  %v7787_v57 = vld [vmem:[%s8606_s11 + $0x48] sm:$0xf0] }
 0x38e   : > { %v3828_v46 = vsel %vm3756_vm15, %v3695_v61, %v3792_v26  ;;  %v7642_v61 = vld [vmem:[%s8606_s11 + $0x48] sm:$0xe]  ;;  %v11191_v17 = vsel %vm1098_vm1, %v5122_v20, %v5123_v6  ;;  %v4899_v26 = vshrl.u32 %v11128_v28, 16  ;;  %v4570_v20 = vld [vmem:[#allocation2 + $0x50] sm:$0x1]  ;;  %v8334_v6 = vor.u32 %v11157_v35, %v11130_v40 }
 0x38f   : > { %v4328_v34 = vpack.c.b16 %v4274_v18, %v4274_v18  ;;  %v4329_v42 = vpack.c.b16 %v4275_v59, %v4275_v59  ;;  %4440 = vst.msk [vmem:[#allocation2 + $0x68] sm:$0x1] %vm4415_vm12, %v4330_v22  ;;  %v3906_v3 = vpack.c.bf16 %v3828_v46, %v3828_v46  ;;  %5646 = vrot.lane.b32.xlu2 %v5604_v43, %s8512_s25  ;;  %v4901_v18 = vshll.u32 %v11128_v28, 16  ;;  %v11199_v46 = vld [vmem:[#allocation2 + $0x54] sm:$0xf0]  ;;  %v7805_v43 = vld [vmem:[%s12362_s3 + $0x30] sm:$0xff] }
 0x390   : > { %v6212_v22 = vunpack.c.l.b16 %v7590_v11  ;;  %v7643_v56 = vor.u32 %v7787_v57, %v7642_v61  ;;  %v5323_v11 = vunpack.c.l.b16 %v4570_v20  ;;  %6836 = vmatpush.bf16.msra.mxu1 %v7805_v43 }
 0x391   : > { %4438 = vst.msk [vmem:[#allocation2 + $0x60] sm:$0xf] %vm4412_vm13, %v4328_v34  ;;  %v3978_v31 = vunpack.c.l.b16 %v3906_v3  ;;  %v3697_v16 = vpop.f32.mrf.mxu0  ;;  %5036 = vrot.lane.b32.xlu1 %v4885_v63, %s8512_s25  ;;  %v11174_v23 = vpop.permute.xlu2 %5030  ;;  %v7811_v63 = vld [vmem:[%s12362_s3 + $0x60] sm:$0xff] }
 0x392   : > { %4439 = vst.msk [vmem:[#allocation2 + $0x64] sm:$0xf] %vm4412_vm13, %v4329_v42  ;;  %5164 = vrot.lane.b32.xlu0 %v5121_v53, %s8514_s15  ;;  %v3698_v60 = vadd.f32 %v10994_v4, %v3697_v16  ;;  %v11181_v53 = vsel %vm3302_vm10, %v11045_v2, %v5639_v55  ;;  %v11195_v55 = vpack.c.b16 %v5802_v33, %v5802_v33  ;;  %v4903_v16 = vrot.slane %v4901_v18, 1 }
 0x393   : > { %v4004_v7 = vpack.c.b16 %v3978_v31, %v3977_v24  ;;  %v6255_v3 = vpack.c.b16 %v6212_v22, %v6212_v22  ;;  %6927 = vmatpush.bf16.msra.mxu2 %v7811_v63  ;;  %v7810_v24 = vld [vmem:[%s12362_s3 + $0x58] sm:$0xff]  ;;  %v5803_v31 = vunpack.c.l.b16 %v4635_v9  ;;  %v6290_v63 = vrot.slane %v7643_v56, 1  ;;  %v7809_v9 = vld [vmem:[%s12362_s3 + $0x50] sm:$0xff]  ;;  %v8181_v56 = vld [vmem:[#allocation2 + $0x48] sm:$0xf0] }
 0x394   : > { %v3793_v2 = vmul.f32 0.01, %v3698_v60  ;;  %vm3757_vm4 = vcmp.ge.f32.partialorder %v3698_v60, 0.0  ;;  %v5886_v40 = vshll.u32 %v11195_v55, 16 }
 0x395   : > { %v4077_v59 = vshrl.u32 %v4004_v7, 16  ;;  %v4080_v42 = vshll.u32 %v4004_v7, 16  ;;  %v11224_v18 = vpack.c.b16 %v5803_v31, %v5803_v31 }
 0x396   : > { %v3829_v33 = vsel %vm3757_vm4, %v3698_v60, %v3793_v2  ;;  %v5888_v20 = vrot.slane %v5886_v40, 1  ;;  %vm6390_vm4 = vcmask 523264  }
 0x397   : > { %v4079_v34 = vrot.slane %v4077_v59, 7  ;;  %5038 = vrot.lane.b32.xlu2 %v4897_v36, %s8512_s25  ;;  %v6291_v36 = vrot.slane %v6255_v3, 1  ;;  %v5893_v59 = vshll.u32 %v11197_v29, 16  ;;  %6928 = vmatpush.bf16.msra.mxu2 %v7810_v24  ;;  %v11233_v3 = vrot.slane %v8201_v50, 1 }
 0x398   : > { %v6103_v24 = vrot.slane %v10822_v38, 1  ;;  %v5898_v32 = vshll.u32 %v11224_v18, 16  ;;  %v11242_v50 = vpack.c.b16 %v5323_v11, %v5323_v11  ;;  %v5889_v38 = vsel %vm719_vm0, %v11169_v49, %v5888_v20  ;;  %v7808_v11 = vld [vmem:[%s12362_s3 + $0x48] sm:$0xff] }
 0x399   : > { %v4082_v0 = vor.u32 %v4080_v42, %v4079_v34  ;;  %v4205_v7 = vsel %vm10539_vm14, %v4079_v34, 0  ;;  %v3699_v61 = vpop.f32.mrf.mxu0  ;;  %5276 = vrot.lane.b32.xlu1 %v10973_v51, %s8515_s27  ;;  %v11222_v60 = vpop.permute.xlu2 %5158  ;;  %v8182_v34 = vld [vmem:[#allocation2 + $0x48] sm:$0xe]  ;;  %v5895_v41 = vrot.slane %v5893_v59, 1  ;;  %v11263_v59 = vsel %vm719_vm0, %v10838_v39, %v11132_v8 }
 0x39a   : > { %v4279_v35 = vunpack.c.l.b16 %v4205_v7  ;;  %5758 = vrot.lane.b32.xlu0 %v11124_v12, %s8514_s15  ;;  %v3700_v57 = vadd.f32 %v10994_v4, %v3699_v61  ;;  %v3907_v7 = vpack.c.bf16 %v3829_v33, %v3829_v33  ;;  %v11237_v61 = vld [vmem:[#allocation2 + $0x24] sm:$0xe]  ;;  %v8183_v40 = vor.u32 %v8182_v34, %v8181_v56 }
 0x39b   : > { %v4187_v1 = vsel %vm10539_vm14, 0, %v4082_v0  ;;  %v5125_v0 = vrot.slane %v8334_v6, 1  ;;  %6929 = vmatpush.bf16.msra.mxu2 %v7809_v9  ;;  %v5891_v9 = vshrl.u32 %v11197_v29, 16  ;;  %v11269_v56 = vld [vmem:[#allocation2 + $0x60] sm:$0xff]   ;;  %v4908_v20 = vrot.slane %v4906_v21, 1 }
 0x39c   : > { %v4277_v2 = vunpack.c.l.b16 %v4187_v1  ;;  %v4278_v51 = vunpack.c.h.b16 %v4187_v1  ;;  %v4333_v22 = vpack.c.b16 %v4279_v35, %v4279_v35  ;;  %vm3758_vm15 = vcmp.ge.f32.partialorder %v3700_v57, 0.0  ;;  %v8308_v34 = vld [vmem:[#allocation2] sm:$0xff]  }
 0x39d   : > { %v3794_v42 = vmul.f32 0.01, %v3700_v57  ;;  %v6292_v1 = vsel %vm1098_vm1, %v6290_v63, %v6291_v36  ;;  %v7804_v63 = vld [vmem:[%s12362_s3 + $0x28] sm:$0xff]  ;;  %v4904_v36 = vor.u32 %v4903_v16, %v4899_v26  ;;  %v6359_v26 = vsel %vm3302_vm10, %v8308_v34, %v11174_v23 }
 0x39e   : > { %v4331_v43 = vpack.c.b16 %v4277_v2, %v4277_v2  ;;  %v4332_v31 = vpack.c.b16 %v4278_v51, %v4278_v51  ;;  %4443 = vst.msk [vmem:[#allocation2 + $0x74] sm:$0x1] %vm4415_vm12, %v4333_v22  ;;  %v3979_v2 = vunpack.c.l.b16 %v3907_v7  ;;  %6837 = vmatpush.bf16.msra.mxu1 %v7804_v63  ;;  %v11276_v8 = vsel %vm1098_vm1, %v5125_v0, %v5126_v44  ;;  %v7807_v44 = vld [vmem:[%s12362_s3 + $0x40] sm:$0xff] }
 0x39f   : > { %v3830_v35 = vsel %vm3758_vm15, %v3700_v57, %v3794_v42  ;;  %5278 = vrot.lane.b32.xlu2 %v11103_v27, %s8515_s27  ;;  %v6684_v57 = vld [vmem:[%s12362_s3 + $0x90] sm:$0x3]  ;;  %v7803_v42 = vld [vmem:[%s12362_s3 + $0x20] sm:$0xff]  ;;  %v5896_v23 = vor.u32 %v5895_v41, %v5891_v9  ;;  %v5606_v7 = vrot.slane %v11242_v50, 1  ;;  %6930 = vmatpush.bf16.msra.mxu2 %v7808_v11  ;;  %v11291_v21 = vsel %vm6390_vm4, %v6359_v26, %v11222_v60  ;;  %v7788_v41 = vld [vmem:[%s8606_s11 + $0x54] sm:$0xf0] }
 0x3a0   : > { %4441 = vst.msk [vmem:[#allocation2 + $0x6c] sm:$0xf] %vm4412_vm13, %v4331_v43  ;;  %v3908_v6 = vpack.c.bf16 %v3830_v35, %v3830_v35  ;;  %v6762_v39 = vunpack.c.l.b16 %v6684_v57  ;;  %v5900_v35 = vrot.slane %v5898_v32, 1  ;;  %v11297_v63 = vsel %vm719_vm0, %v4904_v36, %v4908_v20  ;;  %v7802_v32 = vld [vmem:[%s12362_s3 + $0x18] sm:$0xff]  ;;  %v7816_v36 = vld [vmem:[%s12362_s3 + $0x88] sm:$0xff] }
 0x3a1   : > { %4442 = vst.msk [vmem:[#allocation2 + $0x70] sm:$0xf] %vm4412_vm13, %v4332_v31  ;;  %v3702_v33 = vpop.f32.mrf.mxu0  ;;  %6030 = vrot.lane.b32.xlu1 %v5889_v38, %s8515_s27  ;;  %v1994_v16 = vpop.permute.xlu2 %1993  ;;  %v5605_v31 = vrot.slane %v8183_v40, 1  ;;  %v5905_v38 = vshll.u32 %v11269_v56, 16  ;;  %v7646_v40 = vld [vmem:[%s8606_s11 + $0x54] sm:$0xe]  ;;  %v11304_v11 = vsel %vm1098_vm1, %v11233_v3, %v6103_v24  ;;  %v8337_v60 = vor.u32 %v11237_v61, %v10890_v14 }
 0x3a2   : > { %v3980_v51 = vunpack.c.l.b16 %v3908_v6  ;;  %6334 = vrot.lane.b32.xlu0 %v6292_v1, %s8512_s25  ;;  %v3703_v22 = vadd.f32 %v10994_v4, %v3702_v33  ;;  %v6781_v1 = vpack.c.b16 %v6762_v39, %v6762_v39  ;;  %v7593_v6 = vld [vmem:[%s8606_s11 + $0x5c] sm:$0x1]  ;;  %6838 = vmatpush.bf16.msra.mxu1 %v7803_v42  ;;  %v5901_v9 = vsel %vm719_vm0, %v5896_v23, %v5900_v35 }
 0x3a3   : > { %v6215_v33 = vunpack.c.l.b16 %v7593_v6  ;;  %v5607_v34 = vsel %vm1098_vm1, %v5605_v31, %v5606_v7  ;;  %6931 = vmatpush.bf16.msra.mxu2 %v7807_v44  ;;  %v7647_v24 = vor.u32 %v7788_v41, %v7646_v40  ;;  %v5903_v14 = vshrl.u32 %v11269_v56, 16  ;;  %v7801_v7 = vld [vmem:[%s12362_s3 + $0x10] sm:$0xff] }
 0x3a4   : > { %v4005_v43 = vpack.c.b16 %v3980_v51, %v3979_v2  ;;  %v3795_v0 = vmul.f32 0.01, %v3703_v22  ;;  %vm3759_vm15 = vcmp.ge.f32.partialorder %v3703_v22, 0.0  ;;  %v6833_v57 = vsel %vm3634_vm2, %v6781_v1, 0 }
 0x3a5   : > { %7018 = vmatpush.bf16.msra.mxu3 %v6833_v57  ;;  %v5907_v61 = vrot.slane %v5905_v38, 1  ;;  %vm6423_vm2 = vcmask 785408   ;;  %v11324_v23 = vsel %vm3083_vm8, %v11064_v47, %v1994_v16  ;;  %v6105_v44 = vrot.slane %v8337_v60, 1  ;;  %v7815_v47 = vld [vmem:[%s12362_s3 + $0x80] sm:$0xff] }
 0x3a6   : > { %v4084_v25 = vshrl.u32 %v4005_v43, 16  ;;  %v4087_v51 = vshll.u32 %v4005_v43, 16  ;;  %v3831_v26 = vsel %vm3759_vm15, %v3703_v22, %v3795_v0  ;;  %v6257_v22 = vpack.c.b16 %v6215_v33, %v6215_v33  ;;  %6839 = vmatpush.bf16.msra.mxu1 %v7802_v32 }
 0x3a7   : > { %6032 = vrot.lane.b32.xlu2 %v5901_v9, %s8515_s27  ;;  %v3909_v35 = vpack.c.bf16 %v3831_v26, %v3831_v26  ;;  %v11337_v40 = vor.u32 %v5907_v61, %v5903_v14  ;;  %v6293_v33 = vrot.slane %v7647_v24, 1  ;;  %v6106_v32 = vrot.slane %v10937_v54, 1  ;;  %v11346_v24 = vld [vmem:[#allocation2 + $0x30] sm:$0xf0]  ;;  %v11348_v14 = vld [vmem:[#allocation2 + $0x30] sm:$0xe] }
 0x3a8   : > { %v4086_v2 = vrot.slane %v4084_v25, 7  ;;  %v6294_v57 = vrot.slane %v6257_v22, 1  ;;  %v5375_v26 = vshrl.u32 %v10948_v52, 16 }
 0x3a9   : > { %v3704_v3 = vpop.f32.mrf.mxu0  ;;  %5166 = vrot.lane.b32.xlu1 %v11191_v17, %s8514_s15  ;;  %v11326_v31 = vpop.permute.xlu2 %2765  ;;  %v5377_v17 = vshll.u32 %v10948_v52, 16  ;;  %7019 = vmatpush.bf16.msra.mxu3 %v7816_v36  ;;  %v11342_v36 = vsel %vm1098_vm1, %v6105_v44, %v6106_v32  ;;  %v4571_v44 = vld [vmem:[#allocation2 + $0x5c] sm:$0x1] }
 0x3aa   : > { %v4089_v39 = vor.u32 %v4087_v51, %v4086_v2  ;;  %v4206_v42 = vsel %vm10539_vm14, %v4086_v2, 0  ;;  %5648 = vrot.lane.b32.xlu0 %v5607_v34, %s8512_s25  ;;  %v3705_v20 = vadd.f32 %v10994_v4, %v3704_v3  ;;  %6840 = vmatpush.bf16.msra.mxu1 %v7801_v7  ;;  %v3981_v34 = vunpack.c.l.b16 %v3909_v35  ;;  %v8463_v7 = vld [vmem:[#allocation2 + $0x54] sm:$0xf0]  ;;  %v7789_v35 = vld [vmem:[%s8606_s11 + $0x60] sm:$0xf0] }
 0x3ab   : > { %v4282_v43 = vunpack.c.l.b16 %v4206_v42  ;;  %v5379_v9 = vrot.slane %v5377_v17, 1  ;;  %v5406_v42 = vshll.u32 %v11135_v58, 16  ;;  %v6295_v22 = vsel %vm1098_vm1, %v6293_v33, %v6294_v57  ;;  %v7800_v58 = vld [vmem:[%s12362_s3 + $0x8] sm:$0xff] }
 0x3ac   : > { %v4188_v0 = vsel %vm10539_vm14, 0, %v4089_v39  ;;  %vm3760_vm15 = vcmp.ge.f32.partialorder %v3705_v20, 0.0  ;;  %v3796_v1 = vmul.f32 0.01, %v3705_v20  ;;  %v5751_v6 = vpop.permute.xlu0 %5750  ;;  %v7790_v39 = vld [vmem:[%s8606_s11 + $0x6c] sm:$0xf0] }
 0x3ad   : > { %v4280_v16 = vunpack.c.l.b16 %v4188_v0  ;;  %v4281_v38 = vunpack.c.h.b16 %v4188_v0  ;;  %v4336_v25 = vpack.c.b16 %v4282_v43, %v4282_v43  ;;  %7020 = vmatpush.bf16.msra.mxu3 %v7815_v47  ;;  %v11368_v43 = vld [vmem:[#allocation2 + $0x54] sm:$0xff]  }
 0x3ae   : > { %v3832_v41 = vsel %vm3760_vm15, %v3705_v20, %v3796_v1  ;;  %v6521_v20 = vsel %vm6390_vm4, %v11181_v53, %v5751_v6  ;;  %v8464_v0 = vld [vmem:[#allocation2 + $0x54] sm:$0xe]  ;;  %v11372_v1 = vor.u32 %v5379_v9, %v5375_v26  ;;  %6841 = vmatpush.bf16.msra.mxu1 %v7800_v58 }
 0x3af   : > { %v4334_v60 = vpack.c.b16 %v4280_v16, %v4280_v16  ;;  %v4335_v2 = vpack.c.b16 %v4281_v38, %v4281_v38  ;;  %4446 = vst.msk [vmem:[#allocation2 + $0x80] sm:$0x1] %vm4415_vm12, %v4336_v25  ;;  %v3910_v51 = vpack.c.bf16 %v3832_v41, %v3832_v41  ;;  %5168 = vrot.lane.b32.xlu2 %v11276_v8, %s8514_s15  ;;  %v5324_v38 = vunpack.c.l.b16 %v4571_v44  ;;  %v7596_v25 = vld [vmem:[%s8606_s11 + $0x68] sm:$0x1]  ;;  %v7799_v41 = vld [vmem:[%s12362_s3] sm:$0xff] }
 0x3b0   : > { %v6218_v26 = vunpack.c.l.b16 %v7596_v25 }
 0x3b1   : > { %4444 = vst.msk [vmem:[#allocation2 + $0x78] sm:$0xf] %vm4412_vm13, %v4334_v60  ;;  %v3982_v54 = vunpack.c.l.b16 %v3910_v51  ;;  %v3707_v61 = vpop.f32.mrf.mxu0  ;;  %5760 = vrot.lane.b32.xlu1 %v11197_v29, %s8514_s15  ;;  %v5641_v17 = vpop.permute.xlu2 %5640  ;;  %v7650_v29 = vld [vmem:[%s8606_s11 + $0x60] sm:$0xe]  ;;  %v4636_v60 = vld [vmem:[#allocation2 + $0x68] sm:$0x1] }
 0x3b2   : > { %4445 = vst.msk [vmem:[#allocation2 + $0x7c] sm:$0xf] %vm4412_vm13, %v4335_v2  ;;  %5040 = vrot.lane.b32.xlu0 %v11297_v63, %s8512_s25  ;;  %v3708_v8 = vadd.f32 %v10994_v4, %v3707_v61  ;;  %v4506_v2 = vld [vmem:[#allocation2 + $0x50] sm:$0x1]  ;;  %v7651_v44 = vor.u32 %v7789_v35, %v7650_v29  ;;  %v5804_v52 = vunpack.c.l.b16 %v4636_v60  ;;  %6842 = vmatpush.bf16.msra.mxu1 %v7799_v41  ;;  %v8339_v51 = vld [vmem:[#allocation2 + $0x54] sm:$0xe] }
 0x3b3   : > { %v4006_v53 = vpack.c.b16 %v3982_v54, %v3981_v34  ;;  %v6023_v47 = vpop.permute.xlu1 %6022  ;;  %v8465_v34 = vor.u32 %v8464_v0, %v8463_v7  ;;  %v11385_v54 = vrot.slane %v5406_v42, 1 }
 0x3b4   : > { %vm3761_vm15 = vcmp.ge.f32.partialorder %v3708_v8, 0.0  ;;  %v3797_v6 = vmul.f32 0.01, %v3708_v8  ;;  %v6327_v16 = vpop.permute.xlu0 %6326  ;;  %v6553_v57 = vsel %vm6423_vm2, %v6521_v20, %v6023_v47  ;;  %v11389_v20 = vsel %vm3302_vm10, %v11263_v59, %v5641_v17 }
 0x3b5   : > { %v4091_v33 = vshrl.u32 %v4006_v53, 16  ;;  %v6602_v32 = vsel %vm3302_vm10, %v11304_v11, %v6327_v16  ;;  %6932 = vmatmul.bf16.vlgmr.msra.gmra.mxu2 %v6553_v57  ;;  %v4094_v58 = vshll.u32 %v4006_v53, 16  ;;  %v11391_v11 = vpack.c.b16 %v5324_v38, %v5324_v38  ;;  %v8184_v57 = vld [vmem:[#allocation2 + $0x60] sm:$0xf0] }
 0x3b6   : > { %v3833_v9 = vsel %vm3761_vm15, %v3708_v8, %v3797_v6  ;;  %7760 = vmatmul.msk.bf16.vlgmr.msra.gmra.mxu3 %vm3579_vm11, %v6602_v32  ;;  %v6259_v47 = vpack.c.b16 %v6218_v26, %v6218_v26  ;;  %v4812_v8 = vunpack.c.l.b16 %v4506_v2  ;;  %v4572_v6 = vld [vmem:[#allocation2 + $0x68] sm:$0x1]  ;;  %v5608_v0 = vrot.slane %v8465_v34, 1  ;;  %v8160_v34 = vld [vmem:[#allocation2 + $0x48] sm:$0xf0] }
 0x3b7   : > { %v4093_v61 = vrot.slane %v4091_v33, 7  ;;  %v3911_v42 = vpack.c.bf16 %v3833_v9, %v3833_v9  ;;  %5762 = vrot.lane.b32.xlu2 %v11269_v56, %s8514_s15  ;;  %v6296_v17 = vrot.slane %v7651_v44, 1  ;;  %v11405_v41 = vpack.c.b16 %v5804_v52, %v5804_v52  ;;  %v8161_v44 = vld [vmem:[#allocation2 + $0x48] sm:$0xe] }
 0x3b8   : > { %v6297_v35 = vrot.slane %v6259_v47, 1  ;;  %v11407_v33 = vpack.c.b16 %v4812_v8, %v4812_v8  ;;  %v5325_v32 = vunpack.c.l.b16 %v4572_v6  ;;  %v5609_v52 = vrot.slane %v11391_v11, 1 }
 0x3b9   : > { %v4096_v16 = vor.u32 %v4094_v58, %v4093_v61  ;;  %v4207_v7 = vsel %vm10539_vm14, %v4093_v61, 0  ;;  %v3709_v53 = vpop.f32.mrf.mxu0  ;;  %6336 = vrot.lane.b32.xlu1 %v6295_v22, %s8512_s25  ;;  %v11403_v25 = vpop.permute.xlu2 %5032  ;;  %v3983_v26 = vunpack.c.l.b16 %v3911_v42 }
 0x3ba   : > { %v4285_v29 = vunpack.c.l.b16 %v4207_v7  ;;  %5280 = vrot.lane.b32.xlu0 %v11124_v12, %s8515_s27  ;;  %v3710_v59 = vadd.f32 %v10994_v4, %v3709_v53  ;;  %v8185_v4 = vld [vmem:[#allocation2 + $0x60] sm:$0xe]  ;;  %v6298_v6 = vsel %vm1098_vm1, %v6296_v17, %v6297_v35  ;;  %v4918_v53 = vshll.u32 %v11407_v33, 16 }
 0x3bb   : > { %v4189_v38 = vsel %vm10539_vm14, 0, %v4096_v16  ;;  %v1992_v12 = vpop.permute.xlu1 %1991  ;;  %v5910_v16 = vshll.u32 %v11405_v41, 16  ;;  %v8186_v42 = vor.u32 %v8185_v4, %v8184_v57  ;;  %v11426_v57 = vld [vmem:[#allocation2 + $0x54] sm:$0xf0] }
 0x3bc   : > { %v4283_v60 = vunpack.c.l.b16 %v4189_v38  ;;  %v4284_v22 = vunpack.c.h.b16 %v4189_v38  ;;  %v4339_v2 = vpack.c.b16 %v4285_v29, %v4285_v29  ;;  %vm3762_vm15 = vcmp.ge.f32.partialorder %v3710_v59, 0.0  ;;  %v2208_v9 = vpop.permute.xlu0 %2207 }
 0x3bd   : > { %v3798_v61 = vmul.f32 0.01, %v3710_v59  ;;  %v3149_v58 = vsel %vm3083_vm8, %v11059_v45, %v1992_v12  ;;  %v11416_v29 = vpack.c.b16 %v5325_v32, %v5325_v32  ;;  %v5610_v38 = vsel %vm1098_vm1, %v5608_v0, %v5609_v52 }
 0x3be   : > { %v4337_v47 = vpack.c.b16 %v4283_v60, %v4283_v60  ;;  %v4338_v8 = vpack.c.b16 %v4284_v22, %v4284_v22  ;;  %4449 = vst.msk [vmem:[#allocation2 + $0x8c] sm:$0x1] %vm4415_vm12, %v4339_v2  ;;  %v5912_v12 = vrot.slane %v5910_v16, 1  ;;  %v8162_v60 = vor.u32 %v8161_v44, %v8160_v34  ;;  %v11424_v2 = vld [vmem:[#allocation2 + $0x54] sm:$0xff]  }
 0x3bf   : > { %v3834_v7 = vsel %vm3762_vm15, %v3710_v59, %v3798_v61  ;;  %12748 = vst [vmem:[#allocation6_spill] sm:$0xff] %v11416_v29  ;;  %v3222_v22 = vsel %vm3156_vm7, %v3149_v58, %v2208_v9  ;;  %6338 = vrot.lane.b32.xlu2 %v6298_v6, %s8512_s25  ;;  %v4920_v59 = vrot.slane %v4918_v53, 1  ;;  %v5611_v35 = vrot.slane %v8186_v42, 1  ;;  %v11434_v9 = vld [vmem:[%s12361_s2] ss:$0 sm:$0xff] }
 0x3c0   : > { %4447 = vst.msk [vmem:[#allocation2 + $0x84] sm:$0xf] %vm4412_vm13, %v4337_v47  ;;  %v3912_v45 = vpack.c.bf16 %v3834_v7, %v3834_v7  ;;  %v5612_v32 = vrot.slane %v11416_v29, 1  ;;  %v5913_v0 = vsel %vm719_vm0, %v11337_v40, %v5912_v12  ;;  %v4507_v61 = vld [vmem:[#allocation2 + $0x5c] sm:$0x1]  ;;  %v5128_v44 = vrot.slane %v8162_v60, 1 }
 0x3c1   : > { %4448 = vst.msk [vmem:[#allocation2 + $0x88] sm:$0xf] %vm4412_vm13, %v4338_v8  ;;  %v3712_v17 = vpop.f32.mrf.mxu0  ;;  %5650 = vrot.lane.b32.xlu1 %v5610_v38, %s8512_s25  ;;  %v11438_v58 = vpop.permute.xlu2 %5272  ;;  %v4921_v52 = vsel %vm719_vm0, %v11169_v49, %v4920_v59  ;;  %v5129_v47 = vrot.slane %v11407_v33, 1  ;;  %v4813_v38 = vunpack.c.l.b16 %v4507_v61  ;;  %v11447_v12 = vld [vmem:[#allocation2 + $0x6c] sm:$0xff]  }
 0x3c2   : > { %12749 = vst [vmem:[#allocation9_spill] sm:$0xff] %v11424_v2  ;;  %v3984_v4 = vunpack.c.l.b16 %v3912_v45  ;;  %v3713_v34 = vadd.f32 %v11434_v9, %v3712_v17  ;;  %6034 = vrot.lane.b32.xlu0 %v5913_v0, %s8515_s27  ;;  %v5613_v53 = vsel %vm1098_vm1, %v5611_v35, %v5612_v32  ;;  %v11449_v17 = vld [vmem:[#allocation2 + $0x6c] sm:$0xf0] }
 0x3c3   : > { %v5271_v16 = vpop.permute.xlu1 %5270  ;;  %12750 = vst [vmem:[#allocation56_spill] sm:$0xff] %v11449_v17  ;;  %v11453_v32 = vpack.c.b16 %v4813_v38, %v4813_v38  ;;  %v4637_v38 = vld [vmem:[#allocation2 + $0x74] sm:$0x1] }
 0x3c4   : > { %v4007_v8 = vpack.c.b16 %v3984_v4, %v3983_v26  ;;  %vm3763_vm15 = vcmp.ge.f32.partialorder %v3713_v34, 0.0  ;;  %v3799_v6 = vmul.f32 0.01, %v3713_v34  ;;  %v2586_v7 = vpop.permute.xlu0 %2585  ;;  %v6425_v45 = vsel %vm6423_vm2, %v11291_v21, %v5271_v16 }
 0x3c5   : > { %v3295_v42 = vsel %vm12413_vm9, %v3222_v22, %v2586_v7  ;;  %6843 = vmatmul.bf16.vlgmr.msra.gmra.mxu1 %v6425_v45  ;;  %v5130_v21 = vsel %vm1098_vm1, %v5128_v44, %v5129_v47  ;;  %v4925_v16 = vshll.u32 %v11424_v2, 16  ;;  %v4923_v47 = vshrl.u32 %v11424_v2, 16 }
 0x3c6   : > { %v4098_v60 = vshrl.u32 %v4007_v8, 16  ;;  %v3835_v59 = vsel %vm3763_vm15, %v3713_v34, %v3799_v6  ;;  %v3368_v33 = vsel %vm3302_vm10, %v3295_v42, %v11326_v31  ;;  %v4101_v26 = vshll.u32 %v4007_v8, 16 }
 0x3c7   : > { %v3913_v4 = vpack.c.bf16 %v3835_v59, %v3835_v59  ;;  %v3537_v0 = vshll.u32 %v3368_v33, 16  ;;  %v3535_v22 = vshrl.u32 %v3368_v33, 16  ;;  %5652 = vrot.lane.b32.xlu2 %v5613_v53, %s8512_s25  ;;  %v4930_v6 = vshll.u32 %v11453_v32, 16 }
 0x3c8   : > { %v4100_v35 = vrot.slane %v4098_v60, 7  ;;  %v4927_v53 = vrot.slane %v4925_v16, 1  ;;  %v5805_v16 = vunpack.c.l.b16 %v4637_v38  ;;  %v12751_v38 = vshll.u32 %v11103_v27, 16 }
 0x3c9   : > { %v3539_v7 = vrot.slane %v3537_v0, 1  ;;  %v3714_v61 = vpop.f32.mrf.mxu0  ;;  %5042 = vrot.lane.b32.xlu1 %v4921_v52, %s8512_s25  ;;  %v3985_v45 = vunpack.c.l.b16 %v3913_v4  ;;  %v11464_v44 = vpop.permute.xlu2 %6026  ;;  %v4932_v63 = vrot.slane %v4930_v6, 1 }
 0x3ca   : > { %v4103_v34 = vor.u32 %v4101_v26, %v4100_v35  ;;  %v4208_v31 = vsel %vm10539_vm14, %v4100_v35, 0  ;;  %v3715_v8 = vadd.f32 %v11434_v9, %v3714_v61  ;;  %5170 = vrot.lane.b32.xlu0 %v5130_v21, %s8514_s15  ;;  %v7654_v21 = vld [vmem:[%s8606_s11 + $0x6c] sm:$0xe]  ;;  %v7599_v61 = vld [vmem:[%s8606_s11 + $0x74] sm:$0x1]  ;;  %v4928_v3 = vor.u32 %v4927_v53, %v4923_v47 }
 0x3cb   : > { %v4288_v42 = vunpack.c.l.b16 %v4208_v31  ;;  %v2210_v59 = vpop.permute.xlu1 %2209  ;;  %v11469_v35 = vor.u32 %v3539_v7, %v3535_v22  ;;  %v11478_v22 = vpack.c.b16 %v5805_v16, %v5805_v16  ;;  %v5917_v7 = vshll.u32 %v11447_v12, 16 }
 0x3cc   : > { %v4190_v52 = vsel %vm10539_vm14, 0, %v4103_v34  ;;  %vm3764_vm15 = vcmp.ge.f32.partialorder %v3715_v8, 0.0  ;;  %v3800_v60 = vmul.f32 0.01, %v3715_v8  ;;  %v2588_v33 = vpop.permute.xlu0 %2587  ;;  %v3224_v29 = vsel %vm3156_vm7, %v11324_v23, %v2210_v59 }
 0x3cd   : > { %v4286_v26 = vunpack.c.l.b16 %v4190_v52  ;;  %v4287_v0 = vunpack.c.h.b16 %v4190_v52  ;;  %v4342_v4 = vpack.c.b16 %v4288_v42, %v4288_v42  ;;  %v4933_v42 = vsel %vm719_vm0, %v4928_v3, %v4932_v63 }
 0x3ce   : > { %v3836_v31 = vsel %vm3764_vm15, %v3715_v8, %v3800_v60  ;;  %v6221_v8 = vunpack.c.l.b16 %v7599_v61  ;;  %v5915_v47 = vshrl.u32 %v11447_v12, 16  ;;  %v7655_v53 = vor.u32 %v7790_v39, %v7654_v21 }
 0x3cf   : > { %v4340_v2 = vpack.c.b16 %v4286_v26, %v4286_v26  ;;  %v4341_v17 = vpack.c.b16 %v4287_v0, %v4287_v0  ;;  %4452 = vst.msk [vmem:[#allocation2 + $0x98] sm:$0x1] %vm4415_vm12, %v4342_v4  ;;  %v3914_v34 = vpack.c.bf16 %v3836_v31, %v3836_v31  ;;  %5044 = vrot.lane.b32.xlu2 %v4933_v42, %s8512_s25  ;;  %v5919_v23 = vrot.slane %v5917_v7, 1 }
 0x3d0   : > { %v5922_v3 = vshll.u32 %v11478_v22, 16  ;;  %v6261_v63 = vpack.c.b16 %v6221_v8, %v6221_v8  ;;  %v5403_v52 = vrot.slane %v12751_v38, 1  ;;  %v6299_v39 = vrot.slane %v7655_v53, 1 }
 0x3d1   : > { %4450 = vst.msk [vmem:[#allocation2 + $0x90] sm:$0xf] %vm4412_vm13, %v4340_v2  ;;  %v3986_v6 = vunpack.c.l.b16 %v3914_v34  ;;  %5282 = vrot.lane.b32.xlu1 %v11368_v43, %s8515_s27  ;;  %v3297_v2 = vsel %vm12413_vm9, %v3224_v29, %v2588_v33  ;;  %v11493_v59 = vpop.permute.xlu2 %5162  ;;  %v5920_v4 = vor.u32 %v5919_v23, %v5915_v47  ;;  %v5132_v31 = vrot.slane %v11453_v32, 1  ;;  %v11498_v33 = vld [vmem:[#allocation2 + $0x78] sm:$0xff]  }
 0x3d2   : > { %4451 = vst.msk [vmem:[#allocation2 + $0x94] sm:$0xf] %vm4412_vm13, %v4341_v17  ;;  %5764 = vrot.lane.b32.xlu0 %v11447_v12, %s8514_s15  ;;  %v8340_v17 = vor.u32 %v8339_v51, %v11426_v57  ;;  %v5924_v21 = vrot.slane %v5922_v3, 1  ;;  %v6300_v61 = vrot.slane %v6261_v63, 1  ;;  %v4638_v12 = vld [vmem:[#allocation2 + $0x80] sm:$0x1] }
 0x3d3   : > { %v4008_v60 = vpack.c.b16 %v3986_v6, %v3985_v45  ;;  %v2768_v26 = vpop.permute.xlu1 %2767  ;;  %v12752_v42 = vshrl.u32 %v11103_v27, 16  ;;  %v5806_v23 = vunpack.c.l.b16 %v4638_v12  ;;  %v5929_v38 = vshll.u32 %v11498_v33, 16 }
 0x3d4   : > { %v5753_v0 = vpop.permute.xlu0 %5752  ;;  %v3370_v45 = vsel %vm3302_vm10, %v3297_v2, %v2768_v26  ;;  %v3717_v29 = vpop.f32.mrf.mxu0  ;;  %v5925_v6 = vsel %vm719_vm0, %v5920_v4, %v5924_v21  ;;  %v6301_v47 = vsel %vm1098_vm1, %v6299_v39, %v6300_v61  ;;  %v5131_v53 = vrot.slane %v8340_v17, 1  ;;  %v8466_v4 = vld [vmem:[#allocation2 + $0x6c] sm:$0xf0] }
 0x3d5   : > { %v4105_v16 = vshrl.u32 %v4008_v60, 16  ;;  %v4108_v34 = vshll.u32 %v4008_v60, 16  ;;  %v5404_v7 = vor.u32 %v5403_v52, %v12752_v42  ;;  %v3541_v8 = vshll.u32 %v3370_v45, 16 }
 0x3d6   : > { %v6523_v51 = vsel %vm6390_vm4, %v11389_v20, %v5753_v0  ;;  %v3718_v57 = vadd.f32 %v11434_v9, %v3717_v29  ;;  %v11512_v20 = vpack.c.b16 %v5806_v23, %v5806_v23  ;;  %v5927_v60 = vshrl.u32 %v11498_v33, 16  ;;  %v11520_v0 = vld [vmem:[#allocation2 + $0x6c] sm:$0xff]  }
 0x3d7   : > { %v4107_v32 = vrot.slane %v4105_v16, 7  ;;  %v3543_v3 = vrot.slane %v3541_v8, 1  ;;  %5284 = vrot.lane.b32.xlu2 %v11269_v56, %s8515_s27  ;;  %v5931_v26 = vrot.slane %v5929_v38, 1  ;;  %v5133_v16 = vsel %vm1098_vm1, %v5131_v53, %v5132_v31  ;;  %v8163_v53 = vld [vmem:[#allocation2 + $0x60] sm:$0xf0] }
 0x3d8   : > { %vm3765_vm15 = vcmp.ge.f32.partialorder %v3718_v57, 0.0  ;;  %v3801_v63 = vmul.f32 0.01, %v3718_v57 }
 0x3d9   : > { %v4110_v27 = vor.u32 %v4108_v34, %v4107_v32  ;;  %v4209_v52 = vsel %vm10539_vm14, %v4107_v32, 0  ;;  %6036 = vrot.lane.b32.xlu1 %v5925_v6, %s8515_s27  ;;  %v3544_v17 = vsel %vm719_vm0, %v11469_v35, %v3543_v3  ;;  %v11528_v61 = vpop.permute.xlu2 %5756  ;;  %v5934_v35 = vshll.u32 %v11512_v20, 16  ;;  %v8467_v6 = vld [vmem:[#allocation2 + $0x6c] sm:$0xe]  ;;  %v4508_v32 = vld [vmem:[#allocation2 + $0x68] sm:$0x1] }
 0x3da   : > { %v4291_v2 = vunpack.c.l.b16 %v4209_v52  ;;  %v11515_v39 = vsel %vm3765_vm15, %v3718_v57, %v3801_v63  ;;  %6340 = vrot.lane.b32.xlu0 %v6301_v47, %s8512_s25  ;;  %7574 = vmatmul.msk.bf16.gmra.mxu0 %vm3579_vm11, %v3544_v17  ;;  %v11532_v8 = vor.u32 %v5931_v26, %v5927_v60  ;;  %v4573_v57 = vld [vmem:[#allocation2 + $0x74] sm:$0x1]  ;;  %v8164_v63 = vld [vmem:[#allocation2 + $0x60] sm:$0xe]  ;;  %v7602_v60 = vld [vmem:[%s8606_s11 + $0x80] sm:$0x1]  ;;  %v11546_v26 = vsel %vm719_vm0, %v5404_v7, %v11385_v54 }
 0x3db   : > { %v4191_v21 = vsel %vm10539_vm14, 0, %v4110_v27  ;;  %v3915_v56 = vpack.c.bf16 %v11515_v39, %v11515_v39  ;;  %v6025_v12 = vpop.permute.xlu1 %6024  ;;  %v5936_v31 = vrot.slane %v5934_v35, 1  ;;  %v8165_v17 = vor.u32 %v8164_v63, %v8163_v53  ;;  %v11567_v53 = vld [vmem:[#allocation2 + $0x84] sm:$0xf0] }
 0x3dc   : > { %v4289_v34 = vunpack.c.l.b16 %v4191_v21  ;;  %v4290_v45 = vunpack.c.h.b16 %v4191_v21  ;;  %v4345_v29 = vpack.c.b16 %v4291_v2, %v4291_v2  ;;  %v6329_v42 = vpop.permute.xlu0 %6328  ;;  %v3719_v47 = vpop.f32.mrf.mxu0  ;;  %v6556_v23 = vsel %vm6423_vm2, %v6523_v51, %v6025_v12 }
 0x3dd   : > { %v6605_v3 = vsel %vm3302_vm10, %v11342_v36, %v6329_v42  ;;  %v3720_v52 = vadd.f32 %v11434_v9, %v3719_v47  ;;  %6937 = vmatmul.bf16.gmra.mxu2 %v6556_v23  ;;  %v5937_v51 = vsel %vm719_vm0, %v11532_v8, %v5936_v31  ;;  %v5326_v2 = vunpack.c.l.b16 %v4573_v57  ;;  %v11565_v31 = vld [vmem:[#allocation2 + $0x84] sm:$0xff]  }
 0x3de   : > { %v4343_v38 = vpack.c.b16 %v4289_v34, %v4289_v34  ;;  %v4344_v27 = vpack.c.b16 %v4290_v45, %v4290_v45  ;;  %4455 = vst.msk [vmem:[#allocation2 + $0xa4] sm:$0x1] %vm4415_vm12, %v4345_v29  ;;  %7761 = vmatmul.msk.bf16.gmra.mxu3 %vm3579_vm11, %v6605_v3  ;;  %v4814_v36 = vunpack.c.l.b16 %v4508_v32  ;;  %v8468_v35 = vor.u32 %v8467_v6, %v8466_v4  ;;  %v7658_v45 = vld [vmem:[%s8606_s11 + $0x78] sm:$0xe]  ;;  %v7791_v29 = vld [vmem:[%s8606_s11 + $0x78] sm:$0xf0] }
 0x3df   : > { %vm3766_vm15 = vcmp.ge.f32.partialorder %v3720_v52, 0.0  ;;  %v3802_v39 = vmul.f32 0.01, %v3720_v52  ;;  %6038 = vrot.lane.b32.xlu2 %v5937_v51, %s8515_s27  ;;  %v11550_v21 = vpack.c.b16 %v5326_v2, %v5326_v2  ;;  %v6224_v12 = vunpack.c.l.b16 %v7602_v60 }
 0x3e0   : > { %4453 = vst.msk [vmem:[#allocation2 + $0x9c] sm:$0xf] %vm4412_vm13, %v4343_v38  ;;  %v4830_v34 = vpack.c.b16 %v4814_v36, %v4814_v36  ;;  %v6361_v42 = vsel %vm3302_vm10, %v10841_v19, %v11403_v25  ;;  %v12753_v54 = vor.u32 %v11348_v14, %v11346_v24  ;;  %v5394_v32 = vshll.u32 %v11049_v13, 16 }
 0x3e1   : > { %4454 = vst.msk [vmem:[#allocation2 + $0xa0] sm:$0xf] %vm4412_vm13, %v4344_v27  ;;  %v3838_v57 = vsel %vm3766_vm15, %v3720_v52, %v3802_v39  ;;  %5172 = vrot.lane.b32.xlu1 %v5133_v16, %s8514_s15  ;;  %v5614_v23 = vrot.slane %v8468_v35, 1  ;;  %v5615_v4 = vrot.slane %v11550_v21, 1  ;;  %v11563_v6 = vpop.permute.xlu2 %6332  ;;  %v5134_v3 = vrot.slane %v8165_v17, 1 }
 0x3e2   : > { %v6108_v7 = vrot.slane %v12753_v54, 1  ;;  %v3916_v47 = vpack.c.bf16 %v3838_v57, %v3838_v57  ;;  %v5135_v16 = vrot.slane %v4830_v34, 1  ;;  %v4942_v63 = vshll.u32 %v4830_v34, 16  ;;  %v8187_v54 = vld [vmem:[#allocation2 + $0x78] sm:$0xf0] }
 0x3e3   : > { %v5161_v19 = vpop.permute.xlu1 %5160  ;;  %v7659_v38 = vor.u32 %v7791_v29, %v7658_v45  ;;  %v6263_v24 = vpack.c.b16 %v6224_v12, %v6224_v12  ;;  %v3987_v14 = vunpack.c.l.b16 %v3915_v56  ;;  %v5616_v13 = vsel %vm1098_vm1, %v5614_v23, %v5615_v4 }
 0x3e4   : > { %v5643_v25 = vpop.permute.xlu0 %5642  ;;  %v3988_v27 = vunpack.c.l.b16 %v3916_v47  ;;  %v6394_v52 = vsel %vm6390_vm4, %v6361_v42, %v5161_v19  ;;  %5654 = vrot.lane.b32.xlu0 %v5616_v13, %s8512_s25  ;;  %v5396_v51 = vrot.slane %v5394_v32, 1  ;;  %v12754_v36 = vshll.u32 %v10975_v62, 16  ;;  %v11585_v42 = vld [vmem:[#allocation2 + $0x3c] sm:$0xe]  ;;  %v4574_v32 = vld [vmem:[#allocation2 + $0x80] sm:$0x1] }
 0x3e5   : > { %v6428_v60 = vsel %vm6423_vm2, %v6394_v52, %v11438_v58  ;;  %v5136_v17 = vsel %vm1098_vm1, %v5134_v3, %v5135_v16  ;;  %v4944_v35 = vrot.slane %v4942_v63, 1  ;;  %v6302_v56 = vrot.slane %v7659_v38, 1 }
 0x3e6   : > { %v4009_v2 = vpack.c.b16 %v3988_v27, %v3987_v14  ;;  %v5384_v39 = vrot.slane %v12754_v36, 1  ;;  %6848 = vmatmul.bf16.gmra.mxu1 %v6428_v60  ;;  %v6303_v34 = vrot.slane %v6263_v24, 1  ;;  %v12755_v12 = vrot.slane %v10979_v15, 1  ;;  %v7662_v24 = vld [vmem:[%s8606_s11 + $0x84] sm:$0xe] }
 0x3e7   : > { %5174 = vrot.lane.b32.xlu2 %v5136_v17, %s8514_s15  ;;  %v11592_v47 = vsel %vm719_vm0, %v11017_v10, %v5396_v51  ;;  %v5327_v3 = vunpack.c.l.b16 %v4574_v32  ;;  %v4945_v19 = vsel %vm719_vm0, %v11337_v40, %v4944_v35  ;;  %v7792_v14 = vld [vmem:[%s8606_s11 + $0x84] sm:$0xf0]  ;;  %v8310_v51 = vld [vmem:[#allocation2 + $0x18] sm:$0xff]   ;;  %v5939_v32 = vshrl.u32 %v11565_v31, 16 }
 0x3e8   : > { %v4112_v45 = vshrl.u32 %v4009_v2, 16  ;;  %v5385_v29 = vsel %vm719_vm0, %v11372_v1, %v5384_v39  ;;  %v11583_v58 = vsel %vm1098_vm1, %v6108_v7, %v12755_v12  ;;  %v8188_v1 = vld [vmem:[#allocation2 + $0x78] sm:$0xe]  ;;  %v4115_v7 = vshll.u32 %v4009_v2, 16  ;;  %v7605_v39 = vld [vmem:[%s8606_s11 + $0x8c] sm:$0x1] }
 0x3e9   : > { %v6480_v62 = vsel %vm3302_vm10, %v5385_v29, %v5643_v25  ;;  %5766 = vrot.lane.b32.xlu1 %v11498_v33, %s8514_s15  ;;  %v11594_v23 = vpop.permute.xlu2 %5646  ;;  %v6304_v63 = vsel %vm1098_vm1, %v6302_v56, %v6303_v34  ;;  %v8189_v38 = vor.u32 %v8188_v1, %v8187_v54  ;;  %v11612_v35 = vpack.c.b16 %v5327_v3, %v5327_v3  ;;  %v4639_v34 = vld [vmem:[#allocation2 + $0x8c] sm:$0x1] }
 0x3ea   : > { %v3722_v57 = vpop.f32.mrf.mxu0  ;;  %v4114_v15 = vrot.slane %v4112_v45, 7  ;;  %v7663_v56 = vor.u32 %v7792_v14, %v7662_v24  ;;  %v5941_v45 = vshll.u32 %v11565_v31, 16  ;;  %v6227_v54 = vunpack.c.l.b16 %v7605_v39  ;;  %v11621_v1 = vld [vmem:[#allocation2 + $0x6c] sm:$0xff]  }
 0x3eb   : > { %v3723_v4 = vadd.f32 %v11434_v9, %v3722_v57  ;;  %v5755_v25 = vpop.permute.xlu1 %5754 }
 0x3ec   : > { %v5035_v16 = vpop.permute.xlu0 %5034  ;;  %v4117_v10 = vor.u32 %v4115_v7, %v4114_v15  ;;  %v4210_v27 = vsel %vm10539_vm14, %v4114_v15, 0  ;;  %v6525_v13 = vsel %vm6390_vm4, %v6480_v62, %v5755_v25  ;;  %5046 = vrot.lane.b32.xlu0 %v4945_v19, %s8512_s25  ;;  %v11623_v15 = vld [vmem:[#allocation2 + $0x6c] sm:$0xf0]  ;;  %v5617_v19 = vrot.slane %v8189_v38, 1 }
 0x3ed   : > { %vm3767_vm15 = vcmp.ge.f32.partialorder %v3723_v4, 0.0  ;;  %v4294_v52 = vunpack.c.l.b16 %v4210_v27  ;;  %v3803_v60 = vmul.f32 0.01, %v3723_v4  ;;  %v6363_v2 = vsel %vm3302_vm10, %v8310_v51, %v5035_v16  ;;  %v11631_v27 = vld [vmem:[#allocation2 + $0x84] sm:$0xff]  }
 0x3ee   : > { %v6559_v36 = vsel %vm6423_vm2, %v6525_v13, %v11464_v44  ;;  %v4192_v17 = vsel %vm10539_vm14, 0, %v4117_v10  ;;  %v6396_v44 = vsel %vm6390_vm4, %v6363_v2, %v11493_v59  ;;  %v5807_v25 = vunpack.c.l.b16 %v4639_v34  ;;  %v4509_v10 = vld [vmem:[#allocation2 + $0x74] sm:$0x1]  ;;  %v8469_v13 = vld [vmem:[#allocation2 + $0x84] sm:$0xf0] }
 0x3ef   : > { %6942 = vmatmul.bf16.gmra.mxu2 %v6559_v36  ;;  %v4292_v29 = vunpack.c.l.b16 %v4192_v17  ;;  %v4293_v12 = vunpack.c.h.b16 %v4192_v17  ;;  %v4348_v62 = vpack.c.b16 %v4294_v52, %v4294_v52  ;;  %v3839_v57 = vsel %vm3767_vm15, %v3723_v4, %v3803_v60  ;;  %5768 = vrot.lane.b32.xlu2 %v11565_v31, %s8514_s15  ;;  %v4575_v52 = vld [vmem:[#allocation2 + $0x8c] sm:$0x1]  ;;  %v8470_v36 = vld [vmem:[#allocation2 + $0x84] sm:$0xe] }
 0x3f0   : > { %v3917_v16 = vpack.c.bf16 %v3839_v57, %v3839_v57  ;;  %v5618_v31 = vrot.slane %v11612_v35, 1  ;;  %v6265_v14 = vpack.c.b16 %v6227_v54, %v6227_v54  ;;  %v6305_v51 = vrot.slane %v7663_v56, 1 }
 0x3f1   : > { %v4346_v7 = vpack.c.b16 %v4292_v29, %v4292_v29  ;;  %v4347_v3 = vpack.c.b16 %v4293_v12, %v4293_v12  ;;  %4458 = vst.msk [vmem:[#allocation2 + $0xb0] sm:$0x1] %vm4415_vm12, %v4348_v62  ;;  %6342 = vrot.lane.b32.xlu1 %v6304_v63, %s8512_s25  ;;  %v11627_v24 = vpop.permute.xlu2 %5038  ;;  %v11634_v38 = vpack.c.b16 %v5807_v25, %v5807_v25  ;;  %v5943_v2 = vrot.slane %v5941_v45, 1  ;;  %v8345_v45 = vld [vmem:[#allocation2 + $0x6c] sm:$0xe] }
 0x3f2   : > { %v3724_v4 = vpop.f32.mrf.mxu0  ;;  %v6306_v34 = vrot.slane %v6265_v14, 1  ;;  %v4815_v29 = vunpack.c.l.b16 %v4509_v10  ;;  %v5328_v62 = vunpack.c.l.b16 %v4575_v52  ;;  %v5619_v54 = vsel %vm1098_vm1, %v5617_v19, %v5618_v31 }
 0x3f3   : > { %v3725_v59 = vadd.f32 %v11434_v9, %v3724_v4  ;;  %4456 = vst.msk [vmem:[#allocation2 + $0xa8] sm:$0xf] %vm4412_vm13, %v4346_v7  ;;  %v6331_v60 = vpop.permute.xlu1 %6330  ;;  %v5946_v56 = vshll.u32 %v11634_v38, 16  ;;  %v3989_v4 = vunpack.c.l.b16 %v3917_v16  ;;  %v4949_v14 = vshll.u32 %v11621_v1, 16 }
 0x3f4   : > { %v5275_v63 = vpop.permute.xlu0 %5274  ;;  %4457 = vst.msk [vmem:[#allocation2 + $0xac] sm:$0xf] %vm4412_vm13, %v4347_v3  ;;  %v6608_v39 = vsel %vm3302_vm10, %v11583_v58, %v6331_v60  ;;  %5286 = vrot.lane.b32.xlu0 %v11520_v0, %s8515_s27  ;;  %v6307_v58 = vsel %vm1098_vm1, %v6305_v51, %v6306_v34  ;;  %v4831_v7 = vpack.c.b16 %v4815_v29, %v4815_v29  ;;  %v4947_v19 = vshrl.u32 %v11621_v1, 16 }
 0x3f5   : > { %vm3768_vm15 = vcmp.ge.f32.partialorder %v3725_v59, 0.0  ;;  %v3804_v9 = vmul.f32 0.01, %v3725_v59  ;;  %v6431_v17 = vsel %vm6423_vm2, %v6396_v44, %v5275_v63  ;;  %7762 = vmatmul.msk.bf16.gmra.mxu3 %vm3579_vm11, %v6608_v39  ;;  %v5944_v44 = vor.u32 %v5943_v2, %v5939_v32 }
 0x3f6   : > { %6853 = vmatmul.bf16.gmra.mxu1 %v6431_v17  ;;  %v8471_v3 = vor.u32 %v8470_v36, %v8469_v13  ;;  %v11649_v10 = vpack.c.b16 %v5328_v62, %v5328_v62  ;;  %v4954_v31 = vshll.u32 %v4831_v7, 16  ;;  %v8343_v60 = vor.u32 %v11585_v42, %v11040_v48  ;;  %v4510_v36 = vld [vmem:[#allocation2 + $0x80] sm:$0x1] }
 0x3f7   : > { %v3840_v12 = vsel %vm3768_vm15, %v3725_v59, %v3804_v9  ;;  %6344 = vrot.lane.b32.xlu2 %v6307_v58, %s8512_s25  ;;  %v5948_v59 = vrot.slane %v5946_v56, 1  ;;  %v4951_v16 = vrot.slane %v4949_v14, 1  ;;  %v8346_v2 = vor.u32 %v8345_v45, %v11623_v15  ;;  %v4640_v56 = vld [vmem:[#allocation2 + $0x98] sm:$0x1] }
 0x3f8   : > { %v3918_v57 = vpack.c.bf16 %v3840_v12, %v3840_v12  ;;  %v5620_v51 = vrot.slane %v8471_v3, 1  ;;  %v5621_v42 = vrot.slane %v11649_v10, 1  ;;  %v4956_v12 = vrot.slane %v4954_v31, 1  ;;  %v11671_v3 = vld [vmem:[#allocation2 + $0x90] sm:$0xff]  }
 0x3f9   : > { %5656 = vrot.lane.b32.xlu1 %v5619_v54, %s8512_s25  ;;  %v11651_v52 = vpop.permute.xlu2 %5278  ;;  %v5949_v9 = vsel %vm719_vm0, %v5944_v44, %v5948_v59  ;;  %v4952_v48 = vor.u32 %v4951_v16, %v4947_v19  ;;  %v6111_v15 = vrot.slane %v8343_v60, 1  ;;  %v4816_v45 = vunpack.c.l.b16 %v4510_v36 }
 0x3fa   : > { %v3990_v25 = vunpack.c.l.b16 %v3918_v57  ;;  %v5137_v54 = vrot.slane %v8346_v2, 1  ;;  %v5138_v59 = vrot.slane %v4831_v7, 1  ;;  %v5953_v7 = vshll.u32 %v11671_v3, 16  ;;  %v7608_v2 = vld [vmem:[%s8606_s11 + $0x98] sm:$0x1] }
 0x3fb   : > { %v5645_v63 = vpop.permute.xlu1 %5644  ;;  %v4957_v58 = vsel %vm719_vm0, %v4952_v48, %v4956_v12  ;;  %v11669_v44 = vpack.c.b16 %v4816_v45, %v4816_v45  ;;  %v7666_v48 = vld [vmem:[%s8606_s11 + $0x90] sm:$0xe]  ;;  %v7793_v12 = vld [vmem:[%s8606_s11 + $0x90] sm:$0xf0]  ;;  %v4641_v45 = vld [vmem:[#allocation2 + $0xa4] sm:$0x1] }
 0x3fc   : > { %v4010_v32 = vpack.c.b16 %v3990_v25, %v3989_v4  ;;  %v6029_v13 = vpop.permute.xlu0 %6028  ;;  %v6483_v39 = vsel %vm3302_vm10, %v11592_v47, %v5645_v63  ;;  %6040 = vrot.lane.b32.xlu0 %v5949_v9, %s8515_s27  ;;  %v5622_v47 = vsel %vm1098_vm1, %v5620_v51, %v5621_v42  ;;  %v5808_v4 = vunpack.c.l.b16 %v4640_v56  ;;  %v11692_v42 = vld [vmem:[#allocation2 + $0x9c] sm:$0xff]  }
 0x3fd   : > { %v6527_v34 = vsel %vm6390_vm4, %v6483_v39, %v11528_v61  ;;  %v6112_v61 = vrot.slane %v11079_v5, 1  ;;  %v4966_v5 = vshll.u32 %v11669_v44, 16  ;;  %v5139_v63 = vsel %vm1098_vm1, %v5137_v54, %v5138_v59  ;;  %v11694_v56 = vld [vmem:[#allocation2 + $0x9c] sm:$0xf0]  ;;  %v8206_v54 = vld [vmem:[#allocation2 + $0x48] sm:$0xe] }
 0x3fe   : > { %v4119_v17 = vshrl.u32 %v4010_v32, 16  ;;  %v6562_v29 = vsel %vm6423_vm2, %v6527_v34, %v6029_v13  ;;  %v4122_v57 = vshll.u32 %v4010_v32, 16 }
 0x3ff   : > { %6947 = vmatmul.bf16.gmra.mxu2 %v6562_v29  ;;  %5658 = vrot.lane.b32.xlu2 %v5622_v47, %s8512_s25  ;;  %v6113_v60 = vsel %vm1098_vm1, %v6111_v15, %v6112_v61  ;;  %v4968_v34 = vrot.slane %v4966_v5, 1  ;;  %v6230_v15 = vunpack.c.l.b16 %v7608_v2  ;;  %v8205_v47 = vld [vmem:[#allocation2 + $0x48] sm:$0xf0] }
 0x400   : > { %v4121_v62 = vrot.slane %v4119_v17, 7  ;;  %v6611_v51 = vsel %vm3302_vm10, %v6113_v60, %v11563_v6  ;;  %v11687_v17 = vpack.c.b16 %v5808_v4, %v5808_v4  ;;  %v7667_v4 = vor.u32 %v7793_v12, %v7666_v48 }
 0x401   : > { %5048 = vrot.lane.b32.xlu1 %v4957_v58, %s8512_s25  ;;  %v11676_v31 = vpop.permute.xlu2 %6032  ;;  %v8207_v60 = vor.u32 %v8206_v54, %v8205_v47  ;;  %v8348_v54 = vld [vmem:[#allocation2 + $0x84] sm:$0xe] }
 0x402   : > { %v4124_v25 = vor.u32 %v4122_v57, %v4121_v62  ;;  %v4211_v14 = vsel %vm10539_vm14, %v4121_v62, 0  ;;  %v4969_v62 = vsel %vm719_vm0, %v11532_v8, %v4968_v34  ;;  %v5955_v57 = vrot.slane %v5953_v7, 1  ;;  %v8347_v34 = vld [vmem:[#allocation2 + $0x84] sm:$0xf0] }
 0x403   : > { %v4297_v19 = vunpack.c.l.b16 %v4211_v14  ;;  %v5037_v13 = vpop.permute.xlu1 %5036  ;;  %v5958_v61 = vshll.u32 %v11687_v17, 16  ;;  %v5951_v14 = vshrl.u32 %v11671_v3, 16 }
 0x404   : > { %v4193_v32 = vsel %vm10539_vm14, 0, %v4124_v25  ;;  %v5165_v16 = vpop.permute.xlu0 %5164  ;;  %5176 = vrot.lane.b32.xlu0 %v5139_v63, %s8514_s15  ;;  %v6365_v58 = vsel %vm3302_vm10, %v11032_v30, %v5037_v13  ;;  %v5809_v25 = vunpack.c.l.b16 %v4641_v45  ;;  %v8166_v63 = vld [vmem:[#allocation2 + $0x78] sm:$0xf0]  ;;  %v8167_v13 = vld [vmem:[#allocation2 + $0x78] sm:$0xe] }
 0x405   : > { %v4295_v36 = vunpack.c.l.b16 %v4193_v32  ;;  %v4296_v9 = vunpack.c.h.b16 %v4193_v32  ;;  %v4351_v39 = vpack.c.b16 %v4297_v19, %v4297_v19  ;;  %7763 = vmatmul.msk.bf16.gmra.mxu3 %vm3579_vm11, %v6611_v51  ;;  %v6267_v19 = vpack.c.b16 %v6230_v15, %v6230_v15 }
 0x406   : > { %v6398_v5 = vsel %vm6390_vm4, %v6365_v58, %v5165_v16  ;;  %v11712_v51 = vor.u32 %v5955_v57, %v5951_v14  ;;  %v5960_v2 = vrot.slane %v5958_v61, 1  ;;  %v11720_v16 = vld [vmem:[#allocation2 + $0x84] sm:$0xff]   ;;  %v8168_v12 = vor.u32 %v8167_v13, %v8166_v63  ;;  %v8191_v57 = vld [vmem:[#allocation2 + $0x90] sm:$0xe] }
 0x407   : > { %v4349_v6 = vpack.c.b16 %v4295_v36, %v4295_v36  ;;  %v4350_v29 = vpack.c.b16 %v4296_v9, %v4296_v9  ;;  %4461 = vst.msk [vmem:[#allocation2 + $0xbc] sm:$0x1] %vm4415_vm12, %v4351_v39  ;;  %5050 = vrot.lane.b32.xlu2 %v4969_v62, %s8512_s25  ;;  %v6308_v36 = vrot.slane %v7667_v4, 1  ;;  %v11718_v9 = vpack.c.b16 %v5809_v25, %v5809_v25  ;;  %v4576_v39 = vld [vmem:[#allocation2 + $0x98] sm:$0x1] }
 0x408   : > { %v6309_v48 = vrot.slane %v6267_v19, 1  ;;  %v5961_v45 = vsel %vm719_vm0, %v11712_v51, %v5960_v2  ;;  %v8190_v62 = vld [vmem:[#allocation2 + $0x90] sm:$0xf0]  ;;  %v5329_v47 = vunpack.c.l.b16 %v4576_v39  ;;  %v6486_v58 = vsel %vm3302_vm10, %v11546_v26, %v11594_v23 }
 0x409   : > { %4459 = vst.msk [vmem:[#allocation2 + $0xb4] sm:$0xf] %vm4412_vm13, %v4349_v6  ;;  %5288 = vrot.lane.b32.xlu1 %v11498_v33, %s8515_s27  ;;  %v11709_v59 = vpop.permute.xlu2 %5168  ;;  %v5965_v33 = vshll.u32 %v11692_v42, 16  ;;  %v6114_v6 = vrot.slane %v8207_v60, 1  ;;  %v5970_v61 = vshll.u32 %v11718_v9, 16  ;;  %v5140_v19 = vrot.slane %v8168_v12, 1 }
 0x40a   : > { %4460 = vst.msk [vmem:[#allocation2 + $0xb8] sm:$0xf] %vm4412_vm13, %v4350_v29  ;;  %v6115_v29 = vrot.slane %v11195_v55, 1  ;;  %v5963_v55 = vshrl.u32 %v11692_v42, 16  ;;  %v6310_v4 = vsel %vm1098_vm1, %v6308_v36, %v6309_v48  ;;  %v5141_v60 = vrot.slane %v11669_v44, 1 }
 0x40b   : > { %v5277_v30 = vpop.permute.xlu1 %5276  ;;  %v5967_v15 = vrot.slane %v5965_v33, 1  ;;  %v8192_v13 = vor.u32 %v8191_v57, %v8190_v62  ;;  %v11741_v33 = vpack.c.b16 %v5329_v47, %v5329_v47  ;;  %v5972_v36 = vrot.slane %v5970_v61, 1  ;;  %v7611_v44 = vld [vmem:[%s8606_s11 + $0xa4] sm:$0x1] }
 0x40c   : > { %v5759_v32 = vpop.permute.xlu0 %5758  ;;  %v6434_v7 = vsel %vm6423_vm2, %v6398_v5, %v5277_v30  ;;  %5770 = vrot.lane.b32.xlu0 %v11671_v3, %s8514_s15  ;;  %v6116_v14 = vsel %vm1098_vm1, %v6114_v6, %v6115_v29  ;;  %v4511_v5 = vld [vmem:[#allocation2 + $0x8c] sm:$0x1]  ;;  %v8349_v48 = vor.u32 %v8348_v54, %v8347_v34  ;;  %v5142_v6 = vsel %vm1098_vm1, %v5140_v19, %v5141_v60  ;;  %v8311_v34 = vld [vmem:[#allocation2 + $0x30] sm:$0xff]  }
 0x40d   : > { %6858 = vmatmul.bf16.gmra.mxu1 %v6434_v7  ;;  %v6529_v30 = vsel %vm6390_vm4, %v6486_v58, %v5759_v32  ;;  %v5968_v63 = vor.u32 %v5967_v15, %v5963_v55  ;;  %v4817_v39 = vunpack.c.l.b16 %v4511_v5  ;;  %v5623_v29 = vrot.slane %v8192_v13, 1  ;;  %v7670_v58 = vld [vmem:[%s8606_s11 + $0x9c] sm:$0xe]  ;;  %v7794_v55 = vld [vmem:[%s8606_s11 + $0x9c] sm:$0xf0] }
 0x40e   : > { %v5624_v12 = vrot.slane %v11741_v33, 1  ;;  %v4973_v15 = vshll.u32 %v11720_v16, 16  ;;  %v6233_v62 = vunpack.c.l.b16 %v7611_v44  ;;  %v5418_v47 = vshll.u32 %v11242_v50, 16  ;;  %v8351_v19 = vld [vmem:[#allocation2 + $0x54] sm:$0xe] }
 0x40f   : > { %5290 = vrot.lane.b32.xlu2 %v11631_v27, %s8515_s27  ;;  %v5973_v32 = vsel %vm719_vm0, %v5968_v63, %v5972_v36  ;;  %v6367_v54 = vsel %vm3302_vm10, %v8311_v34, %v11627_v24  ;;  %v4971_v24 = vshrl.u32 %v11720_v16, 16 }
 0x410   : > { %v5625_v60 = vsel %vm1098_vm1, %v5623_v29, %v5624_v12  ;;  %v6269_v63 = vpack.c.b16 %v6233_v62, %v6233_v62  ;;  %v5420_v13 = vrot.slane %v5418_v47, 1  ;;  %v8472_v29 = vld [vmem:[#allocation2 + $0x9c] sm:$0xf0]  ;;  %v8473_v12 = vld [vmem:[#allocation2 + $0x9c] sm:$0xe]  ;;  %v8352_v47 = vor.u32 %v8351_v19, %v11199_v46 }
 0x411   : > { %6042 = vrot.lane.b32.xlu1 %v5961_v45, %s8515_s27  ;;  %v11734_v25 = vpop.permute.xlu2 %5762  ;;  %v4833_v45 = vpack.c.b16 %v4817_v39, %v4817_v39  ;;  %v4642_v39 = vld [vmem:[#allocation2 + $0xb0] sm:$0x1] }
 0x412   : > { %v5810_v34 = vunpack.c.l.b16 %v4642_v39  ;;  %v4578_v39 = vld [vmem:[#allocation2 + $0xb0] sm:$0x1] }
 0x413   : > { %v6031_v26 = vpop.permute.xlu1 %6030 }
 0x414   : > { %v6335_v23 = vpop.permute.xlu0 %6334  ;;  %v6565_v7 = vsel %vm6423_vm2, %v6529_v30, %v6031_v26  ;;  %6346 = vrot.lane.b32.xlu0 %v6310_v4, %s8512_s25  ;;  %v4975_v30 = vrot.slane %v4973_v15, 1  ;;  %v5144_v26 = vrot.slane %v4833_v45, 1 }
 0x415   : > { %v6614_v2 = vsel %vm3302_vm10, %v6116_v14, %v6335_v23  ;;  %6952 = vmatmul.bf16.gmra.mxu2 %v6565_v7  ;;  %v5143_v14 = vrot.slane %v8349_v48, 1  ;;  %v7671_v23 = vor.u32 %v7794_v55, %v7670_v58  ;;  %v4978_v7 = vshll.u32 %v4833_v45, 16  ;;  %v7674_v58 = vld [vmem:[%s8606_s11 + $0xa8] sm:$0xe]  ;;  %v7795_v55 = vld [vmem:[%s8606_s11 + $0xa8] sm:$0xf0] }
 0x416   : > { %7764 = vmatmul.msk.bf16.gmra.mxu3 %vm3579_vm11, %v6614_v2  ;;  %v7614_v2 = vld [vmem:[%s8606_s11 + $0xb0] sm:$0x1]  ;;  %v4976_v44 = vor.u32 %v4975_v30, %v4971_v24  ;;  %v6312_v48 = vrot.slane %v6269_v63, 1  ;;  %v5421_v45 = vsel %vm719_vm0, %v11169_v49, %v5420_v13  ;;  %v7675_v19 = vor.u32 %v7795_v55, %v7674_v58 }
 0x417   : > { %6044 = vrot.lane.b32.xlu2 %v5973_v32, %s8515_s27  ;;  %v5145_v36 = vsel %vm1098_vm1, %v5143_v14, %v5144_v26  ;;  %v11768_v32 = vld [vmem:[#allocation2 + $0xa8] sm:$0xff]   ;;  %v6236_v15 = vunpack.c.l.b16 %v7614_v2  ;;  %v4980_v62 = vrot.slane %v4978_v7, 1  ;;  %v4512_v26 = vld [vmem:[#allocation2 + $0x98] sm:$0x1]  ;;  %v11789_v13 = vpack.c.b16 %v5810_v34, %v5810_v34 }
 0x418   : > { %v5977_v14 = vshll.u32 %v11768_v32, 16  ;;  %v5425_v24 = vshll.u32 %v11368_v43, 16  ;;  %v8474_v2 = vor.u32 %v8473_v12, %v8472_v29  ;;  %v5331_v34 = vunpack.c.l.b16 %v4578_v39 }
 0x419   : > { %5178 = vrot.lane.b32.xlu1 %v5142_v6, %s8514_s15  ;;  %v11752_v57 = vpop.permute.xlu2 %6338  ;;  %v11772_v6 = vld [vmem:[#allocation2 + $0x9c] sm:$0xff]  }
 0x41a   : > { %v5427_v29 = vrot.slane %v5425_v24, 1 }
 0x41b   : > { %v5167_v61 = vpop.permute.xlu1 %5166 }
 0x41c   : > { %v5649_v4 = vpop.permute.xlu0 %5648  ;;  %v6400_v5 = vsel %vm6390_vm4, %v6367_v54, %v5167_v61  ;;  %5660 = vrot.lane.b32.xlu0 %v5625_v60, %s8512_s25  ;;  %v4577_v60 = vld [vmem:[#allocation2 + $0xa4] sm:$0x1] }
 0x41d   : > { %v6437_v50 = vsel %vm6423_vm2, %v6400_v5, %v11651_v52  ;;  %v6311_v52 = vrot.slane %v7671_v23, 1  ;;  %v6489_v54 = vsel %vm3302_vm10, %v5421_v45, %v5649_v4  ;;  %v4981_v5 = vsel %vm719_vm0, %v4976_v44, %v4980_v62  ;;  %v11797_v44 = vld [vmem:[#allocation2 + $0x9c] sm:$0xff]  }
 0x41e   : > { %6863 = vmatmul.bf16.gmra.mxu1 %v6437_v50  ;;  %v6271_v4 = vpack.c.b16 %v6236_v15, %v6236_v15  ;;  %v6117_v23 = vrot.slane %v8352_v47, 1  ;;  %v5330_v63 = vunpack.c.l.b16 %v4577_v60  ;;  %v5979_v15 = vrot.slane %v5977_v14, 1  ;;  %v8193_v60 = vld [vmem:[#allocation2 + $0xa8] sm:$0xf0] }
 0x41f   : > { %5180 = vrot.lane.b32.xlu2 %v5145_v36, %s8514_s15  ;;  %v6313_v46 = vsel %vm1098_vm1, %v6311_v52, %v6312_v48  ;;  %v4818_v36 = vunpack.c.l.b16 %v4512_v26  ;;  %v11799_v52 = vld [vmem:[#allocation2 + $0x9c] sm:$0xf0]  ;;  %v5975_v48 = vshrl.u32 %v11768_v32, 16  ;;  %v6314_v45 = vrot.slane %v7675_v19, 1 }
 0x420   : > { %v6315_v62 = vrot.slane %v6271_v4, 1  ;;  %v11804_v47 = vpack.c.b16 %v5330_v63, %v5330_v63  ;;  %v4513_v63 = vld [vmem:[#allocation2 + $0xa4] sm:$0x1] }
 0x421   : > { %5772 = vrot.lane.b32.xlu1 %v11692_v42, %s8514_s15  ;;  %v11783_v50 = vpop.permute.xlu2 %5652  ;;  %v11811_v14 = vpack.c.b16 %v4818_v36, %v4818_v36  ;;  %v8209_v36 = vld [vmem:[#allocation2 + $0x60] sm:$0xe] }
 0x422   : > { %v5627_v4 = vrot.slane %v11804_v47, 1 }
 0x423   : > { %v5761_v61 = vpop.permute.xlu1 %5760 }
 0x424   : > { %v5041_v42 = vpop.permute.xlu0 %5040  ;;  %v6531_v30 = vsel %vm6390_vm4, %v6489_v54, %v5761_v61  ;;  %5052 = vrot.lane.b32.xlu0 %v4981_v5, %s8512_s25  ;;  %v8194_v5 = vld [vmem:[#allocation2 + $0xa8] sm:$0xe] }
 0x425   : > { %v6568_v49 = vsel %vm6423_vm2, %v6531_v30, %v11676_v31  ;;  %v6369_v7 = vsel %vm3302_vm10, %v11128_v28, %v5041_v42  ;;  %v6118_v31 = vrot.slane %v11224_v18, 1  ;;  %v5982_v18 = vshll.u32 %v11789_v13, 16 }
 0x426   : > { %6957 = vmatmul.bf16.gmra.mxu2 %v6568_v49  ;;  %v6402_v55 = vsel %vm6390_vm4, %v6369_v7, %v11709_v59  ;;  %v5626_v42 = vrot.slane %v8474_v2, 1  ;;  %v6316_v30 = vsel %vm1098_vm1, %v6314_v45, %v6315_v62  ;;  %v5423_v49 = vshrl.u32 %v11368_v43, 16  ;;  %v8170_v2 = vld [vmem:[#allocation2 + $0x90] sm:$0xe]  ;;  %v11832_v45 = vld [vmem:[#allocation2 + $0xb4] sm:$0xf0] }
 0x427   : > { %5774 = vrot.lane.b32.xlu2 %v11768_v32, %s8514_s15  ;;  %v6119_v28 = vsel %vm1098_vm1, %v6117_v23, %v6118_v31  ;;  %v5430_v59 = vshll.u32 %v11391_v11, 16  ;;  %v5984_v26 = vrot.slane %v5982_v18, 1  ;;  %v8208_v23 = vld [vmem:[#allocation2 + $0x60] sm:$0xf0]  ;;  %v8195_v7 = vor.u32 %v8194_v5, %v8193_v60  ;;  %v8169_v31 = vld [vmem:[#allocation2 + $0x90] sm:$0xf0] }
 0x428   : > { %v5428_v24 = vor.u32 %v5427_v29, %v5423_v49  ;;  %v5628_v43 = vsel %vm1098_vm1, %v5626_v42, %v5627_v4  ;;  %v4990_v11 = vshll.u32 %v11811_v14, 16  ;;  %v8210_v18 = vor.u32 %v8209_v36, %v8208_v23  ;;  %v4643_v23 = vld [vmem:[#allocation2 + $0xbc] sm:$0x1]  ;;  %v8354_v36 = vld [vmem:[#allocation2 + $0x6c] sm:$0xe] }
 0x429   : > { %6348 = vrot.lane.b32.xlu1 %v6313_v46, %s8512_s25  ;;  %v11819_v46 = vor.u32 %v5979_v15, %v5975_v48  ;;  %v11821_v19 = vpop.permute.xlu2 %5044  ;;  %v5432_v39 = vrot.slane %v5430_v59, 1  ;;  %v4819_v48 = vunpack.c.l.b16 %v4513_v63  ;;  %v11830_v15 = vld [vmem:[#allocation2 + $0xb4] sm:$0xff]   ;;  %v6121_v4 = vrot.slane %v11405_v41, 1 }
 0x42a   : > { %v4992_v42 = vrot.slane %v4990_v11, 1  ;;  %v6120_v59 = vrot.slane %v8210_v18, 1  ;;  %v5811_v41 = vunpack.c.l.b16 %v4643_v23  ;;  %v5989_v18 = vshll.u32 %v11830_v15, 16  ;;  %v8357_v23 = vld [vmem:[#allocation2 + $0x9c] sm:$0xe] }
 0x42b   : > { %v6337_v12 = vpop.permute.xlu1 %6336  ;;  %v5985_v62 = vsel %vm719_vm0, %v11819_v46, %v5984_v26  ;;  %v5433_v29 = vsel %vm719_vm0, %v5428_v24, %v5432_v39  ;;  %v11843_v5 = vpack.c.b16 %v4819_v48, %v4819_v48  ;;  %v7617_v48 = vld [vmem:[%s8606_s11 + $0xbc] sm:$0x1] }
 0x42c   : > { %v5281_v58 = vpop.permute.xlu0 %5280  ;;  %v6617_v54 = vsel %vm3302_vm10, %v6119_v28, %v6337_v12  ;;  %5292 = vrot.lane.b32.xlu0 %v11671_v3, %s8515_s27  ;;  %v11824_v3 = vpack.c.b16 %v5331_v34, %v5331_v34  ;;  %v8171_v28 = vor.u32 %v8170_v2, %v8169_v31  ;;  %v4997_v34 = vshll.u32 %v11797_v44, 16 }
 0x42d   : > { %v6440_v61 = vsel %vm6423_vm2, %v6402_v55, %v5281_v58  ;;  %7765 = vmatmul.msk.bf16.gmra.mxu3 %vm3579_vm11, %v6617_v54  ;;  %v5629_v58 = vrot.slane %v8195_v7, 1  ;;  %v4993_v24 = vsel %vm719_vm0, %v11712_v51, %v4992_v42  ;;  %v5147_v7 = vrot.slane %v11811_v14, 1 }
 0x42e   : > { %6868 = vmatmul.bf16.gmra.mxu1 %v6440_v61  ;;  %v5630_v55 = vrot.slane %v11824_v3, 1  ;;  %v4999_v26 = vrot.slane %v4997_v34, 1  ;;  %v4995_v31 = vshrl.u32 %v11797_v44, 16  ;;  %v5002_v2 = vshll.u32 %v11843_v5, 16  ;;  %v11871_v34 = vld [vmem:[%s12363_s4] ss:$0 sm:$0xff] }
 0x42f   : > { %6350 = vrot.lane.b32.xlu2 %v6316_v30, %s8512_s25  ;;  %v6122_v11 = vsel %vm1098_vm1, %v6120_v59, %v6121_v4  ;;  %v12757_v4 = vld [vmem:[#allocation56_spill] sm:$0xff] }
 0x430   : > { %v5631_v49 = vsel %vm1098_vm1, %v5629_v58, %v5630_v55  ;;  %v5000_v39 = vor.u32 %v4999_v26, %v4995_v31  ;;  %v6620_v14 = vsel %vm3302_vm10, %v6122_v11, %v11752_v57  ;;  %v6239_v58 = vunpack.c.l.b16 %v7617_v48  ;;  %v8312_v57 = vld [vmem:[#allocation2 + $0x48] sm:$0xff]  }
 0x431   : > { %5662 = vrot.lane.b32.xlu1 %v5628_v43, %s8512_s25  ;;  %v11848_v63 = vpop.permute.xlu2 %5284  ;;  %v8355_v26 = vor.u32 %v8354_v36, %v12757_v4  ;;  %v4579_v4 = vld [vmem:[#allocation2 + $0xbc] sm:$0x1] }
 0x433   : > { %v5651_v12 = vpop.permute.xlu1 %5650 }
 0x434   : > { %v6492_v54 = vsel %vm3302_vm10, %v5433_v29, %v5651_v12  ;;  %v6035_v61 = vpop.permute.xlu0 %6034  ;;  %6046 = vrot.lane.b32.xlu0 %v5985_v62, %s8515_s27  ;;  %v5004_v29 = vrot.slane %v5002_v2, 1  ;;  %v11865_v12 = vpack.c.b16 %v5811_v41, %v5811_v41  ;;  %v6273_v41 = vpack.c.b16 %v6239_v58, %v6239_v58 }
 0x435   : > { %v6533_v60 = vsel %vm6390_vm4, %v6492_v54, %v11734_v25  ;;  %v5146_v25 = vrot.slane %v8171_v28, 1  ;;  %v7678_v54 = vld [vmem:[%s8606_s11 + $0xb4] sm:$0xe] }
 0x436   : > { %v6571_v30 = vsel %vm6423_vm2, %v6533_v60, %v6035_v61  ;;  %v5005_v55 = vsel %vm719_vm0, %v5000_v39, %v5004_v29  ;;  %v7796_v61 = vld [vmem:[%s8606_s11 + $0xb4] sm:$0xf0]  ;;  %v5991_v60 = vrot.slane %v5989_v18, 1  ;;  %v5994_v31 = vshll.u32 %v11865_v12, 16 }
 0x437   : > { %6962 = vmatmul.bf16.gmra.mxu2 %v6571_v30  ;;  %5664 = vrot.lane.b32.xlu2 %v5631_v49, %s8512_s25  ;;  %v5148_v62 = vsel %vm1098_vm1, %v5146_v25, %v5147_v7  ;;  %v12756_v30 = vld [vmem:[#allocation6_spill] sm:$0xff]  ;;  %v5987_v7 = vshrl.u32 %v11830_v15, 16  ;;  %v7679_v2 = vor.u32 %v7796_v61, %v7678_v54  ;;  %v6318_v61 = vrot.slane %v6273_v41, 1 }
 0x438   : > { %v5442_v49 = vshll.u32 %v12756_v30, 16  ;;  %v6933_v59 = vpop.f32.mrf.mxu2  ;;  %v11888_v18 = vld [vmem:[#allocation2 + $0xb4] sm:$0xff]   ;;  %v5332_v41 = vunpack.c.l.b16 %v4579_v4 }
 0x439   : > { %5054 = vrot.lane.b32.xlu1 %v4993_v24, %s8512_s25  ;;  %v11881_v24 = vpop.permute.xlu2 %6038  ;;  %v7022_v48 = vpop.f32.mrf.mxu3  ;;  %v8475_v29 = vld [vmem:[#allocation2 + $0xb4] sm:$0xf0]  ;;  %v6317_v54 = vrot.slane %v7679_v2, 1 }
 0x43b   : > { %v5043_v43 = vpop.permute.xlu1 %5042 }
 0x43c   : > { %v5171_v28 = vpop.permute.xlu0 %5170  ;;  %5182 = vrot.lane.b32.xlu0 %v5148_v62, %s8514_s15  ;;  %v6371_v42 = vsel %vm3302_vm10, %v8312_v57, %v5043_v43  ;;  %v5444_v57 = vrot.slane %v5442_v49, 1  ;;  %v6124_v49 = vrot.slane %v11478_v22, 1 }
 0x43d   : > { %7766 = vmatmul.msk.bf16.gmra.mxu3 %vm3579_vm11, %v6620_v14  ;;  %v6404_v43 = vsel %vm6390_vm4, %v6371_v42, %v5171_v28  ;;  %v5992_v14 = vor.u32 %v5991_v60, %v5987_v7  ;;  %v5996_v28 = vrot.slane %v5994_v31, 1  ;;  %v6123_v42 = vrot.slane %v8355_v26, 1  ;;  %v4514_v26 = vld [vmem:[#allocation2 + $0xb0] sm:$0x1] }
 0x43e   : > { %v6319_v31 = vsel %vm1098_vm1, %v6317_v54, %v6318_v61 }
 0x43f   : > { %5056 = vrot.lane.b32.xlu2 %v5005_v55, %s8512_s25  ;;  %v8476_v55 = vld [vmem:[#allocation2 + $0xb4] sm:$0xe]  ;;  %v5997_v60 = vsel %vm719_vm0, %v5992_v14, %v5996_v28 }
 0x440   : > { %v6935_v22 = vpop.f32.mrf.mxu2 }
 0x441   : > { %5294 = vrot.lane.b32.xlu1 %v11772_v6, %s8515_s27  ;;  %v7024_v54 = vpop.f32.mrf.mxu3 }
 0x442   : > { %v6844_v25 = vpop.f32.mrf.mxu1 }
 0x443   : > { %v6845_v11 = vadd.f32 %v11871_v34, %v6844_v25  ;;  %v5283_v39 = vpop.permute.xlu1 %5282 }
 0x444   : > { %v5765_v62 = vpop.permute.xlu0 %5764  ;;  %v6443_v36 = vsel %vm6423_vm2, %v6404_v43, %v5283_v39  ;;  %5776 = vrot.lane.b32.xlu0 %v11830_v15, %s8514_s15  ;;  %v8358_v15 = vor.u32 %v8357_v23, %v11799_v52 }
 0x445   : > { %v6934_v58 = vadd.f32 %v6933_v59, %v6845_v11  ;;  %6873 = vmatmul.bf16.gmra.mxu1 %v6443_v36  ;;  %v5445_v59 = vsel %vm719_vm0, %v11337_v40, %v5444_v57  ;;  %v8477_v11 = vor.u32 %v8476_v55, %v8475_v29  ;;  %v4820_v57 = vunpack.c.l.b16 %v4514_v26 }
 0x446   : > { %v6495_v7 = vsel %vm3302_vm10, %v5445_v59, %v11783_v50  ;;  %v5149_v14 = vrot.slane %v8358_v15, 1  ;;  %v11923_v29 = vpack.c.b16 %v5332_v41, %v5332_v41  ;;  %v5449_v55 = vshll.u32 %v11520_v0, 16 }
 0x447   : > { %v7023_v30 = vadd.f32 %v7022_v48, %v6934_v58  ;;  %5296 = vrot.lane.b32.xlu2 %v11768_v32, %s8515_s27  ;;  %v6125_v32 = vsel %vm1098_vm1, %v6123_v42, %v6124_v49  ;;  %v6535_v52 = vsel %vm6390_vm4, %v6495_v7, %v5765_v62  ;;  %v11911_v48 = vpop.permute.xlu2 %5174  ;;  %v5150_v62 = vrot.slane %v11843_v5, 1  ;;  %v12758_v5 = vld [vmem:[#allocation9_spill] sm:$0xff] }
 0x448   : > { %v11927_v4 = vpack.c.b16 %v4820_v57, %v4820_v57  ;;  %v5633_v49 = vrot.slane %v11923_v29, 1  ;;  %v5451_v15 = vrot.slane %v5449_v55, 1  ;;  %v6373_v59 = vsel %vm3302_vm10, %v12758_v5, %v11821_v19  ;;  %v8212_v57 = vld [vmem:[#allocation2 + $0x78] sm:$0xe]  ;;  %v8360_v5 = vld [vmem:[#allocation2 + $0x84] sm:$0xe] }
 0x449   : > { %vm7102_vm15 = vcmp.ge.f32.partialorder %v7023_v30, 0.0  ;;  %v7134_v25 = vmul.f32 0.01, %v7023_v30  ;;  %6048 = vrot.lane.b32.xlu1 %v5997_v60, %s8515_s27  ;;  %v5151_v42 = vsel %vm1098_vm1, %v5149_v14, %v5150_v62  ;;  %v5447_v7 = vshrl.u32 %v11520_v0, 16  ;;  %v8211_v14 = vld [vmem:[#allocation2 + $0x78] sm:$0xf0] }
 0x44a   : > { %v6846_v2 = vpop.f32.mrf.mxu1  ;;  %v8213_v55 = vor.u32 %v8212_v57, %v8211_v14 }
 0x44b   : > { %v7166_v43 = vsel %vm7102_vm15, %v7023_v30, %v7134_v25  ;;  %v6847_v40 = vadd.f32 %v11871_v34, %v6846_v2  ;;  %v6037_v23 = vpop.permute.xlu1 %6036  ;;  %v5632_v30 = vrot.slane %v8477_v11, 1  ;;  %v11948_v11 = vld [vmem:[#allocation2 + $0xcc] sm:$0xf0] }
 0x44c   : > { %v7198_v39 = vpack.c.bf16 %v7166_v43, %v7166_v43  ;;  %v6341_v36 = vpop.permute.xlu0 %6340  ;;  %v6574_v50 = vsel %vm6423_vm2, %v6535_v52, %v6037_v23  ;;  %6352 = vrot.lane.b32.xlu0 %v6319_v31, %s8512_s25  ;;  %v5454_v31 = vshll.u32 %v11550_v21, 16  ;;  %v5452_v52 = vor.u32 %v5451_v15, %v5447_v7  ;;  %v11946_v23 = vld [vmem:[#allocation2 + $0xcc] sm:$0xff]  }
 0x44d   : > { %v6936_v58 = vadd.f32 %v6935_v22, %v6847_v40  ;;  %6967 = vmatmul.bf16.gmra.mxu2 %v6574_v50  ;;  %v6623_v28 = vsel %vm3302_vm10, %v6125_v32, %v6341_v36  ;;  %v5634_v32 = vsel %vm1098_vm1, %v5632_v30, %v5633_v49  ;;  %v5014_v22 = vshll.u32 %v11927_v4, 16  ;;  %v8313_v36 = vld [vmem:[%s12361_s2] ss:$0 sm:$0xff] }
 0x44e   : > { %7230 = vst.msk [vmem:[%s11917_s10] sm:$0xf] %vm4412_vm13, %v7198_v39  ;;  %7767 = vmatmul.msk.bf16.gmra.mxu3 %vm3579_vm11, %v6623_v28  ;;  %v5456_v0 = vrot.slane %v5454_v31, 1  ;;  %v4645_v39 = vld [vmem:[#allocation2 + $0xd4] sm:$0x1]  ;;  %v6013_v15 = vshll.u32 %v11946_v23, 16 }
 0x44f   : > { %v7025_v61 = vadd.f32 %v7024_v54, %v6936_v58  ;;  %v11944_v19 = vpop.permute.xlu2 %5768  ;;  %v5813_v28 = vunpack.c.l.b16 %v4645_v39  ;;  %v6127_v7 = vrot.slane %v11512_v20, 1  ;;  %v8314_v20 = vld [vmem:[#allocation2 + $0x60] sm:$0xff]  }
 0x450   : > { %v5457_v58 = vsel %vm719_vm0, %v5452_v52, %v5456_v0  ;;  %v6015_v52 = vrot.slane %v6013_v15, 1  ;;  %v8361_v15 = vor.u32 %v8360_v5, %v11567_v53 }
 0x451   : > { %vm7103_vm15 = vcmp.ge.f32.partialorder %v7025_v61, 0.0  ;;  %v7135_v60 = vmul.f32 0.01, %v7025_v61  ;;  %5184 = vrot.lane.b32.xlu1 %v5151_v42, %s8514_s15  ;;  %v11961_v49 = vpack.c.b16 %v5813_v28, %v5813_v28 }
 0x453   : > { %v7167_v25 = vsel %vm7103_vm15, %v7025_v61, %v7135_v60  ;;  %v5173_v26 = vpop.permute.xlu1 %5172  ;;  %v6018_v0 = vshll.u32 %v11961_v49, 16 }
 0x454   : > { %v7199_v2 = vpack.c.bf16 %v7167_v25, %v7167_v25  ;;  %v6406_v41 = vsel %vm6390_vm4, %v6373_v59, %v5173_v26  ;;  %5666 = vrot.lane.b32.xlu0 %v5634_v32, %s8512_s25  ;;  %v6126_v26 = vrot.slane %v8213_v55, 1  ;;  %v8478_v55 = vld [vmem:[#allocation2 + $0xb4] sm:$0xf0] }
 0x455   : > { %v6446_v43 = vsel %vm6423_vm2, %v6406_v41, %v11848_v63  ;;  %v5016_v63 = vrot.slane %v5014_v22, 1  ;;  %v6011_v22 = vshrl.u32 %v11946_v23, 16 }
 0x456   : > { %7231 = vst.msk [vmem:[%s11917_s10 + $0x4] sm:$0xf] %vm4412_vm13, %v7199_v2  ;;  %6878 = vmatmul.bf16.gmra.mxu1 %v6446_v43  ;;  %v5655_v21 = vpop.permute.xlu0 %5654 }
 0x457   : > { %v3727_v40 = vpop.f32.mrf.mxu0  ;;  %v6498_v54 = vsel %vm3302_vm10, %v5457_v58, %v5655_v21  ;;  %v5017_v42 = vsel %vm719_vm0, %v11819_v46, %v5016_v63  ;;  %v11965_v31 = vpop.permute.xlu2 %6344  ;;  %v6128_v63 = vsel %vm1098_vm1, %v6126_v26, %v6127_v7  ;;  %v4515_v58 = vld [vmem:[#allocation2 + $0xbc] sm:$0x1] }
 0x458   : > { %v3728_v50 = vadd.f32 %v8313_v36, %v3727_v40 }
 0x45a   : > { %v3805_v61 = vmul.f32 0.01, %v3728_v50  ;;  %vm3769_vm15 = vcmp.ge.f32.partialorder %v3728_v50, 0.0 }
 0x45b   : > { %v5767_v62 = vpop.permute.xlu1 %5766 }
 0x45c   : > { %v6537_v30 = vsel %vm6390_vm4, %v6498_v54, %v5767_v62  ;;  %5058 = vrot.lane.b32.xlu0 %v5017_v42, %s8512_s25  ;;  %v3841_v2 = vsel %vm3769_vm15, %v3728_v50, %v3805_v61  ;;  %v11977_v62 = vld [vmem:[#allocation2 + $0xb4] sm:$0xff]  }
 0x45d   : > { %v6577_v60 = vsel %vm6423_vm2, %v6537_v30, %v11881_v24  ;;  %v5466_v24 = vshll.u32 %v11612_v35, 16  ;;  %v3919_v21 = vpack.c.bf16 %v3841_v2, %v3841_v2  ;;  %v8479_v61 = vld [vmem:[#allocation2 + $0xb4] sm:$0xe]  ;;  %v6016_v30 = vor.u32 %v6015_v52, %v6011_v22 }
 0x45e   : > { %6972 = vmatmul.bf16.gmra.mxu2 %v6577_v60  ;;  %v5047_v59 = vpop.permute.xlu0 %5046  ;;  %v6020_v60 = vrot.slane %v6018_v0, 1  ;;  %v4821_v2 = vunpack.c.l.b16 %v4515_v58 }
 0x45f   : > { %v3729_v25 = vpop.f32.mrf.mxu0  ;;  %v6375_v14 = vsel %vm3302_vm10, %v8314_v20, %v5047_v59  ;;  %v5468_v54 = vrot.slane %v5466_v24, 1  ;;  %v3991_v59 = vunpack.c.l.b16 %v3919_v21  ;;  %v6129_v21 = vrot.slane %v8361_v15, 1 }
 0x460   : > { %v3730_v32 = vadd.f32 %v8313_v36, %v3729_v25  ;;  %v6938_v41 = vpop.f32.mrf.mxu2  ;;  %v6408_v7 = vsel %vm6390_vm4, %v6375_v14, %v11911_v48  ;;  %v6021_v22 = vsel %vm719_vm0, %v6016_v30, %v6020_v60  ;;  %v11988_v0 = vpack.c.b16 %v4821_v2, %v4821_v2 }
 0x461   : > { %v7027_v28 = vpop.f32.mrf.mxu3  ;;  %v5469_v5 = vsel %vm719_vm0, %v11532_v8, %v5468_v54  ;;  %v6130_v60 = vrot.slane %v11634_v38, 1 }
 0x462   : > { %vm3770_vm9 = vcmp.ge.f32.partialorder %v3730_v32, 0.0  ;;  %v3806_v43 = vmul.f32 0.01, %v3730_v32 }
 0x463   : > { %v6343_v40 = vpop.permute.xlu1 %6342  ;;  %v6849_v39 = vpop.f32.mrf.mxu1 }
 0x464   : > { %v3842_v50 = vsel %vm3770_vm9, %v3730_v32, %v3806_v43  ;;  %v6850_v36 = vadd.f32 %v11871_v34, %v6849_v39  ;;  %v6626_v57 = vsel %vm3302_vm10, %v6128_v63, %v6343_v40  ;;  %5298 = vrot.lane.b32.xlu0 %v11888_v18, %s8515_s27  ;;  %v11983_v39 = vpop.permute.xlu2 %5658 }
 0x465   : > { %v3920_v35 = vpack.c.bf16 %v3842_v50, %v3842_v50  ;;  %7768 = vmatmul.msk.bf16.gmra.mxu3 %vm3579_vm11, %v6626_v57  ;;  %v8480_v50 = vor.u32 %v8479_v61, %v8478_v55 }
 0x466   : > { %v6939_v42 = vadd.f32 %v6938_v41, %v6850_v36  ;;  %v5287_v26 = vpop.permute.xlu0 %5286 }
 0x467   : > { %v3992_v25 = vunpack.c.l.b16 %v3920_v35  ;;  %v6449_v43 = vsel %vm6423_vm2, %v6408_v7, %v5287_v26  ;;  %v5156_v26 = vrot.slane %v11988_v0, 1  ;;  %v6131_v7 = vsel %vm1098_vm1, %v6129_v21, %v6130_v60 }
 0x468   : > { %v7028_v32 = vadd.f32 %v7027_v28, %v6939_v42  ;;  %v6940_v24 = vpop.f32.mrf.mxu2  ;;  %6883 = vmatmul.bf16.gmra.mxu1 %v6449_v43  ;;  %v5478_v60 = vshll.u32 %v11649_v10, 16 }
 0x469   : > { %v4011_v40 = vpack.c.b16 %v3992_v25, %v3991_v59  ;;  %v7029_v42 = vpop.f32.mrf.mxu3  ;;  %v5155_v59 = vrot.slane %v8480_v50, 1  ;;  %v5473_v25 = vshll.u32 %v11631_v27, 16 }
 0x46a   : > { %vm7104_vm9 = vcmp.ge.f32.partialorder %v7028_v32, 0.0  ;;  %v7136_v41 = vmul.f32 0.01, %v7028_v32  ;;  %v5480_v10 = vrot.slane %v5478_v60, 1  ;;  %v8173_v60 = vld [vmem:[#allocation2 + $0xa8] sm:$0xe] }
 0x46b   : > { %v4126_v53 = vshrl.u32 %v4011_v40, 16  ;;  %v5657_v52 = vpop.permute.xlu1 %5656  ;;  %v6851_v48 = vpop.f32.mrf.mxu1  ;;  %v4129_v57 = vshll.u32 %v4011_v40, 16 }
 0x46c   : > { %v7168_v63 = vsel %vm7104_vm9, %v7028_v32, %v7136_v41  ;;  %v6501_v20 = vsel %vm3302_vm10, %v5469_v5, %v5657_v52  ;;  %v6852_v14 = vadd.f32 %v11871_v34, %v6851_v48  ;;  %6052 = vrot.lane.b32.xlu0 %v6021_v22, %s8515_s27  ;;  %v6629_v22 = vsel %vm3302_vm10, %v6131_v7, %v11965_v31  ;;  %v12009_v5 = vpop.permute.xlu2 %5050  ;;  %v7620_v31 = vld [vmem:[%s8606_s11 + $0xc8] sm:$0x1] }
 0x46d   : > { %v4128_v36 = vrot.slane %v4126_v53, 7  ;;  %v7200_v58 = vpack.c.bf16 %v7168_v63, %v7168_v63  ;;  %v6539_v8 = vsel %vm6390_vm4, %v6501_v20, %v11944_v19  ;;  %v5157_v52 = vsel %vm1098_vm1, %v5155_v59, %v5156_v26 }
 0x46e   : > { %v6941_v35 = vadd.f32 %v6940_v24, %v6852_v14  ;;  %v6041_v30 = vpop.permute.xlu0 %6040  ;;  %v5471_v63 = vshrl.u32 %v11631_v27, 16  ;;  %v5475_v20 = vrot.slane %v5473_v25, 1  ;;  %v7682_v27 = vld [vmem:[%s8606_s11 + $0xc0] sm:$0xe] }
 0x46f   : > { %v4131_v28 = vor.u32 %v4129_v57, %v4128_v36  ;;  %v4212_v54 = vsel %vm10539_vm14, %v4128_v36, 0  ;;  %7232 = vst.msk [vmem:[%s11917_s10 + $0x8] sm:$0xf] %vm4412_vm13, %v7200_v58  ;;  %v6580_v15 = vsel %vm6423_vm2, %v6539_v8, %v6041_v30  ;;  %v7511_v36 = vld [vmem:[%s8606_s11 + $0xe4] sm:$0xff]   ;;  %v8214_v8 = vld [vmem:[#allocation2 + $0x90] sm:$0xf0]  ;;  %v6242_v30 = vunpack.c.l.b16 %v7620_v31 }
 0x470   : > { %v4300_v55 = vunpack.c.l.b16 %v4212_v54  ;;  %v7030_v61 = vadd.f32 %v7029_v42, %v6941_v35  ;;  %6977 = vmatmul.bf16.gmra.mxu2 %v6580_v15  ;;  %v12020_v57 = vld [vmem:[%s8606_s11 + $0xe4] sm:$0xf0]  ;;  %v8215_v35 = vld [vmem:[#allocation2 + $0x90] sm:$0xe]  ;;  %v7797_v42 = vld [vmem:[%s8606_s11 + $0xc0] sm:$0xf0] }
 0x471   : > { %v4194_v19 = vsel %vm10539_vm14, 0, %v4131_v28  ;;  %v8216_v15 = vor.u32 %v8215_v35, %v8214_v8 }
 0x472   : > { %v4298_v2 = vunpack.c.l.b16 %v4194_v19  ;;  %v4299_v32 = vunpack.c.h.b16 %v4194_v19  ;;  %v4354_v43 = vpack.c.b16 %v4300_v55, %v4300_v55  ;;  %vm7105_vm15 = vcmp.ge.f32.partialorder %v7030_v61, 0.0  ;;  %v6943_v38 = vpop.f32.mrf.mxu2 }
 0x473   : > { %v7137_v24 = vmul.f32 0.01, %v7030_v61  ;;  %v5049_v40 = vpop.permute.xlu1 %5048  ;;  %v6854_v41 = vpop.f32.mrf.mxu1 }
 0x474   : > { %v4352_v37 = vpack.c.b16 %v4298_v2, %v4298_v2  ;;  %v4353_v53 = vpack.c.b16 %v4299_v32, %v4299_v32  ;;  %4464 = vst.msk [vmem:[#allocation2 + $0xc8] sm:$0x1] %vm4415_vm12, %v4354_v43  ;;  %v6855_v48 = vadd.f32 %v11871_v34, %v6854_v41  ;;  %5188 = vrot.lane.b32.xlu0 %v5157_v52, %s8514_s15  ;;  %v12034_v41 = vpop.permute.xlu2 %5290 }
 0x475   : > { %v7169_v21 = vsel %vm7105_vm15, %v7030_v61, %v7137_v24  ;;  %7769 = vmatmul.msk.bf16.gmra.mxu3 %vm3579_vm11, %v6629_v22  ;;  %v6377_v28 = vsel %vm3302_vm10, %v11621_v1, %v5049_v40  ;;  %v5476_v61 = vor.u32 %v5475_v20, %v5471_v63  ;;  %v7683_v2 = vor.u32 %v7797_v42, %v7682_v27  ;;  %v8172_v27 = vld [vmem:[#allocation2 + $0xa8] sm:$0xf0] }
 0x476   : > { %4462 = vst.msk [vmem:[#allocation2 + $0xc0] sm:$0xf] %vm4412_vm13, %v4352_v37  ;;  %v7201_v14 = vpack.c.bf16 %v7169_v21, %v7169_v21  ;;  %v6944_v50 = vadd.f32 %v6943_v38, %v6855_v48  ;;  %v5177_v58 = vpop.permute.xlu0 %5176  ;;  %v6275_v24 = vpack.c.b16 %v6242_v30, %v6242_v30 }
 0x477   : > { %4463 = vst.msk [vmem:[#allocation2 + $0xc4] sm:$0xf] %vm4412_vm13, %v4353_v53  ;;  %v6410_v59 = vsel %vm6390_vm4, %v6377_v28, %v5177_v58  ;;  %v5481_v48 = vsel %vm719_vm0, %v5476_v61, %v5480_v10  ;;  %v6132_v58 = vrot.slane %v8216_v15, 1 }
 0x478   : > { %7233 = vst.msk [vmem:[%s11917_s10 + $0xc] sm:$0xf] %vm4412_vm13, %v7201_v14  ;;  %v7032_v54 = vpop.f32.mrf.mxu3  ;;  %v6504_v42 = vsel %vm3302_vm10, %v5481_v48, %v11983_v39  ;;  %v7513_v48 = vld [vmem:[%s8606_s11 + $0xec] sm:$0x1] }
 0x479   : > { %v7033_v55 = vadd.f32 %v7032_v54, %v6944_v50  ;;  %v6320_v50 = vrot.slane %v7683_v2, 1  ;;  %v6133_v54 = vrot.slane %v11687_v17, 1 }
 0x47a   : > { %v6945_v32 = vpop.f32.mrf.mxu2 }
 0x47b   : > { %vm7106_vm14 = vcmp.ge.f32.partialorder %v7033_v55, 0.0  ;;  %v7138_v25 = vmul.f32 0.01, %v7033_v55  ;;  %v5289_v19 = vpop.permute.xlu1 %5288  ;;  %v6856_v26 = vpop.f32.mrf.mxu1  ;;  %v4644_v7 = vld [vmem:[#allocation2 + $0xc8] sm:$0x1] }
 0x47c   : > { %v6857_v1 = vadd.f32 %v11871_v34, %v6856_v26  ;;  %v6452_v43 = vsel %vm6423_vm2, %v6410_v59, %v5289_v19  ;;  %v5812_v38 = vunpack.c.l.b16 %v4644_v7  ;;  %2211 = vrot.lane.b32.xlu0 %v7511_v36, %s8511_s24  ;;  %v4580_v63 = vld [vmem:[#allocation2 + $0xc8] sm:$0x1]  ;;  %v6321_v36 = vrot.slane %v6275_v24, 1 }
 0x47d   : > { %v7170_v40 = vsel %vm7106_vm14, %v7033_v55, %v7138_v25  ;;  %6888 = vmatmul.bf16.gmra.mxu1 %v6452_v43  ;;  %v8197_v55 = vld [vmem:[#allocation2 + $0xc0] sm:$0xe]  ;;  %v5333_v61 = vunpack.c.l.b16 %v4580_v63 }
 0x47e   : > { %v7202_v22 = vpack.c.bf16 %v7170_v40, %v7170_v40  ;;  %v12036_v37 = vld [vmem:[#allocation2 + $0xc0] sm:$0xff]   ;;  %v6946_v53 = vadd.f32 %v6945_v32, %v6857_v1  ;;  %v12038_v52 = vpack.c.b16 %v5812_v38, %v5812_v38  ;;  %v5771_v21 = vpop.permute.xlu0 %5770  ;;  %v6322_v17 = vsel %vm1098_vm1, %v6320_v50, %v6321_v36 }
 0x47f   : > { %v6001_v31 = vshll.u32 %v12036_v37, 16  ;;  %5778 = vrot.lane.b32.xlu1 %v12036_v37, %s8514_s15  ;;  %v5999_v8 = vshrl.u32 %v12036_v37, 16  ;;  %v6541_v59 = vsel %vm6390_vm4, %v6504_v42, %v5771_v21  ;;  %v8196_v26 = vld [vmem:[#allocation2 + $0xc0] sm:$0xf0]  ;;  %v8174_v32 = vor.u32 %v8173_v60, %v8172_v27  ;;  %v8363_v42 = vld [vmem:[#allocation2 + $0x9c] sm:$0xe] }
 0x480   : > { %7234 = vst.msk [vmem:[%s11917_s10 + $0x10] sm:$0xf] %vm4412_vm13, %v7202_v22  ;;  %v7034_v20 = vpop.f32.mrf.mxu3  ;;  %v6006_v14 = vshll.u32 %v12038_v52, 16  ;;  %v12059_v38 = vpack.c.b16 %v5333_v61, %v5333_v61  ;;  %v8198_v24 = vor.u32 %v8197_v55, %v8196_v26  ;;  %v6134_v40 = vsel %vm1098_vm1, %v6132_v58, %v6133_v54  ;;  %v12063_v22 = vpop.permute.xlu2 %6044 }
 0x481   : > { %v6003_v35 = vrot.slane %v6001_v31, 1  ;;  %v7035_v28 = vadd.f32 %v7034_v20, %v6946_v53  ;;  %v5490_v31 = vshll.u32 %v11741_v33, 16  ;;  %v5152_v63 = vrot.slane %v8174_v32, 1 }
 0x482   : > { %v6008_v30 = vrot.slane %v6006_v14, 1  ;;  %v6948_v43 = vpop.f32.mrf.mxu2  ;;  %v5153_v20 = vrot.slane %v11927_v4, 1  ;;  %v2106_v14 = vunpack.c.l.b16 %v7513_v48  ;;  %v5635_v36 = vrot.slane %v8198_v24, 1 }
 0x483   : > { %v12052_v25 = vor.u32 %v6003_v35, %v5999_v8  ;;  %vm7107_vm12 = vcmp.ge.f32.partialorder %v7035_v28, 0.0  ;;  %v7139_v15 = vmul.f32 0.01, %v7035_v28  ;;  %v6043_v19 = vpop.permute.xlu1 %6042  ;;  %v5636_v58 = vrot.slane %v12059_v38, 1  ;;  %v8315_v35 = vld [vmem:[#allocation2 + $0x78] sm:$0xff]  }
 0x484   : > { %v6583_v7 = vsel %vm6423_vm2, %v6541_v59, %v6043_v19  ;;  %v5021_v8 = vshll.u32 %v11977_v62, 16  ;;  %v12077_v33 = vpack.c.b16 %v2106_v14, %v2106_v14  ;;  %v5492_v55 = vrot.slane %v5490_v31, 1  ;;  %v8366_v14 = vld [vmem:[%s8606_s11 + $0xe4] sm:$0xe] }
 0x485   : > { %v7171_v2 = vsel %vm7107_vm12, %v7035_v28, %v7139_v15  ;;  %v6009_v39 = vsel %vm719_vm0, %v12052_v25, %v6008_v30  ;;  %6982 = vmatmul.bf16.gmra.mxu2 %v6583_v7  ;;  %v6379_v28 = vsel %vm3302_vm10, %v8315_v35, %v12009_v5  ;;  %v7623_v30 = vld [vmem:[%s8606_s11 + $0xd4] sm:$0x1]  ;;  %v5154_v61 = vsel %vm1098_vm1, %v5152_v63, %v5153_v20  ;;  %v7686_v7 = vld [vmem:[%s8606_s11 + $0xcc] sm:$0xe] }
 0x486   : > { %v7203_v1 = vpack.c.bf16 %v7171_v2, %v7171_v2  ;;  %6050 = vrot.lane.b32.xlu2 %v6009_v39, %s8515_s27  ;;  %v6347_v10 = vpop.permute.xlu0 %6346  ;;  %2213 = vrot.lane.b32.xlu0 %v12077_v33, %s8511_s24  ;;  %v5637_v5 = vsel %vm1098_vm1, %v5635_v36, %v5636_v58  ;;  %v5023_v15 = vrot.slane %v5021_v8, 1  ;;  %v6245_v2 = vunpack.c.l.b16 %v7623_v30  ;;  %v7549_v39 = vld [vmem:[%s8606_s11 + $0xec] sm:$0x3] }
 0x487   : > { %6354 = vrot.lane.b32.xlu1 %v6322_v17, %s8512_s25  ;;  %v6632_v53 = vsel %vm3302_vm10, %v6134_v40, %v6347_v10  ;;  %v7798_v17 = vld [vmem:[%s8606_s11 + $0xcc] sm:$0xf0]  ;;  %v5493_v10 = vsel %vm719_vm0, %v11712_v51, %v5492_v55  ;;  %v8364_v31 = vor.u32 %v8363_v42, %v11694_v56 }
 0x488   : > { %7235 = vst.msk [vmem:[%s11917_s10 + $0x14] sm:$0xf] %vm4412_vm13, %v7203_v1  ;;  %7770 = vmatmul.msk.bf16.gmra.mxu3 %vm3579_vm11, %v6632_v53  ;;  %v7037_v21 = vpop.f32.mrf.mxu3  ;;  %v5026_v1 = vshll.u32 %v11988_v0, 16  ;;  %v12096_v40 = vpop.permute.xlu2 %5180  ;;  %v6277_v51 = vpack.c.b16 %v6245_v2, %v6245_v2  ;;  %v5502_v2 = vshll.u32 %v11804_v47, 16  ;;  %v8217_v47 = vld [vmem:[#allocation2 + $0xa8] sm:$0xf0] }
 0x489   : > { %v6135_v30 = vrot.slane %v8364_v31, 1 }
 0x48a   : > { %v6859_v50 = vpop.f32.mrf.mxu1  ;;  %v6950_v32 = vpop.f32.mrf.mxu2 }
 0x48b   : > { %v6860_v54 = vadd.f32 %v11871_v34, %v6859_v50  ;;  %v5179_v27 = vpop.permute.xlu1 %5178 }
 0x48c   : > { %v6412_v4 = vsel %vm6390_vm4, %v6379_v28, %v5179_v27  ;;  %v5028_v28 = vrot.slane %v5026_v1, 1 }
 0x48d   : > { %v6949_v60 = vadd.f32 %v6948_v43, %v6860_v54  ;;  %v6455_v59 = vsel %vm6423_vm2, %v6412_v4, %v12034_v41  ;;  %v5019_v41 = vshrl.u32 %v11977_v62, 16  ;;  %v2628_v43 = vunpack.c.l.b16 %v7549_v39  ;;  %v7459_v54 = vld [vmem:[%s8606_s11 + $0xe0] sm:$0x3] }
 0x48e   : > { %5186 = vrot.lane.b32.xlu2 %v5154_v61, %s8514_s15  ;;  %6893 = vmatmul.bf16.gmra.mxu1 %v6455_v59  ;;  %v5661_v26 = vpop.permute.xlu0 %5660  ;;  %v12124_v39 = vor.u32 %v8366_v14, %v12020_v57  ;;  %v12759_v14 = vld [vmem:[#allocation112_spill] sm:$0xff] }
 0x48f   : > { %v7038_v19 = vadd.f32 %v7037_v21, %v6949_v60  ;;  %5668 = vrot.lane.b32.xlu1 %v5637_v5, %s8512_s25  ;;  %v5024_v48 = vor.u32 %v5023_v15, %v5019_v41  ;;  %v7687_v21 = vor.u32 %v7798_v17, %v7686_v7  ;;  %v12099_v63 = vpack.c.b16 %v2628_v43, %v2628_v43 }
 0x490   : > { %v6507_v0 = vsel %vm3302_vm10, %v5493_v10, %v5661_v26  ;;  %v7039_v50 = vpop.f32.mrf.mxu3  ;;  %v5497_v60 = vshll.u32 %v11772_v6, 16  ;;  %v6324_v5 = vrot.slane %v6277_v51, 1  ;;  %v5495_v7 = vshrl.u32 %v11772_v6, 16 }
 0x491   : > { %vm7108_vm9 = vcmp.ge.f32.partialorder %v7038_v19, 0.0  ;;  %v7140_v24 = vmul.f32 0.01, %v7038_v19  ;;  %v2699_v42 = vrot.slane %v12099_v63, 1  ;;  %v5029_v4 = vsel %vm719_vm0, %v5024_v48, %v5028_v28 }
 0x492   : > { %v6861_v53 = vpop.f32.mrf.mxu1  ;;  %v6323_v59 = vrot.slane %v7687_v21, 1  ;;  %v5499_v17 = vrot.slane %v5497_v60, 1  ;;  %v5504_v28 = vrot.slane %v5502_v2, 1  ;;  %v5514_v63 = vshll.u32 %v11824_v3, 16 }
 0x493   : > { %v7172_v20 = vsel %vm7108_vm9, %v7038_v19, %v7140_v24  ;;  %v6862_v36 = vadd.f32 %v11871_v34, %v6861_v53  ;;  %v5773_v58 = vpop.permute.xlu1 %5772  ;;  %2771 = vrot.lane.b32.xlu0 %v2699_v42, %s8512_s25 }
 0x494   : > { %v7204_v8 = vpack.c.bf16 %v7172_v20, %v7172_v20  ;;  %v6543_v35 = vsel %vm6390_vm4, %v6507_v0, %v5773_v58  ;;  %v6325_v43 = vsel %vm1098_vm1, %v6323_v59, %v6324_v5  ;;  %v5500_v31 = vor.u32 %v5499_v17, %v5495_v7  ;;  %v8218_v20 = vld [vmem:[#allocation2 + $0xa8] sm:$0xe] }
 0x495   : > { %v6951_v27 = vadd.f32 %v6950_v32, %v6862_v36  ;;  %v6586_v56 = vsel %vm6423_vm2, %v6543_v35, %v12063_v22  ;;  %v1854_v22 = vunpack.c.l.b16 %v7459_v54  ;;  %v2510_v58 = vshll.u32 %v12124_v39, 16 }
 0x496   : > { %7236 = vst.msk [vmem:[%s11917_s10 + $0x18] sm:$0xf] %vm4412_vm13, %v7204_v8  ;;  %5780 = vrot.lane.b32.xlu2 %v11946_v23, %s8514_s15  ;;  %6987 = vmatmul.bf16.gmra.mxu2 %v6586_v56  ;;  %v5053_v61 = vpop.permute.xlu0 %5052  ;;  %v6136_v23 = vrot.slane %v11718_v9, 1  ;;  %v5775_v9 = vpop.permute.xlu2 %5774  ;;  %v8219_v54 = vor.u32 %v8218_v20, %v8217_v47  ;;  %v5505_v56 = vsel %vm719_vm0, %v5500_v31, %v5504_v28  ;;  %v6139_v7 = vrot.slane %v11789_v13, 1 }
 0x497   : > { %v7040_v55 = vadd.f32 %v7039_v50, %v6951_v27  ;;  %5060 = vrot.lane.b32.xlu1 %v5029_v4, %s8512_s25  ;;  %v1872_v24 = vpack.c.b16 %v1854_v22, %v1854_v22  ;;  %v6381_v53 = vsel %vm3302_vm10, %v11720_v16, %v5053_v61  ;;  %v1924_v50 = vrot.slane %v12759_v14, 1  ;;  %v8316_v14 = vld [vmem:[#allocation2 + $0x90] sm:$0xff]  }
 0x498   : > { %v6953_v15 = vpop.f32.mrf.mxu2  ;;  %v6137_v26 = vsel %vm1098_vm1, %v6135_v30, %v6136_v23  ;;  %v6414_v16 = vsel %vm6390_vm4, %v6381_v53, %v12096_v40  ;;  %v2508_v30 = vshrl.u32 %v12124_v39, 16  ;;  %v2512_v60 = vrot.slane %v2510_v58, 1  ;;  %v8369_v58 = vld [vmem:[#allocation2 + $0xb4] sm:$0xe] }
 0x499   : > { %vm7109_vm15 = vcmp.ge.f32.partialorder %v7040_v55, 0.0  ;;  %v7141_v19 = vmul.f32 0.01, %v7040_v55  ;;  %v7042_v21 = vpop.f32.mrf.mxu3  ;;  %v1925_v36 = vrot.slane %v1872_v24, 1  ;;  %v2698_v24 = vrot.slane %v12124_v39, 1 }
 0x49b   : > { %v7173_v32 = vsel %vm7109_vm15, %v7040_v55, %v7141_v19  ;;  %v6349_v41 = vpop.permute.xlu1 %6348  ;;  %v6864_v1 = vpop.f32.mrf.mxu1  ;;  %v1926_v40 = vsel %vm1098_vm1, %v1924_v50, %v1925_v36  ;;  %v2515_v55 = vshll.u32 %v12077_v33, 16  ;;  %v2700_v39 = vsel %vm1098_vm1, %v2698_v24, %v2699_v42 }
 0x49c   : > { %v7205_v10 = vpack.c.bf16 %v7173_v32, %v7173_v32  ;;  %v6865_v6 = vadd.f32 %v11871_v34, %v6864_v1  ;;  %v6635_v48 = vsel %vm3302_vm10, %v6137_v26, %v6349_v41  ;;  %v6138_v26 = vrot.slane %v8219_v54, 1 }
 0x49d   : > { %7771 = vmatmul.msk.bf16.gmra.mxu3 %vm3579_vm11, %v6635_v48  ;;  %v2513_v32 = vor.u32 %v2512_v60, %v2508_v30  ;;  %v2517_v41 = vrot.slane %v2515_v55, 1  ;;  %v8370_v60 = vor.u32 %v8369_v58, %v11832_v45 }
 0x49e   : > { %7237 = vst.msk [vmem:[%s11917_s10 + $0x1c] sm:$0xf] %vm4412_vm13, %v7205_v10  ;;  %v6954_v57 = vadd.f32 %v6953_v15, %v6865_v6  ;;  %6356 = vrot.lane.b32.xlu2 %v6325_v43, %s8512_s25  ;;  %v5293_v0 = vpop.permute.xlu0 %5292  ;;  %v6351_v23 = vpop.permute.xlu2 %6350  ;;  %v6140_v13 = vsel %vm1098_vm1, %v6138_v26, %v6139_v7  ;;  %v6142_v7 = vrot.slane %v11865_v12, 1  ;;  %v12194_v12 = vld [vmem:[%s12363_s4] ss:$0 sm:$0xff] }
 0x49f   : > { %5300 = vrot.lane.b32.xlu1 %v12036_v37, %s8515_s27  ;;  %v6458_v8 = vsel %vm6423_vm2, %v6414_v16, %v5293_v0  ;;  %v2518_v48 = vsel %vm719_vm0, %v2513_v32, %v2517_v41 }
 0x4a0   : > { %v7043_v51 = vadd.f32 %v7042_v21, %v6954_v57  ;;  %v6955_v35 = vpop.f32.mrf.mxu2  ;;  %6898 = vmatmul.bf16.gmra.mxu1 %v6458_v8  ;;  %v6638_v21 = vsel %vm3302_vm10, %v6140_v13, %v6351_v23 }
 0x4a1   : > { %v7044_v17 = vpop.f32.mrf.mxu3 }
 0x4a2   : > { %vm7110_vm14 = vcmp.ge.f32.partialorder %v7043_v51, 0.0  ;;  %v7142_v27 = vmul.f32 0.01, %v7043_v51 }
 0x4a3   : > { %v5663_v37 = vpop.permute.xlu1 %5662  ;;  %v6866_v4 = vpop.f32.mrf.mxu1 }
 0x4a4   : > { %v7174_v61 = vsel %vm7110_vm14, %v7043_v51, %v7142_v27  ;;  %v6510_v59 = vsel %vm3302_vm10, %v5505_v56, %v5663_v37  ;;  %v6867_v5 = vadd.f32 %v11871_v34, %v6866_v4  ;;  %v2519_v51 = vshrl.u32 %v12077_v33, 16 }
 0x4a5   : > { %v7206_v22 = vpack.c.bf16 %v7174_v61, %v7174_v61  ;;  %v6545_v15 = vsel %vm6390_vm4, %v6510_v59, %v5775_v9  ;;  %v5516_v4 = vrot.slane %v5514_v63, 1 }
 0x4a6   : > { %v6956_v19 = vadd.f32 %v6955_v35, %v6867_v5  ;;  %1995 = vrot.lane.b32.xlu2 %v1926_v40, %s8509_s16  ;;  %v6047_v2 = vpop.permute.xlu0 %6046  ;;  %v5665_v16 = vpop.permute.xlu2 %5664 }
 0x4a7   : > { %7238 = vst.msk [vmem:[%s11917_s10 + $0x20] sm:$0xf] %vm4412_vm13, %v7206_v22  ;;  %1997 = vrot.lane.b32.xlu1 %v1925_v36, %s8509_s16  ;;  %v6589_v43 = vsel %vm6423_vm2, %v6545_v15, %v6047_v2  ;;  %v5517_v61 = vsel %vm719_vm0, %v11819_v46, %v5516_v4 }
 0x4a8   : > { %v7045_v1 = vadd.f32 %v7044_v17, %v6956_v19  ;;  %6992 = vmatmul.bf16.gmra.mxu2 %v6589_v43  ;;  %v6141_v19 = vrot.slane %v8370_v60, 1 }
 0x4a9   : > { %v6958_v10 = vpop.f32.mrf.mxu2 }
 0x4aa   : > { %vm7111_vm12 = vcmp.ge.f32.partialorder %v7045_v1, 0.0  ;;  %v7143_v9 = vmul.f32 0.01, %v7045_v1  ;;  %v6143_v46 = vsel %vm1098_vm1, %v6141_v19, %v6142_v7 }
 0x4ab   : > { %v5055_v53 = vpop.permute.xlu1 %5054  ;;  %v6869_v6 = vpop.f32.mrf.mxu1 }
 0x4ac   : > { %v7175_v47 = vsel %vm7111_vm12, %v7045_v1, %v7143_v9  ;;  %v6870_v57 = vadd.f32 %v11871_v34, %v6869_v6  ;;  %v6383_v50 = vsel %vm3302_vm10, %v8316_v14, %v5055_v53 }
 0x4ad   : > { %v7207_v31 = vpack.c.bf16 %v7175_v47, %v7175_v47  ;;  %7772 = vmatmul.msk.bf16.gmra.mxu3 %vm3579_vm11, %v6638_v21 }
 0x4ae   : > { %2589 = vrot.lane.b32.xlu2 %v2518_v48, %s8510_s17  ;;  %v6959_v20 = vadd.f32 %v6958_v10, %v6870_v57  ;;  %v5183_v0 = vpop.permute.xlu0 %5182  ;;  %v5057_v5 = vpop.permute.xlu2 %5056 }
 0x4af   : > { %7239 = vst.msk [vmem:[%s11917_s10 + $0x24] sm:$0xf] %vm4412_vm13, %v7207_v31  ;;  %2769 = vrot.lane.b32.xlu1 %v2700_v39, %s8512_s25  ;;  %v6416_v8 = vsel %vm6390_vm4, %v6383_v50, %v5183_v0  ;;  %v6385_v24 = vsel %vm3302_vm10, %v11797_v44, %v5057_v5  ;;  %v5521_v5 = vshll.u32 %v11888_v18, 16 }
 0x4b0   : > { %v7047_v36 = vpop.f32.mrf.mxu3 }
 0x4b1   : > { %v7048_v42 = vadd.f32 %v7047_v36, %v6959_v20  ;;  %v6960_v27 = vpop.f32.mrf.mxu2 }
 0x4b3   : > { %vm7112_vm9 = vcmp.ge.f32.partialorder %v7048_v42, 0.0  ;;  %v7144_v35 = vmul.f32 0.01, %v7048_v42  ;;  %v5295_v28 = vpop.permute.xlu1 %5294  ;;  %v6871_v54 = vpop.f32.mrf.mxu1 }
 0x4b4   : > { %v6872_v56 = vadd.f32 %v11871_v34, %v6871_v54  ;;  %v6461_v37 = vsel %vm6423_vm2, %v6416_v8, %v5295_v28  ;;  %v6513_v34 = vsel %vm3302_vm10, %v5517_v61, %v5665_v16 }
 0x4b5   : > { %v7176_v40 = vsel %vm7112_vm9, %v7048_v42, %v7144_v35  ;;  %6903 = vmatmul.bf16.gmra.mxu1 %v6461_v37 }
 0x4b6   : > { %v7208_v30 = vpack.c.bf16 %v7176_v40, %v7176_v40  ;;  %v6961_v3 = vadd.f32 %v6960_v27, %v6872_v56  ;;  %2591 = vrot.lane.b32.xlu2 %v2519_v51, %s8510_s17  ;;  %v5777_v33 = vpop.permute.xlu0 %5776  ;;  %v5297_v13 = vpop.permute.xlu2 %5296  ;;  %s8394_s17 = scalar_lea.hbm %s12364_s5, 256 }
 0x4b7   : > { %v6547_v22 = vsel %vm6390_vm4, %v6513_v34, %v5777_v33 }
 0x4b8   : > { %7240 = vst.msk [vmem:[%s11917_s10 + $0x28] sm:$0xf] %vm4412_vm13, %v7208_v30  ;;  %v7049_v55 = vpop.f32.mrf.mxu3 }
 0x4b9   : > { %v7050_v59 = vadd.f32 %v7049_v55, %v6961_v3 }
 0x4ba   : > { %v6963_v2 = vpop.f32.mrf.mxu2 }
 0x4bb   : > { %vm7113_vm15 = vcmp.ge.f32.partialorder %v7050_v59, 0.0  ;;  %v7145_v15 = vmul.f32 0.01, %v7050_v59  ;;  %v6049_v23 = vpop.permute.xlu1 %6048 }
 0x4bc   : > { %v6592_v26 = vsel %vm6423_vm2, %v6547_v22, %v6049_v23 }
 0x4bd   : > { %v7177_v45 = vsel %vm7113_vm15, %v7050_v59, %v7145_v15  ;;  %6997 = vmatmul.bf16.gmra.mxu2 %v6592_v26  ;;  %v5523_v26 = vrot.slane %v5521_v5, 1 }
 0x4be   : > { %v7209_v17 = vpack.c.bf16 %v7177_v45, %v7177_v45  ;;  %v6353_v32 = vpop.permute.xlu0 %6352  ;;  %v8318_v45 = vld [vmem:[#allocation2 + $0xa8] sm:$0xff]  }
 0x4bf   : > { %v6641_v41 = vsel %vm3302_vm10, %v6143_v46, %v6353_v32 }
 0x4c0   : > { %7241 = vst.msk [vmem:[%s11917_s10 + $0x2c] sm:$0xf] %vm4412_vm13, %v7209_v17  ;;  %7773 = vmatmul.msk.bf16.gmra.mxu3 %vm3579_vm11, %v6641_v41  ;;  %v7052_v1 = vpop.f32.mrf.mxu3 }
 0x4c2   : > { %v6874_v43 = vpop.f32.mrf.mxu1  ;;  %v6965_v47 = vpop.f32.mrf.mxu2 }
 0x4c3   : > { %v6875_v9 = vadd.f32 %v12194_v12, %v6874_v43  ;;  %v5185_v10 = vpop.permute.xlu1 %5184  ;;  %v5526_v43 = vshll.u32 %v11923_v29, 16 }
 0x4c4   : > { %v6418_v53 = vsel %vm6390_vm4, %v6385_v24, %v5185_v10 }
 0x4c5   : > { %v6964_v6 = vadd.f32 %v6963_v2, %v6875_v9  ;;  %v6464_v48 = vsel %vm6423_vm2, %v6418_v53, %v5297_v13 }
 0x4c6   : > { %6908 = vmatmul.bf16.gmra.mxu1 %v6464_v48  ;;  %v5667_v8 = vpop.permute.xlu0 %5666 }
 0x4c7   : > { %v7053_v21 = vadd.f32 %v7052_v1, %v6964_v6  ;;  %v5519_v1 = vshrl.u32 %v11888_v18, 16  ;;  %v5528_v6 = vrot.slane %v5526_v43, 1 }
 0x4c8   : > { %v7054_v31 = vpop.f32.mrf.mxu3 }
 0x4c9   : > { %vm7114_vm14 = vcmp.ge.f32.partialorder %v7053_v21, 0.0  ;;  %v7146_v44 = vmul.f32 0.01, %v7053_v21  ;;  %v5524_v10 = vor.u32 %v5523_v26, %v5519_v1 }
 0x4ca   : > { %v6876_v57 = vpop.f32.mrf.mxu1 }
 0x4cb   : > { %v7178_v39 = vsel %vm7114_vm14, %v7053_v21, %v7146_v44  ;;  %v6877_v20 = vadd.f32 %v12194_v12, %v6876_v57  ;;  %v8220_v21 = vld [vmem:[#allocation2 + $0xc0] sm:$0xf0]  ;;  %v5529_v18 = vsel %vm719_vm0, %v5524_v10, %v5528_v6 }
 0x4cc   : > { %v7210_v0 = vpack.c.bf16 %v7178_v39, %v7178_v39 }
 0x4cd   : > { %v6966_v16 = vadd.f32 %v6965_v47, %v6877_v20  ;;  %v8221_v47 = vld [vmem:[#allocation2 + $0xc0] sm:$0xe] }
 0x4ce   : > { %7242 = vst.msk [vmem:[%s11917_s10 + $0x30] sm:$0xf] %vm4412_vm13, %v7210_v0  ;;  %v5059_v33 = vpop.permute.xlu0 %5058 }
 0x4cf   : > { %v7055_v14 = vadd.f32 %v7054_v31, %v6966_v16  ;;  %v6387_v7 = vsel %vm3302_vm10, %v8318_v45, %v5059_v33  ;;  %v6516_v31 = vsel %vm3302_vm10, %v5529_v18, %v5667_v8  ;;  %v8222_v16 = vor.u32 %v8221_v47, %v8220_v21 }
 0x4d0   : > { %v6968_v50 = vpop.f32.mrf.mxu2 }
 0x4d1   : > { %vm7115_vm12 = vcmp.ge.f32.partialorder %v7055_v14, 0.0  ;;  %v7147_v36 = vmul.f32 0.01, %v7055_v14  ;;  %v7057_v35 = vpop.f32.mrf.mxu3 }
 0x4d3   : > { %v7179_v58 = vsel %vm7115_vm12, %v7055_v14, %v7147_v36  ;;  %v6879_v63 = vpop.f32.mrf.mxu1 }
 0x4d4   : > { %v7211_v42 = vpack.c.bf16 %v7179_v58, %v7179_v58  ;;  %v6880_v51 = vadd.f32 %v12194_v12, %v6879_v63 }
 0x4d6   : > { %7243 = vst.msk [vmem:[%s11917_s10 + $0x34] sm:$0xf] %vm4412_vm13, %v7211_v42  ;;  %v6969_v28 = vadd.f32 %v6968_v50, %v6880_v51  ;;  %v5299_v46 = vpop.permute.xlu0 %5298  ;;  %v6144_v42 = vrot.slane %v8222_v16, 1  ;;  %v6145_v51 = vrot.slane %v12038_v52, 1 }
 0x4d8   : > { %v7058_v54 = vadd.f32 %v7057_v35, %v6969_v28  ;;  %v6970_v27 = vpop.f32.mrf.mxu2  ;;  %v8372_v35 = vld [vmem:[#allocation2 + $0xcc] sm:$0xe] }
 0x4d9   : > { %v7059_v60 = vpop.f32.mrf.mxu3  ;;  %v8373_v52 = vor.u32 %v8372_v35, %v11948_v11 }
 0x4da   : > { %vm7116_vm9 = vcmp.ge.f32.partialorder %v7058_v54, 0.0  ;;  %v7148_v56 = vmul.f32 0.01, %v7058_v54 }
 0x4db   : > { %v6881_v37 = vpop.f32.mrf.mxu1  ;;  %v6147_v5 = vrot.slane %v8373_v52, 1  ;;  %v12767_v52 = vld [vmem:[#allocation60_spill] sm:$0xff] }
 0x4dc   : > { %v7180_v4 = vsel %vm7116_vm9, %v7058_v54, %v7148_v56  ;;  %v6882_v40 = vadd.f32 %v12194_v12, %v6881_v37  ;;  %v6146_v56 = vsel %vm1098_vm1, %v6144_v42, %v6145_v51  ;;  %v12760_v42 = vld [vmem:[#allocation26_spill] sm:$0xff] }
 0x4dd   : > { %v7212_v30 = vpack.c.bf16 %v7180_v4, %v7180_v4  ;;  %v12761_v51 = vunpack.c.l.b16 %v12760_v42 }
 0x4de   : > { %v6971_v3 = vadd.f32 %v6970_v27, %v6882_v40  ;;  %v6053_v54 = vpop.permute.xlu0 %6052  ;;  %v5538_v40 = vshll.u32 %v12059_v38, 16 }
 0x4df   : > { %7244 = vst.msk [vmem:[%s11917_s10 + $0x38] sm:$0xf] %vm4412_vm13, %v7212_v30 }
 0x4e0   : > { %v7060_v55 = vadd.f32 %v7059_v60, %v6971_v3  ;;  %v6051_v61 = vpop.permute.xlu2 %6050 }
 0x4e1   : > { %v6973_v34 = vpop.f32.mrf.mxu2 }
 0x4e2   : > { %vm7117_vm15 = vcmp.ge.f32.partialorder %v7060_v55, 0.0  ;;  %v7149_v59 = vmul.f32 0.01, %v7060_v55 }
 0x4e4   : > { %v7181_v22 = vsel %vm7117_vm15, %v7060_v55, %v7149_v59  ;;  %v5540_v55 = vrot.slane %v5538_v40, 1 }
 0x4e5   : > { %v7213_v15 = vpack.c.bf16 %v7181_v22, %v7181_v22  ;;  %v6884_v23 = vpop.f32.mrf.mxu1 }
 0x4e6   : > { %v6885_v19 = vadd.f32 %v12194_v12, %v6884_v23 }
 0x4e7   : > { %7245 = vst.msk [vmem:[%s11917_s10 + $0x3c] sm:$0xf] %vm4412_vm13, %v7213_v15  ;;  %v5541_v15 = vsel %vm719_vm0, %v12052_v25, %v5540_v55  ;;  %v12768_v55 = vld [vmem:[#allocation142_spill] sm:$0xff] }
 0x4e8   : > { %v5187_v17 = vpop.permute.xlu2 %5186  ;;  %v7062_v2 = vpop.f32.mrf.mxu3  ;;  %v6974_v41 = vadd.f32 %v6973_v34, %v6885_v19  ;;  %v6148_v34 = vrot.slane %v11961_v49, 1 }
 0x4e9   : > { %v6420_v32 = vsel %vm6390_vm4, %v6387_v7, %v5187_v17  ;;  %v6975_v53 = vpop.f32.mrf.mxu2  ;;  %v5189_v19 = vpop.permute.xlu0 %5188 }
 0x4ea   : > { %v6467_v24 = vsel %vm6423_vm2, %v6420_v32, %v5299_v46  ;;  %v7063_v9 = vadd.f32 %v7062_v2, %v6974_v41  ;;  %v6149_v32 = vsel %vm1098_vm1, %v6147_v5, %v6148_v34  ;;  %v12769_v34 = vld [vmem:[#allocation91_spill] sm:$0xff] }
 0x4eb   : > { %6913 = vmatmul.bf16.gmra.mxu1 %v6467_v24 }
 0x4ec   : > { %vm7118_vm14 = vcmp.ge.f32.partialorder %v7063_v9, 0.0  ;;  %v7150_v13 = vmul.f32 0.01, %v7063_v9 }
 0x4ed   : > { %v6886_v48 = vpop.f32.mrf.mxu1 }
 0x4ee   : > { %v7182_v44 = vsel %vm7118_vm14, %v7063_v9, %v7150_v13  ;;  %v6887_v57 = vadd.f32 %v12194_v12, %v6886_v48 }
 0x4ef   : > { %v7214_v39 = vpack.c.bf16 %v7182_v44, %v7182_v44 }
 0x4f0   : > { %v7064_v29 = vpop.f32.mrf.mxu3  ;;  %v6976_v0 = vadd.f32 %v6975_v53, %v6887_v57  ;;  %v5781_v58 = vpop.permute.xlu2 %5780 }
 0x4f1   : > { %v5779_v20 = vpop.permute.xlu1 %5778  ;;  %7246 = vst.msk [vmem:[%s11917_s10 + $0x40] sm:$0xf] %vm4412_vm13, %v7214_v39  ;;  %v2212_v13 = vpop.permute.xlu0 %2211  ;;  %v8319_v39 = vld [vmem:[%s8606_s11 + $0xcc] sm:$0xff]   ;;  %s7817_s11 = sshll.u32 %s8495_s21, 7  ;;  %s7263_s21 = scalar_lea.sflag [#allocation4], %s229_s8 }
 0x4f2   : > { %v6549_v14 = vsel %vm6390_vm4, %v6516_v31, %v5779_v20  ;;  %v7065_v50 = vadd.f32 %v7064_v29, %v6976_v0  ;;  %v626_v29 = vunpack.c.l.b16 %v8319_v39  ;;  %s7276_s27 = scalar_lea.hbm %s12364_s5, %s7817_s11 }
 0x4f3   : > { %v6595_v36 = vsel %vm6423_vm2, %v6549_v14, %v6051_v61  ;;  %v6978_v28 = vpop.f32.mrf.mxu2  ;;  %s7279_s7 = sshll.u32 %s7276_s27, 4  ;;  %s7280_s7 = int_to_ptr.hbm [resolvable:$true] %s7279_s7 }
 0x4f4   : > { %7002 = vmatmul.bf16.gmra.mxu2 %v6595_v36  ;;  %vm7119_vm12 = vcmp.ge.f32.partialorder %v7065_v50, 0.0  ;;  %v7151_v63 = vmul.f32 0.01, %v7065_v50  ;;  %v663_v35 = vpack.c.b16 %v12761_v51, %v626_v29  ;;  %s8388_s9 = sshra.s32 %s7280_s7, 4  ;;  %s8389_s9 = int_to_ptr.hbm [resolvable:$true] %s8388_s9 }
 0x4f5   : > { %s8390_s13 = scalar_lea.hbm %s8389_s9, 128  ;;  %p8395_p1 = scmp.lt.s32.totalorder %s8389_s9, %s12364_s5 }
 0x4f6   : > { %v7183_v8 = vsel %vm7119_vm12, %v7065_v50, %v7151_v63  ;;  %p8391_p12 = scmp.ne.s32.totalorder %s8389_s9, %s8390_s13  ;;  %p8396_p2 = scmp.lt.s32.totalorder %s8394_s17, %s8390_s13 }
 0x4f7   : > { %v7215_v27 = vpack.c.bf16 %v7183_v8, %v7183_v8 }
 0x4f8   : > { %v7067_v4 = vpop.f32.mrf.mxu3  ;;  %v6357_v61 = vpop.permute.xlu2 %6356  ;;  %p8392_p13 = pnand %p8391_p12, %p8586_p4  ;;  %p8397_p3 = por %p8396_p2, %p8395_p1 }
 0x4f9   : > { %v6355_v37 = vpop.permute.xlu1 %6354  ;;  %7247 = vst.msk [vmem:[%s11917_s10 + $0x44] sm:$0xf] %vm4412_vm13, %v7215_v27  ;;  %v6647_v1 = vsel %vm3302_vm10, %v6149_v32, %v6357_v61  ;;  %v2214_v50 = vpop.permute.xlu0 %2213 }
 0x4fa   : > { %v6644_v30 = vsel %vm3302_vm10, %v6146_v56, %v6355_v37  ;;  %v6889_v3 = vpop.f32.mrf.mxu1  ;;  %v12764_v37 = vld [vmem:[#allocation82_spill] sm:$0xff]  ;;  %p8393_p0 = pneg %p8392_p13 }
 0x4fb   : > { %v6890_v33 = vadd.f32 %v12194_v12, %v6889_v3  ;;  %7774 = vmatmul.msk.bf16.gmra.mxu3 %vm3579_vm11, %v6644_v30  ;;  %v6980_v22 = vpop.f32.mrf.mxu2  ;;  %v12766_v30 = vld [vmem:[#allocation116_spill] sm:$0xff] }
 0x4fc   : > { %p8398_p5 = pnand %p8397_p3, %p8393_p0 }
 0x4fd   : > { %v6979_v60 = vadd.f32 %v6978_v28, %v6890_v33  ;;  %v12762_v28 = vld [vmem:[#allocation51_spill] sm:$0xff] }
 0x4ff   : > { %v7068_v59 = vadd.f32 %v7067_v4, %v6979_v60  ;;  %v2861_v60 = vsel %vm2773_vm3, %v663_v35, %v12767_v52 }
 0x500   : > { %v7069_v7 = vpop.f32.mrf.mxu3  ;;  %v1996_v43 = vpop.permute.xlu2 %1995 }
 0x501   : > { %vm7120_vm9 = vcmp.ge.f32.partialorder %v7068_v59, 0.0  ;;  %v7152_v38 = vmul.f32 0.01, %v7068_v59  ;;  %v5669_v23 = vpop.permute.xlu1 %5668 }
 0x502   : > { %v6519_v26 = vsel %vm3302_vm10, %v5541_v15, %v5669_v23  ;;  %v6891_v45 = vpop.f32.mrf.mxu1  ;;  %v12771_v23 = vld [vmem:[#allocation123_spill] sm:$0xff] }
 0x503   : > { %v7184_v11 = vsel %vm7120_vm9, %v7068_v59, %v7152_v38  ;;  %v6892_v17 = vadd.f32 %v12194_v12, %v6891_v45  ;;  %v6551_v2 = vsel %vm6390_vm4, %v6519_v26, %v5781_v58  ;;  %v12772_v45 = vld [vmem:[#allocation149_spill] sm:$0xff] }
 0x504   : > { %v7216_v49 = vpack.c.bf16 %v7184_v11, %v7184_v11  ;;  %v6598_v46 = vsel %vm6423_vm2, %v6551_v2, %v6053_v54  ;;  %v12763_v54 = vld [vmem:[#allocation29_spill] sm:$0xff] }
 0x505   : > { %v6981_v41 = vadd.f32 %v6980_v22, %v6892_v17  ;;  %7007 = vmatmul.bf16.gmra.mxu2 %v6598_v46  ;;  %v2863_v27 = vsel %vm2773_vm3, %v12763_v54, %v12762_v28  ;;  %vm12773_vm3 = vcmask 228352   ;;  %v2772_v32 = vpop.permute.xlu0 %2771 }
 0x506   : > { %7248 = vst.msk [vmem:[%s11917_s10 + $0x48] sm:$0xf] %vm4412_vm13, %v7216_v49 }
 0x507   : > { %v7070_v25 = vadd.f32 %v7069_v7, %v6981_v41 }
 0x508   : > { %v6983_v10 = vpop.f32.mrf.mxu2  ;;  %v2590_v0 = vpop.permute.xlu2 %2589 }
 0x509   : > { %vm7121_vm15 = vcmp.ge.f32.partialorder %v7070_v25, 0.0  ;;  %v7153_v24 = vmul.f32 0.01, %v7070_v25  ;;  %v5061_v9 = vpop.permute.xlu1 %5060 }
 0x50a   : > { %v6389_v44 = vsel %vm3302_vm10, %v11977_v62, %v5061_v9 }
 0x50b   : > { %v7185_v53 = vsel %vm7121_vm15, %v7070_v25, %v7153_v24  ;;  %7775 = vmatmul.msk.bf16.gmra.mxu3 %vm3579_vm11, %v6647_v1  ;;  %v6894_v6 = vpop.f32.mrf.mxu1  ;;  %v7072_v47 = vpop.f32.mrf.mxu3  ;;  %v6422_v20 = vsel %vm6390_vm4, %v6389_v44, %v5189_v19  ;;  %vm12765_vm4 = vcmask 64512  }
 0x50c   : > { %v7217_v48 = vpack.c.bf16 %v7185_v53, %v7185_v53  ;;  %v6895_v21 = vadd.f32 %v12194_v12, %v6894_v6  ;;  %v2936_v4 = vsel %vm12765_vm4, %v2863_v27, %v12764_v37 }
 0x50d   : > { %v3009_v3 = vsel %vm2937_vm5, %v2936_v4, %v12766_v30 }
 0x50e   : > { %7249 = vst.msk [vmem:[%s11917_s10 + $0x4c] sm:$0xf] %vm4412_vm13, %v7217_v48  ;;  %v6984_v57 = vadd.f32 %v6983_v10, %v6895_v21  ;;  %v3082_v61 = vsel %vm3010_vm6, %v3009_v3, %v12768_v55 }
 0x510   : > { %v7073_v18 = vadd.f32 %v7072_v47, %v6984_v57  ;;  %v6985_v36 = vpop.f32.mrf.mxu2  ;;  %v2592_v15 = vpop.permute.xlu2 %2591 }
 0x511   : > { %v5301_v31 = vpop.permute.xlu1 %5300 }
 0x512   : > { %vm7122_vm1 = vcmp.ge.f32.partialorder %v7073_v18, 0.0  ;;  %v7154_v16 = vmul.f32 0.01, %v7073_v18  ;;  %v6470_v14 = vsel %vm6423_vm2, %v6422_v20, %v5301_v31  ;;  %vm12770_vm2 = vmmov %vm12765_vm4 }
 0x513   : > { %6918 = vmatmul.bf16.gmra.mxu1 %v6470_v14  ;;  %v6896_v58 = vpop.f32.mrf.mxu1  ;;  %v7074_v40 = vpop.f32.mrf.mxu3  ;;  %v2934_v5 = vsel %vm12770_vm2, %v2861_v60, %v12769_v34 }
 0x514   : > { %v7186_v63 = vsel %vm7122_vm1, %v7073_v18, %v7154_v16  ;;  %v6897_v62 = vadd.f32 %v12194_v12, %v6896_v58  ;;  %v3007_v19 = vsel %vm2937_vm5, %v2934_v5, %v12771_v23  ;;  %vm12774_vm5 = vmmov %vm12773_vm3 }
 0x515   : > { %v7218_v8 = vpack.c.bf16 %v7186_v63, %v7186_v63  ;;  %v3080_v11 = vsel %vm3010_vm6, %v3007_v19, %v12772_v45 }
 0x516   : > { %v6986_v56 = vadd.f32 %v6985_v36, %v6897_v62  ;;  %v3153_v17 = vsel %vm3083_vm8, %v3080_v11, %v1996_v43 }
 0x517   : > { %7250 = vst.msk [vmem:[%s11917_s10 + $0x50] sm:$0xf] %vm4412_vm13, %v7218_v8  ;;  %v3226_v1 = vsel %vm3156_vm7, %v3153_v17, %v2212_v13 }
 0x518   : > { %v7075_v33 = vadd.f32 %v7074_v40, %v6986_v56  ;;  %v3299_v10 = vsel %vm12774_vm5, %v3226_v1, %v2590_v0 }
 0x519   : > { %v1998_v59 = vpop.permute.xlu1 %1997  ;;  %v6988_v49 = vpop.f32.mrf.mxu2 }
 0x51a   : > { %vm7123_vm14 = vcmp.ge.f32.partialorder %v7075_v33, 0.0  ;;  %v7155_v38 = vmul.f32 0.01, %v7075_v33  ;;  %v3155_v22 = vsel %vm3083_vm8, %v3082_v61, %v1998_v59 }
 0x51b   : > { %v3228_v26 = vsel %vm3156_vm7, %v3155_v22, %v2214_v50 }
 0x51c   : > { %v7187_v7 = vsel %vm7123_vm14, %v7075_v33, %v7155_v38  ;;  %v3301_v46 = vsel %vm12773_vm3, %v3228_v26, %v2592_v15 }
 0x51d   : > { %v7219_v2 = vpack.c.bf16 %v7187_v7, %v7187_v7  ;;  %v6899_v41 = vpop.f32.mrf.mxu1  ;;  %v3374_v24 = vsel %vm3302_vm10, %v3301_v46, %v2772_v32 }
 0x51e   : > { %v6900_v25 = vadd.f32 %v12194_v12, %v6899_v41  ;;  %v3551_v48 = vshll.u32 %v3374_v24, 16 }
 0x51f   : > { %7251 = vst.msk [vmem:[%s11917_s10 + $0x54] sm:$0xf] %vm4412_vm13, %v7219_v2 }
 0x520   : > { %v7077_v9 = vpop.f32.mrf.mxu3  ;;  %v6989_v6 = vadd.f32 %v6988_v49, %v6900_v25  ;;  %v3553_v29 = vrot.slane %v3551_v48, 1 }
 0x521   : > { %v2770_v53 = vpop.permute.xlu1 %2769  ;;  %v6990_v20 = vpop.f32.mrf.mxu2 }
 0x522   : > { %v3372_v43 = vsel %vm3302_vm10, %v3299_v10, %v2770_v53  ;;  %v7078_v47 = vadd.f32 %v7077_v9, %v6989_v6 }
 0x523   : > { %v3547_v21 = vshll.u32 %v3372_v43, 16  ;;  %v3545_v44 = vshrl.u32 %v3372_v43, 16 }
 0x524   : > { %vm7124_vm6 = vcmp.ge.f32.partialorder %v7078_v47, 0.0  ;;  %v7156_v18 = vmul.f32 0.01, %v7078_v47 }
 0x525   : > { %v3549_v57 = vrot.slane %v3547_v21, 1  ;;  %v6901_v39 = vpop.f32.mrf.mxu1 }
 0x526   : > { %v7188_v31 = vsel %vm7124_vm6, %v7078_v47, %v7156_v18  ;;  %v6902_v0 = vadd.f32 %v12194_v12, %v6901_v39 }
 0x527   : > { %v3550_v13 = vor.u32 %v3549_v57, %v3545_v44  ;;  %v7220_v16 = vpack.c.bf16 %v7188_v31, %v7188_v31 }
 0x528   : > { %v7079_v14 = vpop.f32.mrf.mxu3  ;;  %v6991_v50 = vadd.f32 %v6990_v20, %v6902_v0 }
 0x529   : > { %v3554_v36 = vsel %vm719_vm0, %v3550_v13, %v3553_v29  ;;  %7252 = vst.msk [vmem:[%s11917_s10 + $0x58] sm:$0xf] %vm4412_vm13, %v7220_v16 }
 0x52a   : > { %7575 = vmatmul.msk.bf16.gmra.mxu0 %vm3579_vm11, %v3554_v36  ;;  %v7080_v58 = vadd.f32 %v7079_v14, %v6991_v50 }
 0x52b   : > { %v6993_v51 = vpop.f32.mrf.mxu2 }
 0x52c   : > { %vm7125_vm7 = vcmp.ge.f32.partialorder %v7080_v58, 0.0  ;;  %v7157_v63 = vmul.f32 0.01, %v7080_v58 }
 0x52e   : > { %v7189_v62 = vsel %vm7125_vm7, %v7080_v58, %v7157_v63 }
 0x52f   : > { %v7221_v42 = vpack.c.bf16 %v7189_v62, %v7189_v62 }
 0x530   : > { %v7082_v35 = vpop.f32.mrf.mxu3 }
 0x531   : > { %7253 = vst.msk [vmem:[%s11917_s10 + $0x5c] sm:$0xf] %vm4412_vm13, %v7221_v42 }
 0x532   : > { %v6904_v8 = vpop.f32.mrf.mxu1 }
 0x533   : > { %v6905_v28 = vadd.f32 %v12194_v12, %v6904_v8  ;;  %v6995_v40 = vpop.f32.mrf.mxu2 }
 0x535   : > { %v6994_v54 = vadd.f32 %v6993_v51, %v6905_v28 }
 0x537   : > { %v7083_v27 = vadd.f32 %v7082_v35, %v6994_v54 }
 0x538   : > { %v7084_v30 = vpop.f32.mrf.mxu3 }
 0x539   : > { %vm7126_vm0 = vcmp.ge.f32.partialorder %v7083_v27, 0.0  ;;  %v7158_v56 = vmul.f32 0.01, %v7083_v27 }
 0x53a   : > { %v6906_v37 = vpop.f32.mrf.mxu1 }
 0x53b   : > { %v7190_v4 = vsel %vm7126_vm0, %v7083_v27, %v7158_v56  ;;  %v6907_v3 = vadd.f32 %v12194_v12, %v6906_v37 }
 0x53c   : > { %v7222_v33 = vpack.c.bf16 %v7190_v4, %v7190_v4 }
 0x53d   : > { %v6996_v52 = vadd.f32 %v6995_v40, %v6907_v3 }
 0x53e   : > { %7254 = vst.msk [vmem:[%s11917_s10 + $0x60] sm:$0xf] %vm4412_vm13, %v7222_v33 }
 0x53f   : > { %v7085_v60 = vadd.f32 %v7084_v30, %v6996_v52 }
 0x540   : > { %v6998_v59 = vpop.f32.mrf.mxu2 }
 0x541   : > { %vm7127_vm8 = vcmp.ge.f32.partialorder %v7085_v60, 0.0  ;;  %v7159_v55 = vmul.f32 0.01, %v7085_v60 }
 0x543   : > { %v7191_v61 = vsel %vm7127_vm8, %v7085_v60, %v7159_v55  ;;  %v6909_v34 = vpop.f32.mrf.mxu1  ;;  %v7087_v22 = vpop.f32.mrf.mxu3 }
 0x544   : > { %v7223_v5 = vpack.c.bf16 %v7191_v61, %v7191_v61  ;;  %v6910_v38 = vadd.f32 %v12194_v12, %v6909_v34 }
 0x546   : > { %7255 = vst.msk [vmem:[%s11917_s10 + $0x64] sm:$0xf] %vm4412_vm13, %v7223_v5  ;;  %v6999_v15 = vadd.f32 %v6998_v59, %v6910_v38 }
 0x548   : > { %v7088_v23 = vadd.f32 %v7087_v22, %v6999_v15  ;;  %v7000_v17 = vpop.f32.mrf.mxu2 }
 0x54a   : > { %vm7128_vm10 = vcmp.ge.f32.partialorder %v7088_v23, 0.0  ;;  %v7160_v19 = vmul.f32 0.01, %v7088_v23 }
 0x54b   : > { %v6911_v26 = vpop.f32.mrf.mxu1  ;;  %v7089_v49 = vpop.f32.mrf.mxu3 }
 0x54c   : > { %v7192_v45 = vsel %vm7128_vm10, %v7088_v23, %v7160_v19  ;;  %v6912_v11 = vadd.f32 %v12194_v12, %v6911_v26 }
 0x54d   : > { %v7224_v7 = vpack.c.bf16 %v7192_v45, %v7192_v45 }
 0x54e   : > { %v7001_v2 = vadd.f32 %v7000_v17, %v6912_v11 }
 0x54f   : > { %7256 = vst.msk [vmem:[%s11917_s10 + $0x68] sm:$0xf] %vm4412_vm13, %v7224_v7 }
 0x550   : > { %v7090_v46 = vadd.f32 %v7089_v49, %v7001_v2 }
 0x552   : > { %vm7129_vm11 = vcmp.ge.f32.partialorder %v7090_v46, 0.0  ;;  %v7161_v32 = vmul.f32 0.01, %v7090_v46 }
 0x554   : > { %v7193_v41 = vsel %vm7129_vm11, %v7090_v46, %v7161_v32 }
 0x555   : > { %v7225_v25 = vpack.c.bf16 %v7193_v41, %v7193_v41 }
 0x557   : > { %7257 = vst.msk [vmem:[%s11917_s10 + $0x6c] sm:$0xf] %vm4412_vm13, %v7225_v25 }
 0x568   : > { %v6914_v1 = vpop.f32.mrf.mxu1 }
 0x569   : > { %v6915_v9 = vadd.f32 %v12194_v12, %v6914_v1 }
 0x570   : > { %v6916_v43 = vpop.f32.mrf.mxu1 }
 0x571   : > { %v6917_v47 = vadd.f32 %v12194_v12, %v6916_v43 }
 0x577   : > { %v7003_v24 = vpop.f32.mrf.mxu2 }
 0x578   : > { %v7004_v10 = vadd.f32 %v7003_v24, %v6915_v9 }
 0x57e   : > { %v7092_v53 = vpop.f32.mrf.mxu3 }
 0x57f   : > { %v7093_v6 = vadd.f32 %v7092_v53, %v7004_v10  ;;  %v7005_v21 = vpop.f32.mrf.mxu2 }
 0x580   : > { %v7006_v18 = vadd.f32 %v7005_v21, %v6917_v47 }
 0x581   : > { %vm7130_vm12 = vcmp.ge.f32.partialorder %v7093_v6, 0.0  ;;  %v7162_v48 = vmul.f32 0.01, %v7093_v6 }
 0x583   : > { %v7194_v44 = vsel %vm7130_vm12, %v7093_v6, %v7162_v48 }
 0x584   : > { %v7226_v57 = vpack.c.bf16 %v7194_v44, %v7194_v44 }
 0x586   : > { %7258 = vst.msk [vmem:[%s11917_s10 + $0x70] sm:$0xf] %vm4412_vm13, %v7226_v57  ;;  %v7094_v39 = vpop.f32.mrf.mxu3 }
 0x587   : > { %v7095_v29 = vadd.f32 %v7094_v39, %v7006_v18 }
 0x588   : > { %v7008_v0 = vpop.f32.mrf.mxu2 }
 0x589   : > { %vm7131_vm9 = vcmp.ge.f32.partialorder %v7095_v29, 0.0  ;;  %v7163_v13 = vmul.f32 0.01, %v7095_v29 }
 0x58b   : > { %v7195_v31 = vsel %vm7131_vm9, %v7095_v29, %v7163_v13 }
 0x58c   : > { %v7227_v20 = vpack.c.bf16 %v7195_v31, %v7195_v31 }
 0x58e   : > { %7259 = vst.msk [vmem:[%s11917_s10 + $0x74] sm:$0xf] %vm4412_vm13, %v7227_v20  ;;  %v7097_v50 = vpop.f32.mrf.mxu3 }
 0x590   : > { %v6919_v16 = vpop.f32.mrf.mxu1  ;;  %v7010_v8 = vpop.f32.mrf.mxu2 }
 0x591   : > { %v6920_v14 = vadd.f32 %v12194_v12, %v6919_v16 }
 0x593   : > { %v7009_v36 = vadd.f32 %v7008_v0, %v6920_v14 }
 0x595   : > { %v7098_v58 = vadd.f32 %v7097_v50, %v7009_v36 }
 0x596   : > { %v7099_v54 = vpop.f32.mrf.mxu3 }
 0x597   : > { %vm7132_vm15 = vcmp.ge.f32.partialorder %v7098_v58, 0.0  ;;  %v7164_v63 = vmul.f32 0.01, %v7098_v58 }
 0x598   : > { %v6921_v62 = vpop.f32.mrf.mxu1 }
 0x599   : > { %v7196_v42 = vsel %vm7132_vm15, %v7098_v58, %v7164_v63  ;;  %v6922_v51 = vadd.f32 %v12194_v12, %v6921_v62 }
 0x59a   : > { %v7228_v35 = vpack.c.bf16 %v7196_v42, %v7196_v42 }
 0x59b   : > { %v7011_v28 = vadd.f32 %v7010_v8, %v6922_v51 }
 0x59c   : > { %7260 = vst.msk [vmem:[%s11917_s10 + $0x78] sm:$0xf] %vm4412_vm13, %v7228_v35 }
 0x59d   : > { %v7100_v27 = vadd.f32 %v7099_v54, %v7011_v28 }
 0x59f   : > { %vm7133_vm1 = vcmp.ge.f32.partialorder %v7100_v27, 0.0  ;;  %v7165_v56 = vmul.f32 0.01, %v7100_v27 }
 0x5a1   : > { %v7197_v12 = vsel %vm7133_vm1, %v7100_v27, %v7165_v56 }
 0x5a2   : > { %v7229_v37 = vpack.c.bf16 %v7197_v12, %v7197_v12 }
 0x5a4   : > { %7261 = vst.msk [vmem:[%s11917_s10 + $0x7c] sm:$0xf] %vm4412_vm13, %v7229_v37 }
 0x5a5   : > { %8401 = shalt.err (!%p8398_p5)
}
 0x5a6   : > { %8224 = dma.vmem_to_hbm [thread:$0]  (%p8586_p4), %s7278_s29, 2048, %s7280_s7, %s7263_s21, %s8514_s15, %s8514_s15, %s8505_s12  }
 0x5a7   : > { %v3732_v4 = vpop.f32.mrf.mxu0 }
 0x5af   : > { %v3734_v40 = vpop.f32.mrf.mxu0 }
 0x5b0 PF: > { %p8230_p6 = scmp.ge.s32.totalorder %s8503_s23, 2  ;;  %s7294_s8 = sand.u32 1, %s8483_s18  }
 0x5b1   : > { %s7295_s10 = scalar_lea.sflag [#allocation4], %s7294_s8 }
 0x5b2   : > { %p8227_p7 = pnand %p8230_p6, %p8593_p8 }
 0x5b4   : > { %p8228_p9 = pneg %p8227_p7 }
 0x5b6   : > { %8427 = dma.done.wait (%p8228_p9), %s7295_s10, 2048  }
 0x5b7   : > { %8429 = vsyncadd (%p8228_p9), %s7295_s10, 4294965248  ;;  %s18_s23 = sadd.s32 1, %s8503_s23   ;;  %s12775_s18 = smov %s8487_s19 }
 0x5b8   : > { %p15_p10 = scmp.ge.s32.totalorder %s18_s23, 4   ;;  %s12776_s19 = smov %s8491_s20 }
 0x5b9   : > { %s12777_s20 = smov %s8599_s6  ;;  %s12778_s21 = smov %s8499_s22 }
 0x5ba   : > { %s12779_s22 = smov %s12781_s26  ;;  %17 = sbr.rel (!%p15_p10) target bundleno = 4 (0x4), region = 80 }
 0x5bf   :  { %7301 = vsyncpa [#allocation4], 1 }
 0x5c0   :  { %7303 = vsyncpa [#allocation4 + $0x1], 1 }

</bundles_post_ra>
